<compile_context>
chip_gen: v7x
topology: tpu7x:2x2x1
jax: 0.10.0
libtpu: 0.0.40
codegen_flags: <defaults>
</compile_context>

<pallas_src>
import math

import jax
import jax.numpy as jnp
from jax import lax
from jax.experimental import pallas as pl
from jax.experimental.pallas import tpu as pltpu

# --- model hyper-parameters (PyTorch PoseFormer defaults) --------------------
D_MODEL = 128                 # exactly one vreg lane width -> lane-dense
N_HEAD = 4
HEAD_DIM = D_MODEL // N_HEAD  # 32
D_FF = 256
LN_EPS = 1e-5
LANE = 128


# --- small helpers (pure jnp; used both in-kernel and in the reference) ------
def build_pe_table(d_model: int, max_len: int = 500) -> jnp.ndarray:
    """Sinusoidal table identical to PyTorch PositionalEncoding.__init__."""
    position = jnp.arange(max_len, dtype=jnp.float32)[:, None]
    div_term = jnp.exp(jnp.arange(0, d_model, 2, dtype=jnp.float32)
                       * (-math.log(10000.0) / d_model))
    angles = position * div_term                               # (max_len, d/2)
    pe = jnp.stack([jnp.sin(angles), jnp.cos(angles)], axis=-1)
    return pe.reshape(max_len, d_model)                        # even=sin, odd=cos


def _layernorm(x, g, b):
    mu = jnp.mean(x, axis=-1, keepdims=True)
    var = jnp.mean(jnp.square(x - mu), axis=-1, keepdims=True)
    return (x - mu) * lax.rsqrt(var + LN_EPS) * g + b


# --- the single fused kernel ---------------------------------------------------
def _poseformer_kernel(x_ref, w_in_ref, b_in_ref, g_in_ref, beta_in_ref,
                       cls_ref, pe_ref,
                       wqkv_ref, bqkv_ref, wo_ref, bo_ref, g1_ref, b1_ref,
                       wf1_ref, bf1_ref, wf2_ref, bf2_ref, g2_ref, b2_ref,
                       wfc_ref, bfc_ref, o_ref):
    """Full PoseFormer forward for ONE batch element (one grid step).

    input_proj + LayerNorm, cls/PE token assembly, num_layers post-LN
    TransformerEncoderLayers (MHA + relu FFN), and fc on the cls token — all
    fused so activations never leave VMEM between stages.

    TODO(synk): dropout (p=0.1) omitted — eval-mode identity semantics.
    """
    num_layers = wqkv_ref.shape[0]
    d = D_MODEL
    hd = HEAD_DIM
    scale = 1.0 / math.sqrt(hd)

    # ---- input projection + LayerNorm on the S frame tokens -----------------
    x = x_ref[0]                                                    # (S, In)
    h = jnp.dot(x, w_in_ref[...], preferred_element_type=jnp.float32) + b_in_ref[...]
    h = _layernorm(h, g_in_ref[...], beta_in_ref[...])

    # ---- token assembly: row 0 = cls + pe[0], rows 1..S = frames + pe[1:S+1] -
    # cls_ref already has pe[0] folded in (parameter-only precompute).
    tok = jnp.concatenate([cls_ref[...], h + pe_ref[...]], axis=0)  # (T, D)

    # ---- transformer encoder layers (post-LN, relu FFN) ---------------------
    for l in range(num_layers):
        qkv = (jnp.dot(tok, wqkv_ref[l], preferred_element_type=jnp.float32)
               + bqkv_ref[l])                                       # (T, 3D)

        heads = []
        for hi in range(N_HEAD):                                    # static unroll
            qh = qkv[:, hi * hd:(hi + 1) * hd]                      # (T, hd)
            kh = qkv[:, d + hi * hd:d + (hi + 1) * hd]
            vh = qkv[:, 2 * d + hi * hd:2 * d + (hi + 1) * hd]
            # q @ k^T without an explicit transpose (contract on dim 1 of both)
            s = lax.dot_general(qh, kh, (((1,), (1,)), ((), ())),
                                preferred_element_type=jnp.float32) * scale
            s = s - jnp.max(s, axis=-1, keepdims=True)
            e = jnp.exp(s)
            # divide -> EUP reciprocal (approx) + VPU multiply
            p = e * pl.reciprocal(jnp.sum(e, axis=-1, keepdims=True), approx=True)
            heads.append(jnp.dot(p, vh, preferred_element_type=jnp.float32))

        # one K=128 output projection instead of 4 K=32 partial matmuls
        attn = jnp.concatenate(heads, axis=-1)                      # (T, D)
        attn = (jnp.dot(attn, wo_ref[l], preferred_element_type=jnp.float32)
                + bo_ref[l])

        x1 = _layernorm(tok + attn, g1_ref[l], b1_ref[l])
        f = jnp.maximum(
            jnp.dot(x1, wf1_ref[l], preferred_element_type=jnp.float32) + bf1_ref[l],
            0.0)
        f = jnp.dot(f, wf2_ref[l], preferred_element_type=jnp.float32) + bf2_ref[l]
        tok = _layernorm(x1 + f, g2_ref[l], b2_ref[l])

    # ---- classifier on the cls token (lane-padded output -> dense stores) ----
    logits = (jnp.dot(tok[0:1, :], wfc_ref[...], preferred_element_type=jnp.float32)
              + bfc_ref[...])                                       # (1, C_pad)
    o_ref[0] = logits


# --- wrapper --------------------------------------------------------------------
def poseformer_forward(params, x):
    B, S, In = x.shape
    T = S + 1
    D = D_MODEL
    L = params["wqkv"].shape[0]
    C = params["w_fc"].shape[1]
    C_pad = params["w_fc_pad"].shape[1]

    pe_frames = params["pe"][1:T]                                   # (S, D) static slice

    args = (x,
            params["w_in"], params["b_in"], params["g_in"], params["beta_in"],
            params["cls_pe"], pe_frames,
            params["wqkv"], params["bqkv"], params["wo"], params["bo"],
            params["g1"], params["b1"], params["wf1"], params["bf1"],
            params["wf2"], params["bf2"], params["g2"], params["b2"],
            params["w_fc_pad"], params["b_fc_pad"])

    def _resident(a):
        """Full-array block kept resident across the batch grid (constant index)."""
        zeros = (0,) * a.ndim
        return pl.BlockSpec(a.shape, lambda b, _z=zeros: _z)

    in_specs = [pl.BlockSpec((1, S, In), lambda b: (b, 0, 0))]
    in_specs += [_resident(a) for a in args[1:]]

    per_layer = (2 * T * D * 3 * D                  # qkv projection
                 + 4 * N_HEAD * T * T * HEAD_DIM    # qk^T and p@v
                 + 2 * T * D * D                    # output projection
                 + 4 * T * D * D_FF)                # FFN
    flops = B * (2 * T * In * D + L * per_layer + 2 * D * C_pad)
    trans = B * L * N_HEAD * T * T                  # softmax exps (dominant)
    nbytes = sum(int(a.size) * a.dtype.itemsize for a in args) + B * C_pad * 4

    out = pl.pallas_call(
        _poseformer_kernel,
        out_shape=jax.ShapeDtypeStruct((B, 1, C_pad), jnp.float32),
        grid=(B,),
        in_specs=in_specs,
        out_specs=pl.BlockSpec((1, 1, C_pad), lambda b: (b, 0, 0)),
        compiler_params=pltpu.CompilerParams(
            dimension_semantics=("parallel",),      # both TCs on v7x; no-op on v5e/v6e
            vmem_limit_bytes=32 * 1024 * 1024),
        cost_estimate=pl.CostEstimate(flops=int(flops), transcendentals=int(trans),
                                      bytes_accessed=int(nbytes)),
    )(*args)
    return out[:, 0, :C]


# --- parameters -----------------------------------------------------------------
def init_params(key, input_size=132, num_classes=419, num_layers=4, max_len=500):
    keys = iter(jax.random.split(key, 64))
    scale = 0.05

    def rnd(shape):
        return scale * jax.random.normal(next(keys), shape, dtype=jnp.float32)

    pe = build_pe_table(D_MODEL, max_len)
    cls = rnd((1, D_MODEL))
    params = {
        "w_in": rnd((input_size, D_MODEL)),
        "b_in": rnd((1, D_MODEL)),
        "g_in": jnp.ones((1, D_MODEL), jnp.float32),
        "beta_in": jnp.zeros((1, D_MODEL), jnp.float32),
        "cls": cls,
        "pe": pe,
        "cls_pe": cls + pe[0:1],          # parameter-only precompute (cls + PE row 0)
        "w_fc": rnd((D_MODEL, num_classes)),
        "b_fc": rnd((1, num_classes)),
    }
    # classifier lane-padded ONCE here (not per forward call)
    c_pad = ((num_classes + LANE - 1) // LANE) * LANE
    params["w_fc_pad"] = jnp.pad(params["w_fc"], ((0, 0), (0, c_pad - num_classes)))
    params["b_fc_pad"] = jnp.pad(params["b_fc"], ((0, 0), (0, c_pad - num_classes)))

    # per-layer weights stacked along a leading layer axis -> one fused kernel
    def stacked(shape):
        return jnp.stack([rnd(shape) for _ in range(num_layers)], axis=0)

    params.update({
        "wqkv": stacked((D_MODEL, 3 * D_MODEL)),
        "bqkv": stacked((1, 3 * D_MODEL)),
        "wo": stacked((D_MODEL, D_MODEL)),
        "bo": stacked((1, D_MODEL)),
        "g1": jnp.ones((num_layers, 1, D_MODEL), jnp.float32),
        "b1": jnp.zeros((num_layers, 1, D_MODEL), jnp.float32),
        "wf1": stacked((D_MODEL, D_FF)),
        "bf1": stacked((1, D_FF)),
        "wf2": stacked((D_FF, D_MODEL)),
        "bf2": stacked((1, D_MODEL)),
        "g2": jnp.ones((num_layers, 1, D_MODEL), jnp.float32),
        "b2": jnp.zeros((num_layers, 1, D_MODEL), jnp.float32),
    })
    return params


# --- pure-JAX reference (for correctness checking) -------------------------------
def reference_forward(params, x):
    B, S, In = x.shape
    D = D_MODEL
    h = x.reshape(B * S, In) @ params["w_in"] + params["b_in"]
    h = _layernorm(h, params["g_in"], params["beta_in"]).reshape(B, S, D)
    cls = jnp.broadcast_to(params["cls"][None], (B, 1, D))
    h = jnp.concatenate([cls, h], axis=1)
    h = h + params["pe"][None, :S + 1, :]
    scale = 1.0 / math.sqrt(HEAD_DIM)
    L = params["wqkv"].shape[0]
    for l in range(L):
        T = h.shape[1]
        xf = h.reshape(B * T, D)
        qkv = xf @ params["wqkv"][l] + params["bqkv"][l]
        q, k, v = jnp.split(qkv, 3, axis=-1)

        def split_heads(a):
            return a.reshape(B, T, N_HEAD, HEAD_DIM).transpose(0, 2, 1, 3)

        q, k, v = split_heads(q), split_heads(k), split_heads(v)
        s = jnp.einsum("bhqd,bhkd->bhqk", q, k) * scale
        a = jax.nn.softmax(s, axis=-1)
        o = (jnp.einsum("bhqk,bhkd->bhqd", a, v)
             .transpose(0, 2, 1, 3).reshape(B * T, D))
        attn = o @ params["wo"][l] + params["bo"][l]
        x1 = _layernorm(xf + attn, params["g1"][l], params["b1"][l])
        f = (jax.nn.relu(x1 @ params["wf1"][l] + params["bf1"][l])
             @ params["wf2"][l] + params["bf2"][l])
        h = _layernorm(x1 + f, params["g2"][l], params["b2"][l]).reshape(B, T, D)
    return h[:, 0, :] @ params["w_fc"] + params["b_fc"]


if __name__ == "__main__":
    INPUT_SIZE = 132
    NUM_CLASSES = 419
    NUM_LAYERS = 4
    batch, seq = 2, 8

    key = jax.random.PRNGKey(0)
    k_param, k_x = jax.random.split(key)
    params = init_params(k_param, input_size=INPUT_SIZE, num_classes=NUM_CLASSES,
                         num_layers=NUM_LAYERS)
    x = jax.random.normal(k_x, (batch, seq, INPUT_SIZE), dtype=jnp.float32)

    logits = jax.jit(poseformer_forward)(params, x)
    logits = jax.block_until_ready(logits)
    assert logits.shape == (batch, NUM_CLASSES), logits.shape

    with jax.default_matmul_precision("highest"):
        ref = reference_forward(params, x)
    err = float(jnp.max(jnp.abs(logits - ref)))
    # Tolerance is dominated by the EUP approximate-reciprocal softmax
    # denominator (~1e-3-level drift in attention weights); exact math would
    # allow ~1e-4.
    assert err < 1e-2, f"mismatch vs pure-JAX reference: max abs err {err}"

    print("KERNEL_OK")
</pallas_src>

<mosaic_0001>
module attributes {stable_mosaic.version = 11 : i64} {
  func.func @_poseformer_kernel(%arg0: i32, %arg1: memref<1x8x132xf32, #tpu.memory_space<vmem>>, %arg2: memref<132x128xf32, #tpu.memory_space<vmem>>, %arg3: memref<1x128xf32, #tpu.memory_space<vmem>>, %arg4: memref<1x128xf32, #tpu.memory_space<vmem>>, %arg5: memref<1x128xf32, #tpu.memory_space<vmem>>, %arg6: memref<1x128xf32, #tpu.memory_space<vmem>>, %arg7: memref<8x128xf32, #tpu.memory_space<vmem>>, %arg8: memref<4x128x384xf32, #tpu.memory_space<vmem>>, %arg9: memref<4x1x384xf32, #tpu.memory_space<vmem>>, %arg10: memref<4x128x128xf32, #tpu.memory_space<vmem>>, %arg11: memref<4x1x128xf32, #tpu.memory_space<vmem>>, %arg12: memref<4x1x128xf32, #tpu.memory_space<vmem>>, %arg13: memref<4x1x128xf32, #tpu.memory_space<vmem>>, %arg14: memref<4x128x256xf32, #tpu.memory_space<vmem>>, %arg15: memref<4x1x256xf32, #tpu.memory_space<vmem>>, %arg16: memref<4x256x128xf32, #tpu.memory_space<vmem>>, %arg17: memref<4x1x128xf32, #tpu.memory_space<vmem>>, %arg18: memref<4x1x128xf32, #tpu.memory_space<vmem>>, %arg19: memref<4x1x128xf32, #tpu.memory_space<vmem>>, %arg20: memref<128x512xf32, #tpu.memory_space<vmem>>, %arg21: memref<1x512xf32, #tpu.memory_space<vmem>>, %arg22: memref<1x1x512xf32, #tpu.memory_space<vmem>>) attributes {dimension_semantics = [#tpu.dimension_semantics<parallel>], iteration_bounds = array<i64: 2>, scalar_prefetch = 0 : i64, scratch_operands = 0 : i64, tpu.core_type = #tpu.core_type<tc>, window_params = [{transform_indices = @transform_0, window_bounds = array<i64: 1, 8, 132>}, {pipeline_mode = #tpu.pipeline_mode<synchronous>, transform_indices = @transform_1, window_bounds = array<i64: 132, 128>}, {pipeline_mode = #tpu.pipeline_mode<synchronous>, transform_indices = @transform_2, window_bounds = array<i64: 1, 128>}, {pipeline_mode = #tpu.pipeline_mode<synchronous>, transform_indices = @transform_3, window_bounds = array<i64: 1, 128>}, {pipeline_mode = #tpu.pipeline_mode<synchronous>, transform_indices = @transform_4, window_bounds = array<i64: 1, 128>}, {pipeline_mode = #tpu.pipeline_mode<synchronous>, transform_indices = @transform_5, window_bounds = array<i64: 1, 128>}, {pipeline_mode = #tpu.pipeline_mode<synchronous>, transform_indices = @transform_6, window_bounds = array<i64: 8, 128>}, {pipeline_mode = #tpu.pipeline_mode<synchronous>, transform_indices = @transform_7, window_bounds = array<i64: 4, 128, 384>}, {pipeline_mode = #tpu.pipeline_mode<synchronous>, transform_indices = @transform_8, window_bounds = array<i64: 4, 1, 384>}, {pipeline_mode = #tpu.pipeline_mode<synchronous>, transform_indices = @transform_9, window_bounds = array<i64: 4, 128, 128>}, {pipeline_mode = #tpu.pipeline_mode<synchronous>, transform_indices = @transform_10, window_bounds = array<i64: 4, 1, 128>}, {pipeline_mode = #tpu.pipeline_mode<synchronous>, transform_indices = @transform_11, window_bounds = array<i64: 4, 1, 128>}, {pipeline_mode = #tpu.pipeline_mode<synchronous>, transform_indices = @transform_12, window_bounds = array<i64: 4, 1, 128>}, {pipeline_mode = #tpu.pipeline_mode<synchronous>, transform_indices = @transform_13, window_bounds = array<i64: 4, 128, 256>}, {pipeline_mode = #tpu.pipeline_mode<synchronous>, transform_indices = @transform_14, window_bounds = array<i64: 4, 1, 256>}, {pipeline_mode = #tpu.pipeline_mode<synchronous>, transform_indices = @transform_15, window_bounds = array<i64: 4, 256, 128>}, {pipeline_mode = #tpu.pipeline_mode<synchronous>, transform_indices = @transform_16, window_bounds = array<i64: 4, 1, 128>}, {pipeline_mode = #tpu.pipeline_mode<synchronous>, transform_indices = @transform_17, window_bounds = array<i64: 4, 1, 128>}, {pipeline_mode = #tpu.pipeline_mode<synchronous>, transform_indices = @transform_18, window_bounds = array<i64: 4, 1, 128>}, {pipeline_mode = #tpu.pipeline_mode<synchronous>, transform_indices = @transform_19, window_bounds = array<i64: 128, 512>}, {pipeline_mode = #tpu.pipeline_mode<synchronous>, transform_indices = @transform_20, window_bounds = array<i64: 1, 512>}, {transform_indices = @transform_21, window_bounds = array<i64: 1, 1, 512>}]} {
    %c0 = arith.constant 0 : index
    %c0_0 = arith.constant 0 : index
    %c0_1 = arith.constant 0 : index
    %0 = vector.load %arg1[%c0, %c0_0, %c0_1] : memref<1x8x132xf32, #tpu.memory_space<vmem>>, vector<1x8x132xf32>
    %1 = vector.shape_cast %0 : vector<1x8x132xf32> to vector<8x132xf32>
    %c0_2 = arith.constant 0 : index
    %c0_3 = arith.constant 0 : index
    %2 = vector.load %arg2[%c0_2, %c0_3] : memref<132x128xf32, #tpu.memory_space<vmem>>, vector<132x128xf32>
    %cst = arith.constant dense<0.000000e+00> : vector<8x128xf32>
    %3 = tpu.matmul %1, %2, %cst {dimension_numbers = #tpu.dot_dimension_numbers<[1], [0], [0], [1], [0, 0, 1, 1], [], []>} : vector<8x132xf32>, vector<132x128xf32>, vector<8x128xf32> -> vector<8x128xf32>
    %c0_4 = arith.constant 0 : index
    %c0_5 = arith.constant 0 : index
    %4 = vector.load %arg3[%c0_4, %c0_5] : memref<1x128xf32, #tpu.memory_space<vmem>>, vector<1x128xf32>
    %5 = vector.broadcast %4 : vector<1x128xf32> to vector<8x128xf32>
    %6 = arith.addf %3, %5 : vector<8x128xf32>
    %c0_6 = arith.constant 0 : index
    %c0_7 = arith.constant 0 : index
    %7 = vector.load %arg4[%c0_6, %c0_7] : memref<1x128xf32, #tpu.memory_space<vmem>>, vector<1x128xf32>
    %c0_8 = arith.constant 0 : index
    %c0_9 = arith.constant 0 : index
    %8 = vector.load %arg5[%c0_8, %c0_9] : memref<1x128xf32, #tpu.memory_space<vmem>>, vector<1x128xf32>
    %cst_10 = arith.constant dense<0.000000e+00> : vector<8xf32>
    %9 = vector.multi_reduction <add>, %6, %cst_10 [1] : vector<8x128xf32> to vector<8xf32>
    %10 = vector.shape_cast %9 : vector<8xf32> to vector<8x1xf32>
    %cst_11 = arith.constant 1.280000e+02 : f32
    %11 = vector.broadcast %cst_11 : f32 to vector<8x1xf32>
    %12 = arith.divf %10, %11 : vector<8x1xf32>
    %13 = vector.broadcast %12 : vector<8x1xf32> to vector<8x128xf32>
    %14 = arith.subf %6, %13 : vector<8x128xf32>
    %15 = arith.mulf %14, %14 : vector<8x128xf32>
    %cst_12 = arith.constant dense<0.000000e+00> : vector<8xf32>
    %16 = vector.multi_reduction <add>, %15, %cst_12 [1] : vector<8x128xf32> to vector<8xf32>
    %17 = vector.shape_cast %16 : vector<8xf32> to vector<8x1xf32>
    %cst_13 = arith.constant 1.280000e+02 : f32
    %18 = vector.broadcast %cst_13 : f32 to vector<8x1xf32>
    %19 = arith.divf %17, %18 : vector<8x1xf32>
    %20 = vector.broadcast %12 : vector<8x1xf32> to vector<8x128xf32>
    %21 = arith.subf %6, %20 : vector<8x128xf32>
    %cst_14 = arith.constant 9.99999974E-6 : f32
    %22 = vector.broadcast %cst_14 : f32 to vector<8x1xf32>
    %23 = arith.addf %19, %22 : vector<8x1xf32>
    %24 = math.rsqrt %23 : vector<8x1xf32>
    %25 = vector.broadcast %24 : vector<8x1xf32> to vector<8x128xf32>
    %26 = arith.mulf %21, %25 : vector<8x128xf32>
    %27 = vector.broadcast %7 : vector<1x128xf32> to vector<8x128xf32>
    %28 = arith.mulf %26, %27 : vector<8x128xf32>
    %29 = vector.broadcast %8 : vector<1x128xf32> to vector<8x128xf32>
    %30 = arith.addf %28, %29 : vector<8x128xf32>
    %c0_15 = arith.constant 0 : index
    %c0_16 = arith.constant 0 : index
    %31 = vector.load %arg6[%c0_15, %c0_16] : memref<1x128xf32, #tpu.memory_space<vmem>>, vector<1x128xf32>
    %c0_17 = arith.constant 0 : index
    %c0_18 = arith.constant 0 : index
    %32 = vector.load %arg7[%c0_17, %c0_18] : memref<8x128xf32, #tpu.memory_space<vmem>>, vector<8x128xf32>
    %33 = arith.addf %30, %32 : vector<8x128xf32>
    %34 = tpu.concatenate %31, %33 in 0 : vector<1x128xf32>, vector<8x128xf32> -> vector<9x128xf32>
    %c0_19 = arith.constant 0 : index
    %c0_20 = arith.constant 0 : index
    %c0_21 = arith.constant 0 : index
    %35 = vector.load %arg8[%c0_19, %c0_20, %c0_21] : memref<4x128x384xf32, #tpu.memory_space<vmem>>, vector<1x128x384xf32>
    %36 = vector.shape_cast %35 : vector<1x128x384xf32> to vector<128x384xf32>
    %cst_22 = arith.constant dense<0.000000e+00> : vector<9x384xf32>
    %37 = tpu.matmul %34, %36, %cst_22 {dimension_numbers = #tpu.dot_dimension_numbers<[1], [0], [0], [1], [0, 0, 1, 1], [], []>} : vector<9x128xf32>, vector<128x384xf32>, vector<9x384xf32> -> vector<9x384xf32>
    %c0_23 = arith.constant 0 : index
    %c0_24 = arith.constant 0 : index
    %c0_25 = arith.constant 0 : index
    %38 = vector.load %arg9[%c0_23, %c0_24, %c0_25] : memref<4x1x384xf32, #tpu.memory_space<vmem>>, vector<1x1x384xf32>
    %39 = vector.shape_cast %38 : vector<1x1x384xf32> to vector<1x384xf32>
    %40 = vector.broadcast %39 : vector<1x384xf32> to vector<9x384xf32>
    %41 = arith.addf %37, %40 : vector<9x384xf32>
    %42 = vector.extract_strided_slice %41 {offsets = [0, 0], sizes = [9, 32], strides = [1, 1]} : vector<9x384xf32> to vector<9x32xf32>
    %43 = vector.extract_strided_slice %41 {offsets = [0, 128], sizes = [9, 32], strides = [1, 1]} : vector<9x384xf32> to vector<9x32xf32>
    %44 = vector.extract_strided_slice %41 {offsets = [0, 256], sizes = [9, 32], strides = [1, 1]} : vector<9x384xf32> to vector<9x32xf32>
    %cst_26 = arith.constant dense<0.000000e+00> : vector<9x9xf32>
    %45 = tpu.matmul %42, %43, %cst_26 {dimension_numbers = #tpu.dot_dimension_numbers<[1], [1], [0], [0], [0, 0, 1, 0], [], []>} : vector<9x32xf32>, vector<9x32xf32>, vector<9x9xf32> -> vector<9x9xf32>
    %cst_27 = arith.constant 0.176776692 : f32
    %46 = vector.broadcast %cst_27 : f32 to vector<9x9xf32>
    %47 = arith.mulf %45, %46 : vector<9x9xf32>
    %cst_28 = arith.constant dense<0xFF800000> : vector<9xf32>
    %48 = vector.multi_reduction <maximumf>, %47, %cst_28 [1] : vector<9x9xf32> to vector<9xf32>
    %49 = vector.shape_cast %48 : vector<9xf32> to vector<9x1xf32>
    %50 = vector.broadcast %49 : vector<9x1xf32> to vector<9x9xf32>
    %51 = arith.subf %47, %50 : vector<9x9xf32>
    %52 = math.exp %51 : vector<9x9xf32>
    %cst_29 = arith.constant dense<0.000000e+00> : vector<9xf32>
    %53 = vector.multi_reduction <add>, %52, %cst_29 [1] : vector<9x9xf32> to vector<9xf32>
    %54 = vector.shape_cast %53 : vector<9xf32> to vector<9x1xf32>
    %55 = tpu.reciprocal %54 {approx = true} : vector<9x1xf32> -> vector<9x1xf32>
    %56 = vector.broadcast %55 : vector<9x1xf32> to vector<9x9xf32>
    %57 = arith.mulf %52, %56 : vector<9x9xf32>
    %cst_30 = arith.constant dense<0.000000e+00> : vector<9x32xf32>
    %58 = tpu.matmul %57, %44, %cst_30 {dimension_numbers = #tpu.dot_dimension_numbers<[1], [0], [0], [1], [0, 0, 1, 1], [], []>} : vector<9x9xf32>, vector<9x32xf32>, vector<9x32xf32> -> vector<9x32xf32>
    %59 = vector.extract_strided_slice %41 {offsets = [0, 32], sizes = [9, 32], strides = [1, 1]} : vector<9x384xf32> to vector<9x32xf32>
    %60 = vector.extract_strided_slice %41 {offsets = [0, 160], sizes = [9, 32], strides = [1, 1]} : vector<9x384xf32> to vector<9x32xf32>
    %61 = vector.extract_strided_slice %41 {offsets = [0, 288], sizes = [9, 32], strides = [1, 1]} : vector<9x384xf32> to vector<9x32xf32>
    %cst_31 = arith.constant dense<0.000000e+00> : vector<9x9xf32>
    %62 = tpu.matmul %59, %60, %cst_31 {dimension_numbers = #tpu.dot_dimension_numbers<[1], [1], [0], [0], [0, 0, 1, 0], [], []>} : vector<9x32xf32>, vector<9x32xf32>, vector<9x9xf32> -> vector<9x9xf32>
    %cst_32 = arith.constant 0.176776692 : f32
    %63 = vector.broadcast %cst_32 : f32 to vector<9x9xf32>
    %64 = arith.mulf %62, %63 : vector<9x9xf32>
    %cst_33 = arith.constant dense<0xFF800000> : vector<9xf32>
    %65 = vector.multi_reduction <maximumf>, %64, %cst_33 [1] : vector<9x9xf32> to vector<9xf32>
    %66 = vector.shape_cast %65 : vector<9xf32> to vector<9x1xf32>
    %67 = vector.broadcast %66 : vector<9x1xf32> to vector<9x9xf32>
    %68 = arith.subf %64, %67 : vector<9x9xf32>
    %69 = math.exp %68 : vector<9x9xf32>
    %cst_34 = arith.constant dense<0.000000e+00> : vector<9xf32>
    %70 = vector.multi_reduction <add>, %69, %cst_34 [1] : vector<9x9xf32> to vector<9xf32>
    %71 = vector.shape_cast %70 : vector<9xf32> to vector<9x1xf32>
    %72 = tpu.reciprocal %71 {approx = true} : vector<9x1xf32> -> vector<9x1xf32>
    %73 = vector.broadcast %72 : vector<9x1xf32> to vector<9x9xf32>
    %74 = arith.mulf %69, %73 : vector<9x9xf32>
    %cst_35 = arith.constant dense<0.000000e+00> : vector<9x32xf32>
    %75 = tpu.matmul %74, %61, %cst_35 {dimension_numbers = #tpu.dot_dimension_numbers<[1], [0], [0], [1], [0, 0, 1, 1], [], []>} : vector<9x9xf32>, vector<9x32xf32>, vector<9x32xf32> -> vector<9x32xf32>
    %76 = vector.extract_strided_slice %41 {offsets = [0, 64], sizes = [9, 32], strides = [1, 1]} : vector<9x384xf32> to vector<9x32xf32>
    %77 = vector.extract_strided_slice %41 {offsets = [0, 192], sizes = [9, 32], strides = [1, 1]} : vector<9x384xf32> to vector<9x32xf32>
    %78 = vector.extract_strided_slice %41 {offsets = [0, 320], sizes = [9, 32], strides = [1, 1]} : vector<9x384xf32> to vector<9x32xf32>
    %cst_36 = arith.constant dense<0.000000e+00> : vector<9x9xf32>
    %79 = tpu.matmul %76, %77, %cst_36 {dimension_numbers = #tpu.dot_dimension_numbers<[1], [1], [0], [0], [0, 0, 1, 0], [], []>} : vector<9x32xf32>, vector<9x32xf32>, vector<9x9xf32> -> vector<9x9xf32>
    %cst_37 = arith.constant 0.176776692 : f32
    %80 = vector.broadcast %cst_37 : f32 to vector<9x9xf32>
    %81 = arith.mulf %79, %80 : vector<9x9xf32>
    %cst_38 = arith.constant dense<0xFF800000> : vector<9xf32>
    %82 = vector.multi_reduction <maximumf>, %81, %cst_38 [1] : vector<9x9xf32> to vector<9xf32>
    %83 = vector.shape_cast %82 : vector<9xf32> to vector<9x1xf32>
    %84 = vector.broadcast %83 : vector<9x1xf32> to vector<9x9xf32>
    %85 = arith.subf %81, %84 : vector<9x9xf32>
    %86 = math.exp %85 : vector<9x9xf32>
    %cst_39 = arith.constant dense<0.000000e+00> : vector<9xf32>
    %87 = vector.multi_reduction <add>, %86, %cst_39 [1] : vector<9x9xf32> to vector<9xf32>
    %88 = vector.shape_cast %87 : vector<9xf32> to vector<9x1xf32>
    %89 = tpu.reciprocal %88 {approx = true} : vector<9x1xf32> -> vector<9x1xf32>
    %90 = vector.broadcast %89 : vector<9x1xf32> to vector<9x9xf32>
    %91 = arith.mulf %86, %90 : vector<9x9xf32>
    %cst_40 = arith.constant dense<0.000000e+00> : vector<9x32xf32>
    %92 = tpu.matmul %91, %78, %cst_40 {dimension_numbers = #tpu.dot_dimension_numbers<[1], [0], [0], [1], [0, 0, 1, 1], [], []>} : vector<9x9xf32>, vector<9x32xf32>, vector<9x32xf32> -> vector<9x32xf32>
    %93 = vector.extract_strided_slice %41 {offsets = [0, 96], sizes = [9, 32], strides = [1, 1]} : vector<9x384xf32> to vector<9x32xf32>
    %94 = vector.extract_strided_slice %41 {offsets = [0, 224], sizes = [9, 32], strides = [1, 1]} : vector<9x384xf32> to vector<9x32xf32>
    %95 = vector.extract_strided_slice %41 {offsets = [0, 352], sizes = [9, 32], strides = [1, 1]} : vector<9x384xf32> to vector<9x32xf32>
    %cst_41 = arith.constant dense<0.000000e+00> : vector<9x9xf32>
    %96 = tpu.matmul %93, %94, %cst_41 {dimension_numbers = #tpu.dot_dimension_numbers<[1], [1], [0], [0], [0, 0, 1, 0], [], []>} : vector<9x32xf32>, vector<9x32xf32>, vector<9x9xf32> -> vector<9x9xf32>
    %cst_42 = arith.constant 0.176776692 : f32
    %97 = vector.broadcast %cst_42 : f32 to vector<9x9xf32>
    %98 = arith.mulf %96, %97 : vector<9x9xf32>
    %cst_43 = arith.constant dense<0xFF800000> : vector<9xf32>
    %99 = vector.multi_reduction <maximumf>, %98, %cst_43 [1] : vector<9x9xf32> to vector<9xf32>
    %100 = vector.shape_cast %99 : vector<9xf32> to vector<9x1xf32>
    %101 = vector.broadcast %100 : vector<9x1xf32> to vector<9x9xf32>
    %102 = arith.subf %98, %101 : vector<9x9xf32>
    %103 = math.exp %102 : vector<9x9xf32>
    %cst_44 = arith.constant dense<0.000000e+00> : vector<9xf32>
    %104 = vector.multi_reduction <add>, %103, %cst_44 [1] : vector<9x9xf32> to vector<9xf32>
    %105 = vector.shape_cast %104 : vector<9xf32> to vector<9x1xf32>
    %106 = tpu.reciprocal %105 {approx = true} : vector<9x1xf32> -> vector<9x1xf32>
    %107 = vector.broadcast %106 : vector<9x1xf32> to vector<9x9xf32>
    %108 = arith.mulf %103, %107 : vector<9x9xf32>
    %cst_45 = arith.constant dense<0.000000e+00> : vector<9x32xf32>
    %109 = tpu.matmul %108, %95, %cst_45 {dimension_numbers = #tpu.dot_dimension_numbers<[1], [0], [0], [1], [0, 0, 1, 1], [], []>} : vector<9x9xf32>, vector<9x32xf32>, vector<9x32xf32> -> vector<9x32xf32>
    %110 = tpu.concatenate %58, %75, %92, %109 in 1 : vector<9x32xf32>, vector<9x32xf32>, vector<9x32xf32>, vector<9x32xf32> -> vector<9x128xf32>
    %c0_46 = arith.constant 0 : index
    %c0_47 = arith.constant 0 : index
    %c0_48 = arith.constant 0 : index
    %111 = vector.load %arg10[%c0_46, %c0_47, %c0_48] : memref<4x128x128xf32, #tpu.memory_space<vmem>>, vector<1x128x128xf32>
    %112 = vector.shape_cast %111 : vector<1x128x128xf32> to vector<128x128xf32>
    %cst_49 = arith.constant dense<0.000000e+00> : vector<9x128xf32>
    %113 = tpu.matmul %110, %112, %cst_49 {dimension_numbers = #tpu.dot_dimension_numbers<[1], [0], [0], [1], [0, 0, 1, 1], [], []>} : vector<9x128xf32>, vector<128x128xf32>, vector<9x128xf32> -> vector<9x128xf32>
    %c0_50 = arith.constant 0 : index
    %c0_51 = arith.constant 0 : index
    %c0_52 = arith.constant 0 : index
    %114 = vector.load %arg11[%c0_50, %c0_51, %c0_52] : memref<4x1x128xf32, #tpu.memory_space<vmem>>, vector<1x1x128xf32>
    %115 = vector.shape_cast %114 : vector<1x1x128xf32> to vector<1x128xf32>
    %116 = vector.broadcast %115 : vector<1x128xf32> to vector<9x128xf32>
    %117 = arith.addf %113, %116 : vector<9x128xf32>
    %118 = arith.addf %34, %117 : vector<9x128xf32>
    %c0_53 = arith.constant 0 : index
    %c0_54 = arith.constant 0 : index
    %c0_55 = arith.constant 0 : index
    %119 = vector.load %arg12[%c0_53, %c0_54, %c0_55] : memref<4x1x128xf32, #tpu.memory_space<vmem>>, vector<1x1x128xf32>
    %120 = vector.shape_cast %119 : vector<1x1x128xf32> to vector<1x128xf32>
    %c0_56 = arith.constant 0 : index
    %c0_57 = arith.constant 0 : index
    %c0_58 = arith.constant 0 : index
    %121 = vector.load %arg13[%c0_56, %c0_57, %c0_58] : memref<4x1x128xf32, #tpu.memory_space<vmem>>, vector<1x1x128xf32>
    %122 = vector.shape_cast %121 : vector<1x1x128xf32> to vector<1x128xf32>
    %cst_59 = arith.constant dense<0.000000e+00> : vector<9xf32>
    %123 = vector.multi_reduction <add>, %118, %cst_59 [1] : vector<9x128xf32> to vector<9xf32>
    %124 = vector.shape_cast %123 : vector<9xf32> to vector<9x1xf32>
    %cst_60 = arith.constant 1.280000e+02 : f32
    %125 = vector.broadcast %cst_60 : f32 to vector<9x1xf32>
    %126 = arith.divf %124, %125 : vector<9x1xf32>
    %127 = vector.broadcast %126 : vector<9x1xf32> to vector<9x128xf32>
    %128 = arith.subf %118, %127 : vector<9x128xf32>
    %129 = arith.mulf %128, %128 : vector<9x128xf32>
    %cst_61 = arith.constant dense<0.000000e+00> : vector<9xf32>
    %130 = vector.multi_reduction <add>, %129, %cst_61 [1] : vector<9x128xf32> to vector<9xf32>
    %131 = vector.shape_cast %130 : vector<9xf32> to vector<9x1xf32>
    %cst_62 = arith.constant 1.280000e+02 : f32
    %132 = vector.broadcast %cst_62 : f32 to vector<9x1xf32>
    %133 = arith.divf %131, %132 : vector<9x1xf32>
    %134 = vector.broadcast %126 : vector<9x1xf32> to vector<9x128xf32>
    %135 = arith.subf %118, %134 : vector<9x128xf32>
    %cst_63 = arith.constant 9.99999974E-6 : f32
    %136 = vector.broadcast %cst_63 : f32 to vector<9x1xf32>
    %137 = arith.addf %133, %136 : vector<9x1xf32>
    %138 = math.rsqrt %137 : vector<9x1xf32>
    %139 = vector.broadcast %138 : vector<9x1xf32> to vector<9x128xf32>
    %140 = arith.mulf %135, %139 : vector<9x128xf32>
    %141 = vector.broadcast %120 : vector<1x128xf32> to vector<9x128xf32>
    %142 = arith.mulf %140, %141 : vector<9x128xf32>
    %143 = vector.broadcast %122 : vector<1x128xf32> to vector<9x128xf32>
    %144 = arith.addf %142, %143 : vector<9x128xf32>
    %c0_64 = arith.constant 0 : index
    %c0_65 = arith.constant 0 : index
    %c0_66 = arith.constant 0 : index
    %145 = vector.load %arg14[%c0_64, %c0_65, %c0_66] : memref<4x128x256xf32, #tpu.memory_space<vmem>>, vector<1x128x256xf32>
    %146 = vector.shape_cast %145 : vector<1x128x256xf32> to vector<128x256xf32>
    %cst_67 = arith.constant dense<0.000000e+00> : vector<9x256xf32>
    %147 = tpu.matmul %144, %146, %cst_67 {dimension_numbers = #tpu.dot_dimension_numbers<[1], [0], [0], [1], [0, 0, 1, 1], [], []>} : vector<9x128xf32>, vector<128x256xf32>, vector<9x256xf32> -> vector<9x256xf32>
    %c0_68 = arith.constant 0 : index
    %c0_69 = arith.constant 0 : index
    %c0_70 = arith.constant 0 : index
    %148 = vector.load %arg15[%c0_68, %c0_69, %c0_70] : memref<4x1x256xf32, #tpu.memory_space<vmem>>, vector<1x1x256xf32>
    %149 = vector.shape_cast %148 : vector<1x1x256xf32> to vector<1x256xf32>
    %150 = vector.broadcast %149 : vector<1x256xf32> to vector<9x256xf32>
    %151 = arith.addf %147, %150 : vector<9x256xf32>
    %cst_71 = arith.constant 0.000000e+00 : f32
    %152 = vector.broadcast %cst_71 : f32 to vector<9x256xf32>
    %153 = arith.maximumf %151, %152 : vector<9x256xf32>
    %c0_72 = arith.constant 0 : index
    %c0_73 = arith.constant 0 : index
    %c0_74 = arith.constant 0 : index
    %154 = vector.load %arg16[%c0_72, %c0_73, %c0_74] : memref<4x256x128xf32, #tpu.memory_space<vmem>>, vector<1x256x128xf32>
    %155 = vector.shape_cast %154 : vector<1x256x128xf32> to vector<256x128xf32>
    %cst_75 = arith.constant dense<0.000000e+00> : vector<9x128xf32>
    %156 = tpu.matmul %153, %155, %cst_75 {dimension_numbers = #tpu.dot_dimension_numbers<[1], [0], [0], [1], [0, 0, 1, 1], [], []>} : vector<9x256xf32>, vector<256x128xf32>, vector<9x128xf32> -> vector<9x128xf32>
    %c0_76 = arith.constant 0 : index
    %c0_77 = arith.constant 0 : index
    %c0_78 = arith.constant 0 : index
    %157 = vector.load %arg17[%c0_76, %c0_77, %c0_78] : memref<4x1x128xf32, #tpu.memory_space<vmem>>, vector<1x1x128xf32>
    %158 = vector.shape_cast %157 : vector<1x1x128xf32> to vector<1x128xf32>
    %159 = vector.broadcast %158 : vector<1x128xf32> to vector<9x128xf32>
    %160 = arith.addf %156, %159 : vector<9x128xf32>
    %161 = arith.addf %144, %160 : vector<9x128xf32>
    %c0_79 = arith.constant 0 : index
    %c0_80 = arith.constant 0 : index
    %c0_81 = arith.constant 0 : index
    %162 = vector.load %arg18[%c0_79, %c0_80, %c0_81] : memref<4x1x128xf32, #tpu.memory_space<vmem>>, vector<1x1x128xf32>
    %163 = vector.shape_cast %162 : vector<1x1x128xf32> to vector<1x128xf32>
    %c0_82 = arith.constant 0 : index
    %c0_83 = arith.constant 0 : index
    %c0_84 = arith.constant 0 : index
    %164 = vector.load %arg19[%c0_82, %c0_83, %c0_84] : memref<4x1x128xf32, #tpu.memory_space<vmem>>, vector<1x1x128xf32>
    %165 = vector.shape_cast %164 : vector<1x1x128xf32> to vector<1x128xf32>
    %cst_85 = arith.constant dense<0.000000e+00> : vector<9xf32>
    %166 = vector.multi_reduction <add>, %161, %cst_85 [1] : vector<9x128xf32> to vector<9xf32>
    %167 = vector.shape_cast %166 : vector<9xf32> to vector<9x1xf32>
    %cst_86 = arith.constant 1.280000e+02 : f32
    %168 = vector.broadcast %cst_86 : f32 to vector<9x1xf32>
    %169 = arith.divf %167, %168 : vector<9x1xf32>
    %170 = vector.broadcast %169 : vector<9x1xf32> to vector<9x128xf32>
    %171 = arith.subf %161, %170 : vector<9x128xf32>
    %172 = arith.mulf %171, %171 : vector<9x128xf32>
    %cst_87 = arith.constant dense<0.000000e+00> : vector<9xf32>
    %173 = vector.multi_reduction <add>, %172, %cst_87 [1] : vector<9x128xf32> to vector<9xf32>
    %174 = vector.shape_cast %173 : vector<9xf32> to vector<9x1xf32>
    %cst_88 = arith.constant 1.280000e+02 : f32
    %175 = vector.broadcast %cst_88 : f32 to vector<9x1xf32>
    %176 = arith.divf %174, %175 : vector<9x1xf32>
    %177 = vector.broadcast %169 : vector<9x1xf32> to vector<9x128xf32>
    %178 = arith.subf %161, %177 : vector<9x128xf32>
    %cst_89 = arith.constant 9.99999974E-6 : f32
    %179 = vector.broadcast %cst_89 : f32 to vector<9x1xf32>
    %180 = arith.addf %176, %179 : vector<9x1xf32>
    %181 = math.rsqrt %180 : vector<9x1xf32>
    %182 = vector.broadcast %181 : vector<9x1xf32> to vector<9x128xf32>
    %183 = arith.mulf %178, %182 : vector<9x128xf32>
    %184 = vector.broadcast %163 : vector<1x128xf32> to vector<9x128xf32>
    %185 = arith.mulf %183, %184 : vector<9x128xf32>
    %186 = vector.broadcast %165 : vector<1x128xf32> to vector<9x128xf32>
    %187 = arith.addf %185, %186 : vector<9x128xf32>
    %c1 = arith.constant 1 : index
    %c0_90 = arith.constant 0 : index
    %c0_91 = arith.constant 0 : index
    %188 = vector.load %arg8[%c1, %c0_90, %c0_91] : memref<4x128x384xf32, #tpu.memory_space<vmem>>, vector<1x128x384xf32>
    %189 = vector.shape_cast %188 : vector<1x128x384xf32> to vector<128x384xf32>
    %cst_92 = arith.constant dense<0.000000e+00> : vector<9x384xf32>
    %190 = tpu.matmul %187, %189, %cst_92 {dimension_numbers = #tpu.dot_dimension_numbers<[1], [0], [0], [1], [0, 0, 1, 1], [], []>} : vector<9x128xf32>, vector<128x384xf32>, vector<9x384xf32> -> vector<9x384xf32>
    %c1_93 = arith.constant 1 : index
    %c0_94 = arith.constant 0 : index
    %c0_95 = arith.constant 0 : index
    %191 = vector.load %arg9[%c1_93, %c0_94, %c0_95] : memref<4x1x384xf32, #tpu.memory_space<vmem>>, vector<1x1x384xf32>
    %192 = vector.shape_cast %191 : vector<1x1x384xf32> to vector<1x384xf32>
    %193 = vector.broadcast %192 : vector<1x384xf32> to vector<9x384xf32>
    %194 = arith.addf %190, %193 : vector<9x384xf32>
    %195 = vector.extract_strided_slice %194 {offsets = [0, 0], sizes = [9, 32], strides = [1, 1]} : vector<9x384xf32> to vector<9x32xf32>
    %196 = vector.extract_strided_slice %194 {offsets = [0, 128], sizes = [9, 32], strides = [1, 1]} : vector<9x384xf32> to vector<9x32xf32>
    %197 = vector.extract_strided_slice %194 {offsets = [0, 256], sizes = [9, 32], strides = [1, 1]} : vector<9x384xf32> to vector<9x32xf32>
    %cst_96 = arith.constant dense<0.000000e+00> : vector<9x9xf32>
    %198 = tpu.matmul %195, %196, %cst_96 {dimension_numbers = #tpu.dot_dimension_numbers<[1], [1], [0], [0], [0, 0, 1, 0], [], []>} : vector<9x32xf32>, vector<9x32xf32>, vector<9x9xf32> -> vector<9x9xf32>
    %cst_97 = arith.constant 0.176776692 : f32
    %199 = vector.broadcast %cst_97 : f32 to vector<9x9xf32>
    %200 = arith.mulf %198, %199 : vector<9x9xf32>
    %cst_98 = arith.constant dense<0xFF800000> : vector<9xf32>
    %201 = vector.multi_reduction <maximumf>, %200, %cst_98 [1] : vector<9x9xf32> to vector<9xf32>
    %202 = vector.shape_cast %201 : vector<9xf32> to vector<9x1xf32>
    %203 = vector.broadcast %202 : vector<9x1xf32> to vector<9x9xf32>
    %204 = arith.subf %200, %203 : vector<9x9xf32>
    %205 = math.exp %204 : vector<9x9xf32>
    %cst_99 = arith.constant dense<0.000000e+00> : vector<9xf32>
    %206 = vector.multi_reduction <add>, %205, %cst_99 [1] : vector<9x9xf32> to vector<9xf32>
    %207 = vector.shape_cast %206 : vector<9xf32> to vector<9x1xf32>
    %208 = tpu.reciprocal %207 {approx = true} : vector<9x1xf32> -> vector<9x1xf32>
    %209 = vector.broadcast %208 : vector<9x1xf32> to vector<9x9xf32>
    %210 = arith.mulf %205, %209 : vector<9x9xf32>
    %cst_100 = arith.constant dense<0.000000e+00> : vector<9x32xf32>
    %211 = tpu.matmul %210, %197, %cst_100 {dimension_numbers = #tpu.dot_dimension_numbers<[1], [0], [0], [1], [0, 0, 1, 1], [], []>} : vector<9x9xf32>, vector<9x32xf32>, vector<9x32xf32> -> vector<9x32xf32>
    %212 = vector.extract_strided_slice %194 {offsets = [0, 32], sizes = [9, 32], strides = [1, 1]} : vector<9x384xf32> to vector<9x32xf32>
    %213 = vector.extract_strided_slice %194 {offsets = [0, 160], sizes = [9, 32], strides = [1, 1]} : vector<9x384xf32> to vector<9x32xf32>
    %214 = vector.extract_strided_slice %194 {offsets = [0, 288], sizes = [9, 32], strides = [1, 1]} : vector<9x384xf32> to vector<9x32xf32>
    %cst_101 = arith.constant dense<0.000000e+00> : vector<9x9xf32>
    %215 = tpu.matmul %212, %213, %cst_101 {dimension_numbers = #tpu.dot_dimension_numbers<[1], [1], [0], [0], [0, 0, 1, 0], [], []>} : vector<9x32xf32>, vector<9x32xf32>, vector<9x9xf32> -> vector<9x9xf32>
    %cst_102 = arith.constant 0.176776692 : f32
    %216 = vector.broadcast %cst_102 : f32 to vector<9x9xf32>
    %217 = arith.mulf %215, %216 : vector<9x9xf32>
    %cst_103 = arith.constant dense<0xFF800000> : vector<9xf32>
    %218 = vector.multi_reduction <maximumf>, %217, %cst_103 [1] : vector<9x9xf32> to vector<9xf32>
    %219 = vector.shape_cast %218 : vector<9xf32> to vector<9x1xf32>
    %220 = vector.broadcast %219 : vector<9x1xf32> to vector<9x9xf32>
    %221 = arith.subf %217, %220 : vector<9x9xf32>
    %222 = math.exp %221 : vector<9x9xf32>
    %cst_104 = arith.constant dense<0.000000e+00> : vector<9xf32>
    %223 = vector.multi_reduction <add>, %222, %cst_104 [1] : vector<9x9xf32> to vector<9xf32>
    %224 = vector.shape_cast %223 : vector<9xf32> to vector<9x1xf32>
    %225 = tpu.reciprocal %224 {approx = true} : vector<9x1xf32> -> vector<9x1xf32>
    %226 = vector.broadcast %225 : vector<9x1xf32> to vector<9x9xf32>
    %227 = arith.mulf %222, %226 : vector<9x9xf32>
    %cst_105 = arith.constant dense<0.000000e+00> : vector<9x32xf32>
    %228 = tpu.matmul %227, %214, %cst_105 {dimension_numbers = #tpu.dot_dimension_numbers<[1], [0], [0], [1], [0, 0, 1, 1], [], []>} : vector<9x9xf32>, vector<9x32xf32>, vector<9x32xf32> -> vector<9x32xf32>
    %229 = vector.extract_strided_slice %194 {offsets = [0, 64], sizes = [9, 32], strides = [1, 1]} : vector<9x384xf32> to vector<9x32xf32>
    %230 = vector.extract_strided_slice %194 {offsets = [0, 192], sizes = [9, 32], strides = [1, 1]} : vector<9x384xf32> to vector<9x32xf32>
    %231 = vector.extract_strided_slice %194 {offsets = [0, 320], sizes = [9, 32], strides = [1, 1]} : vector<9x384xf32> to vector<9x32xf32>
    %cst_106 = arith.constant dense<0.000000e+00> : vector<9x9xf32>
    %232 = tpu.matmul %229, %230, %cst_106 {dimension_numbers = #tpu.dot_dimension_numbers<[1], [1], [0], [0], [0, 0, 1, 0], [], []>} : vector<9x32xf32>, vector<9x32xf32>, vector<9x9xf32> -> vector<9x9xf32>
    %cst_107 = arith.constant 0.176776692 : f32
    %233 = vector.broadcast %cst_107 : f32 to vector<9x9xf32>
    %234 = arith.mulf %232, %233 : vector<9x9xf32>
    %cst_108 = arith.constant dense<0xFF800000> : vector<9xf32>
    %235 = vector.multi_reduction <maximumf>, %234, %cst_108 [1] : vector<9x9xf32> to vector<9xf32>
    %236 = vector.shape_cast %235 : vector<9xf32> to vector<9x1xf32>
    %237 = vector.broadcast %236 : vector<9x1xf32> to vector<9x9xf32>
    %238 = arith.subf %234, %237 : vector<9x9xf32>
    %239 = math.exp %238 : vector<9x9xf32>
    %cst_109 = arith.constant dense<0.000000e+00> : vector<9xf32>
    %240 = vector.multi_reduction <add>, %239, %cst_109 [1] : vector<9x9xf32> to vector<9xf32>
    %241 = vector.shape_cast %240 : vector<9xf32> to vector<9x1xf32>
    %242 = tpu.reciprocal %241 {approx = true} : vector<9x1xf32> -> vector<9x1xf32>
    %243 = vector.broadcast %242 : vector<9x1xf32> to vector<9x9xf32>
    %244 = arith.mulf %239, %243 : vector<9x9xf32>
    %cst_110 = arith.constant dense<0.000000e+00> : vector<9x32xf32>
    %245 = tpu.matmul %244, %231, %cst_110 {dimension_numbers = #tpu.dot_dimension_numbers<[1], [0], [0], [1], [0, 0, 1, 1], [], []>} : vector<9x9xf32>, vector<9x32xf32>, vector<9x32xf32> -> vector<9x32xf32>
    %246 = vector.extract_strided_slice %194 {offsets = [0, 96], sizes = [9, 32], strides = [1, 1]} : vector<9x384xf32> to vector<9x32xf32>
    %247 = vector.extract_strided_slice %194 {offsets = [0, 224], sizes = [9, 32], strides = [1, 1]} : vector<9x384xf32> to vector<9x32xf32>
    %248 = vector.extract_strided_slice %194 {offsets = [0, 352], sizes = [9, 32], strides = [1, 1]} : vector<9x384xf32> to vector<9x32xf32>
    %cst_111 = arith.constant dense<0.000000e+00> : vector<9x9xf32>
    %249 = tpu.matmul %246, %247, %cst_111 {dimension_numbers = #tpu.dot_dimension_numbers<[1], [1], [0], [0], [0, 0, 1, 0], [], []>} : vector<9x32xf32>, vector<9x32xf32>, vector<9x9xf32> -> vector<9x9xf32>
    %cst_112 = arith.constant 0.176776692 : f32
    %250 = vector.broadcast %cst_112 : f32 to vector<9x9xf32>
    %251 = arith.mulf %249, %250 : vector<9x9xf32>
    %cst_113 = arith.constant dense<0xFF800000> : vector<9xf32>
    %252 = vector.multi_reduction <maximumf>, %251, %cst_113 [1] : vector<9x9xf32> to vector<9xf32>
    %253 = vector.shape_cast %252 : vector<9xf32> to vector<9x1xf32>
    %254 = vector.broadcast %253 : vector<9x1xf32> to vector<9x9xf32>
    %255 = arith.subf %251, %254 : vector<9x9xf32>
    %256 = math.exp %255 : vector<9x9xf32>
    %cst_114 = arith.constant dense<0.000000e+00> : vector<9xf32>
    %257 = vector.multi_reduction <add>, %256, %cst_114 [1] : vector<9x9xf32> to vector<9xf32>
    %258 = vector.shape_cast %257 : vector<9xf32> to vector<9x1xf32>
    %259 = tpu.reciprocal %258 {approx = true} : vector<9x1xf32> -> vector<9x1xf32>
    %260 = vector.broadcast %259 : vector<9x1xf32> to vector<9x9xf32>
    %261 = arith.mulf %256, %260 : vector<9x9xf32>
    %cst_115 = arith.constant dense<0.000000e+00> : vector<9x32xf32>
    %262 = tpu.matmul %261, %248, %cst_115 {dimension_numbers = #tpu.dot_dimension_numbers<[1], [0], [0], [1], [0, 0, 1, 1], [], []>} : vector<9x9xf32>, vector<9x32xf32>, vector<9x32xf32> -> vector<9x32xf32>
    %263 = tpu.concatenate %211, %228, %245, %262 in 1 : vector<9x32xf32>, vector<9x32xf32>, vector<9x32xf32>, vector<9x32xf32> -> vector<9x128xf32>
    %c1_116 = arith.constant 1 : index
    %c0_117 = arith.constant 0 : index
    %c0_118 = arith.constant 0 : index
    %264 = vector.load %arg10[%c1_116, %c0_117, %c0_118] : memref<4x128x128xf32, #tpu.memory_space<vmem>>, vector<1x128x128xf32>
    %265 = vector.shape_cast %264 : vector<1x128x128xf32> to vector<128x128xf32>
    %cst_119 = arith.constant dense<0.000000e+00> : vector<9x128xf32>
    %266 = tpu.matmul %263, %265, %cst_119 {dimension_numbers = #tpu.dot_dimension_numbers<[1], [0], [0], [1], [0, 0, 1, 1], [], []>} : vector<9x128xf32>, vector<128x128xf32>, vector<9x128xf32> -> vector<9x128xf32>
    %c1_120 = arith.constant 1 : index
    %c0_121 = arith.constant 0 : index
    %c0_122 = arith.constant 0 : index
    %267 = vector.load %arg11[%c1_120, %c0_121, %c0_122] : memref<4x1x128xf32, #tpu.memory_space<vmem>>, vector<1x1x128xf32>
    %268 = vector.shape_cast %267 : vector<1x1x128xf32> to vector<1x128xf32>
    %269 = vector.broadcast %268 : vector<1x128xf32> to vector<9x128xf32>
    %270 = arith.addf %266, %269 : vector<9x128xf32>
    %271 = arith.addf %187, %270 : vector<9x128xf32>
    %c1_123 = arith.constant 1 : index
    %c0_124 = arith.constant 0 : index
    %c0_125 = arith.constant 0 : index
    %272 = vector.load %arg12[%c1_123, %c0_124, %c0_125] : memref<4x1x128xf32, #tpu.memory_space<vmem>>, vector<1x1x128xf32>
    %273 = vector.shape_cast %272 : vector<1x1x128xf32> to vector<1x128xf32>
    %c1_126 = arith.constant 1 : index
    %c0_127 = arith.constant 0 : index
    %c0_128 = arith.constant 0 : index
    %274 = vector.load %arg13[%c1_126, %c0_127, %c0_128] : memref<4x1x128xf32, #tpu.memory_space<vmem>>, vector<1x1x128xf32>
    %275 = vector.shape_cast %274 : vector<1x1x128xf32> to vector<1x128xf32>
    %cst_129 = arith.constant dense<0.000000e+00> : vector<9xf32>
    %276 = vector.multi_reduction <add>, %271, %cst_129 [1] : vector<9x128xf32> to vector<9xf32>
    %277 = vector.shape_cast %276 : vector<9xf32> to vector<9x1xf32>
    %cst_130 = arith.constant 1.280000e+02 : f32
    %278 = vector.broadcast %cst_130 : f32 to vector<9x1xf32>
    %279 = arith.divf %277, %278 : vector<9x1xf32>
    %280 = vector.broadcast %279 : vector<9x1xf32> to vector<9x128xf32>
    %281 = arith.subf %271, %280 : vector<9x128xf32>
    %282 = arith.mulf %281, %281 : vector<9x128xf32>
    %cst_131 = arith.constant dense<0.000000e+00> : vector<9xf32>
    %283 = vector.multi_reduction <add>, %282, %cst_131 [1] : vector<9x128xf32> to vector<9xf32>
    %284 = vector.shape_cast %283 : vector<9xf32> to vector<9x1xf32>
    %cst_132 = arith.constant 1.280000e+02 : f32
    %285 = vector.broadcast %cst_132 : f32 to vector<9x1xf32>
    %286 = arith.divf %284, %285 : vector<9x1xf32>
    %287 = vector.broadcast %279 : vector<9x1xf32> to vector<9x128xf32>
    %288 = arith.subf %271, %287 : vector<9x128xf32>
    %cst_133 = arith.constant 9.99999974E-6 : f32
    %289 = vector.broadcast %cst_133 : f32 to vector<9x1xf32>
    %290 = arith.addf %286, %289 : vector<9x1xf32>
    %291 = math.rsqrt %290 : vector<9x1xf32>
    %292 = vector.broadcast %291 : vector<9x1xf32> to vector<9x128xf32>
    %293 = arith.mulf %288, %292 : vector<9x128xf32>
    %294 = vector.broadcast %273 : vector<1x128xf32> to vector<9x128xf32>
    %295 = arith.mulf %293, %294 : vector<9x128xf32>
    %296 = vector.broadcast %275 : vector<1x128xf32> to vector<9x128xf32>
    %297 = arith.addf %295, %296 : vector<9x128xf32>
    %c1_134 = arith.constant 1 : index
    %c0_135 = arith.constant 0 : index
    %c0_136 = arith.constant 0 : index
    %298 = vector.load %arg14[%c1_134, %c0_135, %c0_136] : memref<4x128x256xf32, #tpu.memory_space<vmem>>, vector<1x128x256xf32>
    %299 = vector.shape_cast %298 : vector<1x128x256xf32> to vector<128x256xf32>
    %cst_137 = arith.constant dense<0.000000e+00> : vector<9x256xf32>
    %300 = tpu.matmul %297, %299, %cst_137 {dimension_numbers = #tpu.dot_dimension_numbers<[1], [0], [0], [1], [0, 0, 1, 1], [], []>} : vector<9x128xf32>, vector<128x256xf32>, vector<9x256xf32> -> vector<9x256xf32>
    %c1_138 = arith.constant 1 : index
    %c0_139 = arith.constant 0 : index
    %c0_140 = arith.constant 0 : index
    %301 = vector.load %arg15[%c1_138, %c0_139, %c0_140] : memref<4x1x256xf32, #tpu.memory_space<vmem>>, vector<1x1x256xf32>
    %302 = vector.shape_cast %301 : vector<1x1x256xf32> to vector<1x256xf32>
    %303 = vector.broadcast %302 : vector<1x256xf32> to vector<9x256xf32>
    %304 = arith.addf %300, %303 : vector<9x256xf32>
    %cst_141 = arith.constant 0.000000e+00 : f32
    %305 = vector.broadcast %cst_141 : f32 to vector<9x256xf32>
    %306 = arith.maximumf %304, %305 : vector<9x256xf32>
    %c1_142 = arith.constant 1 : index
    %c0_143 = arith.constant 0 : index
    %c0_144 = arith.constant 0 : index
    %307 = vector.load %arg16[%c1_142, %c0_143, %c0_144] : memref<4x256x128xf32, #tpu.memory_space<vmem>>, vector<1x256x128xf32>
    %308 = vector.shape_cast %307 : vector<1x256x128xf32> to vector<256x128xf32>
    %cst_145 = arith.constant dense<0.000000e+00> : vector<9x128xf32>
    %309 = tpu.matmul %306, %308, %cst_145 {dimension_numbers = #tpu.dot_dimension_numbers<[1], [0], [0], [1], [0, 0, 1, 1], [], []>} : vector<9x256xf32>, vector<256x128xf32>, vector<9x128xf32> -> vector<9x128xf32>
    %c1_146 = arith.constant 1 : index
    %c0_147 = arith.constant 0 : index
    %c0_148 = arith.constant 0 : index
    %310 = vector.load %arg17[%c1_146, %c0_147, %c0_148] : memref<4x1x128xf32, #tpu.memory_space<vmem>>, vector<1x1x128xf32>
    %311 = vector.shape_cast %310 : vector<1x1x128xf32> to vector<1x128xf32>
    %312 = vector.broadcast %311 : vector<1x128xf32> to vector<9x128xf32>
    %313 = arith.addf %309, %312 : vector<9x128xf32>
    %314 = arith.addf %297, %313 : vector<9x128xf32>
    %c1_149 = arith.constant 1 : index
    %c0_150 = arith.constant 0 : index
    %c0_151 = arith.constant 0 : index
    %315 = vector.load %arg18[%c1_149, %c0_150, %c0_151] : memref<4x1x128xf32, #tpu.memory_space<vmem>>, vector<1x1x128xf32>
    %316 = vector.shape_cast %315 : vector<1x1x128xf32> to vector<1x128xf32>
    %c1_152 = arith.constant 1 : index
    %c0_153 = arith.constant 0 : index
    %c0_154 = arith.constant 0 : index
    %317 = vector.load %arg19[%c1_152, %c0_153, %c0_154] : memref<4x1x128xf32, #tpu.memory_space<vmem>>, vector<1x1x128xf32>
    %318 = vector.shape_cast %317 : vector<1x1x128xf32> to vector<1x128xf32>
    %cst_155 = arith.constant dense<0.000000e+00> : vector<9xf32>
    %319 = vector.multi_reduction <add>, %314, %cst_155 [1] : vector<9x128xf32> to vector<9xf32>
    %320 = vector.shape_cast %319 : vector<9xf32> to vector<9x1xf32>
    %cst_156 = arith.constant 1.280000e+02 : f32
    %321 = vector.broadcast %cst_156 : f32 to vector<9x1xf32>
    %322 = arith.divf %320, %321 : vector<9x1xf32>
    %323 = vector.broadcast %322 : vector<9x1xf32> to vector<9x128xf32>
    %324 = arith.subf %314, %323 : vector<9x128xf32>
    %325 = arith.mulf %324, %324 : vector<9x128xf32>
    %cst_157 = arith.constant dense<0.000000e+00> : vector<9xf32>
    %326 = vector.multi_reduction <add>, %325, %cst_157 [1] : vector<9x128xf32> to vector<9xf32>
    %327 = vector.shape_cast %326 : vector<9xf32> to vector<9x1xf32>
    %cst_158 = arith.constant 1.280000e+02 : f32
    %328 = vector.broadcast %cst_158 : f32 to vector<9x1xf32>
    %329 = arith.divf %327, %328 : vector<9x1xf32>
    %330 = vector.broadcast %322 : vector<9x1xf32> to vector<9x128xf32>
    %331 = arith.subf %314, %330 : vector<9x128xf32>
    %cst_159 = arith.constant 9.99999974E-6 : f32
    %332 = vector.broadcast %cst_159 : f32 to vector<9x1xf32>
    %333 = arith.addf %329, %332 : vector<9x1xf32>
    %334 = math.rsqrt %333 : vector<9x1xf32>
    %335 = vector.broadcast %334 : vector<9x1xf32> to vector<9x128xf32>
    %336 = arith.mulf %331, %335 : vector<9x128xf32>
    %337 = vector.broadcast %316 : vector<1x128xf32> to vector<9x128xf32>
    %338 = arith.mulf %336, %337 : vector<9x128xf32>
    %339 = vector.broadcast %318 : vector<1x128xf32> to vector<9x128xf32>
    %340 = arith.addf %338, %339 : vector<9x128xf32>
    %c2 = arith.constant 2 : index
    %c0_160 = arith.constant 0 : index
    %c0_161 = arith.constant 0 : index
    %341 = vector.load %arg8[%c2, %c0_160, %c0_161] : memref<4x128x384xf32, #tpu.memory_space<vmem>>, vector<1x128x384xf32>
    %342 = vector.shape_cast %341 : vector<1x128x384xf32> to vector<128x384xf32>
    %cst_162 = arith.constant dense<0.000000e+00> : vector<9x384xf32>
    %343 = tpu.matmul %340, %342, %cst_162 {dimension_numbers = #tpu.dot_dimension_numbers<[1], [0], [0], [1], [0, 0, 1, 1], [], []>} : vector<9x128xf32>, vector<128x384xf32>, vector<9x384xf32> -> vector<9x384xf32>
    %c2_163 = arith.constant 2 : index
    %c0_164 = arith.constant 0 : index
    %c0_165 = arith.constant 0 : index
    %344 = vector.load %arg9[%c2_163, %c0_164, %c0_165] : memref<4x1x384xf32, #tpu.memory_space<vmem>>, vector<1x1x384xf32>
    %345 = vector.shape_cast %344 : vector<1x1x384xf32> to vector<1x384xf32>
    %346 = vector.broadcast %345 : vector<1x384xf32> to vector<9x384xf32>
    %347 = arith.addf %343, %346 : vector<9x384xf32>
    %348 = vector.extract_strided_slice %347 {offsets = [0, 0], sizes = [9, 32], strides = [1, 1]} : vector<9x384xf32> to vector<9x32xf32>
    %349 = vector.extract_strided_slice %347 {offsets = [0, 128], sizes = [9, 32], strides = [1, 1]} : vector<9x384xf32> to vector<9x32xf32>
    %350 = vector.extract_strided_slice %347 {offsets = [0, 256], sizes = [9, 32], strides = [1, 1]} : vector<9x384xf32> to vector<9x32xf32>
    %cst_166 = arith.constant dense<0.000000e+00> : vector<9x9xf32>
    %351 = tpu.matmul %348, %349, %cst_166 {dimension_numbers = #tpu.dot_dimension_numbers<[1], [1], [0], [0], [0, 0, 1, 0], [], []>} : vector<9x32xf32>, vector<9x32xf32>, vector<9x9xf32> -> vector<9x9xf32>
    %cst_167 = arith.constant 0.176776692 : f32
    %352 = vector.broadcast %cst_167 : f32 to vector<9x9xf32>
    %353 = arith.mulf %351, %352 : vector<9x9xf32>
    %cst_168 = arith.constant dense<0xFF800000> : vector<9xf32>
    %354 = vector.multi_reduction <maximumf>, %353, %cst_168 [1] : vector<9x9xf32> to vector<9xf32>
    %355 = vector.shape_cast %354 : vector<9xf32> to vector<9x1xf32>
    %356 = vector.broadcast %355 : vector<9x1xf32> to vector<9x9xf32>
    %357 = arith.subf %353, %356 : vector<9x9xf32>
    %358 = math.exp %357 : vector<9x9xf32>
    %cst_169 = arith.constant dense<0.000000e+00> : vector<9xf32>
    %359 = vector.multi_reduction <add>, %358, %cst_169 [1] : vector<9x9xf32> to vector<9xf32>
    %360 = vector.shape_cast %359 : vector<9xf32> to vector<9x1xf32>
    %361 = tpu.reciprocal %360 {approx = true} : vector<9x1xf32> -> vector<9x1xf32>
    %362 = vector.broadcast %361 : vector<9x1xf32> to vector<9x9xf32>
    %363 = arith.mulf %358, %362 : vector<9x9xf32>
    %cst_170 = arith.constant dense<0.000000e+00> : vector<9x32xf32>
    %364 = tpu.matmul %363, %350, %cst_170 {dimension_numbers = #tpu.dot_dimension_numbers<[1], [0], [0], [1], [0, 0, 1, 1], [], []>} : vector<9x9xf32>, vector<9x32xf32>, vector<9x32xf32> -> vector<9x32xf32>
    %365 = vector.extract_strided_slice %347 {offsets = [0, 32], sizes = [9, 32], strides = [1, 1]} : vector<9x384xf32> to vector<9x32xf32>
    %366 = vector.extract_strided_slice %347 {offsets = [0, 160], sizes = [9, 32], strides = [1, 1]} : vector<9x384xf32> to vector<9x32xf32>
    %367 = vector.extract_strided_slice %347 {offsets = [0, 288], sizes = [9, 32], strides = [1, 1]} : vector<9x384xf32> to vector<9x32xf32>
    %cst_171 = arith.constant dense<0.000000e+00> : vector<9x9xf32>
    %368 = tpu.matmul %365, %366, %cst_171 {dimension_numbers = #tpu.dot_dimension_numbers<[1], [1], [0], [0], [0, 0, 1, 0], [], []>} : vector<9x32xf32>, vector<9x32xf32>, vector<9x9xf32> -> vector<9x9xf32>
    %cst_172 = arith.constant 0.176776692 : f32
    %369 = vector.broadcast %cst_172 : f32 to vector<9x9xf32>
    %370 = arith.mulf %368, %369 : vector<9x9xf32>
    %cst_173 = arith.constant dense<0xFF800000> : vector<9xf32>
    %371 = vector.multi_reduction <maximumf>, %370, %cst_173 [1] : vector<9x9xf32> to vector<9xf32>
    %372 = vector.shape_cast %371 : vector<9xf32> to vector<9x1xf32>
    %373 = vector.broadcast %372 : vector<9x1xf32> to vector<9x9xf32>
    %374 = arith.subf %370, %373 : vector<9x9xf32>
    %375 = math.exp %374 : vector<9x9xf32>
    %cst_174 = arith.constant dense<0.000000e+00> : vector<9xf32>
    %376 = vector.multi_reduction <add>, %375, %cst_174 [1] : vector<9x9xf32> to vector<9xf32>
    %377 = vector.shape_cast %376 : vector<9xf32> to vector<9x1xf32>
    %378 = tpu.reciprocal %377 {approx = true} : vector<9x1xf32> -> vector<9x1xf32>
    %379 = vector.broadcast %378 : vector<9x1xf32> to vector<9x9xf32>
    %380 = arith.mulf %375, %379 : vector<9x9xf32>
    %cst_175 = arith.constant dense<0.000000e+00> : vector<9x32xf32>
    %381 = tpu.matmul %380, %367, %cst_175 {dimension_numbers = #tpu.dot_dimension_numbers<[1], [0], [0], [1], [0, 0, 1, 1], [], []>} : vector<9x9xf32>, vector<9x32xf32>, vector<9x32xf32> -> vector<9x32xf32>
    %382 = vector.extract_strided_slice %347 {offsets = [0, 64], sizes = [9, 32], strides = [1, 1]} : vector<9x384xf32> to vector<9x32xf32>
    %383 = vector.extract_strided_slice %347 {offsets = [0, 192], sizes = [9, 32], strides = [1, 1]} : vector<9x384xf32> to vector<9x32xf32>
    %384 = vector.extract_strided_slice %347 {offsets = [0, 320], sizes = [9, 32], strides = [1, 1]} : vector<9x384xf32> to vector<9x32xf32>
    %cst_176 = arith.constant dense<0.000000e+00> : vector<9x9xf32>
    %385 = tpu.matmul %382, %383, %cst_176 {dimension_numbers = #tpu.dot_dimension_numbers<[1], [1], [0], [0], [0, 0, 1, 0], [], []>} : vector<9x32xf32>, vector<9x32xf32>, vector<9x9xf32> -> vector<9x9xf32>
    %cst_177 = arith.constant 0.176776692 : f32
    %386 = vector.broadcast %cst_177 : f32 to vector<9x9xf32>
    %387 = arith.mulf %385, %386 : vector<9x9xf32>
    %cst_178 = arith.constant dense<0xFF800000> : vector<9xf32>
    %388 = vector.multi_reduction <maximumf>, %387, %cst_178 [1] : vector<9x9xf32> to vector<9xf32>
    %389 = vector.shape_cast %388 : vector<9xf32> to vector<9x1xf32>
    %390 = vector.broadcast %389 : vector<9x1xf32> to vector<9x9xf32>
    %391 = arith.subf %387, %390 : vector<9x9xf32>
    %392 = math.exp %391 : vector<9x9xf32>
    %cst_179 = arith.constant dense<0.000000e+00> : vector<9xf32>
    %393 = vector.multi_reduction <add>, %392, %cst_179 [1] : vector<9x9xf32> to vector<9xf32>
    %394 = vector.shape_cast %393 : vector<9xf32> to vector<9x1xf32>
    %395 = tpu.reciprocal %394 {approx = true} : vector<9x1xf32> -> vector<9x1xf32>
    %396 = vector.broadcast %395 : vector<9x1xf32> to vector<9x9xf32>
    %397 = arith.mulf %392, %396 : vector<9x9xf32>
    %cst_180 = arith.constant dense<0.000000e+00> : vector<9x32xf32>
    %398 = tpu.matmul %397, %384, %cst_180 {dimension_numbers = #tpu.dot_dimension_numbers<[1], [0], [0], [1], [0, 0, 1, 1], [], []>} : vector<9x9xf32>, vector<9x32xf32>, vector<9x32xf32> -> vector<9x32xf32>
    %399 = vector.extract_strided_slice %347 {offsets = [0, 96], sizes = [9, 32], strides = [1, 1]} : vector<9x384xf32> to vector<9x32xf32>
    %400 = vector.extract_strided_slice %347 {offsets = [0, 224], sizes = [9, 32], strides = [1, 1]} : vector<9x384xf32> to vector<9x32xf32>
    %401 = vector.extract_strided_slice %347 {offsets = [0, 352], sizes = [9, 32], strides = [1, 1]} : vector<9x384xf32> to vector<9x32xf32>
    %cst_181 = arith.constant dense<0.000000e+00> : vector<9x9xf32>
    %402 = tpu.matmul %399, %400, %cst_181 {dimension_numbers = #tpu.dot_dimension_numbers<[1], [1], [0], [0], [0, 0, 1, 0], [], []>} : vector<9x32xf32>, vector<9x32xf32>, vector<9x9xf32> -> vector<9x9xf32>
    %cst_182 = arith.constant 0.176776692 : f32
    %403 = vector.broadcast %cst_182 : f32 to vector<9x9xf32>
    %404 = arith.mulf %402, %403 : vector<9x9xf32>
    %cst_183 = arith.constant dense<0xFF800000> : vector<9xf32>
    %405 = vector.multi_reduction <maximumf>, %404, %cst_183 [1] : vector<9x9xf32> to vector<9xf32>
    %406 = vector.shape_cast %405 : vector<9xf32> to vector<9x1xf32>
    %407 = vector.broadcast %406 : vector<9x1xf32> to vector<9x9xf32>
    %408 = arith.subf %404, %407 : vector<9x9xf32>
    %409 = math.exp %408 : vector<9x9xf32>
    %cst_184 = arith.constant dense<0.000000e+00> : vector<9xf32>
    %410 = vector.multi_reduction <add>, %409, %cst_184 [1] : vector<9x9xf32> to vector<9xf32>
    %411 = vector.shape_cast %410 : vector<9xf32> to vector<9x1xf32>
    %412 = tpu.reciprocal %411 {approx = true} : vector<9x1xf32> -> vector<9x1xf32>
    %413 = vector.broadcast %412 : vector<9x1xf32> to vector<9x9xf32>
    %414 = arith.mulf %409, %413 : vector<9x9xf32>
    %cst_185 = arith.constant dense<0.000000e+00> : vector<9x32xf32>
    %415 = tpu.matmul %414, %401, %cst_185 {dimension_numbers = #tpu.dot_dimension_numbers<[1], [0], [0], [1], [0, 0, 1, 1], [], []>} : vector<9x9xf32>, vector<9x32xf32>, vector<9x32xf32> -> vector<9x32xf32>
    %416 = tpu.concatenate %364, %381, %398, %415 in 1 : vector<9x32xf32>, vector<9x32xf32>, vector<9x32xf32>, vector<9x32xf32> -> vector<9x128xf32>
    %c2_186 = arith.constant 2 : index
    %c0_187 = arith.constant 0 : index
    %c0_188 = arith.constant 0 : index
    %417 = vector.load %arg10[%c2_186, %c0_187, %c0_188] : memref<4x128x128xf32, #tpu.memory_space<vmem>>, vector<1x128x128xf32>
    %418 = vector.shape_cast %417 : vector<1x128x128xf32> to vector<128x128xf32>
    %cst_189 = arith.constant dense<0.000000e+00> : vector<9x128xf32>
    %419 = tpu.matmul %416, %418, %cst_189 {dimension_numbers = #tpu.dot_dimension_numbers<[1], [0], [0], [1], [0, 0, 1, 1], [], []>} : vector<9x128xf32>, vector<128x128xf32>, vector<9x128xf32> -> vector<9x128xf32>
    %c2_190 = arith.constant 2 : index
    %c0_191 = arith.constant 0 : index
    %c0_192 = arith.constant 0 : index
    %420 = vector.load %arg11[%c2_190, %c0_191, %c0_192] : memref<4x1x128xf32, #tpu.memory_space<vmem>>, vector<1x1x128xf32>
    %421 = vector.shape_cast %420 : vector<1x1x128xf32> to vector<1x128xf32>
    %422 = vector.broadcast %421 : vector<1x128xf32> to vector<9x128xf32>
    %423 = arith.addf %419, %422 : vector<9x128xf32>
    %424 = arith.addf %340, %423 : vector<9x128xf32>
    %c2_193 = arith.constant 2 : index
    %c0_194 = arith.constant 0 : index
    %c0_195 = arith.constant 0 : index
    %425 = vector.load %arg12[%c2_193, %c0_194, %c0_195] : memref<4x1x128xf32, #tpu.memory_space<vmem>>, vector<1x1x128xf32>
    %426 = vector.shape_cast %425 : vector<1x1x128xf32> to vector<1x128xf32>
    %c2_196 = arith.constant 2 : index
    %c0_197 = arith.constant 0 : index
    %c0_198 = arith.constant 0 : index
    %427 = vector.load %arg13[%c2_196, %c0_197, %c0_198] : memref<4x1x128xf32, #tpu.memory_space<vmem>>, vector<1x1x128xf32>
    %428 = vector.shape_cast %427 : vector<1x1x128xf32> to vector<1x128xf32>
    %cst_199 = arith.constant dense<0.000000e+00> : vector<9xf32>
    %429 = vector.multi_reduction <add>, %424, %cst_199 [1] : vector<9x128xf32> to vector<9xf32>
    %430 = vector.shape_cast %429 : vector<9xf32> to vector<9x1xf32>
    %cst_200 = arith.constant 1.280000e+02 : f32
    %431 = vector.broadcast %cst_200 : f32 to vector<9x1xf32>
    %432 = arith.divf %430, %431 : vector<9x1xf32>
    %433 = vector.broadcast %432 : vector<9x1xf32> to vector<9x128xf32>
    %434 = arith.subf %424, %433 : vector<9x128xf32>
    %435 = arith.mulf %434, %434 : vector<9x128xf32>
    %cst_201 = arith.constant dense<0.000000e+00> : vector<9xf32>
    %436 = vector.multi_reduction <add>, %435, %cst_201 [1] : vector<9x128xf32> to vector<9xf32>
    %437 = vector.shape_cast %436 : vector<9xf32> to vector<9x1xf32>
    %cst_202 = arith.constant 1.280000e+02 : f32
    %438 = vector.broadcast %cst_202 : f32 to vector<9x1xf32>
    %439 = arith.divf %437, %438 : vector<9x1xf32>
    %440 = vector.broadcast %432 : vector<9x1xf32> to vector<9x128xf32>
    %441 = arith.subf %424, %440 : vector<9x128xf32>
    %cst_203 = arith.constant 9.99999974E-6 : f32
    %442 = vector.broadcast %cst_203 : f32 to vector<9x1xf32>
    %443 = arith.addf %439, %442 : vector<9x1xf32>
    %444 = math.rsqrt %443 : vector<9x1xf32>
    %445 = vector.broadcast %444 : vector<9x1xf32> to vector<9x128xf32>
    %446 = arith.mulf %441, %445 : vector<9x128xf32>
    %447 = vector.broadcast %426 : vector<1x128xf32> to vector<9x128xf32>
    %448 = arith.mulf %446, %447 : vector<9x128xf32>
    %449 = vector.broadcast %428 : vector<1x128xf32> to vector<9x128xf32>
    %450 = arith.addf %448, %449 : vector<9x128xf32>
    %c2_204 = arith.constant 2 : index
    %c0_205 = arith.constant 0 : index
    %c0_206 = arith.constant 0 : index
    %451 = vector.load %arg14[%c2_204, %c0_205, %c0_206] : memref<4x128x256xf32, #tpu.memory_space<vmem>>, vector<1x128x256xf32>
    %452 = vector.shape_cast %451 : vector<1x128x256xf32> to vector<128x256xf32>
    %cst_207 = arith.constant dense<0.000000e+00> : vector<9x256xf32>
    %453 = tpu.matmul %450, %452, %cst_207 {dimension_numbers = #tpu.dot_dimension_numbers<[1], [0], [0], [1], [0, 0, 1, 1], [], []>} : vector<9x128xf32>, vector<128x256xf32>, vector<9x256xf32> -> vector<9x256xf32>
    %c2_208 = arith.constant 2 : index
    %c0_209 = arith.constant 0 : index
    %c0_210 = arith.constant 0 : index
    %454 = vector.load %arg15[%c2_208, %c0_209, %c0_210] : memref<4x1x256xf32, #tpu.memory_space<vmem>>, vector<1x1x256xf32>
    %455 = vector.shape_cast %454 : vector<1x1x256xf32> to vector<1x256xf32>
    %456 = vector.broadcast %455 : vector<1x256xf32> to vector<9x256xf32>
    %457 = arith.addf %453, %456 : vector<9x256xf32>
    %cst_211 = arith.constant 0.000000e+00 : f32
    %458 = vector.broadcast %cst_211 : f32 to vector<9x256xf32>
    %459 = arith.maximumf %457, %458 : vector<9x256xf32>
    %c2_212 = arith.constant 2 : index
    %c0_213 = arith.constant 0 : index
    %c0_214 = arith.constant 0 : index
    %460 = vector.load %arg16[%c2_212, %c0_213, %c0_214] : memref<4x256x128xf32, #tpu.memory_space<vmem>>, vector<1x256x128xf32>
    %461 = vector.shape_cast %460 : vector<1x256x128xf32> to vector<256x128xf32>
    %cst_215 = arith.constant dense<0.000000e+00> : vector<9x128xf32>
    %462 = tpu.matmul %459, %461, %cst_215 {dimension_numbers = #tpu.dot_dimension_numbers<[1], [0], [0], [1], [0, 0, 1, 1], [], []>} : vector<9x256xf32>, vector<256x128xf32>, vector<9x128xf32> -> vector<9x128xf32>
    %c2_216 = arith.constant 2 : index
    %c0_217 = arith.constant 0 : index
    %c0_218 = arith.constant 0 : index
    %463 = vector.load %arg17[%c2_216, %c0_217, %c0_218] : memref<4x1x128xf32, #tpu.memory_space<vmem>>, vector<1x1x128xf32>
    %464 = vector.shape_cast %463 : vector<1x1x128xf32> to vector<1x128xf32>
    %465 = vector.broadcast %464 : vector<1x128xf32> to vector<9x128xf32>
    %466 = arith.addf %462, %465 : vector<9x128xf32>
    %467 = arith.addf %450, %466 : vector<9x128xf32>
    %c2_219 = arith.constant 2 : index
    %c0_220 = arith.constant 0 : index
    %c0_221 = arith.constant 0 : index
    %468 = vector.load %arg18[%c2_219, %c0_220, %c0_221] : memref<4x1x128xf32, #tpu.memory_space<vmem>>, vector<1x1x128xf32>
    %469 = vector.shape_cast %468 : vector<1x1x128xf32> to vector<1x128xf32>
    %c2_222 = arith.constant 2 : index
    %c0_223 = arith.constant 0 : index
    %c0_224 = arith.constant 0 : index
    %470 = vector.load %arg19[%c2_222, %c0_223, %c0_224] : memref<4x1x128xf32, #tpu.memory_space<vmem>>, vector<1x1x128xf32>
    %471 = vector.shape_cast %470 : vector<1x1x128xf32> to vector<1x128xf32>
    %cst_225 = arith.constant dense<0.000000e+00> : vector<9xf32>
    %472 = vector.multi_reduction <add>, %467, %cst_225 [1] : vector<9x128xf32> to vector<9xf32>
    %473 = vector.shape_cast %472 : vector<9xf32> to vector<9x1xf32>
    %cst_226 = arith.constant 1.280000e+02 : f32
    %474 = vector.broadcast %cst_226 : f32 to vector<9x1xf32>
    %475 = arith.divf %473, %474 : vector<9x1xf32>
    %476 = vector.broadcast %475 : vector<9x1xf32> to vector<9x128xf32>
    %477 = arith.subf %467, %476 : vector<9x128xf32>
    %478 = arith.mulf %477, %477 : vector<9x128xf32>
    %cst_227 = arith.constant dense<0.000000e+00> : vector<9xf32>
    %479 = vector.multi_reduction <add>, %478, %cst_227 [1] : vector<9x128xf32> to vector<9xf32>
    %480 = vector.shape_cast %479 : vector<9xf32> to vector<9x1xf32>
    %cst_228 = arith.constant 1.280000e+02 : f32
    %481 = vector.broadcast %cst_228 : f32 to vector<9x1xf32>
    %482 = arith.divf %480, %481 : vector<9x1xf32>
    %483 = vector.broadcast %475 : vector<9x1xf32> to vector<9x128xf32>
    %484 = arith.subf %467, %483 : vector<9x128xf32>
    %cst_229 = arith.constant 9.99999974E-6 : f32
    %485 = vector.broadcast %cst_229 : f32 to vector<9x1xf32>
    %486 = arith.addf %482, %485 : vector<9x1xf32>
    %487 = math.rsqrt %486 : vector<9x1xf32>
    %488 = vector.broadcast %487 : vector<9x1xf32> to vector<9x128xf32>
    %489 = arith.mulf %484, %488 : vector<9x128xf32>
    %490 = vector.broadcast %469 : vector<1x128xf32> to vector<9x128xf32>
    %491 = arith.mulf %489, %490 : vector<9x128xf32>
    %492 = vector.broadcast %471 : vector<1x128xf32> to vector<9x128xf32>
    %493 = arith.addf %491, %492 : vector<9x128xf32>
    %c3 = arith.constant 3 : index
    %c0_230 = arith.constant 0 : index
    %c0_231 = arith.constant 0 : index
    %494 = vector.load %arg8[%c3, %c0_230, %c0_231] : memref<4x128x384xf32, #tpu.memory_space<vmem>>, vector<1x128x384xf32>
    %495 = vector.shape_cast %494 : vector<1x128x384xf32> to vector<128x384xf32>
    %cst_232 = arith.constant dense<0.000000e+00> : vector<9x384xf32>
    %496 = tpu.matmul %493, %495, %cst_232 {dimension_numbers = #tpu.dot_dimension_numbers<[1], [0], [0], [1], [0, 0, 1, 1], [], []>} : vector<9x128xf32>, vector<128x384xf32>, vector<9x384xf32> -> vector<9x384xf32>
    %c3_233 = arith.constant 3 : index
    %c0_234 = arith.constant 0 : index
    %c0_235 = arith.constant 0 : index
    %497 = vector.load %arg9[%c3_233, %c0_234, %c0_235] : memref<4x1x384xf32, #tpu.memory_space<vmem>>, vector<1x1x384xf32>
    %498 = vector.shape_cast %497 : vector<1x1x384xf32> to vector<1x384xf32>
    %499 = vector.broadcast %498 : vector<1x384xf32> to vector<9x384xf32>
    %500 = arith.addf %496, %499 : vector<9x384xf32>
    %501 = vector.extract_strided_slice %500 {offsets = [0, 0], sizes = [9, 32], strides = [1, 1]} : vector<9x384xf32> to vector<9x32xf32>
    %502 = vector.extract_strided_slice %500 {offsets = [0, 128], sizes = [9, 32], strides = [1, 1]} : vector<9x384xf32> to vector<9x32xf32>
    %503 = vector.extract_strided_slice %500 {offsets = [0, 256], sizes = [9, 32], strides = [1, 1]} : vector<9x384xf32> to vector<9x32xf32>
    %cst_236 = arith.constant dense<0.000000e+00> : vector<9x9xf32>
    %504 = tpu.matmul %501, %502, %cst_236 {dimension_numbers = #tpu.dot_dimension_numbers<[1], [1], [0], [0], [0, 0, 1, 0], [], []>} : vector<9x32xf32>, vector<9x32xf32>, vector<9x9xf32> -> vector<9x9xf32>
    %cst_237 = arith.constant 0.176776692 : f32
    %505 = vector.broadcast %cst_237 : f32 to vector<9x9xf32>
    %506 = arith.mulf %504, %505 : vector<9x9xf32>
    %cst_238 = arith.constant dense<0xFF800000> : vector<9xf32>
    %507 = vector.multi_reduction <maximumf>, %506, %cst_238 [1] : vector<9x9xf32> to vector<9xf32>
    %508 = vector.shape_cast %507 : vector<9xf32> to vector<9x1xf32>
    %509 = vector.broadcast %508 : vector<9x1xf32> to vector<9x9xf32>
    %510 = arith.subf %506, %509 : vector<9x9xf32>
    %511 = math.exp %510 : vector<9x9xf32>
    %cst_239 = arith.constant dense<0.000000e+00> : vector<9xf32>
    %512 = vector.multi_reduction <add>, %511, %cst_239 [1] : vector<9x9xf32> to vector<9xf32>
    %513 = vector.shape_cast %512 : vector<9xf32> to vector<9x1xf32>
    %514 = tpu.reciprocal %513 {approx = true} : vector<9x1xf32> -> vector<9x1xf32>
    %515 = vector.broadcast %514 : vector<9x1xf32> to vector<9x9xf32>
    %516 = arith.mulf %511, %515 : vector<9x9xf32>
    %cst_240 = arith.constant dense<0.000000e+00> : vector<9x32xf32>
    %517 = tpu.matmul %516, %503, %cst_240 {dimension_numbers = #tpu.dot_dimension_numbers<[1], [0], [0], [1], [0, 0, 1, 1], [], []>} : vector<9x9xf32>, vector<9x32xf32>, vector<9x32xf32> -> vector<9x32xf32>
    %518 = vector.extract_strided_slice %500 {offsets = [0, 32], sizes = [9, 32], strides = [1, 1]} : vector<9x384xf32> to vector<9x32xf32>
    %519 = vector.extract_strided_slice %500 {offsets = [0, 160], sizes = [9, 32], strides = [1, 1]} : vector<9x384xf32> to vector<9x32xf32>
    %520 = vector.extract_strided_slice %500 {offsets = [0, 288], sizes = [9, 32], strides = [1, 1]} : vector<9x384xf32> to vector<9x32xf32>
    %cst_241 = arith.constant dense<0.000000e+00> : vector<9x9xf32>
    %521 = tpu.matmul %518, %519, %cst_241 {dimension_numbers = #tpu.dot_dimension_numbers<[1], [1], [0], [0], [0, 0, 1, 0], [], []>} : vector<9x32xf32>, vector<9x32xf32>, vector<9x9xf32> -> vector<9x9xf32>
    %cst_242 = arith.constant 0.176776692 : f32
    %522 = vector.broadcast %cst_242 : f32 to vector<9x9xf32>
    %523 = arith.mulf %521, %522 : vector<9x9xf32>
    %cst_243 = arith.constant dense<0xFF800000> : vector<9xf32>
    %524 = vector.multi_reduction <maximumf>, %523, %cst_243 [1] : vector<9x9xf32> to vector<9xf32>
    %525 = vector.shape_cast %524 : vector<9xf32> to vector<9x1xf32>
    %526 = vector.broadcast %525 : vector<9x1xf32> to vector<9x9xf32>
    %527 = arith.subf %523, %526 : vector<9x9xf32>
    %528 = math.exp %527 : vector<9x9xf32>
    %cst_244 = arith.constant dense<0.000000e+00> : vector<9xf32>
    %529 = vector.multi_reduction <add>, %528, %cst_244 [1] : vector<9x9xf32> to vector<9xf32>
    %530 = vector.shape_cast %529 : vector<9xf32> to vector<9x1xf32>
    %531 = tpu.reciprocal %530 {approx = true} : vector<9x1xf32> -> vector<9x1xf32>
    %532 = vector.broadcast %531 : vector<9x1xf32> to vector<9x9xf32>
    %533 = arith.mulf %528, %532 : vector<9x9xf32>
    %cst_245 = arith.constant dense<0.000000e+00> : vector<9x32xf32>
    %534 = tpu.matmul %533, %520, %cst_245 {dimension_numbers = #tpu.dot_dimension_numbers<[1], [0], [0], [1], [0, 0, 1, 1], [], []>} : vector<9x9xf32>, vector<9x32xf32>, vector<9x32xf32> -> vector<9x32xf32>
    %535 = vector.extract_strided_slice %500 {offsets = [0, 64], sizes = [9, 32], strides = [1, 1]} : vector<9x384xf32> to vector<9x32xf32>
    %536 = vector.extract_strided_slice %500 {offsets = [0, 192], sizes = [9, 32], strides = [1, 1]} : vector<9x384xf32> to vector<9x32xf32>
    %537 = vector.extract_strided_slice %500 {offsets = [0, 320], sizes = [9, 32], strides = [1, 1]} : vector<9x384xf32> to vector<9x32xf32>
    %cst_246 = arith.constant dense<0.000000e+00> : vector<9x9xf32>
    %538 = tpu.matmul %535, %536, %cst_246 {dimension_numbers = #tpu.dot_dimension_numbers<[1], [1], [0], [0], [0, 0, 1, 0], [], []>} : vector<9x32xf32>, vector<9x32xf32>, vector<9x9xf32> -> vector<9x9xf32>
    %cst_247 = arith.constant 0.176776692 : f32
    %539 = vector.broadcast %cst_247 : f32 to vector<9x9xf32>
    %540 = arith.mulf %538, %539 : vector<9x9xf32>
    %cst_248 = arith.constant dense<0xFF800000> : vector<9xf32>
    %541 = vector.multi_reduction <maximumf>, %540, %cst_248 [1] : vector<9x9xf32> to vector<9xf32>
    %542 = vector.shape_cast %541 : vector<9xf32> to vector<9x1xf32>
    %543 = vector.broadcast %542 : vector<9x1xf32> to vector<9x9xf32>
    %544 = arith.subf %540, %543 : vector<9x9xf32>
    %545 = math.exp %544 : vector<9x9xf32>
    %cst_249 = arith.constant dense<0.000000e+00> : vector<9xf32>
    %546 = vector.multi_reduction <add>, %545, %cst_249 [1] : vector<9x9xf32> to vector<9xf32>
    %547 = vector.shape_cast %546 : vector<9xf32> to vector<9x1xf32>
    %548 = tpu.reciprocal %547 {approx = true} : vector<9x1xf32> -> vector<9x1xf32>
    %549 = vector.broadcast %548 : vector<9x1xf32> to vector<9x9xf32>
    %550 = arith.mulf %545, %549 : vector<9x9xf32>
    %cst_250 = arith.constant dense<0.000000e+00> : vector<9x32xf32>
    %551 = tpu.matmul %550, %537, %cst_250 {dimension_numbers = #tpu.dot_dimension_numbers<[1], [0], [0], [1], [0, 0, 1, 1], [], []>} : vector<9x9xf32>, vector<9x32xf32>, vector<9x32xf32> -> vector<9x32xf32>
    %552 = vector.extract_strided_slice %500 {offsets = [0, 96], sizes = [9, 32], strides = [1, 1]} : vector<9x384xf32> to vector<9x32xf32>
    %553 = vector.extract_strided_slice %500 {offsets = [0, 224], sizes = [9, 32], strides = [1, 1]} : vector<9x384xf32> to vector<9x32xf32>
    %554 = vector.extract_strided_slice %500 {offsets = [0, 352], sizes = [9, 32], strides = [1, 1]} : vector<9x384xf32> to vector<9x32xf32>
    %cst_251 = arith.constant dense<0.000000e+00> : vector<9x9xf32>
    %555 = tpu.matmul %552, %553, %cst_251 {dimension_numbers = #tpu.dot_dimension_numbers<[1], [1], [0], [0], [0, 0, 1, 0], [], []>} : vector<9x32xf32>, vector<9x32xf32>, vector<9x9xf32> -> vector<9x9xf32>
    %cst_252 = arith.constant 0.176776692 : f32
    %556 = vector.broadcast %cst_252 : f32 to vector<9x9xf32>
    %557 = arith.mulf %555, %556 : vector<9x9xf32>
    %cst_253 = arith.constant dense<0xFF800000> : vector<9xf32>
    %558 = vector.multi_reduction <maximumf>, %557, %cst_253 [1] : vector<9x9xf32> to vector<9xf32>
    %559 = vector.shape_cast %558 : vector<9xf32> to vector<9x1xf32>
    %560 = vector.broadcast %559 : vector<9x1xf32> to vector<9x9xf32>
    %561 = arith.subf %557, %560 : vector<9x9xf32>
    %562 = math.exp %561 : vector<9x9xf32>
    %cst_254 = arith.constant dense<0.000000e+00> : vector<9xf32>
    %563 = vector.multi_reduction <add>, %562, %cst_254 [1] : vector<9x9xf32> to vector<9xf32>
    %564 = vector.shape_cast %563 : vector<9xf32> to vector<9x1xf32>
    %565 = tpu.reciprocal %564 {approx = true} : vector<9x1xf32> -> vector<9x1xf32>
    %566 = vector.broadcast %565 : vector<9x1xf32> to vector<9x9xf32>
    %567 = arith.mulf %562, %566 : vector<9x9xf32>
    %cst_255 = arith.constant dense<0.000000e+00> : vector<9x32xf32>
    %568 = tpu.matmul %567, %554, %cst_255 {dimension_numbers = #tpu.dot_dimension_numbers<[1], [0], [0], [1], [0, 0, 1, 1], [], []>} : vector<9x9xf32>, vector<9x32xf32>, vector<9x32xf32> -> vector<9x32xf32>
    %569 = tpu.concatenate %517, %534, %551, %568 in 1 : vector<9x32xf32>, vector<9x32xf32>, vector<9x32xf32>, vector<9x32xf32> -> vector<9x128xf32>
    %c3_256 = arith.constant 3 : index
    %c0_257 = arith.constant 0 : index
    %c0_258 = arith.constant 0 : index
    %570 = vector.load %arg10[%c3_256, %c0_257, %c0_258] : memref<4x128x128xf32, #tpu.memory_space<vmem>>, vector<1x128x128xf32>
    %571 = vector.shape_cast %570 : vector<1x128x128xf32> to vector<128x128xf32>
    %cst_259 = arith.constant dense<0.000000e+00> : vector<9x128xf32>
    %572 = tpu.matmul %569, %571, %cst_259 {dimension_numbers = #tpu.dot_dimension_numbers<[1], [0], [0], [1], [0, 0, 1, 1], [], []>} : vector<9x128xf32>, vector<128x128xf32>, vector<9x128xf32> -> vector<9x128xf32>
    %c3_260 = arith.constant 3 : index
    %c0_261 = arith.constant 0 : index
    %c0_262 = arith.constant 0 : index
    %573 = vector.load %arg11[%c3_260, %c0_261, %c0_262] : memref<4x1x128xf32, #tpu.memory_space<vmem>>, vector<1x1x128xf32>
    %574 = vector.shape_cast %573 : vector<1x1x128xf32> to vector<1x128xf32>
    %575 = vector.broadcast %574 : vector<1x128xf32> to vector<9x128xf32>
    %576 = arith.addf %572, %575 : vector<9x128xf32>
    %577 = arith.addf %493, %576 : vector<9x128xf32>
    %c3_263 = arith.constant 3 : index
    %c0_264 = arith.constant 0 : index
    %c0_265 = arith.constant 0 : index
    %578 = vector.load %arg12[%c3_263, %c0_264, %c0_265] : memref<4x1x128xf32, #tpu.memory_space<vmem>>, vector<1x1x128xf32>
    %579 = vector.shape_cast %578 : vector<1x1x128xf32> to vector<1x128xf32>
    %c3_266 = arith.constant 3 : index
    %c0_267 = arith.constant 0 : index
    %c0_268 = arith.constant 0 : index
    %580 = vector.load %arg13[%c3_266, %c0_267, %c0_268] : memref<4x1x128xf32, #tpu.memory_space<vmem>>, vector<1x1x128xf32>
    %581 = vector.shape_cast %580 : vector<1x1x128xf32> to vector<1x128xf32>
    %cst_269 = arith.constant dense<0.000000e+00> : vector<9xf32>
    %582 = vector.multi_reduction <add>, %577, %cst_269 [1] : vector<9x128xf32> to vector<9xf32>
    %583 = vector.shape_cast %582 : vector<9xf32> to vector<9x1xf32>
    %cst_270 = arith.constant 1.280000e+02 : f32
    %584 = vector.broadcast %cst_270 : f32 to vector<9x1xf32>
    %585 = arith.divf %583, %584 : vector<9x1xf32>
    %586 = vector.broadcast %585 : vector<9x1xf32> to vector<9x128xf32>
    %587 = arith.subf %577, %586 : vector<9x128xf32>
    %588 = arith.mulf %587, %587 : vector<9x128xf32>
    %cst_271 = arith.constant dense<0.000000e+00> : vector<9xf32>
    %589 = vector.multi_reduction <add>, %588, %cst_271 [1] : vector<9x128xf32> to vector<9xf32>
    %590 = vector.shape_cast %589 : vector<9xf32> to vector<9x1xf32>
    %cst_272 = arith.constant 1.280000e+02 : f32
    %591 = vector.broadcast %cst_272 : f32 to vector<9x1xf32>
    %592 = arith.divf %590, %591 : vector<9x1xf32>
    %593 = vector.broadcast %585 : vector<9x1xf32> to vector<9x128xf32>
    %594 = arith.subf %577, %593 : vector<9x128xf32>
    %cst_273 = arith.constant 9.99999974E-6 : f32
    %595 = vector.broadcast %cst_273 : f32 to vector<9x1xf32>
    %596 = arith.addf %592, %595 : vector<9x1xf32>
    %597 = math.rsqrt %596 : vector<9x1xf32>
    %598 = vector.broadcast %597 : vector<9x1xf32> to vector<9x128xf32>
    %599 = arith.mulf %594, %598 : vector<9x128xf32>
    %600 = vector.broadcast %579 : vector<1x128xf32> to vector<9x128xf32>
    %601 = arith.mulf %599, %600 : vector<9x128xf32>
    %602 = vector.broadcast %581 : vector<1x128xf32> to vector<9x128xf32>
    %603 = arith.addf %601, %602 : vector<9x128xf32>
    %c3_274 = arith.constant 3 : index
    %c0_275 = arith.constant 0 : index
    %c0_276 = arith.constant 0 : index
    %604 = vector.load %arg14[%c3_274, %c0_275, %c0_276] : memref<4x128x256xf32, #tpu.memory_space<vmem>>, vector<1x128x256xf32>
    %605 = vector.shape_cast %604 : vector<1x128x256xf32> to vector<128x256xf32>
    %cst_277 = arith.constant dense<0.000000e+00> : vector<9x256xf32>
    %606 = tpu.matmul %603, %605, %cst_277 {dimension_numbers = #tpu.dot_dimension_numbers<[1], [0], [0], [1], [0, 0, 1, 1], [], []>} : vector<9x128xf32>, vector<128x256xf32>, vector<9x256xf32> -> vector<9x256xf32>
    %c3_278 = arith.constant 3 : index
    %c0_279 = arith.constant 0 : index
    %c0_280 = arith.constant 0 : index
    %607 = vector.load %arg15[%c3_278, %c0_279, %c0_280] : memref<4x1x256xf32, #tpu.memory_space<vmem>>, vector<1x1x256xf32>
    %608 = vector.shape_cast %607 : vector<1x1x256xf32> to vector<1x256xf32>
    %609 = vector.broadcast %608 : vector<1x256xf32> to vector<9x256xf32>
    %610 = arith.addf %606, %609 : vector<9x256xf32>
    %cst_281 = arith.constant 0.000000e+00 : f32
    %611 = vector.broadcast %cst_281 : f32 to vector<9x256xf32>
    %612 = arith.maximumf %610, %611 : vector<9x256xf32>
    %c3_282 = arith.constant 3 : index
    %c0_283 = arith.constant 0 : index
    %c0_284 = arith.constant 0 : index
    %613 = vector.load %arg16[%c3_282, %c0_283, %c0_284] : memref<4x256x128xf32, #tpu.memory_space<vmem>>, vector<1x256x128xf32>
    %614 = vector.shape_cast %613 : vector<1x256x128xf32> to vector<256x128xf32>
    %cst_285 = arith.constant dense<0.000000e+00> : vector<9x128xf32>
    %615 = tpu.matmul %612, %614, %cst_285 {dimension_numbers = #tpu.dot_dimension_numbers<[1], [0], [0], [1], [0, 0, 1, 1], [], []>} : vector<9x256xf32>, vector<256x128xf32>, vector<9x128xf32> -> vector<9x128xf32>
    %c3_286 = arith.constant 3 : index
    %c0_287 = arith.constant 0 : index
    %c0_288 = arith.constant 0 : index
    %616 = vector.load %arg17[%c3_286, %c0_287, %c0_288] : memref<4x1x128xf32, #tpu.memory_space<vmem>>, vector<1x1x128xf32>
    %617 = vector.shape_cast %616 : vector<1x1x128xf32> to vector<1x128xf32>
    %618 = vector.broadcast %617 : vector<1x128xf32> to vector<9x128xf32>
    %619 = arith.addf %615, %618 : vector<9x128xf32>
    %620 = arith.addf %603, %619 : vector<9x128xf32>
    %c3_289 = arith.constant 3 : index
    %c0_290 = arith.constant 0 : index
    %c0_291 = arith.constant 0 : index
    %621 = vector.load %arg18[%c3_289, %c0_290, %c0_291] : memref<4x1x128xf32, #tpu.memory_space<vmem>>, vector<1x1x128xf32>
    %622 = vector.shape_cast %621 : vector<1x1x128xf32> to vector<1x128xf32>
    %c3_292 = arith.constant 3 : index
    %c0_293 = arith.constant 0 : index
    %c0_294 = arith.constant 0 : index
    %623 = vector.load %arg19[%c3_292, %c0_293, %c0_294] : memref<4x1x128xf32, #tpu.memory_space<vmem>>, vector<1x1x128xf32>
    %624 = vector.shape_cast %623 : vector<1x1x128xf32> to vector<1x128xf32>
    %cst_295 = arith.constant dense<0.000000e+00> : vector<9xf32>
    %625 = vector.multi_reduction <add>, %620, %cst_295 [1] : vector<9x128xf32> to vector<9xf32>
    %626 = vector.shape_cast %625 : vector<9xf32> to vector<9x1xf32>
    %cst_296 = arith.constant 1.280000e+02 : f32
    %627 = vector.broadcast %cst_296 : f32 to vector<9x1xf32>
    %628 = arith.divf %626, %627 : vector<9x1xf32>
    %629 = vector.broadcast %628 : vector<9x1xf32> to vector<9x128xf32>
    %630 = arith.subf %620, %629 : vector<9x128xf32>
    %631 = arith.mulf %630, %630 : vector<9x128xf32>
    %cst_297 = arith.constant dense<0.000000e+00> : vector<9xf32>
    %632 = vector.multi_reduction <add>, %631, %cst_297 [1] : vector<9x128xf32> to vector<9xf32>
    %633 = vector.shape_cast %632 : vector<9xf32> to vector<9x1xf32>
    %cst_298 = arith.constant 1.280000e+02 : f32
    %634 = vector.broadcast %cst_298 : f32 to vector<9x1xf32>
    %635 = arith.divf %633, %634 : vector<9x1xf32>
    %636 = vector.broadcast %628 : vector<9x1xf32> to vector<9x128xf32>
    %637 = arith.subf %620, %636 : vector<9x128xf32>
    %cst_299 = arith.constant 9.99999974E-6 : f32
    %638 = vector.broadcast %cst_299 : f32 to vector<9x1xf32>
    %639 = arith.addf %635, %638 : vector<9x1xf32>
    %640 = math.rsqrt %639 : vector<9x1xf32>
    %641 = vector.broadcast %640 : vector<9x1xf32> to vector<9x128xf32>
    %642 = arith.mulf %637, %641 : vector<9x128xf32>
    %643 = vector.broadcast %622 : vector<1x128xf32> to vector<9x128xf32>
    %644 = arith.mulf %642, %643 : vector<9x128xf32>
    %645 = vector.broadcast %624 : vector<1x128xf32> to vector<9x128xf32>
    %646 = arith.addf %644, %645 : vector<9x128xf32>
    %647 = vector.extract_strided_slice %646 {offsets = [0, 0], sizes = [1, 128], strides = [1, 1]} : vector<9x128xf32> to vector<1x128xf32>
    %c0_300 = arith.constant 0 : index
    %c0_301 = arith.constant 0 : index
    %648 = vector.load %arg20[%c0_300, %c0_301] : memref<128x512xf32, #tpu.memory_space<vmem>>, vector<128x512xf32>
    %cst_302 = arith.constant dense<0.000000e+00> : vector<1x512xf32>
    %649 = tpu.matmul %647, %648, %cst_302 {dimension_numbers = #tpu.dot_dimension_numbers<[1], [0], [0], [1], [0, 0, 1, 1], [], []>} : vector<1x128xf32>, vector<128x512xf32>, vector<1x512xf32> -> vector<1x512xf32>
    %c0_303 = arith.constant 0 : index
    %c0_304 = arith.constant 0 : index
    %650 = vector.load %arg21[%c0_303, %c0_304] : memref<1x512xf32, #tpu.memory_space<vmem>>, vector<1x512xf32>
    %651 = arith.addf %649, %650 : vector<1x512xf32>
    %c0_305 = arith.constant 0 : index
    %c0_306 = arith.constant 0 : index
    %c0_307 = arith.constant 0 : index
    %652 = vector.load %arg22[%c0_305, %c0_306, %c0_307] : memref<1x1x512xf32, #tpu.memory_space<vmem>>, vector<1x1x512xf32>
    %653 = vector.shape_cast %652 : vector<1x1x512xf32> to vector<1x512xf32>
    %654 = vector.shape_cast %651 : vector<1x512xf32> to vector<1x1x512xf32>
    tpu.vector_store %arg22[%c0_305, %c0_306, %c0_307], %654 {strides = array<i32>} : memref<1x1x512xf32, #tpu.memory_space<vmem>>, vector<1x1x512xf32>,
    return
  }
  func.func @transform_0(%arg0: i32) -> (i32, i32, i32) {
    %c0_i32 = arith.constant 0 : i32
    %c0_i32_0 = arith.constant 0 : i32
    %c0_i32_1 = arith.constant 0 : i32
    return %arg0, %c0_i32, %c0_i32_0 : i32, i32, i32
  }
  func.func @transform_1(%arg0: i32) -> (i32, i32) {
    %c0_i32 = arith.constant 0 : i32
    %c0_i32_0 = arith.constant 0 : i32
    %c0_i32_1 = arith.constant 0 : i32
    return %c0_i32, %c0_i32_0 : i32, i32
  }
  func.func @transform_2(%arg0: i32) -> (i32, i32) {
    %c0_i32 = arith.constant 0 : i32
    %c0_i32_0 = arith.constant 0 : i32
    %c0_i32_1 = arith.constant 0 : i32
    return %c0_i32, %c0_i32_0 : i32, i32
  }
  func.func @transform_3(%arg0: i32) -> (i32, i32) {
    %c0_i32 = arith.constant 0 : i32
    %c0_i32_0 = arith.constant 0 : i32
    %c0_i32_1 = arith.constant 0 : i32
    return %c0_i32, %c0_i32_0 : i32, i32
  }
  func.func @transform_4(%arg0: i32) -> (i32, i32) {
    %c0_i32 = arith.constant 0 : i32
    %c0_i32_0 = arith.constant 0 : i32
    %c0_i32_1 = arith.constant 0 : i32
    return %c0_i32, %c0_i32_0 : i32, i32
  }
  func.func @transform_5(%arg0: i32) -> (i32, i32) {
    %c0_i32 = arith.constant 0 : i32
    %c0_i32_0 = arith.constant 0 : i32
    %c0_i32_1 = arith.constant 0 : i32
    return %c0_i32, %c0_i32_0 : i32, i32
  }
  func.func @transform_6(%arg0: i32) -> (i32, i32) {
    %c0_i32 = arith.constant 0 : i32
    %c0_i32_0 = arith.constant 0 : i32
    %c0_i32_1 = arith.constant 0 : i32
    return %c0_i32, %c0_i32_0 : i32, i32
  }
  func.func @transform_7(%arg0: i32) -> (i32, i32, i32) {
    %c0_i32 = arith.constant 0 : i32
    %c0_i32_0 = arith.constant 0 : i32
    %c0_i32_1 = arith.constant 0 : i32
    %c0_i32_2 = arith.constant 0 : i32
    return %c0_i32, %c0_i32_0, %c0_i32_1 : i32, i32, i32
  }
  func.func @transform_8(%arg0: i32) -> (i32, i32, i32) {
    %c0_i32 = arith.constant 0 : i32
    %c0_i32_0 = arith.constant 0 : i32
    %c0_i32_1 = arith.constant 0 : i32
    %c0_i32_2 = arith.constant 0 : i32
    return %c0_i32, %c0_i32_0, %c0_i32_1 : i32, i32, i32
  }
  func.func @transform_9(%arg0: i32) -> (i32, i32, i32) {
    %c0_i32 = arith.constant 0 : i32
    %c0_i32_0 = arith.constant 0 : i32
    %c0_i32_1 = arith.constant 0 : i32
    %c0_i32_2 = arith.constant 0 : i32
    return %c0_i32, %c0_i32_0, %c0_i32_1 : i32, i32, i32
  }
  func.func @transform_10(%arg0: i32) -> (i32, i32, i32) {
    %c0_i32 = arith.constant 0 : i32
    %c0_i32_0 = arith.constant 0 : i32
    %c0_i32_1 = arith.constant 0 : i32
    %c0_i32_2 = arith.constant 0 : i32
    return %c0_i32, %c0_i32_0, %c0_i32_1 : i32, i32, i32
  }
  func.func @transform_11(%arg0: i32) -> (i32, i32, i32) {
    %c0_i32 = arith.constant 0 : i32
    %c0_i32_0 = arith.constant 0 : i32
    %c0_i32_1 = arith.constant 0 : i32
    %c0_i32_2 = arith.constant 0 : i32
    return %c0_i32, %c0_i32_0, %c0_i32_1 : i32, i32, i32
  }
  func.func @transform_12(%arg0: i32) -> (i32, i32, i32) {
    %c0_i32 = arith.constant 0 : i32
    %c0_i32_0 = arith.constant 0 : i32
    %c0_i32_1 = arith.constant 0 : i32
    %c0_i32_2 = arith.constant 0 : i32
    return %c0_i32, %c0_i32_0, %c0_i32_1 : i32, i32, i32
  }
  func.func @transform_13(%arg0: i32) -> (i32, i32, i32) {
    %c0_i32 = arith.constant 0 : i32
    %c0_i32_0 = arith.constant 0 : i32
    %c0_i32_1 = arith.constant 0 : i32
    %c0_i32_2 = arith.constant 0 : i32
    return %c0_i32, %c0_i32_0, %c0_i32_1 : i32, i32, i32
  }
  func.func @transform_14(%arg0: i32) -> (i32, i32, i32) {
    %c0_i32 = arith.constant 0 : i32
    %c0_i32_0 = arith.constant 0 : i32
    %c0_i32_1 = arith.constant 0 : i32
    %c0_i32_2 = arith.constant 0 : i32
    return %c0_i32, %c0_i32_0, %c0_i32_1 : i32, i32, i32
  }
  func.func @transform_15(%arg0: i32) -> (i32, i32, i32) {
    %c0_i32 = arith.constant 0 : i32
    %c0_i32_0 = arith.constant 0 : i32
    %c0_i32_1 = arith.constant 0 : i32
    %c0_i32_2 = arith.constant 0 : i32
    return %c0_i32, %c0_i32_0, %c0_i32_1 : i32, i32, i32
  }
  func.func @transform_16(%arg0: i32) -> (i32, i32, i32) {
    %c0_i32 = arith.constant 0 : i32
    %c0_i32_0 = arith.constant 0 : i32
    %c0_i32_1 = arith.constant 0 : i32
    %c0_i32_2 = arith.constant 0 : i32
    return %c0_i32, %c0_i32_0, %c0_i32_1 : i32, i32, i32
  }
  func.func @transform_17(%arg0: i32) -> (i32, i32, i32) {
    %c0_i32 = arith.constant 0 : i32
    %c0_i32_0 = arith.constant 0 : i32
    %c0_i32_1 = arith.constant 0 : i32
    %c0_i32_2 = arith.constant 0 : i32
    return %c0_i32, %c0_i32_0, %c0_i32_1 : i32, i32, i32
  }
  func.func @transform_18(%arg0: i32) -> (i32, i32, i32) {
    %c0_i32 = arith.constant 0 : i32
    %c0_i32_0 = arith.constant 0 : i32
    %c0_i32_1 = arith.constant 0 : i32
    %c0_i32_2 = arith.constant 0 : i32
    return %c0_i32, %c0_i32_0, %c0_i32_1 : i32, i32, i32
  }
  func.func @transform_19(%arg0: i32) -> (i32, i32) {
    %c0_i32 = arith.constant 0 : i32
    %c0_i32_0 = arith.constant 0 : i32
    %c0_i32_1 = arith.constant 0 : i32
    return %c0_i32, %c0_i32_0 : i32, i32
  }
  func.func @transform_20(%arg0: i32) -> (i32, i32) {
    %c0_i32 = arith.constant 0 : i32
    %c0_i32_0 = arith.constant 0 : i32
    %c0_i32_1 = arith.constant 0 : i32
    return %c0_i32, %c0_i32_0 : i32, i32
  }
  func.func @transform_21(%arg0: i32) -> (i32, i32, i32) {
    %c0_i32 = arith.constant 0 : i32
    %c0_i32_0 = arith.constant 0 : i32
    %c0_i32_1 = arith.constant 0 : i32
    return %arg0, %c0_i32, %c0_i32_0 : i32, i32, i32
  }
}

</mosaic_0001>

<bundles_post_ra>
// kernel: poseformer_forward.1
= control target key start
LH: loop header
LB: loop body
LE: loop exit
PB: predicated region body
PF: predicated region fallthrough
CT: control target
= control target key end

     0   :  { %s11514_s0 = inlined_call_operand.vmem [shape: f32[2,8,132], index: 0, kind: input, shape index: {}]   ;;  %s11515_s1 = inlined_call_operand.hbm [shape: f32[132,128], index: 1, kind: input, shape index: {}]   ;;  %s11516_s2 = inlined_call_operand.vmem [shape: f32[1,128], index: 2, kind: input, shape index: {}]   ;;  %s11517_s3 = inlined_call_operand.hbm [shape: f32[1,128], index: 3, kind: input, shape index: {}]   ;;  %s11518_s4 = inlined_call_operand.hbm [shape: f32[1,128], index: 4, kind: input, shape index: {}]   ;;  %s11519_s5 = inlined_call_operand.hbm [shape: f32[1,128], index: 5, kind: input, shape index: {}]   ;;  %s11520_s6 = inlined_call_operand.vmem [shape: f32[8,128], index: 6, kind: input, shape index: {}]   ;;  %s11521_s7 = inlined_call_operand.hbm [shape: f32[4,128,384], index: 7, kind: input, shape index: {}]   ;;  %s11522_s8 = inlined_call_operand.vmem [shape: f32[4,1,384], index: 8, kind: input, shape index: {}]   ;;  %s11523_s9 = inlined_call_operand.hbm [shape: f32[4,128,128], index: 9, kind: input, shape index: {}]   ;;  %s11524_s10 = inlined_call_operand.vmem [shape: f32[4,1,128], index: 10, kind: input, shape index: {}]   ;;  %s11525_s11 = inlined_call_operand.vmem [shape: f32[4,1,128], index: 11, kind: input, shape index: {}]   ;;  %s11526_s12 = inlined_call_operand.hbm [shape: f32[4,1,128], index: 12, kind: input, shape index: {}]   ;;  %s11527_s13 = inlined_call_operand.hbm [shape: f32[4,128,256], index: 13, kind: input, shape index: {}]   ;;  %s11528_s14 = inlined_call_operand.vmem [shape: f32[4,1,256], index: 14, kind: input, shape index: {}]   ;;  %s11529_s15 = inlined_call_operand.hbm [shape: f32[4,256,128], index: 15, kind: input, shape index: {}]   ;;  %s11530_s16 = inlined_call_operand.vmem [shape: f32[4,1,128], index: 16, kind: input, shape index: {}]   ;;  %s11531_s17 = inlined_call_operand.hbm [shape: f32[4,1,128], index: 17, kind: input, shape index: {}]   ;;  %s11532_s18 = inlined_call_operand.hbm [shape: f32[4,1,128], index: 18, kind: input, shape index: {}]   ;;  %s11533_s19 = inlined_call_operand.hbm [shape: f32[128,512], index: 19, kind: input, shape index: {}]   ;;  %s11534_s20 = inlined_call_operand.hbm [shape: f32[1,512], index: 20, kind: input, shape index: {}]   ;;  %s11535_s21 = inlined_call_operand.vmem [shape: f32[2,1,512], index: 21, kind: output, shape index: {}]  }
   0x1   :  { %11557 = sst [smem:[#allocation30_spill]] %s11514_s0 }
   0x2   :  { %11558 = sst [smem:[#allocation31_spill]] %s11515_s1 }
   0x3   :  { %11559 = sst [smem:[#allocation32_spill]] %s11516_s2 }
   0x4   :  { %11560 = sst [smem:[#allocation33_spill]] %s11517_s3 }
   0x5   :  { %11561 = sst [smem:[#allocation34_spill]] %s11518_s4 }
   0x6   :  { %11562 = sst [smem:[#allocation35_spill]] %s11519_s5 }
   0x7   :  { %11563 = sst [smem:[#allocation36_spill]] %s11523_s9 }
   0x8   :  { %11564 = sst [smem:[#allocation37_spill]] %s11527_s13 }
   0x9   :  { %11565 = sst [smem:[#allocation38_spill]] %s11528_s14 }
   0xa   :  { %11566 = sst [smem:[#allocation39_spill]] %s11530_s16 }
   0xb   :  { %11567 = sst [smem:[#allocation40_spill]] %s11531_s17 }
   0xc   :  { %11568 = sst [smem:[#allocation41_spill]] %s11533_s19 }
   0xd   :  { %11569 = sst [smem:[#allocation42_spill]] %s11535_s21 }
   0xe   :  { %26 = vsyncpa [#allocation3], 0 }
   0xf   :  { %27 = vsyncpa [#allocation5], 0 }
  0x10   :  { %28 = vsyncpa [#allocation8], 0 }
  0x11   :  { %29 = vsyncpa [#allocation11], 0 }
  0x12   :  { %30 = vsyncpa [#allocation14], 0 }
  0x13   :  { %31 = vsyncpa [#allocation17], 0 }
  0x14   :  { %32 = vsyncpa [#allocation20], 0  ;;  %s10424_s2 = smov 0  }
  0x15 LB: > { %11570 = sst [smem:[#allocation29_spill]] %s10283_s2  ;;  %s10285_s25 = smov [#allocation4]   ;;  %s10283_s2 = sphi %s10424_s2, %s38_s2  }
  0x16   : > { %s544_s26 = sshll.u32 %s10285_s25, 4  ;;  %s10430_s27 = sadd.s32 4294967295, %s10283_s2   ;;  %s545_s26 = int_to_ptr.vmem [resolvable:$true] %s544_s26 }
  0x17   : > { %p7351_p0 = scmp.ge.s32.totalorder %s10283_s2, 1  ;;  %p515_p1 = scmp.lt.s32.totalorder %s10283_s2, 3 }
  0x18   : > { %p11541_p2 = scmp.eq.s32.totalorder %s10430_s27, 0  ;;  %s10286_s28 = smov [#allocation7]  }
  0x19   : > { %p10435_p3 = pnand %p7351_p0, %p515_p1  ;;  %s566_s29 = sshll.u32 %s10286_s28, 4  ;;  %s10441_s29 = int_to_ptr.vmem [resolvable:$true] %s566_s29 }
  0x1a   : > { %s10287_s4 = smov [#allocation10]   ;;  %s11573_s23 = sld [smem:[#allocation33_spill]] }
  0x1b   : > { %s11571_s3 = scalar_select %p10435_p3, 1, 0 }
  0x1c   : > { %p9442_p4 = pneg %p10435_p3  ;;  %s595_s30 = sshll.u32 %s10287_s4, 4  ;;  %s10449_s30 = int_to_ptr.vmem [resolvable:$true] %s595_s30 }
  0x1e   : > { %p10445_p5 = pnand %p11541_p2, %p9442_p4 }
  0x20   : > { %s9885_s1 = scalar_lea.hbm %s11573_s23, 16  ;;  %p10459_p7 = pneg %p10445_p5 }
  0x21   : > { %p9886_p6 = scmp.ne.s32.totalorder %s11573_s23, %s9885_s1  ;;  %p9892_p10 = scmp.lt.u32.totalorder %s9885_s1, %s11573_s23 }
  0x23   : > { %p9888_p8 = pnand %p10459_p7, %p9886_p6 }
  0x25   : > { %p9889_p9 = pneg %p9888_p8 }
  0x27   : > { %p9894_p11 = pnand %p9892_p10, %p9889_p9 }
  0x29   : > { %9897 = shalt.err (!%p9894_p11)
}
  0x2a   : > { %s9898_s5 = scalar_lea.vmem %s545_s26, 16  ;;  %s9905_s22 = scalar_lea.vmem %s545_s26, 32 }
  0x2b   : > { %p9899_p12 = scmp.ne.s32.totalorder %s545_s26, %s9898_s5  ;;  %p9906_p1 = scmp.lt.s32.totalorder %s545_s26, %s545_s26 }
  0x2c   : > { %p9907_p4 = scmp.lt.s32.totalorder %s9905_s22, %s9898_s5 }
  0x2d   : > { %p9901_p13 = pnand %p9899_p12, %p10459_p7 }
  0x2e   : > { %p9908_p2 = por %p9907_p4, %p9906_p1 }
  0x2f   : > { %p9902_p0 = pneg %p9901_p13 }
  0x31   : > { %p9909_p3 = pnand %p9908_p2, %p9902_p0 }
  0x33   : > { %9912 = shalt.err (!%p9909_p3)
}
  0x34   : > { %9448 = dma.hbm_to_vmem [thread:$0]  (!%p10445_p5), %s11573_s23, 16, %s545_s26, [#allocation5]  }
  0x35   : > { %s11575_s4 = sld [smem:[#allocation35_spill]] }
  0x3b   : > { %s9913_s21 = scalar_lea.hbm %s11575_s4, 16 }
  0x3c   : > { %p9914_p6 = scmp.ne.s32.totalorder %s11575_s4, %s9913_s21  ;;  %p9920_p2 = scmp.lt.u32.totalorder %s9913_s21, %s11575_s4 }
  0x3e   : > { %p9916_p8 = pnand %p9914_p6, %p10459_p7 }
  0x40   : > { %p9917_p9 = pneg %p9916_p8 }
  0x42   : > { %p9922_p3 = pnand %p9920_p2, %p9917_p9 }
  0x44   : > { %9925 = shalt.err (!%p9922_p3)
}
  0x45   : > { %s9926_s26 = scalar_lea.vmem %s10441_s29, 16  ;;  %s9933_s14 = scalar_lea.vmem %s10441_s29, 32 }
  0x46   : > { %p9927_p10 = scmp.ne.s32.totalorder %s10441_s29, %s9926_s26  ;;  %p9934_p13 = scmp.lt.s32.totalorder %s10441_s29, %s10441_s29 }
  0x47   : > { %p9935_p0 = scmp.lt.s32.totalorder %s9933_s14, %s9926_s26 }
  0x48   : > { %p9929_p11 = pnand %p9927_p10, %p10459_p7 }
  0x49   : > { %p9936_p1 = por %p9935_p0, %p9934_p13 }
  0x4a   : > { %p9930_p12 = pneg %p9929_p11 }
  0x4c   : > { %p9937_p4 = pnand %p9936_p1, %p9930_p12 }
  0x4e   : > { %9940 = shalt.err (!%p9937_p4)
}
  0x4f   : > { %9454 = dma.hbm_to_vmem [thread:$0]  (!%p10445_p5), %s11575_s4, 16, %s10441_s29, [#allocation8]  }
  0x50   : > { %s11576_s9 = sld [smem:[#allocation36_spill]] }
  0x56   : > { %s9941_s2 = scalar_lea.hbm %s11576_s9, 8192 }
  0x57   : > { %p9942_p6 = scmp.ne.s32.totalorder %s11576_s9, %s9941_s2  ;;  %p9948_p2 = scmp.lt.u32.totalorder %s9941_s2, %s11576_s9 }
  0x59   : > { %p9944_p8 = pnand %p9942_p6, %p10459_p7 }
  0x5b   : > { %p9945_p9 = pneg %p9944_p8 }
  0x5d   : > { %p9950_p3 = pnand %p9948_p2, %p9945_p9 }
  0x5f   : > { %9953 = shalt.err (!%p9950_p3)
}
  0x60   : > { %s9954_s29 = scalar_lea.vmem %s10449_s30, 8192  ;;  %p9962_p13 = scmp.lt.s32.totalorder %s10449_s30, %s10449_s30 }
  0x61   : > { %p9955_p10 = scmp.ne.s32.totalorder %s10449_s30, %s9954_s29  ;;  %p9963_p0 = scmp.lt.s32.totalorder %s9954_s29, %s9954_s29 }
  0x63   : > { %p9957_p11 = pnand %p9955_p10, %p10459_p7  ;;  %p9964_p1 = por %p9963_p0, %p9962_p13 }
  0x65   : > { %p9958_p12 = pneg %p9957_p11 }
  0x67   : > { %p9965_p4 = pnand %p9964_p1, %p9958_p12 }
  0x69   : > { %9968 = shalt.err (!%p9965_p4)
}
  0x6a   : > { %s11547_s14 = smov 128   ;;  %s11549_s16 = smov 8  }
  0x6b   : > { %9460 = dma.hbm_to_vmem [thread:$0]  (!%p10445_p5), %s11576_s9, 8192, %s10449_s30, [#allocation11], %s11547_s14, %s11547_s14, %s11549_s16  }
  0x6c   : > { %s10290_s25 = smov [#allocation13]   ;;  %s11577_s13 = sld [smem:[#allocation37_spill]] }
  0x6d   : > { %s627_s2 = sshll.u32 %s10290_s25, 4  ;;  %s628_s2 = int_to_ptr.vmem [resolvable:$true] %s627_s2 }
  0x72   : > { %s9969_s22 = scalar_lea.hbm %s11577_s13, 16384 }
  0x73   : > { %p9970_p6 = scmp.ne.s32.totalorder %s11577_s13, %s9969_s22  ;;  %p9976_p2 = scmp.lt.u32.totalorder %s9969_s22, %s11577_s13 }
  0x75   : > { %p9972_p8 = pnand %p9970_p6, %p10459_p7 }
  0x77   : > { %p9973_p9 = pneg %p9972_p8 }
  0x79   : > { %p9978_p3 = pnand %p9976_p2, %p9973_p9 }
  0x7b   : > { %9981 = shalt.err (!%p9978_p3)
}
  0x7c   : > { %s9982_s30 = scalar_lea.vmem %s628_s2, 16384  ;;  %p9990_p13 = scmp.lt.s32.totalorder %s628_s2, %s628_s2 }
  0x7d   : > { %p9983_p10 = scmp.ne.s32.totalorder %s628_s2, %s9982_s30  ;;  %p9991_p0 = scmp.lt.s32.totalorder %s9982_s30, %s9982_s30 }
  0x7f   : > { %p9985_p11 = pnand %p9983_p10, %p10459_p7  ;;  %p9992_p1 = por %p9991_p0, %p9990_p13 }
  0x81   : > { %p9986_p12 = pneg %p9985_p11 }
  0x83   : > { %p9993_p4 = pnand %p9992_p1, %p9986_p12 }
  0x85   : > { %9996 = shalt.err (!%p9993_p4)
}
  0x86   : > { %s10291_s21 = smov 256   ;;  %s11551_s24 = smov 16  }
  0x87   : > { %9466 = dma.hbm_to_vmem [thread:$0]  (!%p10445_p5), %s11577_s13, 16384, %s628_s2, [#allocation14], %s10291_s21, %s10291_s21, %s11551_s24  }
  0x88   : > { %s10293_s25 = smov [#allocation16]   ;;  %s10294_s5 = smov [#allocation19]  }
  0x89   : > { %s659_s1 = sshll.u32 %s10293_s25, 4  ;;  %s685_s22 = sshll.u32 %s10294_s5, 4  ;;  %s660_s1 = int_to_ptr.vmem [resolvable:$true] %s659_s1  ;;  %s10544_s22 = int_to_ptr.vmem [resolvable:$true] %s685_s22 }
  0x8a   : > { %s11578_s17 = sld [smem:[#allocation40_spill]] }
  0x90   : > { %s9997_s30 = scalar_lea.hbm %s11578_s17, 64 }
  0x91   : > { %p9998_p6 = scmp.ne.s32.totalorder %s11578_s17, %s9997_s30  ;;  %p10004_p2 = scmp.lt.u32.totalorder %s9997_s30, %s11578_s17 }
  0x93   : > { %p10000_p8 = pnand %p9998_p6, %p10459_p7 }
  0x95   : > { %p10001_p9 = pneg %p10000_p8 }
  0x97   : > { %p10006_p3 = pnand %p10004_p2, %p10001_p9 }
  0x99   : > { %10009 = shalt.err (!%p10006_p3)
}
  0x9a   : > { %s10010_s21 = scalar_lea.vmem %s660_s1, 64  ;;  %p10018_p13 = scmp.lt.s32.totalorder %s660_s1, %s660_s1 }
  0x9b   : > { %p10011_p10 = scmp.ne.s32.totalorder %s660_s1, %s10010_s21  ;;  %p10019_p0 = scmp.lt.s32.totalorder %s10010_s21, %s10010_s21 }
  0x9d   : > { %p10013_p11 = pnand %p10011_p10, %p10459_p7  ;;  %p10020_p1 = por %p10019_p0, %p10018_p13 }
  0x9f   : > { %p10014_p12 = pneg %p10013_p11 }
  0xa1   : > { %p10021_p4 = pnand %p10020_p1, %p10014_p12 }
  0xa3   : > { %10024 = shalt.err (!%p10021_p4)
}
  0xa4   : > { %s11553_s14 = smov 1   ;;  %s11579_s19 = sld [smem:[#allocation41_spill]] }
  0xa5   : > { %9472 = dma.hbm_to_vmem [thread:$0]  (!%p10445_p5), %s11578_s17, 64, %s660_s1, [#allocation17], %s11551_s24, %s11551_s24, %s11553_s14  }
  0xaa   : > { %s10025_s26 = scalar_lea.hbm %s11579_s19, 8192 }
  0xab   : > { %p10026_p6 = scmp.ne.s32.totalorder %s11579_s19, %s10025_s26  ;;  %p10032_p2 = scmp.lt.u32.totalorder %s10025_s26, %s11579_s19 }
  0xad   : > { %p10028_p8 = pnand %p10026_p6, %p10459_p7 }
  0xaf   : > { %p10029_p9 = pneg %p10028_p8 }
  0xb1   : > { %p10034_p3 = pnand %p10032_p2, %p10029_p9 }
  0xb3   : > { %10037 = shalt.err (!%p10034_p3)
}
  0xb4   : > { %s10038_s1 = scalar_lea.vmem %s10544_s22, 8192  ;;  %p10046_p13 = scmp.lt.s32.totalorder %s10544_s22, %s10544_s22 }
  0xb5   : > { %p10039_p10 = scmp.ne.s32.totalorder %s10544_s22, %s10038_s1  ;;  %p10047_p0 = scmp.lt.s32.totalorder %s10038_s1, %s10038_s1 }
  0xb7   : > { %p10041_p11 = pnand %p10039_p10, %p10459_p7  ;;  %p10048_p1 = por %p10047_p0, %p10046_p13 }
  0xb9   : > { %p10042_p12 = pneg %p10041_p11 }
  0xbb   : > { %p10049_p4 = pnand %p10048_p1, %p10042_p12 }
  0xbd   : > { %10052 = shalt.err (!%p10049_p4)
}
  0xbe   : > { %s10296_s21 = smov 512   ;;  %s10297_s16 = smov 32  }
  0xbf   : > { %9478 = dma.hbm_to_vmem [thread:$0]  (!%p10445_p5), %s11579_s19, 8192, %s10544_s22, [#allocation20], %s10296_s21, %s10296_s21, %s10297_s16  }
  0xc0   : > { %s10298_s5 = smov [#allocation2]   ;;  %s10299_s29 = smov [#allocation6]  }
  0xc1   : > { %s527_s26 = sshll.u32 %s10298_s5, 4  ;;  %s555_s30 = sshll.u32 %s10299_s29, 4  ;;  %s528_s26 = int_to_ptr.vmem [resolvable:$true] %s527_s26  ;;  %s10590_s30 = int_to_ptr.vmem [resolvable:$true] %s555_s30 }
  0xc2   : > { %s11580_s1 = sld [smem:[#allocation31_spill]] }
  0xc8   : > { %s10053_s24 = scalar_lea.hbm %s11580_s1, 2176 }
  0xc9   : > { %p10054_p6 = scmp.ne.s32.totalorder %s11580_s1, %s10053_s24  ;;  %p10060_p2 = scmp.lt.u32.totalorder %s10053_s24, %s11580_s1 }
  0xcb   : > { %p10056_p8 = pnand %p10054_p6, %p10459_p7 }
  0xcd   : > { %p10057_p9 = pneg %p10056_p8 }
  0xcf   : > { %p10062_p3 = pnand %p10060_p2, %p10057_p9 }
  0xd1   : > { %10065 = shalt.err (!%p10062_p3)
}
  0xd2   : > { %s10066_s21 = scalar_lea.vmem %s528_s26, 2176  ;;  %p10074_p13 = scmp.lt.s32.totalorder %s528_s26, %s528_s26 }
  0xd3   : > { %p10067_p10 = scmp.ne.s32.totalorder %s528_s26, %s10066_s21  ;;  %p10075_p0 = scmp.lt.s32.totalorder %s10066_s21, %s10066_s21 }
  0xd5   : > { %p10069_p11 = pnand %p10067_p10, %p10459_p7  ;;  %p10076_p1 = por %p10075_p0, %p10074_p13 }
  0xd7   : > { %p10070_p12 = pneg %p10069_p11 }
  0xd9   : > { %p10077_p4 = pnand %p10076_p1, %p10070_p12 }
  0xdb   : > { %10080 = shalt.err (!%p10077_p4)
}
  0xdc   : > { %s11581_s9 = smov 8   ;;  %s11582_s14 = smov 128  }
  0xdd   : > { %9445 = dma.hbm_to_vmem [thread:$0]  (!%p10445_p5), %s11580_s1, 2176, %s528_s26, [#allocation3], %s11582_s14, %s11582_s14, %s11581_s9  }
  0xde   : > { %s11583_s29 = sld [smem:[#allocation34_spill]] }
  0xe4   : > { %s10081_s23 = scalar_lea.hbm %s11583_s29, 16 }
  0xe5   : > { %p10082_p6 = scmp.ne.s32.totalorder %s11583_s29, %s10081_s23  ;;  %p10088_p2 = scmp.lt.u32.totalorder %s10081_s23, %s11583_s29 }
  0xe7   : > { %p10084_p8 = pnand %p10082_p6, %p10459_p7 }
  0xe9   : > { %p10085_p9 = pneg %p10084_p8 }
  0xeb   : > { %p10090_p3 = pnand %p10088_p2, %p10085_p9 }
  0xed   : > { %10093 = shalt.err (!%p10090_p3)
}
  0xee   : > { %s10094_s26 = scalar_lea.vmem %s10590_s30, 16  ;;  %s10101_s16 = scalar_lea.vmem %s10590_s30, 32 }
  0xef   : > { %p10095_p10 = scmp.ne.s32.totalorder %s10590_s30, %s10094_s26  ;;  %p10102_p13 = scmp.lt.s32.totalorder %s10590_s30, %s10590_s30 }
  0xf0   : > { %p10103_p0 = scmp.lt.s32.totalorder %s10101_s16, %s10094_s26 }
  0xf1   : > { %p10097_p11 = pnand %p10095_p10, %p10459_p7 }
  0xf2   : > { %p10104_p1 = por %p10103_p0, %p10102_p13 }
  0xf3   : > { %p10098_p12 = pneg %p10097_p11 }
  0xf5   : > { %p10105_p4 = pnand %p10104_p1, %p10098_p12 }
  0xf7   : > { %10108 = shalt.err (!%p10105_p4)
}
  0xf8   : > { %9451 = dma.hbm_to_vmem [thread:$0]  (!%p10445_p5), %s11583_s29, 16, %s10590_s30, [#allocation5]  }
  0xf9   : > { %s10300_s5 = smov [#allocation9]   ;;  %s10109_s22 = scalar_lea.hbm %s11521_s7, 24576 }
  0xfa   : > { %s579_s23 = sshll.u32 %s10300_s5, 4  ;;  %p10110_p6 = scmp.ne.s32.totalorder %s11521_s7, %s10109_s22  ;;  %s580_s23 = int_to_ptr.vmem [resolvable:$true] %s579_s23 }
  0xfb   : > { %p10116_p2 = scmp.lt.u32.totalorder %s10109_s22, %s11521_s7 }
  0xfc   : > { %p10112_p8 = pnand %p10110_p6, %p10459_p7 }
  0xfe   : > { %p10113_p9 = pneg %p10112_p8 }
 0x100   : > { %p10118_p3 = pnand %p10116_p2, %p10113_p9 }
 0x102   : > { %10121 = shalt.err (!%p10118_p3)
}
 0x103   : > { %s10122_s30 = scalar_lea.vmem %s580_s23, 24576  ;;  %p10130_p13 = scmp.lt.s32.totalorder %s580_s23, %s580_s23 }
 0x104   : > { %p10123_p10 = scmp.ne.s32.totalorder %s580_s23, %s10122_s30  ;;  %p10131_p0 = scmp.lt.s32.totalorder %s10122_s30, %s10122_s30 }
 0x106   : > { %p10125_p11 = pnand %p10123_p10, %p10459_p7  ;;  %p10132_p1 = por %p10131_p0, %p10130_p13 }
 0x108   : > { %p10126_p12 = pneg %p10125_p11 }
 0x10a   : > { %p10133_p4 = pnand %p10132_p1, %p10126_p12 }
 0x10c   : > { %10136 = shalt.err (!%p10133_p4)
}
 0x10d   : > { %s10301_s24 = smov 384   ;;  %s10302_s25 = smov 24  }
 0x10e   : > { %9457 = dma.hbm_to_vmem [thread:$0]  (!%p10445_p5), %s11521_s7, 24576, %s580_s23, [#allocation8], %s10301_s24, %s10301_s24, %s10302_s25  }
 0x10f   : > { %s10303_s2 = smov [#allocation12]   ;;  %s10304_s22 = smov [#allocation15]  }
 0x110   : > { %s614_s4 = sshll.u32 %s10303_s2, 4  ;;  %s643_s21 = sshll.u32 %s10304_s22, 4  ;;  %s615_s4 = int_to_ptr.vmem [resolvable:$true] %s614_s4  ;;  %s644_s21 = int_to_ptr.vmem [resolvable:$true] %s643_s21 }
 0x111   : > { %s10137_s30 = scalar_lea.hbm %s11526_s12, 64 }
 0x112   : > { %p10138_p6 = scmp.ne.s32.totalorder %s11526_s12, %s10137_s30  ;;  %p10144_p2 = scmp.lt.u32.totalorder %s10137_s30, %s11526_s12 }
 0x114   : > { %p10140_p8 = pnand %p10138_p6, %p10459_p7 }
 0x116   : > { %p10141_p9 = pneg %p10140_p8 }
 0x118   : > { %p10146_p3 = pnand %p10144_p2, %p10141_p9 }
 0x11a   : > { %10149 = shalt.err (!%p10146_p3)
}
 0x11b   : > { %s10150_s23 = scalar_lea.vmem %s615_s4, 64  ;;  %p10158_p13 = scmp.lt.s32.totalorder %s615_s4, %s615_s4 }
 0x11c   : > { %p10151_p10 = scmp.ne.s32.totalorder %s615_s4, %s10150_s23  ;;  %p10159_p0 = scmp.lt.s32.totalorder %s10150_s23, %s10150_s23 }
 0x11e   : > { %p10153_p11 = pnand %p10151_p10, %p10459_p7  ;;  %p10160_p1 = por %p10159_p0, %p10158_p13 }
 0x120   : > { %p10154_p12 = pneg %p10153_p11 }
 0x122   : > { %p10161_p4 = pnand %p10160_p1, %p10154_p12 }
 0x124   : > { %10164 = shalt.err (!%p10161_p4)
}
 0x125   : > { %s11584_s13 = smov 1   ;;  %s11585_s17 = smov 16  }
 0x126   : > { %9463 = dma.hbm_to_vmem [thread:$0]  (!%p10445_p5), %s11526_s12, 64, %s615_s4, [#allocation11], %s11585_s17, %s11585_s17, %s11584_s13  }
 0x127   : > { %s10165_s1 = scalar_lea.hbm %s11529_s15, 16384 }
 0x128   : > { %p10166_p6 = scmp.ne.s32.totalorder %s11529_s15, %s10165_s1  ;;  %p10172_p2 = scmp.lt.u32.totalorder %s10165_s1, %s11529_s15 }
 0x12a   : > { %p10168_p8 = pnand %p10166_p6, %p10459_p7 }
 0x12c   : > { %p10169_p9 = pneg %p10168_p8 }
 0x12e   : > { %p10174_p3 = pnand %p10172_p2, %p10169_p9 }
 0x130   : > { %10177 = shalt.err (!%p10174_p3)
}
 0x131   : > { %s10178_s16 = scalar_lea.vmem %s644_s21, 16384  ;;  %p10186_p13 = scmp.lt.s32.totalorder %s644_s21, %s644_s21 }
 0x132   : > { %p10179_p10 = scmp.ne.s32.totalorder %s644_s21, %s10178_s16  ;;  %p10187_p0 = scmp.lt.s32.totalorder %s10178_s16, %s10178_s16 }
 0x134   : > { %p10181_p11 = pnand %p10179_p10, %p10459_p7  ;;  %p10188_p1 = por %p10187_p0, %p10186_p13 }
 0x136   : > { %p10182_p12 = pneg %p10181_p11 }
 0x138   : > { %p10189_p4 = pnand %p10188_p1, %p10182_p12 }
 0x13a   : > { %10192 = shalt.err (!%p10189_p4)
}
 0x13b   : > { %9469 = dma.hbm_to_vmem [thread:$0]  (!%p10445_p5), %s11529_s15, 16384, %s644_s21, [#allocation14], %s11582_s14, %s11582_s14, %s11581_s9  }
 0x13c   : > { %s10305_s23 = smov [#allocation18]   ;;  %s10306_s29 = smov [#allocation21]  }
 0x13d   : > { %s672_s19 = sshll.u32 %s10305_s23, 4  ;;  %s699_s24 = sshll.u32 %s10306_s29, 4  ;;  %s673_s19 = int_to_ptr.vmem [resolvable:$true] %s672_s19  ;;  %s700_s24 = int_to_ptr.vmem [resolvable:$true] %s699_s24 }
 0x13e   : > { %s10193_s5 = scalar_lea.hbm %s11532_s18, 64 }
 0x13f   : > { %p10194_p6 = scmp.ne.s32.totalorder %s11532_s18, %s10193_s5  ;;  %p10200_p2 = scmp.lt.u32.totalorder %s10193_s5, %s11532_s18 }
 0x141   : > { %p10196_p8 = pnand %p10194_p6, %p10459_p7 }
 0x143   : > { %p10197_p9 = pneg %p10196_p8 }
 0x145   : > { %p10202_p3 = pnand %p10200_p2, %p10197_p9 }
 0x147   : > { %10205 = shalt.err (!%p10202_p3)
}
 0x148   : > { %s10206_s9 = scalar_lea.vmem %s673_s19, 64  ;;  %p10214_p13 = scmp.lt.s32.totalorder %s673_s19, %s673_s19 }
 0x149   : > { %p10207_p10 = scmp.ne.s32.totalorder %s673_s19, %s10206_s9  ;;  %p10215_p0 = scmp.lt.s32.totalorder %s10206_s9, %s10206_s9 }
 0x14b   : > { %p10209_p11 = pnand %p10207_p10, %p10459_p7  ;;  %p10216_p1 = por %p10215_p0, %p10214_p13 }
 0x14d   : > { %p10210_p12 = pneg %p10209_p11 }
 0x14f   : > { %p10217_p4 = pnand %p10216_p1, %p10210_p12 }
 0x151   : > { %10220 = shalt.err (!%p10217_p4)
}
 0x152   : > { %9475 = dma.hbm_to_vmem [thread:$0]  (!%p10445_p5), %s11532_s18, 64, %s673_s19, [#allocation17], %s11585_s17, %s11585_s17, %s11584_s13  }
 0x153   : > { %s10221_s23 = scalar_lea.hbm %s11534_s20, 64 }
 0x154   : > { %p10222_p6 = scmp.ne.s32.totalorder %s11534_s20, %s10221_s23  ;;  %p10228_p2 = scmp.lt.u32.totalorder %s10221_s23, %s11534_s20 }
 0x156   : > { %p10224_p8 = pnand %p10222_p6, %p10459_p7 }
 0x158   : > { %p10225_p9 = pneg %p10224_p8 }
 0x15a   : > { %p10230_p3 = pnand %p10228_p2, %p10225_p9 }
 0x15c   : > { %10233 = shalt.err (!%p10230_p3)
}
 0x15d   : > { %s10234_s2 = scalar_lea.vmem %s700_s24, 64  ;;  %p10242_p13 = scmp.lt.s32.totalorder %s700_s24, %s700_s24 }
 0x15e   : > { %p10235_p10 = scmp.ne.s32.totalorder %s700_s24, %s10234_s2  ;;  %p10243_p0 = scmp.lt.s32.totalorder %s10234_s2, %s10234_s2 }
 0x160   : > { %p10237_p11 = pnand %p10235_p10, %p10459_p7  ;;  %p10244_p1 = por %p10243_p0, %p10242_p13 }
 0x162   : > { %p10238_p12 = pneg %p10237_p11 }
 0x164   : > { %p10245_p4 = pnand %p10244_p1, %p10238_p12 }
 0x166   : > { %10248 = shalt.err (!%p10245_p4)
}
 0x167   : > { %9481 = dma.hbm_to_vmem [thread:$0]  (!%p10445_p5), %s11534_s20, 64, %s700_s24, [#allocation20]  }
 0x168   : > { %p11586_p6 = scmp.ne.s32.totalorder %s11571_s3, 0 }
 0x169   : > { %p11587_p8 = scmp.eq.s32.totalorder (!%p11586_p6), %s10430_s27, 0 }
 0x16a   : > { %720 = sbr.rel (%p11586_p6) target bundleno = 16093 (0x3edd), region = 104 }
 0x171   : > { %10254 = dma.done.wait (%p11587_p8), [#allocation3], 2176   ;;  %p11588_p7 = pmov %p11587_p8 }
 0x173   : > { %10256 = vsyncadd (%p11588_p7), [#allocation3], 4294965120  ;;  %p11589_p9 = pmov %p11588_p7 }
 0x174   : > { %p11590_p2 = pmov %p11588_p7 }
 0x175   : > { %10258 = dma.done.wait (%p11589_p9), [#allocation5], 32  }
 0x176   : > { %10260 = vsyncadd (%p11590_p2), [#allocation5], 4294967264  ;;  %p11591_p3 = pmov %p11590_p2 }
 0x177   : > { %p11592_p5 = pmov %p11590_p2 }
 0x178   : > { %10262 = dma.done.wait (%p11591_p3), [#allocation8], 24592  }
 0x179   : > { %10264 = vsyncadd (%p11592_p5), [#allocation8], 4294942704  ;;  %p11593_p10 = pmov %p11590_p2 }
 0x17a   : > { %p11594_p11 = pmov %p11590_p2 }
 0x17b   : > { %10266 = dma.done.wait (%p11593_p10), [#allocation11], 8256  }
 0x17c   : > { %10268 = vsyncadd (%p11594_p11), [#allocation11], 4294959040  ;;  %p11595_p12 = pmov %p11590_p2 }
 0x17d   : > { %p11596_p13 = pmov %p11590_p2 }
 0x17e   : > { %10270 = dma.done.wait (%p11595_p12), [#allocation14], 32768  }
 0x17f   : > { %10272 = vsyncadd (%p11596_p13), [#allocation14], 4294934528  ;;  %p11597_p0 = pmov %p11590_p2 }
 0x181   : > { %10274 = dma.done.wait (%p11597_p0), [#allocation17], 128   ;;  %p11598_p1 = pmov %p11597_p0 }
 0x182   : > { %p11599_p4 = pmov %p11597_p0 }
 0x183   : > { %10276 = vsyncadd (%p11598_p1), [#allocation17], 4294967168 }
 0x184   : > { %10278 = dma.done.wait (%p11599_p4), [#allocation20], 8256   ;;  %p11600_p6 = pmov %p11597_p0 }
 0x185   : > { %p827_p8 = scmp.lt.s32.totalorder %s10430_s27, 1  ;;  %v10307_v0 = vmov 0.0|0.0   ;;  %v10308_v1 = vmov 0.0   ;;  %v838_v2 = vld [vmem:[#allocation2] sm:$0xff]  ;;  %v839_v3 = vld [vmem:[#allocation2 + $0x8] sm:$0xff]  ;;  %v840_v4 = vld [vmem:[#allocation2 + $0x10] sm:$0xff] }
 0x186   : > { %10280 = vsyncadd (%p11600_p6), [#allocation20], 4294959040  ;;  %8470 = vmatprep.subr.bf16.mxu0 %v10307_v0  ;;  %1105 = vmatprep.mubr.f32.mxu1 %v10308_v1  ;;  %v8471_v5 = vpack.c.bf16 %v839_v3, %v838_v2  ;;  %v841_v6 = vld [vmem:[#allocation2 + $0x18] sm:$0xff]  ;;  %s11601_s19 = sld [smem:[#allocation30_spill]]  ;;  %vm862_vm0 = vcmask 31744   ;;  %v842_v8 = vld [vmem:[#allocation2 + $0x20] sm:$0xff] }
 0x187   : > { %s11612_s27 = smov (!%p827_p8, %s10430_s27), 1  ;;  %v8474_v7 = vpack.c.bf16 %v841_v6, %v840_v4  ;;  %v843_v9 = vld [vmem:[#allocation2 + $0x28] sm:$0xff]  ;;  %v844_v12 = vld [vmem:[#allocation2 + $0x30] sm:$0xff]  ;;  %v845_v13 = vld [vmem:[#allocation2 + $0x38] sm:$0xff]  ;;  %vm866_vm1 = vcmask 1043456   ;;  %s11602_s16 = sld [smem:[#allocation32_spill]] }
 0x188   : > { %s7541_s3 = sshll.u32 %s11612_s27, 4  ;;  %8472 = vmatpush1.bf16.msra.mxu0 %v8471_v5  ;;  %v8477_v11 = vpack.c.bf16 %v843_v9, %v842_v8  ;;  %v8480_v14 = vpack.c.bf16 %v845_v13, %v844_v12  ;;  %v846_v15 = vld [vmem:[#allocation2 + $0x40] sm:$0xff]  ;;  %v847_v16 = vld [vmem:[#allocation2 + $0x48] sm:$0xff]  ;;  %v848_v18 = vld [vmem:[#allocation2 + $0x50] sm:$0xff]  ;;  %vm974_vm2 = vcmask 1040384   ;;  %vm1193_vm3 = vcmask 261120  }
 0x189   : > { %8473 = vmatprep.subr.bf16.mxu0 %v10307_v0  ;;  %v8483_v17 = vpack.c.bf16 %v847_v16, %v846_v15  ;;  %v849_v19 = vld [vmem:[#allocation2 + $0x58] sm:$0xff]  ;;  %v850_v21 = vld [vmem:[#allocation2 + $0x60] sm:$0xff]  ;;  %v851_v22 = vld [vmem:[#allocation2 + $0x68] sm:$0xff]  ;;  %vm10309_vm5 = vmmov 1   ;;  %vm1283_vm7 = vcmask 72704   ;;  %vm1287_vm8 = vcmask 65536  }
 0x18a   : > { %v8486_v20 = vpack.c.bf16 %v849_v19, %v848_v18  ;;  %v8489_v23 = vpack.c.bf16 %v851_v22, %v850_v21  ;;  %v852_v24 = vld [vmem:[#allocation2 + $0x70] sm:$0xff]  ;;  %v853_v25 = vld [vmem:[#allocation2 + $0x78] sm:$0xff]  ;;  %v854_v27 = vld [vmem:[#allocation2 + $0x80] sm:$0xf]  ;;  %s10310_s30 = smov 96   ;;  %s10311_s23 = smov 64  }
 0x18b   : > { %v8492_v26 = vpack.c.bf16 %v853_v25, %v852_v24  ;;  %v977_v33 = vld [vmem:[#allocation9 + $0x8] sm:$0xff]  ;;  %v980_v34 = vld [vmem:[#allocation9 + $0x20] sm:$0xff]  ;;  %v979_v37 = vld [vmem:[#allocation9 + $0x18] sm:$0xff]  ;;  %s10312_s29 = smov 32   ;;  %vm2027_vm9 = vcmask 523264   ;;  %vm2030_vm10 = vcmask 785408  }
 0x18c   : > { %s10775_s24 = scalar_lea.vmem %s11601_s19, %s7541_s3  ;;  %8475 = vmatpush1.bf16.msra.mxu0 %v8474_v7  ;;  %v976_v35 = vld [vmem:[#allocation9] sm:$0xff]  ;;  %v8494_v36 = vpack.c.bf16 %v980_v34, %v977_v33  ;;  %v983_v38 = vld [vmem:[#allocation9 + $0x38] sm:$0xff]  ;;  %v986_v39 = vld [vmem:[#allocation9 + $0x50] sm:$0xff]  ;;  %s11607_s3 = sld [smem:[#allocation38_spill]] }
 0x18d   : > { %v837_v10 = vld [vmem:[%s10775_s24 + $0x8] sm:$0xff]  ;;  %8476 = vmatprep.subr.bf16.mxu0 %v10307_v0  ;;  %v836_v28 = vld [vmem:[%s10775_s24] sm:$0xff]  ;;  %v8496_v40 = vpack.c.bf16 %v979_v37, %v976_v35  ;;  %v8498_v41 = vpack.c.bf16 %v986_v39, %v983_v38  ;;  %v985_v43 = vld [vmem:[#allocation9 + $0x48] sm:$0xff]  ;;  %s11608_s19 = sld [smem:[#allocation39_spill]]  ;;  %s7382_s2 = sshll.u32 %s11612_s27, 2 }
 0x18e   : > { %7385 = vmatprep.mubr.msk.f32.mxu0 %vm862_vm0, %v837_v10  ;;  %v7383_v29 = vld [vmem:[%s11602_s16] ss:$0 sm:$0xff]  ;;  %8495 = vmatprep.subr.bf16.mxu1 %v8494_v36  ;;  %v989_v49 = vld [vmem:[#allocation9 + $0x68] sm:$0xff]  ;;  %v992_v50 = vld [vmem:[#allocation9 + $0x80] sm:$0xff]  ;;  %s11609_s0 = sld [smem:[#allocation42_spill]] }
 0x18f   : > { %v982_v42 = vld [vmem:[#allocation9 + $0x30] sm:$0xff]  ;;  %8497 = vmatpush1.bf16.msra.mxu1 %v8496_v40  ;;  %v8502_v51 = vpack.c.bf16 %v992_v50, %v989_v49  ;;  %v988_v52 = vld [vmem:[#allocation9 + $0x60] sm:$0xff]  ;;  %v991_v53 = vld [vmem:[#allocation9 + $0x78] sm:$0xff] }
 0x190   : > { %8478 = vmatpush1.bf16.msra.mxu0 %v8477_v11  ;;  %v8500_v44 = vpack.c.bf16 %v985_v43, %v982_v42  ;;  %8499 = vmatprep.subr.bf16.mxu1 %v8498_v41  ;;  %v8504_v54 = vpack.c.bf16 %v991_v53, %v988_v52  ;;  %v995_v55 = vld [vmem:[#allocation9 + $0x98] sm:$0xff]  ;;  %v998_v56 = vld [vmem:[#allocation9 + $0xb0] sm:$0xff]  ;;  %v997_v59 = vld [vmem:[#allocation9 + $0xa8] sm:$0xff] }
 0x191   : > { %8479 = vmatprep.subr.bf16.mxu0 %v10307_v0  ;;  %v8506_v57 = vpack.c.bf16 %v998_v56, %v995_v55  ;;  %v994_v58 = vld [vmem:[#allocation9 + $0x90] sm:$0xff]  ;;  %v1001_v61 = vld [vmem:[#allocation9 + $0xc8] sm:$0xff]  ;;  %v1004_v62 = vld [vmem:[#allocation9 + $0xe0] sm:$0xff] }
 0x192   : > { %v8508_v60 = vpack.c.bf16 %v997_v59, %v994_v58  ;;  %v8510_v63 = vpack.c.bf16 %v1004_v62, %v1001_v61  ;;  %v1003_v2 = vld [vmem:[#allocation9 + $0xd8] sm:$0xff]  ;;  %v1010_v5 = vld [vmem:[#allocation9 + $0x110] sm:$0xff]  ;;  %v1009_v8 = vld [vmem:[#allocation9 + $0x108] sm:$0xff] }
 0x193   : > { %8501 = vmatpush1.bf16.msra.mxu1 %v8500_v44  ;;  %v1007_v4 = vld [vmem:[#allocation9 + $0xf8] sm:$0xff]  ;;  %v1006_v7 = vld [vmem:[#allocation9 + $0xf0] sm:$0xff]  ;;  %v1013_v10 = vld [vmem:[#allocation9 + $0x128] sm:$0xff] }
 0x194   : > { %8481 = vmatpush1.bf16.msra.mxu0 %v8480_v14  ;;  %8503 = vmatprep.subr.bf16.mxu1 %v8502_v51  ;;  %v8514_v6 = vpack.c.bf16 %v1010_v5, %v1007_v4  ;;  %v8516_v9 = vpack.c.bf16 %v1009_v8, %v1006_v7  ;;  %v1016_v11 = vld [vmem:[#allocation9 + $0x140] sm:$0xff]  ;;  %v1015_v14 = vld [vmem:[#allocation9 + $0x138] sm:$0xff]  ;;  %v1018_v18 = vld [vmem:[#allocation9 + $0x150] sm:$0xff]  ;;  %s835_s28 = scalar_lea.vmem %s11609_s0, %s7382_s2 }
 0x195   : > { %8482 = vmatprep.subr.bf16.mxu0 %v10307_v0  ;;  %v8518_v12 = vpack.c.bf16 %v1016_v11, %v1013_v10  ;;  %v1012_v13 = vld [vmem:[#allocation9 + $0x120] sm:$0xff]  ;;  %v1019_v15 = vld [vmem:[#allocation9 + $0x158] sm:$0xff]  ;;  %v1021_v19 = vld [vmem:[#allocation9 + $0x168] sm:$0xff] }
 0x196   : > { %v8520_v16 = vpack.c.bf16 %v1015_v14, %v1012_v13  ;;  %v978_v21 = vld [vmem:[#allocation9 + $0x10] sm:$0xff]  ;;  %v981_v22 = vld [vmem:[#allocation9 + $0x28] sm:$0xff]  ;;  %v984_v36 = vld [vmem:[#allocation9 + $0x40] sm:$0xff] }
 0x197   : > { %8505 = vmatpush1.bf16.msra.mxu1 %v8504_v54  ;;  %v8526_v24 = vpack.c.bf16 %v981_v22, %v978_v21  ;;  %v969_v33 = vld [vmem:[%s11520_s6] sm:$0xff]  ;;  %v968_v38 = vld [vmem:[#allocation7] sm:$0x1]  ;;  %v993_v43 = vld [vmem:[#allocation9 + $0x88] sm:$0xff] }
 0x198   : > { %8484 = vmatpush1.bf16.msra.mxu0 %v8483_v17  ;;  %8507 = vmatprep.subr.bf16.mxu1 %v8506_v57  ;;  %v1022_v17 = vld [vmem:[#allocation9 + $0x170] sm:$0xff]  ;;  %v987_v37 = vld [vmem:[#allocation9 + $0x58] sm:$0xff]  ;;  %v1005_v49 = vld [vmem:[#allocation9 + $0xe8] sm:$0xff] }
 0x199   : > { %8485 = vmatprep.subr.bf16.mxu0 %v10307_v0  ;;  %v8530_v40 = vpack.c.bf16 %v987_v37, %v984_v36  ;;  %v990_v42 = vld [vmem:[#allocation9 + $0x70] sm:$0xff]  ;;  %v1008_v51 = vld [vmem:[#allocation9 + $0x100] sm:$0xff]  ;;  %v1011_v52 = vld [vmem:[#allocation9 + $0x118] sm:$0xff] }
 0x19a   : > { %v8534_v44 = vpack.c.bf16 %v993_v43, %v990_v42  ;;  %v8546_v53 = vpack.c.bf16 %v1011_v52, %v1008_v51  ;;  %v1014_v54 = vld [vmem:[#allocation9 + $0x130] sm:$0xff]  ;;  %v1017_v55 = vld [vmem:[#allocation9 + $0x148] sm:$0xff]  ;;  %v1020_v57 = vld [vmem:[#allocation9 + $0x160] sm:$0xff] }
 0x19b   : > { %8509 = vmatpush1.bf16.msra.mxu1 %v8508_v60  ;;  %v8550_v56 = vpack.c.bf16 %v1017_v55, %v1014_v54  ;;  %v1023_v58 = vld [vmem:[#allocation9 + $0x178] sm:$0xff]  ;;  %v1026_v60 = vlaneseq  ;;  %vm10817_vm4 = vmpackc.low %vm1193_vm3, %vm1193_vm3  ;;  %v6497_v21 = vld [vmem:[#allocation10 + $0x1b0] sm:$0xff] }
 0x19c   : > { %8487 = vmatpush1.bf16.msra.mxu0 %v8486_v20  ;;  %8511 = vmatprep.subr.bf16.mxu1 %v8510_v63  ;;  %v8522_v20 = vpack.c.bf16 %v1022_v17, %v1019_v15  ;;  %v8554_v59 = vpack.c.bf16 %v1023_v58, %v1020_v57  ;;  %v1024_v63 = vld [vmem:[%s11522_s8] sm:$0x7]  ;;  %vm10836_vm6 = vmpackc.low %vm974_vm2, %vm10309_vm5 }
 0x19d   : > { %8488 = vmatprep.subr.bf16.mxu0 %v10307_v0  ;;  %v10798_v61 = vshrl.u32 %v1026_v60, 7  ;;  %vm7167_vm11 = vcmp.lt.s32.totalorder %v1026_v60, 512 }
 0x19f   : > { %v10801_v62 = vsub.s32 0, %v10798_v61  ;;  %v10832_v15 = vsub.s32 2, %v10798_v61 }
 0x1a0   : > { %8490 = vmatpush1.bf16.msra.mxu0 %v8489_v23  ;;  %v8524_v23 = vpack.c.bf16 %v1021_v19, %v1018_v18 }
 0x1a1   : > { %8491 = vmatprep.subr.bf16.mxu0 %v10307_v0  ;;  %v1000_v0 = vld [vmem:[#allocation9 + $0xc0] sm:$0xff] }
 0x1a2   : > { %v8512_v3 = vpack.c.bf16 %v1003_v2, %v1000_v0  ;;  %v1029_v0 = vrot.slane %v1024_v63, %v10801_v62  ;;  %v10808_v2 = vsub.s32 1, %v10798_v61 }
 0x1a4   : > { %8493 = vmatpush1.bf16.msra.mxu0 %v8492_v26  ;;  %8513 = vmatpush1.bf16.msra.mxu1 %v8512_v3 }
 0x1a5   : > { %902 = vmatprep.subr.mxu0 %v10308_v1  ;;  %8515 = vmatprep.subr.bf16.mxu1 %v8514_v6  ;;  %v1033_v6 = vrot.slane %v1024_v63, %v10808_v2 }
 0x1a8   : > { %7384 = vmatpush1.msk.msra.mxu0 %vm866_vm1, %v854_v27  ;;  %8517 = vmatpush1.bf16.msra.mxu1 %v8516_v9 }
 0x1a9   : > { %935 = vmatmul.mubr.f32.vlgmr.msra.gmra.mrb[0].mxu0 %v836_v28  ;;  %8519 = vmatprep.subr.bf16.mxu1 %v8518_v12 }
 0x1ac   : > { %8521 = vmatpush1.bf16.msra.mxu1 %v8520_v16  ;;  %v1037_v16 = vrot.slane %v1024_v63, %v10832_v15 }
 0x1ad   : > { %8523 = vmatprep.subr.bf16.mxu1 %v8522_v20 }
 0x1b0   : > { %8525 = vmatpush1.bf16.msra.mxu1 %v8524_v23 }
 0x1b1   : > { %8527 = vmatprep.subr.bf16.mxu1 %v8526_v24 }
 0x27c   : > { %v936_v30 = vpop.f32.mrb[0].mxu0 }
 0x27d   : > { %v937_v31 = vadd.f32 %v7383_v29, %v936_v30  ;;  %v938_v32 = vpop.f32.mrb[1].mxu0  ;;  %v7386_v29 = vld [vmem:[#allocation4] ss:$0 sm:$0xff] }
 0x27f   : > { %942 = vadd.xlane.f32.xlu0 %v937_v31 }
 0x30c   : > { %v943_v45 = vpop.xlane.xlu0 %942 }
 0x30d   : > { %v945_v46 = vmul.f32 0.0078125, %v943_v45  ;;  %v996_v45 = vld [vmem:[#allocation9 + $0xa0] sm:$0xff] }
 0x30f   : > { %v946_v47 = vsub.f32 %v937_v31, %v945_v46  ;;  %v7387_v31 = vld [vmem:[#allocation6] ss:$0 sm:$0xff] }
 0x310   : > { %v999_v46 = vld [vmem:[#allocation9 + $0xb8] sm:$0xff] }
 0x311   : > { %v947_v48 = vmul.f32 %v946_v47, %v946_v47 }
 0x313   : > { %948 = vadd.xlane.f32.xlu0 %v947_v48  ;;  %v1002_v48 = vld [vmem:[#allocation9 + $0xd0] sm:$0xff] }
 0x314   : > { %v8542_v50 = vpack.c.bf16 %v1005_v49, %v1002_v48 }
 0x3a0   : > { %v949_v25 = vpop.xlane.xlu0 %948 }
 0x3a1   : > { %v950_v26 = vmul.f32 0.0078125, %v949_v25 }
 0x3a3   : > { %v951_v27 = vadd.f32 1e-05, %v950_v26 }
 0x3a5   : > { %9725 = vrsqrt.f32 %v951_v27 }
 0x3af   : > { %v9726_v28 = vpop.eup %9725 }
 0x3b0   : > { %v953_v30 = vmul.f32 %v9726_v28, %v946_v47  ;;  %v8538_v47 = vpack.c.bf16 %v999_v46, %v996_v45 }
 0x3b2   : > { %v960_v32 = vmul.f32 %v7386_v29, %v953_v30 }
 0x3b4   : > { %v967_v34 = vadd.f32 %v7387_v31, %v960_v32 }
 0x3b6   : > { %v970_v35 = vadd.f32 %v969_v33, %v967_v34 }
 0x3b8   : > { %v10786_v39 = vrot.slane %v970_v35, 7 }
 0x3ba   : > { %v10790_v41 = vsel %vm974_vm2, %v968_v38, %v10786_v39 }
 0x3bb   : > { %1106 = vmatmul.mubr.f32.vlgmr.msra.gmra.mrb[0].mxu1 %v10790_v41 }
 0x3bc   : > { %8529 = vmatpush3.bf16.msra.mxu1 %v8526_v24  ;;  %1111 = vmatprep.mubr.f32.mxu1 %v10308_v1 }
 0x3bd   : > { %8531 = vmatprep.subr.bf16.mxu1 %v8530_v40 }
 0x3bf   : > { %1112 = vmatmul.mubr.f32.gmra.mrb[2].mxu1 %v10786_v39 }
 0x3c0   : > { %8533 = vmatpush3.bf16.msra.mxu1 %v8530_v40  ;;  %7998 = vmatprep.mubr.f32.mxu1 %v10790_v41 }
 0x3c1   : > { %8535 = vmatprep.subr.bf16.mxu1 %v8534_v44 }
 0x3c4   : > { %8537 = vmatpush3.bf16.msra.mxu1 %v8534_v44 }
 0x3c5   : > { %8539 = vmatprep.subr.bf16.mxu1 %v8538_v47 }
 0x3c8   : > { %8541 = vmatpush3.bf16.msra.mxu1 %v8538_v47 }
 0x3c9   : > { %8543 = vmatprep.subr.bf16.mxu1 %v8542_v50 }
 0x3cc   : > { %8545 = vmatpush3.bf16.msra.mxu1 %v8542_v50 }
 0x3cd   : > { %8547 = vmatprep.subr.bf16.mxu1 %v8546_v53 }
 0x3d0   : > { %8549 = vmatpush3.bf16.msra.mxu1 %v8546_v53 }
 0x3d1   : > { %8551 = vmatprep.subr.bf16.mxu1 %v8550_v56 }
 0x3d4   : > { %8553 = vmatpush3.bf16.msra.mxu1 %v8550_v56 }
 0x3d5   : > { %8555 = vmatprep.subr.bf16.mxu1 %v8554_v59 }
 0x3d8   : > { %8557 = vmatpush3.bf16.msra.mxu1 %v8554_v59 }
 0x3db   : > { %7999 = vmatmul.mubr.f32.vlgmr.msra.gmra.mrb[4].mxu1 %v10786_v39 }
 0x48e   : > { %v1107_v3 = vpop.f32.mrb[0].mxu1 }
 0x48f   : > { %v10810_v4 = vadd.f32 %v1107_v3, %v1029_v0  ;;  %v1109_v5 = vpop.f32.mrb[1].mxu1 }
 0x490   : > { %v1110_v9 = vadd.f32 %v1109_v5, %v1033_v6 }
 0x491   : > { %8005 = vmatprep.mubr.msk.f32.mxu0 %vm1193_vm3, %v10810_v4 }
 0x492   : > { %v1113_v7 = vpop.f32.mrb[2].mxu1 }
 0x493   : > { %v1115_v8 = vpop.f32.mrb[3].mxu1  ;;  %v10827_v14 = vadd.f32 %v1113_v7, %v1029_v0 }
 0x494   : > { %v1116_v10 = vadd.f32 %v1115_v8, %v1033_v6 }
 0x496   : > { %v8558_v12 = vpack.c.bf16 %v1116_v10, %v1110_v9  ;;  %v10821_v13 = vpack.i.bf16 %v1116_v10, %v1110_v9 }
 0x498   : > { %8560 = vmatprep.subr.msk.bf16.mxu0 %vm10817_vm4, %v8558_v12 }
 0x499   : > { %8563 = vmatpush3.bf16.xpose.msk.msra.mxu0 %vm10817_vm4, %v8558_v12 }
 0x4a0   : > { %8006 = vmatmul.mubr.msk.f32.vlgmr.msra.gmra.mrb[2].mxu0 %vm1193_vm3, %v10827_v14 }
 0x4ae   : > { %v8000_v17 = vpop.f32.mrb[4].mxu1 }
 0x4af   : > { %v1190_v18 = vadd.f32 %v8000_v17, %v1037_v16  ;;  %v1184_v19 = vpop.f32.mrb[5].mxu1 }
 0x4b0   : > { %v1185_v20 = vadd.f32 %v1184_v19, %v1037_v16 }
 0x4b2   : > { %v8564_v22 = vpack.c.bf16 %v1190_v18, %v1185_v20  ;;  %v10840_v23 = vpack.i.bf16 %v1190_v18, %v1185_v20 }
 0x4b4   : > { %8566 = vmatprep.subr.msk.bf16.mxu0 %vm10836_vm6, %v8564_v22 }
 0x4b5   : > { %8569 = vmatpush3.bf16.msk.msra.mxu0 %vm10836_vm6, %v8564_v22 }
 0x573   : > { %v8007_v24 = vpop.f32.mrb[2].mxu0 }
 0x574   : > { %v1272_v25 = vpop.f32.mrb[3].mxu0  ;;  %v1282_v27 = vmul.f32 0.17677669, %v8007_v24 }
 0x575   : > { %v1281_v26 = vmul.f32 0.17677669, %v1272_v25 }
 0x576   : > { %v1288_v29 = vsel %vm1287_vm8, %v1282_v27, -inf }
 0x577   : > { %v1284_v28 = vsel %vm1283_vm7, %v1281_v26, -inf }
 0x578   : > { %1285 = vmax.xlane.f32.xlu1 %v1284_v28 }
 0x57c   : > { %1289 = vmax.xlane.f32.xlu1 %v1288_v29 }
 0x605   : > { %v1286_v30 = vpop.xlane.xlu1 %1285 }
 0x606   : > { %v1291_v31 = vsub.f32 %v1281_v26, %v1286_v30 }
 0x608   : > { %v1293_v32 = vmul.f32 1.442695, %v1291_v31 }
 0x609   : > { %v1290_v33 = vpop.xlane.xlu1 %1289 }
 0x60a   : > { %9727 = vpow2.f32 %v1293_v32  ;;  %v1292_v34 = vsub.f32 %v1282_v27, %v1290_v33 }
 0x60c   : > { %v1295_v35 = vmul.f32 1.442695, %v1292_v34 }
 0x60e   : > { %9729 = vpow2.f32 %v1295_v35 }
 0x614   : > { %v9728_v36 = vpop.eup %9727 }
 0x615   : > { %v1297_v37 = vsel %vm1283_vm7, %v9728_v36, 0.0 }
 0x616   : > { %1298 = vadd.xlane.f32.xlu0 %v1297_v37 }
 0x618   : > { %v9730_v38 = vpop.eup %9729 }
 0x619   : > { %v1300_v40 = vsel %vm1287_vm8, %v9730_v38, 0.0 }
 0x61a   : > { %1301 = vadd.xlane.f32.xlu1 %v1300_v40 }
 0x62b   : > { %1391 = vrot.lane.b32.xlu1 %v10810_v4, %s10310_s30 }
 0x62c   : > { %9546 = vrot.lane.b32.xlu0 %v10821_v13, %s10310_s30 }
 0x62f   : > { %1393 = vrot.lane.b32.xlu1 %v10827_v14, %s10310_s30 }
 0x6a3   : > { %v1299_v42 = vpop.xlane.xlu0 %1298 }
 0x6a4   : > { %9731 = vrcp.f32 %v1299_v42 }
 0x6a7   : > { %v9547_v43 = vpop.permute.xlu0 %9546  ;;  %v1302_v44 = vpop.xlane.xlu1 %1301 }
 0x6a8   : > { %v9549_v45 = vunpack.i.h.bf16 %v9547_v43  ;;  %v9548_v46 = vunpack.i.l.bf16 %v9547_v43  ;;  %9733 = vrcp.f32 %v1302_v44 }
 0x6aa   : > { %v8570_v47 = vpack.c.bf16 %v9549_v45, %v9548_v46 }
 0x6ab   : > { %v1392_v52 = vpop.permute.xlu1 %1391 }
 0x6ac   : > { %8572 = vmatprep.subr.msk.bf16.mxu0 %vm10817_vm4, %v8570_v47 }
 0x6ae   : > { %v9732_v48 = vpop.eup %9731 }
 0x6af   : > { %v1305_v49 = vmul.f32 %v9732_v48, %v9728_v36  ;;  %v1394_v53 = vpop.permute.xlu1 %1393 }
 0x6b1   : > { %8012 = vmatprep.mubr.msk.f32.mxu0 %vm1283_vm7, %v1305_v49 }
 0x6b2   : > { %v9734_v50 = vpop.eup %9733 }
 0x6b3   : > { %v1306_v51 = vmul.f32 %v9734_v50, %v9730_v38 }
 0x6b5   : > { %8013 = vmatmul.mubr.msk.f32.vlgmr.msra.gmra.mrb[4].mxu0 %vm1283_vm7, %v1306_v51 }
 0x6b6   : > { %8575 = vmatpush3.bf16.xpose.msk.msra.mxu0 %vm10817_vm4, %v8570_v47  ;;  %8019 = vmatprep.mubr.msk.f32.mxu0 %vm1193_vm3, %v1392_v52 }
 0x6bd   : > { %8020 = vmatmul.mubr.msk.f32.vlgmr.msra.gmra.mrb[6].mxu0 %vm1193_vm3, %v1394_v53 }
 0x788   : > { %v10864_v54 = vpop.f32.mrb[4].mxu0 }
 0x789   : > { %v10866_v55 = vpop.f32.mrb[5].mxu0 }
 0x790   : > { %v8021_v56 = vpop.f32.mrb[6].mxu0 }
 0x791   : > { %v1483_v57 = vmul.f32 0.17677669, %v8021_v56  ;;  %v1473_v58 = vpop.f32.mrb[7].mxu0 }
 0x792   : > { %v1482_v59 = vmul.f32 0.17677669, %v1473_v58 }
 0x793   : > { %v1487_v63 = vsel %vm1287_vm8, %v1483_v57, -inf }
 0x794   : > { %1488 = vmax.xlane.f32.xlu0 %v1487_v63  ;;  %v1484_v0 = vsel %vm1283_vm7, %v1482_v59, -inf }
 0x795   : > { %1485 = vmax.xlane.f32.xlu1 %v1484_v0 }
 0x7a6   : > { %9551 = vrot.lane.b32.xlu1 %v10840_v23, %s10310_s30 }
 0x7aa   : > { %1595 = vrot.lane.b32.xlu1 %v10810_v4, %s10311_s23 }
 0x7ae   : > { %1597 = vrot.lane.b32.xlu1 %v10827_v14, %s10311_s23 }
 0x821   : > { %v1489_v3 = vpop.xlane.xlu0 %1488 }
 0x822   : > { %v1491_v5 = vsub.f32 %v1483_v57, %v1489_v3  ;;  %v1486_v6 = vpop.xlane.xlu1 %1485 }
 0x823   : > { %v1490_v7 = vsub.f32 %v1482_v59, %v1486_v6 }
 0x824   : > { %v1494_v8 = vmul.f32 1.442695, %v1491_v5 }
 0x825   : > { %v1492_v9 = vmul.f32 1.442695, %v1490_v7 }
 0x826   : > { %9735 = vpow2.f32 %v1494_v8  ;;  %v9552_v10 = vpop.permute.xlu1 %9551 }
 0x827   : > { %v9554_v12 = vunpack.i.h.bf16 %v9552_v10  ;;  %v9553_v16 = vunpack.i.l.bf16 %v9552_v10  ;;  %9737 = vpow2.f32 %v1492_v9 }
 0x829   : > { %v8576_v17 = vpack.c.bf16 %v9554_v12, %v9553_v16 }
 0x82a   : > { %v1596_v34 = vpop.permute.xlu1 %1595 }
 0x82b   : > { %8578 = vmatprep.subr.msk.bf16.mxu0 %vm10836_vm6, %v8576_v17 }
 0x82c   : > { %8581 = vmatpush3.bf16.msk.msra.mxu0 %vm10836_vm6, %v8576_v17 }
 0x82e   : > { %v1598_v35 = vpop.permute.xlu1 %1597 }
 0x830   : > { %v9736_v18 = vpop.eup %9735 }
 0x831   : > { %v1499_v19 = vsel %vm1287_vm8, %v9736_v18, 0.0  ;;  %v9738_v20 = vpop.eup %9737 }
 0x832   : > { %1500 = vadd.xlane.f32.xlu0 %v1499_v19  ;;  %v1496_v22 = vsel %vm1283_vm7, %v9738_v20, 0.0 }
 0x836   : > { %1497 = vadd.xlane.f32.xlu0 %v1496_v22 }
 0x84c   : > { %9556 = vrot.lane.b32.xlu0 %v10821_v13, %s10311_s23 }
 0x8bf   : > { %v1501_v24 = vpop.xlane.xlu0 %1500 }
 0x8c0   : > { %9739 = vrcp.f32 %v1501_v24 }
 0x8c3   : > { %v1498_v25 = vpop.xlane.xlu0 %1497 }
 0x8c4   : > { %9741 = vrcp.f32 %v1498_v25 }
 0x8c7   : > { %v9557_v26 = vpop.permute.xlu0 %9556 }
 0x8c8   : > { %v9559_v27 = vunpack.i.h.bf16 %v9557_v26  ;;  %v9558_v28 = vunpack.i.l.bf16 %v9557_v26 }
 0x8ca   : > { %v8582_v29 = vpack.c.bf16 %v9559_v27, %v9558_v28  ;;  %v9740_v30 = vpop.eup %9739 }
 0x8cb   : > { %v1505_v33 = vmul.f32 %v9740_v30, %v9736_v18 }
 0x8cc   : > { %8584 = vmatprep.subr.msk.bf16.mxu0 %vm10817_vm4, %v8582_v29 }
 0x8ce   : > { %v9742_v31 = vpop.eup %9741 }
 0x8cf   : > { %v1504_v32 = vmul.f32 %v9742_v31, %v9738_v20 }
 0x8d1   : > { %8026 = vmatprep.mubr.msk.f32.mxu0 %vm1283_vm7, %v1504_v32 }
 0x8d2   : > { %8027 = vmatmul.mubr.msk.f32.vlgmr.msra.gmra.mrb[8].mxu0 %vm1283_vm7, %v1505_v33 }
 0x8d3   : > { %8587 = vmatpush3.bf16.xpose.msk.msra.mxu0 %vm10817_vm4, %v8582_v29  ;;  %8033 = vmatprep.mubr.msk.f32.mxu0 %vm1193_vm3, %v1596_v34 }
 0x8da   : > { %8034 = vmatmul.mubr.msk.f32.vlgmr.msra.gmra.mrb[10].mxu0 %vm1193_vm3, %v1598_v35 }
 0x9a5   : > { %v10892_v36 = vpop.f32.mrb[8].mxu0 }
 0x9a6   : > { %v10894_v37 = vpop.f32.mrb[9].mxu0 }
 0x9a7   : > { %v9575_v38 = vpack.i.bf16 %v10892_v36, %v10894_v37  ;;  %v2036_v36 = vld [vmem:[#allocation10 + $0x18] sm:$0xff] }
 0x9ad   : > { %v8035_v40 = vpop.f32.mrb[10].mxu0 }
 0x9ae   : > { %v1687_v42 = vmul.f32 0.17677669, %v8035_v40  ;;  %v1677_v43 = vpop.f32.mrb[11].mxu0 }
 0x9af   : > { %v1686_v44 = vmul.f32 0.17677669, %v1677_v43 }
 0x9b0   : > { %v1691_v45 = vsel %vm1287_vm8, %v1687_v42, -inf }
 0x9b1   : > { %1692 = vmax.xlane.f32.xlu0 %v1691_v45  ;;  %v1688_v46 = vsel %vm1283_vm7, %v1686_v44, -inf }
 0x9b2   : > { %1689 = vmax.xlane.f32.xlu1 %v1688_v46 }
 0x9c3   : > { %9561 = vrot.lane.b32.xlu1 %v10840_v23, %s10311_s23 }
 0x9c7   : > { %1798 = vrot.lane.b32.xlu1 %v10810_v4, %s10312_s29 }
 0x9cb   : > { %1800 = vrot.lane.b32.xlu1 %v10827_v14, %s10312_s29 }
 0xa3e   : > { %v1693_v47 = vpop.xlane.xlu0 %1692 }
 0xa3f   : > { %v1695_v48 = vsub.f32 %v1687_v42, %v1693_v47  ;;  %v1690_v49 = vpop.xlane.xlu1 %1689 }
 0xa40   : > { %v1694_v50 = vsub.f32 %v1686_v44, %v1690_v49 }
 0xa41   : > { %v1698_v51 = vmul.f32 1.442695, %v1695_v48 }
 0xa42   : > { %v1696_v52 = vmul.f32 1.442695, %v1694_v50 }
 0xa43   : > { %9743 = vpow2.f32 %v1698_v51  ;;  %v9562_v53 = vpop.permute.xlu1 %9561 }
 0xa44   : > { %v9564_v56 = vunpack.i.h.bf16 %v9562_v53  ;;  %v9563_v57 = vunpack.i.l.bf16 %v9562_v53  ;;  %9745 = vpow2.f32 %v1696_v52  ;;  %v2033_v53 = vld [vmem:[#allocation10] sm:$0xff] }
 0xa46   : > { %v8588_v58 = vpack.c.bf16 %v9564_v56, %v9563_v57  ;;  %v2034_v56 = vld [vmem:[#allocation10 + $0x8] sm:$0xff]  ;;  %v2035_v57 = vld [vmem:[#allocation10 + $0x10] sm:$0xff] }
 0xa47   : > { %v1799_v17 = vpop.permute.xlu1 %1798  ;;  %v8610_v37 = vpack.c.bf16 %v2036_v36, %v2035_v57  ;;  %v2182_v57 = vld [vmem:[#allocation13 + $0x38] sm:$0xff] }
 0xa48   : > { %8590 = vmatprep.subr.msk.bf16.mxu0 %vm10836_vm6, %v8588_v58 }
 0xa49   : > { %8593 = vmatpush3.bf16.msk.msra.mxu0 %vm10836_vm6, %v8588_v58  ;;  %v8606_v58 = vpack.c.bf16 %v2034_v56, %v2033_v53  ;;  %v2177_v53 = vld [vmem:[#allocation13 + $0x10] sm:$0xff]  ;;  %v2180_v56 = vld [vmem:[#allocation13 + $0x28] sm:$0xff] }
 0xa4a   : > { %v8642_v36 = vpack.c.bf16 %v2182_v57, %v2180_v56  ;;  %v2301_v56 = vld [vmem:[#allocation15 + $0x8] sm:$0xff]  ;;  %v2318_v57 = vld [vmem:[#allocation15 + $0x90] sm:$0xff] }
 0xa4b   : > { %8607 = vmatprep.subr.bf16.mxu1 %v8606_v58 }
 0xa4c   : > { %8609 = vmatpush3.bf16.msra.mxu1 %v8606_v58 }
 0xa4d   : > { %v9744_v4 = vpop.eup %9743  ;;  %8611 = vmatprep.subr.bf16.mxu1 %v8610_v37 }
 0xa4e   : > { %v1703_v14 = vsel %vm1287_vm8, %v9744_v4, 0.0  ;;  %v9746_v59 = vpop.eup %9745 }
 0xa4f   : > { %1704 = vadd.xlane.f32.xlu0 %v1703_v14  ;;  %v1700_v63 = vsel %vm1283_vm7, %v9746_v59, 0.0 }
 0xa50   : > { %8613 = vmatpush3.bf16.msra.mxu1 %v8610_v37  ;;  %v2179_v37 = vld [vmem:[#allocation13 + $0x20] sm:$0xff] }
 0xa53   : > { %1701 = vadd.xlane.f32.xlu0 %v1700_v63  ;;  %v2040_v63 = vld [vmem:[#allocation10 + $0x38] sm:$0xff] }
 0xa69   : > { %9566 = vrot.lane.b32.xlu0 %v10821_v13, %s10312_s29  ;;  %v1801_v13 = vpop.permute.xlu1 %1800 }
 0xadc   : > { %v1705_v0 = vpop.xlane.xlu0 %1704 }
 0xadd   : > { %9747 = vrcp.f32 %v1705_v0 }
 0xae0   : > { %v1702_v3 = vpop.xlane.xlu0 %1701 }
 0xae1   : > { %9749 = vrcp.f32 %v1702_v3  ;;  %v2041_v3 = vld [vmem:[#allocation10 + $0x40] sm:$0xff] }
 0xae4   : > { %v9567_v5 = vpop.permute.xlu0 %9566 }
 0xae5   : > { %v9569_v6 = vunpack.i.h.bf16 %v9567_v5  ;;  %v9568_v7 = vunpack.i.l.bf16 %v9567_v5  ;;  %v2042_v5 = vld [vmem:[#allocation10 + $0x48] sm:$0xff] }
 0xae7   : > { %v8594_v8 = vpack.c.bf16 %v9569_v6, %v9568_v7  ;;  %v9748_v9 = vpop.eup %9747  ;;  %v8622_v6 = vpack.c.bf16 %v2042_v5, %v2041_v3  ;;  %v2043_v7 = vld [vmem:[#allocation10 + $0x50] sm:$0xff] }
 0xae8   : > { %v1709_v16 = vmul.f32 %v9748_v9, %v9744_v4  ;;  %v2038_v4 = vld [vmem:[#allocation10 + $0x28] sm:$0xff] }
 0xae9   : > { %8596 = vmatprep.subr.msk.bf16.mxu0 %vm10817_vm4, %v8594_v8 }
 0xaeb   : > { %v9750_v10 = vpop.eup %9749 }
 0xaec   : > { %v1708_v12 = vmul.f32 %v9750_v10, %v9746_v59  ;;  %v2039_v59 = vld [vmem:[#allocation10 + $0x30] sm:$0xff]  ;;  %v2045_v10 = vld [vmem:[#allocation10 + $0x60] sm:$0xff] }
 0xaed   : > { %v8618_v0 = vpack.c.bf16 %v2040_v63, %v2039_v59  ;;  %v2183_v59 = vld [vmem:[#allocation13 + $0x40] sm:$0xff]  ;;  %v2185_v63 = vld [vmem:[#allocation13 + $0x50] sm:$0xff] }
 0xaee   : > { %8040 = vmatprep.mubr.msk.f32.mxu0 %vm1283_vm7, %v1708_v12  ;;  %v2046_v12 = vld [vmem:[#allocation10 + $0x68] sm:$0xff] }
 0xaef   : > { %8041 = vmatmul.mubr.msk.f32.vlgmr.msra.gmra.mrb[12].mxu0 %vm1283_vm7, %v1709_v16  ;;  %v8630_v16 = vpack.c.bf16 %v2046_v12, %v2045_v10 }
 0xaf0   : > { %8599 = vmatpush3.bf16.xpose.msk.msra.mxu0 %vm10817_vm4, %v8594_v8  ;;  %8047 = vmatprep.mubr.msk.f32.mxu0 %vm1193_vm3, %v1799_v17  ;;  %v2044_v8 = vld [vmem:[#allocation10 + $0x58] sm:$0xff]  ;;  %v2047_v17 = vld [vmem:[#allocation10 + $0x70] sm:$0xff] }
 0xaf1   : > { %v8626_v9 = vpack.c.bf16 %v2044_v8, %v2043_v7 }
 0xaf7   : > { %8048 = vmatmul.mubr.msk.f32.vlgmr.msra.gmra.mrb[14].mxu0 %vm1193_vm3, %v1801_v13  ;;  %v2048_v13 = vld [vmem:[#allocation10 + $0x78] sm:$0xff] }
 0xbc2   : > { %v8042_v18 = vpop.f32.mrb[12].mxu0 }
 0xbc3   : > { %v1789_v19 = vpop.f32.mrb[13].mxu0 }
 0xbc4   : > { %v9580_v20 = vpack.i.bf16 %v8042_v18, %v1789_v19  ;;  %v8634_v18 = vpack.c.bf16 %v2048_v13, %v2047_v17  ;;  %v2188_v17 = vld [vmem:[#allocation13 + $0x68] sm:$0xff]  ;;  %v2190_v13 = vld [vmem:[#allocation13 + $0x78] sm:$0xff] }
 0xbca   : > { %v8049_v22 = vpop.f32.mrb[14].mxu0 }
 0xbcb   : > { %v1890_v24 = vmul.f32 0.17677669, %v8049_v22  ;;  %v1880_v25 = vpop.f32.mrb[15].mxu0 }
 0xbcc   : > { %v1889_v26 = vmul.f32 0.17677669, %v1880_v25 }
 0xbcd   : > { %v1894_v27 = vsel %vm1287_vm8, %v1890_v24, -inf }
 0xbce   : > { %1895 = vmax.xlane.f32.xlu0 %v1894_v27  ;;  %v1891_v28 = vsel %vm1283_vm7, %v1889_v26, -inf }
 0xbcf   : > { %1892 = vmax.xlane.f32.xlu1 %v1891_v28 }
 0xbe0   : > { %9571 = vrot.lane.b32.xlu1 %v10840_v23, %s10312_s29 }
 0xbe4   : > { %9581 = vrot.lane.b32.xlu1 %v9580_v20, %s10311_s23 }
 0xc5b   : > { %v1896_v29 = vpop.xlane.xlu0 %1895 }
 0xc5c   : > { %v1898_v30 = vsub.f32 %v1890_v24, %v1896_v29  ;;  %v1893_v31 = vpop.xlane.xlu1 %1892 }
 0xc5d   : > { %v1897_v32 = vsub.f32 %v1889_v26, %v1893_v31 }
 0xc5e   : > { %v1901_v33 = vmul.f32 1.442695, %v1898_v30 }
 0xc5f   : > { %v1899_v34 = vmul.f32 1.442695, %v1897_v32 }
 0xc60   : > { %v9572_v35 = vpop.permute.xlu1 %9571 }
 0xc61   : > { %9751 = vpow2.f32 %v1899_v34  ;;  %v9574_v40 = vunpack.i.h.bf16 %v9572_v35  ;;  %v9573_v42 = vunpack.i.l.bf16 %v9572_v35 }
 0xc62   : > { %9753 = vpow2.f32 %v1901_v33 }
 0xc63   : > { %v8600_v43 = vpack.c.bf16 %v9574_v40, %v9573_v42 }
 0xc64   : > { %v9582_v27 = vpop.permute.xlu1 %9581 }
 0xc65   : > { %8602 = vmatprep.subr.msk.bf16.mxu0 %vm10836_vm6, %v8600_v43  ;;  %v9584_v30 = vunpack.i.h.bf16 %v9582_v27  ;;  %v9583_v31 = vunpack.i.l.bf16 %v9582_v27  ;;  %v2191_v27 = vld [vmem:[#allocation13 + $0x80] sm:$0xff] }
 0xc66   : > { %8605 = vmatpush3.bf16.msk.msra.mxu0 %vm10836_vm6, %v8600_v43 }
 0xc6b   : > { %v9752_v23 = vpop.eup %9751 }
 0xc6c   : > { %v1903_v44 = vsel %vm1283_vm7, %v9752_v23, 0.0  ;;  %v9754_v45 = vpop.eup %9753 }
 0xc6d   : > { %1904 = vadd.xlane.f32.xlu0 %v1903_v44  ;;  %v1906_v46 = vsel %vm1287_vm8, %v9754_v45, 0.0 }
 0xc71   : > { %1907 = vadd.xlane.f32.xlu0 %v1906_v46 }
 0xc87   : > { %9576 = vrot.lane.b32.xlu0 %v9575_v38, %s10312_s29  ;;  %v2037_v38 = vld [vmem:[#allocation10 + $0x20] sm:$0xff] }
 0xc88   : > { %v8614_v14 = vpack.c.bf16 %v2038_v4, %v2037_v38  ;;  %v2181_v38 = vld [vmem:[#allocation13 + $0x30] sm:$0xff]  ;;  %v2184_v4 = vld [vmem:[#allocation13 + $0x48] sm:$0xff] }
 0xc8a   : > { %8615 = vmatprep.subr.bf16.mxu1 %v8614_v14 }
 0xc8b   : > { %8617 = vmatpush3.bf16.msra.mxu1 %v8614_v14 }
 0xc8c   : > { %8619 = vmatprep.subr.bf16.mxu1 %v8618_v0 }
 0xc8f   : > { %8621 = vmatpush3.bf16.msra.mxu1 %v8618_v0  ;;  %v8648_v0 = vpack.c.bf16 %v2185_v63, %v2183_v59  ;;  %v2304_v63 = vld [vmem:[#allocation15 + $0x20] sm:$0xff] }
 0xc90   : > { %8623 = vmatprep.subr.bf16.mxu1 %v8622_v6 }
 0xc93   : > { %8625 = vmatpush3.bf16.msra.mxu1 %v8622_v6 }
 0xc94   : > { %8627 = vmatprep.subr.bf16.mxu1 %v8626_v9 }
 0xc97   : > { %8629 = vmatpush3.bf16.msra.mxu1 %v8626_v9 }
 0xc98   : > { %8631 = vmatprep.subr.bf16.mxu1 %v8630_v16 }
 0xc9b   : > { %8633 = vmatpush3.bf16.msra.mxu1 %v8630_v16 }
 0xc9c   : > { %8635 = vmatprep.subr.bf16.mxu1 %v8634_v18 }
 0xc9f   : > { %8637 = vmatpush3.bf16.msra.mxu1 %v8634_v18  ;;  %v8650_v18 = vpack.c.bf16 %v2190_v13, %v2188_v17  ;;  %v2325_v17 = vld [vmem:[#allocation15 + $0xc8] sm:$0xff] }
 0xcfa   : > { %v1905_v47 = vpop.xlane.xlu0 %1904 }
 0xcfb   : > { %9755 = vrcp.f32 %v1905_v47 }
 0xcfe   : > { %v1908_v48 = vpop.xlane.xlu0 %1907 }
 0xcff   : > { %9757 = vrcp.f32 %v1908_v48 }
 0xd02   : > { %v9577_v24 = vpop.permute.xlu0 %9576 }
 0xd03   : > { %v9579_v25 = vunpack.i.h.bf16 %v9577_v24  ;;  %v9578_v26 = vunpack.i.l.bf16 %v9577_v24  ;;  %v2192_v24 = vld [vmem:[#allocation13 + $0x88] sm:$0xff] }
 0xd05   : > { %v9756_v49 = vpop.eup %9755  ;;  %v2025_v28 = vsel %vm1193_vm3, %v10866_v55, %v9578_v26  ;;  %v2026_v29 = vsel %vm1193_vm3, %v10864_v54, %v9579_v25  ;;  %v7416_v54 = vld [vmem:[%s11524_s10] ss:$0 sm:$0xff]  ;;  %v2194_v25 = vld [vmem:[#allocation13 + $0x98] sm:$0xff] }
 0xd06   : > { %v1911_v50 = vmul.f32 %v9756_v49, %v9752_v23  ;;  %v2028_v35 = vsel %vm2027_vm9, %v2025_v28, %v9583_v31  ;;  %v2029_v40 = vsel %vm2027_vm9, %v2026_v29, %v9584_v30  ;;  %v2176_v49 = vld [vmem:[#allocation13 + $0x8] sm:$0xff]  ;;  %v8654_v26 = vpack.c.bf16 %v2194_v25, %v2192_v24  ;;  %v2193_v28 = vld [vmem:[#allocation13 + $0x90] sm:$0xff]  ;;  %v2198_v31 = vld [vmem:[#allocation13 + $0xb8] sm:$0xff] }
 0xd07   : > { %v8656_v29 = vpack.c.bf16 %v2193_v28, %v2191_v27  ;;  %v2196_v30 = vld [vmem:[#allocation13 + $0xa8] sm:$0xff]  ;;  %v2327_v24 = vld [vmem:[#allocation15 + $0xd8] sm:$0xff]  ;;  %v2310_v27 = vld [vmem:[#allocation15 + $0x50] sm:$0xff] }
 0xd08   : > { %8054 = vmatprep.mubr.msk.f32.mxu0 %vm1283_vm7, %v1911_v50  ;;  %v2178_v50 = vld [vmem:[#allocation13 + $0x18] sm:$0xff] }
 0xd09   : > { %v9758_v51 = vpop.eup %9757  ;;  %v2311_v28 = vld [vmem:[#allocation15 + $0x58] sm:$0xff] }
 0xd0a   : > { %v1912_v52 = vmul.f32 %v9758_v51, %v9754_v45  ;;  %v2175_v51 = vld [vmem:[#allocation13] sm:$0xff] }
 0xd0b   : > { %v8640_v58 = vpack.c.bf16 %v2177_v53, %v2175_v51  ;;  %v2317_v51 = vld [vmem:[#allocation15 + $0x88] sm:$0xff] }
 0xd0c   : > { %8055 = vmatmul.mubr.msk.f32.vlgmr.msra.gmra.mrb[16].mxu0 %vm1283_vm7, %v1912_v52  ;;  %v8638_v52 = vpack.c.bf16 %v2178_v50, %v2176_v49  ;;  %v2316_v50 = vld [vmem:[#allocation15 + $0x80] sm:$0xff] }
 0xd0d   : > { %2283 = vmatprep.mubr.f32.mxu0 %v10308_v1  ;;  %v8670_v53 = vpack.c.bf16 %v2317_v51, %v2316_v50  ;;  %v2312_v51 = vld [vmem:[#allocation15 + $0x60] sm:$0xff] }
 0xd0e   : > { %8639 = vmatprep.subr.bf16.mxu0 %v8638_v52  ;;  %v2300_v52 = vld [vmem:[#allocation15] sm:$0xff] }
 0xd0f   : > { %8641 = vmatpush1.bf16.msra.mxu0 %v8640_v58  ;;  %v2319_v58 = vld [vmem:[#allocation15 + $0x98] sm:$0xff]  ;;  %8671 = vmatprep.subr.bf16.mxu1 %v8670_v53 }
 0xd10   : > { %8643 = vmatprep.subr.bf16.mxu0 %v8642_v36  ;;  %v8672_v36 = vpack.c.bf16 %v2301_v56, %v2300_v52  ;;  %v2313_v52 = vld [vmem:[#allocation15 + $0x68] sm:$0xff]  ;;  %v2330_v56 = vld [vmem:[#allocation15 + $0xf0] sm:$0xff] }
 0xd11   : > { %v8696_v53 = vpack.c.bf16 %v2313_v52, %v2312_v51  ;;  %v2474_v51 = vld [vmem:[#allocation9 + $0x1f8] sm:$0xff] }
 0xd12   : > { %v2470_v52 = vld [vmem:[#allocation9 + $0x1d8] sm:$0xff] }
 0xddf   : > { %v8056_v19 = vpop.f32.mrb[16].mxu0 }
 0xde0   : > { %v1992_v20 = vpop.f32.mrb[17].mxu0 }
 0xde1   : > { %v9585_v22 = vpack.i.bf16 %v8056_v19, %v1992_v20  ;;  %v2187_v19 = vld [vmem:[#allocation13 + $0x60] sm:$0xff]  ;;  %v2189_v20 = vld [vmem:[#allocation13 + $0x70] sm:$0xff] }
 0xde3   : > { %9586 = vrot.lane.b32.xlu1 %v9585_v22, %s10310_s30  ;;  %v8652_v22 = vpack.c.bf16 %v2189_v20, %v2187_v19  ;;  %v2308_v19 = vld [vmem:[#allocation15 + $0x40] sm:$0xff]  ;;  %v2309_v20 = vld [vmem:[#allocation15 + $0x48] sm:$0xff] }
 0xde4   : > { %v8688_v25 = vpack.c.bf16 %v2309_v20, %v2308_v19 }
 0xe55   : > { %v9587_v32 = vpop.permute.xlu1 %9586 }
 0xe56   : > { %v9589_v33 = vunpack.i.h.bf16 %v9587_v32  ;;  %v9588_v34 = vunpack.i.l.bf16 %v9587_v32  ;;  %v8658_v32 = vpack.c.bf16 %v2198_v31, %v2196_v30  ;;  %v2329_v30 = vld [vmem:[#allocation15 + $0xe8] sm:$0xff]  ;;  %v8692_v31 = vpack.c.bf16 %v2311_v28, %v2310_v27 }
 0xe58   : > { %v2031_v42 = vsel %vm2030_vm10, %v2028_v35, %v9588_v34  ;;  %v2032_v43 = vsel %vm2030_vm10, %v2029_v40, %v9589_v33  ;;  %v2195_v33 = vld [vmem:[#allocation13 + $0xa0] sm:$0xff]  ;;  %v2197_v34 = vld [vmem:[#allocation13 + $0xb0] sm:$0xff]  ;;  %v2200_v40 = vld [vmem:[#allocation13 + $0xc8] sm:$0xff] }
 0xe59   : > { %8089 = vmatprep.mubr.f32.mxu1 %v2031_v42  ;;  %v8660_v35 = vpack.c.bf16 %v2197_v34, %v2195_v33  ;;  %v2202_v42 = vld [vmem:[#allocation13 + $0xd8] sm:$0xff] }
 0xe5a   : > { %8090 = vmatmul.mubr.f32.vlgmr.msra.gmra.mrb[6].mxu1 %v2032_v43  ;;  %v2199_v43 = vld [vmem:[#allocation13 + $0xc0] sm:$0xff] }
 0xe5b   : > { %8673 = vmatpush3.bf16.msra.mxu1 %v8672_v36  ;;  %v2315_v36 = vld [vmem:[#allocation15 + $0x78] sm:$0xff] }
 0xf2d   : > { %v8091_v55 = vpop.f32.mrb[6].mxu1 }
 0xf2e   : > { %v2128_v23 = vadd.f32 %v8091_v55, %v7416_v54  ;;  %v2122_v44 = vpop.f32.mrb[7].mxu1  ;;  %v2201_v55 = vld [vmem:[#allocation13 + $0xd0] sm:$0xff] }
 0xf2f   : > { %v2123_v45 = vadd.f32 %v7416_v54, %v2122_v44  ;;  %v8662_v54 = vpack.c.bf16 %v2202_v42, %v2200_v40  ;;  %v2206_v44 = vld [vmem:[#allocation13 + $0xf8] sm:$0xff] }
 0xf30   : > { %v2132_v46 = vadd.f32 %v2128_v23, %v10786_v39  ;;  %v2186_v39 = vld [vmem:[#allocation13 + $0x58] sm:$0xff]  ;;  %v2204_v23 = vld [vmem:[#allocation13 + $0xe8] sm:$0xff] }
 0xf31   : > { %v2131_v47 = vadd.f32 %v2123_v45, %v10790_v41  ;;  %v8644_v41 = vpack.c.bf16 %v2181_v38, %v2179_v37  ;;  %v8646_v14 = vpack.c.bf16 %v2186_v39, %v2184_v4  ;;  %v8664_v45 = vpack.c.bf16 %v2201_v55, %v2199_v43  ;;  %v2302_v38 = vld [vmem:[#allocation15 + $0x10] sm:$0xff]  ;;  %v2303_v4 = vld [vmem:[#allocation15 + $0x18] sm:$0xff]  ;;  %v2320_v39 = vld [vmem:[#allocation15 + $0xa0] sm:$0xff] }
 0xf32   : > { %v2137_v48 = vsel %vm974_vm2, %v2132_v46, 0.0  ;;  %v8674_v37 = vpack.c.bf16 %v2319_v58, %v2318_v57  ;;  %v7417_v55 = vld [vmem:[%s11525_s11] ss:$0 sm:$0xff]  ;;  %v2314_v58 = vld [vmem:[#allocation15 + $0x70] sm:$0xff] }
 0xf33   : > { %2138 = vadd.xlane.f32.xlu0 %v2137_v48  ;;  %2135 = vadd.xlane.f32.xlu1 %v2131_v47  ;;  %v2205_v48 = vld [vmem:[#allocation13 + $0xf0] sm:$0xff] }
 0xf34   : > { %8645 = vmatpush1.bf16.msra.mxu0 %v8644_v41  ;;  %v2321_v41 = vld [vmem:[#allocation15 + $0xa8] sm:$0xff]  ;;  %8675 = vmatprep.subr.bf16.mxu1 %v8674_v37  ;;  %v8700_v37 = vpack.c.bf16 %v2315_v36, %v2314_v58 }
 0xf35   : > { %8647 = vmatprep.subr.bf16.mxu0 %v8646_v14  ;;  %v8676_v14 = vpack.c.bf16 %v2303_v4, %v2302_v38  ;;  %v8678_v59 = vpack.c.bf16 %v2321_v41, %v2320_v39 }
 0xf37   : > { %8677 = vmatpush3.bf16.msra.mxu1 %v8676_v14 }
 0xf38   : > { %8649 = vmatpush1.bf16.msra.mxu0 %v8648_v0  ;;  %v2305_v0 = vld [vmem:[#allocation15 + $0x28] sm:$0xff]  ;;  %8679 = vmatprep.subr.bf16.mxu1 %v8678_v59 }
 0xf39   : > { %8651 = vmatprep.subr.bf16.mxu0 %v8650_v18 }
 0xf3c   : > { %8653 = vmatpush1.bf16.msra.mxu0 %v8652_v22  ;;  %v2326_v22 = vld [vmem:[#allocation15 + $0xd0] sm:$0xff] }
 0xf3d   : > { %8655 = vmatprep.subr.bf16.mxu0 %v8654_v26  ;;  %v8690_v26 = vpack.c.bf16 %v2327_v24, %v2326_v22 }
 0xf40   : > { %8657 = vmatpush1.bf16.msra.mxu0 %v8656_v29  ;;  %v2328_v29 = vld [vmem:[#allocation15 + $0xe0] sm:$0xff] }
 0xf41   : > { %8659 = vmatprep.subr.bf16.mxu0 %v8658_v32  ;;  %v8694_v32 = vpack.c.bf16 %v2329_v30, %v2328_v29  ;;  %v2460_v29 = vld [vmem:[#allocation9 + $0x188] sm:$0xff]  ;;  %v2463_v30 = vld [vmem:[#allocation9 + $0x1a0] sm:$0xff] }
 0xf44   : > { %8661 = vmatpush1.bf16.msra.mxu0 %v8660_v35 }
 0xf45   : > { %8663 = vmatprep.subr.bf16.mxu0 %v8662_v54 }
 0xf48   : > { %8665 = vmatpush1.bf16.msra.mxu0 %v8664_v45 }
 0xfc0   : > { %v2139_v3 = vpop.xlane.xlu0 %2138  ;;  %v2136_v5 = vpop.xlane.xlu1 %2135 }
 0xfc1   : > { %v2141_v6 = vmul.f32 0.0078125, %v2139_v3  ;;  %v2140_v7 = vmul.f32 0.0078125, %v2136_v5  ;;  %v2322_v3 = vld [vmem:[#allocation15 + $0xb0] sm:$0xff]  ;;  %v2323_v5 = vld [vmem:[#allocation15 + $0xb8] sm:$0xff] }
 0xfc3   : > { %v10955_v8 = vsub.f32 %v2132_v46, %v2141_v6  ;;  %v10957_v9 = vsub.f32 %v2131_v47, %v2140_v7  ;;  %v8666_v46 = vpack.c.bf16 %v2206_v44, %v2204_v23  ;;  %v2203_v47 = vld [vmem:[#allocation13 + $0xe0] sm:$0xff]  ;;  %v8680_v6 = vpack.c.bf16 %v2305_v0, %v2304_v63  ;;  %v7418_v44 = vld [vmem:[#allocation12] ss:$0 sm:$0xff] }
 0xfc4   : > { %v8668_v49 = vpack.c.bf16 %v2205_v48, %v2203_v47  ;;  %v8682_v7 = vpack.c.bf16 %v2323_v5, %v2322_v3 }
 0xfc5   : > { %v2144_v10 = vmul.f32 %v10957_v9, %v10957_v9  ;;  %v2145_v12 = vmul.f32 %v10955_v8, %v10955_v8  ;;  %8667 = vmatprep.subr.bf16.mxu0 %v8666_v46  ;;  %8681 = vmatpush3.bf16.msra.mxu1 %v8680_v6 }
 0xfc6   : > { %8669 = vmatpush1.bf16.msra.mxu0 %v8668_v49  ;;  %8683 = vmatprep.subr.bf16.mxu1 %v8682_v7 }
 0xfc7   : > { %2146 = vadd.xlane.f32.xlu0 %v2144_v10  ;;  %v2148_v16 = vsel %vm974_vm2, %v2145_v12, 0.0  ;;  %v2306_v10 = vld [vmem:[#allocation15 + $0x30] sm:$0xff]  ;;  %v2307_v12 = vld [vmem:[#allocation15 + $0x38] sm:$0xff] }
 0xfc8   : > { %v8684_v13 = vpack.c.bf16 %v2307_v12, %v2306_v10 }
 0xfca   : > { %8685 = vmatpush3.bf16.msra.mxu1 %v8684_v13 }
 0xfcb   : > { %2149 = vadd.xlane.f32.xlu0 %v2148_v16  ;;  %v2324_v16 = vld [vmem:[#allocation15 + $0xc0] sm:$0xff] }
 0xfcc   : > { %v8686_v18 = vpack.c.bf16 %v2325_v17, %v2324_v16  ;;  %v7419_v17 = vld [vmem:[%s11608_s19] ss:$0 sm:$0xff] }
 0xfce   : > { %8687 = vmatprep.subr.bf16.mxu1 %v8686_v18 }
 0xfcf   : > { %8689 = vmatpush3.bf16.msra.mxu1 %v8688_v25 }
 0xfd0   : > { %8691 = vmatprep.subr.bf16.mxu1 %v8690_v26 }
 0xfd3   : > { %8693 = vmatpush3.bf16.msra.mxu1 %v8692_v31  ;;  %v2459_v31 = vld [vmem:[#allocation9 + $0x180] sm:$0xff] }
 0xfd4   : > { %8695 = vmatprep.subr.bf16.mxu1 %v8694_v32  ;;  %v8702_v32 = vpack.c.bf16 %v2463_v30, %v2460_v29  ;;  %v2485_v30 = vld [vmem:[#allocation9 + $0x250] sm:$0xff] }
 0xfd6   : > { %8703 = vmatprep.subr.bf16.mxu0 %v8702_v32 }
 0xfd7   : > { %8697 = vmatpush3.bf16.msra.mxu1 %v8696_v53 }
0x1054   : > { %v2147_v33 = vpop.xlane.xlu0 %2146 }
0x1055   : > { %v2151_v34 = vmul.f32 0.0078125, %v2147_v33  ;;  %v2462_v33 = vld [vmem:[#allocation9 + $0x198] sm:$0xff] }
0x1057   : > { %v2153_v35 = vadd.f32 1e-05, %v2151_v34  ;;  %v2466_v34 = vld [vmem:[#allocation9 + $0x1b8] sm:$0xff] }
0x1058   : > { %v2150_v40 = vpop.xlane.xlu0 %2149 }
0x1059   : > { %9759 = vrsqrt.f32 %v2153_v35  ;;  %v2152_v42 = vmul.f32 0.0078125, %v2150_v40  ;;  %v2469_v35 = vld [vmem:[#allocation9 + $0x1d0] sm:$0xff]  ;;  %v8704_v40 = vpack.c.bf16 %v2462_v33, %v2459_v31  ;;  %v2488_v31 = vld [vmem:[#allocation9 + $0x268] sm:$0xff] }
0x105a   : > { %v8750_v32 = vpack.c.bf16 %v2488_v31, %v2485_v30  ;;  %v2496_v33 = vld [vmem:[#allocation9 + $0x2a8] sm:$0xff] }
0x105b   : > { %v2154_v43 = vadd.f32 1e-05, %v2152_v42  ;;  %v8706_v42 = vpack.c.bf16 %v2469_v35, %v2466_v34  ;;  %v2499_v34 = vld [vmem:[#allocation9 + $0x2c0] sm:$0xff] }
0x105c   : > { %v8726_v35 = vpack.c.bf16 %v2499_v34, %v2496_v33 }
0x105d   : > { %9761 = vrsqrt.f32 %v2154_v43  ;;  %v2465_v43 = vld [vmem:[#allocation9 + $0x1b0] sm:$0xff] }
0x1063   : > { %v9760_v54 = vpop.eup %9759 }
0x1064   : > { %v2157_v23 = vmul.f32 %v9760_v54, %v10957_v9  ;;  %v2331_v9 = vld [vmem:[#allocation15 + $0xf8] sm:$0xff]  ;;  %v2468_v54 = vld [vmem:[#allocation9 + $0x1c8] sm:$0xff] }
0x1065   : > { %v8698_v57 = vpack.c.bf16 %v2331_v9, %v2330_v56 }
0x1066   : > { %v2165_v45 = vmul.f32 %v7417_v55, %v2157_v23  ;;  %v2464_v23 = vld [vmem:[#allocation9 + $0x1a8] sm:$0xff] }
0x1067   : > { %v9762_v46 = vpop.eup %9761  ;;  %8699 = vmatprep.subr.bf16.mxu1 %v8698_v57 }
0x1068   : > { %v2173_v47 = vadd.f32 %v7418_v44, %v2165_v45  ;;  %v2158_v48 = vmul.f32 %v9762_v46, %v10955_v8  ;;  %8701 = vmatpush3.bf16.msra.mxu1 %v8700_v37  ;;  %v2207_v8 = vld [vmem:[%s11607_s3] sm:$0x3]  ;;  %v2475_v45 = vld [vmem:[#allocation9 + $0x200] sm:$0xff]  ;;  %v8708_v46 = vpack.c.bf16 %v2468_v54, %v2465_v43 }
0x1069   : > { %v2212_v38 = vrot.slane %v2207_v8, %v10801_v62  ;;  %v2216_v4 = vrot.slane %v2207_v8, %v10808_v2  ;;  %v2491_v54 = vld [vmem:[#allocation9 + $0x280] sm:$0xff] }
0x106a   : > { %2284 = vmatmul.mubr.f32.vlgmr.msra.gmra.mrb[18].mxu0 %v2173_v47  ;;  %v2166_v49 = vmul.f32 %v7417_v55, %v2158_v48  ;;  %v2461_v55 = vld [vmem:[#allocation9 + $0x190] sm:$0xff]  ;;  %v2467_v48 = vld [vmem:[#allocation9 + $0x1c0] sm:$0xff] }
0x106b   : > { %2289 = vmatprep.mubr.f32.mxu0 %v10308_v1  ;;  %8705 = vmatpush1.bf16.msra.mxu0 %v8704_v40  ;;  %v8738_v53 = vpack.c.bf16 %v2470_v52, %v2467_v48  ;;  %v2495_v40 = vld [vmem:[#allocation9 + $0x2a0] sm:$0xff]  ;;  %v2504_v48 = vld [vmem:[#allocation9 + $0x2e8] sm:$0xff] }
0x106c   : > { %v2174_v50 = vadd.f32 %v7418_v44, %v2166_v49  ;;  %v2472_v44 = vld [vmem:[#allocation9 + $0x1e8] sm:$0xff]  ;;  %8707 = vmatprep.subr.bf16.mxu0 %v8706_v42  ;;  %v2498_v42 = vld [vmem:[#allocation9 + $0x2b8] sm:$0xff] }
0x106d   : > { %v8710_v49 = vpack.c.bf16 %v2475_v45, %v2472_v44  ;;  %v8728_v43 = vpack.c.bf16 %v2498_v42, %v2495_v40  ;;  %v2502_v44 = vld [vmem:[#allocation9 + $0x2d8] sm:$0xff]  ;;  %v2505_v45 = vld [vmem:[#allocation9 + $0x2f0] sm:$0xff] }
0x106e   : > { %2290 = vmatmul.mubr.f32.gmra.mrb[20].mxu0 %v2174_v50 }
0x106f   : > { %2589 = vmatprep.mubr.f32.mxu0 %v10308_v1  ;;  %8709 = vmatpush1.bf16.msra.mxu0 %v8708_v46  ;;  %v8730_v46 = vpack.c.bf16 %v2505_v45, %v2502_v44 }
0x1070   : > { %8711 = vmatprep.subr.bf16.mxu0 %v8710_v49  ;;  %v2497_v49 = vld [vmem:[#allocation9 + $0x2b0] sm:$0xff] }
0x113d   : > { %v2285_v39 = vpop.f32.mrb[18].mxu0 }
0x113e   : > { %v2286_v41 = vadd.f32 %v2285_v39, %v2212_v38  ;;  %v2287_v14 = vpop.f32.mrb[19].mxu0 }
0x113f   : > { %v2288_v59 = vadd.f32 %v2287_v14, %v2216_v4  ;;  %v2481_v14 = vld [vmem:[#allocation9 + $0x230] sm:$0xff] }
0x1140   : > { %v2296_v3 = vmax.f32 %v2286_v41, 0.0  ;;  %v2478_v41 = vld [vmem:[#allocation9 + $0x218] sm:$0xff] }
0x1141   : > { %v2297_v63 = vmax.f32 %v2288_v59, 0.0  ;;  %v2291_v0 = vpop.f32.mrb[20].mxu0  ;;  %v8714_v59 = vpack.c.bf16 %v2481_v14, %v2478_v41  ;;  %v7420_v14 = vld [vmem:[#allocation16] ss:$0 sm:$0xff] }
0x1142   : > { %v2292_v5 = vadd.f32 %v2291_v0, %v2212_v38  ;;  %v2293_v6 = vpop.f32.mrb[21].mxu0  ;;  %v2480_v0 = vld [vmem:[#allocation9 + $0x228] sm:$0xff] }
0x1143   : > { %v2294_v7 = vadd.f32 %v2293_v6, %v2216_v4  ;;  %2403 = vmatprep.mubr.f32.mxu1 %v2297_v63  ;;  %v2477_v63 = vld [vmem:[#allocation9 + $0x210] sm:$0xff]  ;;  %v2476_v6 = vld [vmem:[#allocation9 + $0x208] sm:$0xff] }
0x1144   : > { %2404 = vmatmul.mubr.f32.vlgmr.msra.gmra.mrb[8].mxu1 %v2296_v3  ;;  %v2298_v12 = vmax.f32 %v2292_v5, 0.0  ;;  %v8716_v3 = vpack.c.bf16 %v2480_v0, %v2477_v63  ;;  %v2473_v5 = vld [vmem:[#allocation9 + $0x1f0] sm:$0xff]  ;;  %v7421_v63 = vld [vmem:[#allocation18] ss:$0 sm:$0xff] }
0x1145   : > { %v2299_v10 = vmax.f32 %v2294_v7, 0.0  ;;  %v8742_v7 = vpack.c.bf16 %v2476_v6, %v2473_v5 }
0x1147   : > { %2408 = vmatprep.mubr.f32.mxu1 %v2299_v10  ;;  %v2484_v10 = vld [vmem:[#allocation9 + $0x248] sm:$0xff] }
0x1148   : > { %2409 = vmatmul.mubr.f32.gmra.mrb[10].mxu1 %v2298_v12  ;;  %v2487_v12 = vld [vmem:[#allocation9 + $0x260] sm:$0xff] }
0x1217   : > { %v7642_v16 = vpop.f32.mrb[8].mxu1 }
0x1218   : > { %v7643_v13 = vpop.f32.mrb[9].mxu1 }
0x1219   : > { %v7644_v18 = vadd.f32 %v7643_v13, %v7642_v16  ;;  %v8718_v16 = vpack.c.bf16 %v2487_v12, %v2484_v10  ;;  %v2486_v13 = vld [vmem:[#allocation9 + $0x258] sm:$0xff] }
0x121b   : > { %v2406_v19 = vadd.f32 %v7644_v18, %v7419_v17  ;;  %v7645_v20 = vpop.f32.mrb[10].mxu1 }
0x121c   : > { %v7646_v22 = vpop.f32.mrb[11].mxu1 }
0x121d   : > { %v7647_v24 = vadd.f32 %v7646_v22, %v7645_v20  ;;  %v2414_v25 = vadd.f32 %v2406_v19, %v2173_v47  ;;  %v8734_v47 = vpack.c.bf16 %v2464_v23, %v2461_v55  ;;  %v2479_v19 = vld [vmem:[#allocation9 + $0x220] sm:$0xff]  ;;  %v2482_v20 = vld [vmem:[#allocation9 + $0x238] sm:$0xff] }
0x121e   : > { %v8746_v22 = vpack.c.bf16 %v2482_v20, %v2479_v19  ;;  %v2494_v55 = vld [vmem:[#allocation9 + $0x298] sm:$0xff] }
0x121f   : > { %v2411_v26 = vadd.f32 %v7647_v24, %v7419_v17  ;;  %2418 = vadd.xlane.f32.xlu1 %v2414_v25  ;;  %8735 = vmatprep.subr.bf16.mxu1 %v8734_v47  ;;  %v2483_v17 = vld [vmem:[#allocation9 + $0x240] sm:$0xff]  ;;  %v2490_v24 = vld [vmem:[#allocation9 + $0x278] sm:$0xff]  ;;  %v8754_v23 = vpack.c.bf16 %v2494_v55, %v2491_v54 }
0x1220   : > { %8737 = vmatpush3.bf16.msra.mxu1 %v8734_v47  ;;  %v8720_v18 = vpack.c.bf16 %v2486_v13, %v2483_v17  ;;  %v2501_v47 = vld [vmem:[#allocation9 + $0x2d0] sm:$0xff] }
0x1221   : > { %v2415_v27 = vadd.f32 %v2411_v26, %v2174_v50  ;;  %v2471_v50 = vld [vmem:[#allocation9 + $0x1e0] sm:$0xff]  ;;  %8739 = vmatprep.subr.bf16.mxu1 %v8738_v53 }
0x1222   : > { %v8712_v56 = vpack.c.bf16 %v2474_v51, %v2471_v50  ;;  %v8732_v50 = vpack.c.bf16 %v2504_v48, %v2501_v47  ;;  %v2500_v51 = vld [vmem:[#allocation9 + $0x2c8] sm:$0xff] }
0x1223   : > { %v2420_v28 = vsel %vm974_vm2, %v2415_v27, 0.0  ;;  %v8758_v52 = vpack.c.bf16 %v2500_v51, %v2497_v49 }
0x1224   : > { %2421 = vadd.xlane.f32.xlu0 %v2420_v28  ;;  %8741 = vmatpush3.bf16.msra.mxu1 %v8738_v53  ;;  %v2492_v28 = vld [vmem:[#allocation9 + $0x288] sm:$0xff]  ;;  %v2503_v53 = vld [vmem:[#allocation9 + $0x2e0] sm:$0xff] }
0x1225   : > { %8713 = vmatpush1.bf16.msra.mxu0 %v8712_v56  ;;  %8743 = vmatprep.subr.bf16.mxu1 %v8742_v7  ;;  %v2506_v56 = vld [vmem:[#allocation9 + $0x2f8] sm:$0xff] }
0x1226   : > { %8715 = vmatprep.subr.bf16.mxu0 %v8714_v59 }
0x1228   : > { %8745 = vmatpush3.bf16.msra.mxu1 %v8742_v7 }
0x1229   : > { %8717 = vmatpush1.bf16.msra.mxu0 %v8716_v3  ;;  %8747 = vmatprep.subr.bf16.mxu1 %v8746_v22 }
0x122a   : > { %8719 = vmatprep.subr.bf16.mxu0 %v8718_v16 }
0x122c   : > { %8749 = vmatpush3.bf16.msra.mxu1 %v8746_v22 }
0x122d   : > { %8721 = vmatpush1.bf16.msra.mxu0 %v8720_v18  ;;  %8751 = vmatprep.subr.bf16.mxu1 %v8750_v32 }
0x1230   : > { %8753 = vmatpush3.bf16.msra.mxu1 %v8750_v32 }
0x1231   : > { %8755 = vmatprep.subr.bf16.mxu1 %v8754_v23 }
0x1234   : > { %8757 = vmatpush3.bf16.msra.mxu1 %v8754_v23 }
0x1235   : > { %8759 = vmatprep.subr.bf16.mxu1 %v8758_v52 }
0x1238   : > { %8761 = vmatpush3.bf16.msra.mxu1 %v8758_v52 }
0x12ac   : > { %v2419_v9 = vpop.xlane.xlu1 %2418 }
0x12ad   : > { %v2423_v57 = vmul.f32 0.0078125, %v2419_v9  ;;  %v8762_v9 = vpack.c.bf16 %v2506_v56, %v2503_v53 }
0x12af   : > { %v10980_v58 = vsub.f32 %v2414_v25, %v2423_v57  ;;  %v2493_v25 = vld [vmem:[#allocation9 + $0x290] sm:$0xff]  ;;  %8763 = vmatprep.subr.bf16.mxu1 %v8762_v9 }
0x12b0   : > { %v8722_v26 = vpack.c.bf16 %v2493_v25, %v2490_v24  ;;  %8765 = vmatpush3.bf16.msra.mxu1 %v8762_v9 }
0x12b1   : > { %v2422_v36 = vpop.xlane.xlu0 %2421  ;;  %v2427_v37 = vmul.f32 %v10980_v58, %v10980_v58 }
0x12b2   : > { %v2424_v8 = vmul.f32 0.0078125, %v2422_v36  ;;  %8723 = vmatprep.subr.bf16.mxu0 %v8722_v26 }
0x12b3   : > { %2429 = vadd.xlane.f32.xlu1 %v2427_v37 }
0x12b4   : > { %v10984_v38 = vsub.f32 %v2415_v27, %v2424_v8  ;;  %v2489_v27 = vld [vmem:[#allocation9 + $0x270] sm:$0xff] }
0x12b5   : > { %v8724_v29 = vpack.c.bf16 %v2492_v28, %v2489_v27 }
0x12b6   : > { %v2428_v4 = vmul.f32 %v10984_v38, %v10984_v38 }
0x12b7   : > { %8725 = vmatpush1.bf16.msra.mxu0 %v8724_v29 }
0x12b8   : > { %v2431_v39 = vsel %vm974_vm2, %v2428_v4, 0.0  ;;  %8727 = vmatprep.subr.bf16.mxu0 %v8726_v35 }
0x12b9   : > { %2432 = vadd.xlane.f32.xlu0 %v2431_v39 }
0x12bb   : > { %8729 = vmatpush1.bf16.msra.mxu0 %v8728_v43 }
0x12bc   : > { %8731 = vmatprep.subr.bf16.mxu0 %v8730_v46 }
0x12bf   : > { %8733 = vmatpush1.bf16.msra.mxu0 %v8732_v50 }
0x1340   : > { %v2430_v57 = vpop.xlane.xlu1 %2429 }
0x1341   : > { %v2434_v36 = vmul.f32 0.0078125, %v2430_v57 }
0x1343   : > { %v2436_v37 = vadd.f32 1e-05, %v2434_v36 }
0x1345   : > { %9763 = vrsqrt.f32 %v2436_v37 }
0x1346   : > { %v2433_v8 = vpop.xlane.xlu0 %2432 }
0x1347   : > { %v2435_v4 = vmul.f32 0.0078125, %v2433_v8 }
0x1349   : > { %v2437_v39 = vadd.f32 1e-05, %v2435_v4 }
0x134b   : > { %9765 = vrsqrt.f32 %v2437_v39 }
0x134f   : > { %v9764_v41 = vpop.eup %9763 }
0x1350   : > { %v2440_v59 = vmul.f32 %v9764_v41, %v10980_v58  ;;  %v7422_v58 = vld [vmem:[%s11522_s8 + $0x3] sm:$0x7] }
0x1351   : > { %v2513_v12 = vrot.slane %v7422_v58, %v10801_v62  ;;  %v2517_v18 = vrot.slane %v7422_v58, %v10808_v2 }
0x1352   : > { %v2448_v0 = vmul.f32 %v7420_v14, %v2440_v59 }
0x1354   : > { %v10990_v3 = vadd.f32 %v7421_v63, %v2448_v0 }
0x1355   : > { %v9766_v5 = vpop.eup %9765 }
0x1356   : > { %2590 = vmatmul.mubr.f32.vlgmr.msra.gmra.mrb[22].mxu0 %v10990_v3  ;;  %8124 = vmatprep.mubr.f32.mxu1 %v10990_v3  ;;  %v2441_v6 = vmul.f32 %v9766_v5, %v10984_v38  ;;  %v2521_v38 = vrot.slane %v7422_v58, %v10832_v15 }
0x1357   : > { %2595 = vmatprep.mubr.f32.mxu0 %v10308_v1 }
0x1358   : > { %v2449_v7 = vmul.f32 %v7420_v14, %v2441_v6 }
0x135a   : > { %v10996_v10 = vadd.f32 %v7421_v63, %v2449_v7 }
0x135c   : > { %2596 = vmatmul.mubr.f32.gmra.mrb[24].mxu0 %v10996_v10  ;;  %8125 = vmatmul.mubr.f32.vlgmr.msra.gmra.mrb[12].mxu1 %v10996_v10 }
0x1429   : > { %v2591_v16 = vpop.f32.mrb[22].mxu0 }
0x142a   : > { %v11004_v17 = vadd.f32 %v2591_v16, %v2513_v12  ;;  %v2593_v13 = vpop.f32.mrb[23].mxu0 }
0x142b   : > { %v2594_v26 = vadd.f32 %v2593_v13, %v2517_v18 }
0x142c   : > { %8131 = vmatprep.mubr.msk.f32.mxu0 %vm1193_vm3, %v11004_v17 }
0x142f   : > { %v2597_v19 = vpop.f32.mrb[24].mxu0  ;;  %v8126_v20 = vpop.f32.mrb[12].mxu1 }
0x1430   : > { %v2674_v22 = vadd.f32 %v8126_v20, %v2521_v38  ;;  %v2599_v24 = vpop.f32.mrb[25].mxu0  ;;  %v2668_v25 = vpop.f32.mrb[13].mxu1  ;;  %v11020_v33 = vadd.f32 %v2597_v19, %v2513_v12 }
0x1431   : > { %v2600_v27 = vadd.f32 %v2599_v24, %v2517_v18  ;;  %v2669_v28 = vadd.f32 %v2668_v25, %v2521_v38 }
0x1433   : > { %v8766_v29 = vpack.c.bf16 %v2600_v27, %v2594_v26  ;;  %v8772_v30 = vpack.c.bf16 %v2674_v22, %v2669_v28  ;;  %v11010_v31 = vpack.i.bf16 %v2600_v27, %v2594_v26  ;;  %v11012_v32 = vpack.i.bf16 %v2674_v22, %v2669_v28 }
0x1435   : > { %8768 = vmatprep.subr.msk.bf16.mxu0 %vm10817_vm4, %v8766_v29 }
0x1436   : > { %8771 = vmatpush3.bf16.xpose.msk.msra.mxu0 %vm10817_vm4, %v8766_v29 }
0x1437   : > { %8774 = vmatprep.subr.msk.bf16.mxu0 %vm10836_vm6, %v8772_v30 }
0x143d   : > { %8132 = vmatmul.mubr.msk.f32.vlgmr.msra.gmra.mrb[26].mxu0 %vm1193_vm3, %v11020_v33 }
0x143e   : > { %8777 = vmatpush3.bf16.msk.msra.mxu0 %vm10836_vm6, %v8772_v30 }
0x1510   : > { %v8133_v34 = vpop.f32.mrb[26].mxu0 }
0x1511   : > { %v2765_v35 = vmul.f32 0.17677669, %v8133_v34  ;;  %v2755_v40 = vpop.f32.mrb[27].mxu0 }
0x1512   : > { %v2764_v42 = vmul.f32 0.17677669, %v2755_v40 }
0x1513   : > { %v2769_v43 = vsel %vm1287_vm8, %v2765_v35, -inf }
0x1514   : > { %2770 = vmax.xlane.f32.xlu0 %v2769_v43  ;;  %v2766_v54 = vsel %vm1283_vm7, %v2764_v42, -inf }
0x1515   : > { %2767 = vmax.xlane.f32.xlu1 %v2766_v54 }
0x1526   : > { %9591 = vrot.lane.b32.xlu1 %v11010_v31, %s10310_s30 }
0x15a1   : > { %v2771_v55 = vpop.xlane.xlu0 %2770 }
0x15a2   : > { %v2773_v23 = vsub.f32 %v2765_v35, %v2771_v55  ;;  %v2768_v44 = vpop.xlane.xlu1 %2767 }
0x15a3   : > { %v2772_v45 = vsub.f32 %v2764_v42, %v2768_v44 }
0x15a4   : > { %v2776_v46 = vmul.f32 1.442695, %v2773_v23 }
0x15a5   : > { %v2774_v47 = vmul.f32 1.442695, %v2772_v45 }
0x15a6   : > { %9767 = vpow2.f32 %v2776_v46  ;;  %v9592_v48 = vpop.permute.xlu1 %9591 }
0x15a7   : > { %9769 = vpow2.f32 %v2774_v47  ;;  %v9594_v49 = vunpack.i.h.bf16 %v9592_v48  ;;  %v9593_v50 = vunpack.i.l.bf16 %v9592_v48 }
0x15a9   : > { %v8778_v51 = vpack.c.bf16 %v9594_v49, %v9593_v50 }
0x15ab   : > { %8780 = vmatprep.subr.msk.bf16.mxu0 %vm10817_vm4, %v8778_v51 }
0x15b0   : > { %v9768_v52 = vpop.eup %9767 }
0x15b1   : > { %v9770_v53 = vpop.eup %9769  ;;  %v2781_v56 = vsel %vm1287_vm8, %v9768_v52, 0.0 }
0x15b2   : > { %2782 = vadd.xlane.f32.xlu0 %v2781_v56  ;;  %v2778_v9 = vsel %vm1283_vm7, %v9770_v53, 0.0 }
0x15b3   : > { %2779 = vadd.xlane.f32.xlu1 %v2778_v9 }
0x15c4   : > { %2874 = vrot.lane.b32.xlu1 %v11020_v33, %s10310_s30 }
0x15c8   : > { %2872 = vrot.lane.b32.xlu0 %v11004_v17, %s10310_s30 }
0x163f   : > { %v2783_v57 = vpop.xlane.xlu0 %2782 }
0x1640   : > { %9771 = vrcp.f32 %v2783_v57  ;;  %v2780_v36 = vpop.xlane.xlu1 %2779 }
0x1641   : > { %9773 = vrcp.f32 %v2780_v36 }
0x1643   : > { %v2873_v41 = vpop.permute.xlu0 %2872 }
0x1644   : > { %v2875_v14 = vpop.permute.xlu1 %2874 }
0x164a   : > { %v9772_v37 = vpop.eup %9771 }
0x164b   : > { %v9774_v8 = vpop.eup %9773  ;;  %v2787_v39 = vmul.f32 %v9772_v37, %v9768_v52 }
0x164c   : > { %v2786_v4 = vmul.f32 %v9774_v8, %v9770_v53 }
0x164e   : > { %8138 = vmatprep.mubr.msk.f32.mxu0 %vm1283_vm7, %v2786_v4 }
0x164f   : > { %8139 = vmatmul.mubr.msk.f32.vlgmr.msra.gmra.mrb[28].mxu0 %vm1283_vm7, %v2787_v39 }
0x1650   : > { %8783 = vmatpush3.bf16.xpose.msk.msra.mxu0 %vm10817_vm4, %v8778_v51  ;;  %8145 = vmatprep.mubr.msk.f32.mxu0 %vm1193_vm3, %v2873_v41 }
0x1657   : > { %8146 = vmatmul.mubr.msk.f32.vlgmr.msra.gmra.mrb[30].mxu0 %vm1193_vm3, %v2875_v14 }
0x1722   : > { %v11044_v59 = vpop.f32.mrb[28].mxu0 }
0x1723   : > { %v11046_v63 = vpop.f32.mrb[29].mxu0 }
0x172a   : > { %v8147_v0 = vpop.f32.mrb[30].mxu0 }
0x172b   : > { %v2964_v5 = vmul.f32 0.17677669, %v8147_v0  ;;  %v2954_v6 = vpop.f32.mrb[31].mxu0 }
0x172c   : > { %v2963_v7 = vmul.f32 0.17677669, %v2954_v6 }
0x172d   : > { %v2968_v58 = vsel %vm1287_vm8, %v2964_v5, -inf }
0x172e   : > { %2969 = vmax.xlane.f32.xlu0 %v2968_v58  ;;  %v2965_v12 = vsel %vm1283_vm7, %v2963_v7, -inf }
0x172f   : > { %2966 = vmax.xlane.f32.xlu1 %v2965_v12 }
0x17bb   : > { %v2970_v16 = vpop.xlane.xlu0 %2969 }
0x17bc   : > { %v2972_v13 = vsub.f32 %v2964_v5, %v2970_v16  ;;  %v2967_v38 = vpop.xlane.xlu1 %2966 }
0x17bd   : > { %v2971_v18 = vsub.f32 %v2963_v7, %v2967_v38 }
0x17be   : > { %v2975_v19 = vmul.f32 1.442695, %v2972_v13 }
0x17bf   : > { %v2973_v20 = vmul.f32 1.442695, %v2971_v18 }
0x17c0   : > { %9775 = vpow2.f32 %v2975_v19 }
0x17c1   : > { %9777 = vpow2.f32 %v2973_v20 }
0x17ca   : > { %v9776_v22 = vpop.eup %9775 }
0x17cb   : > { %v9778_v24 = vpop.eup %9777  ;;  %v2980_v25 = vsel %vm1287_vm8, %v9776_v22, 0.0 }
0x17cc   : > { %2981 = vadd.xlane.f32.xlu1 %v2980_v25  ;;  %v2977_v26 = vsel %vm1283_vm7, %v9778_v24, 0.0 }
0x17cd   : > { %2978 = vadd.xlane.f32.xlu0 %v2977_v26 }
0x17dd   : > { %9601 = vrot.lane.b32.xlu1 %v11010_v31, %s10311_s23 }
0x17e1   : > { %3076 = vrot.lane.b32.xlu1 %v11004_v17, %s10311_s23 }
0x17e3   : > { %9596 = vrot.lane.b32.xlu0 %v11012_v32, %s10310_s30 }
0x17e5   : > { %3078 = vrot.lane.b32.xlu1 %v11020_v33, %s10311_s23 }
0x1859   : > { %v2982_v27 = vpop.xlane.xlu1 %2981 }
0x185a   : > { %9779 = vrcp.f32 %v2982_v27  ;;  %v2979_v28 = vpop.xlane.xlu0 %2978 }
0x185b   : > { %9781 = vrcp.f32 %v2979_v28 }
0x185d   : > { %v9602_v29 = vpop.permute.xlu1 %9601 }
0x185e   : > { %v9597_v30 = vpop.permute.xlu0 %9596  ;;  %v9604_v34 = vunpack.i.h.bf16 %v9602_v29  ;;  %v9603_v35 = vunpack.i.l.bf16 %v9602_v29 }
0x185f   : > { %v9599_v40 = vunpack.i.h.bf16 %v9597_v30  ;;  %v9598_v42 = vunpack.i.l.bf16 %v9597_v30 }
0x1860   : > { %v8790_v54 = vpack.c.bf16 %v9604_v34, %v9603_v35 }
0x1861   : > { %v8784_v43 = vpack.c.bf16 %v9599_v40, %v9598_v42  ;;  %v3077_v46 = vpop.permute.xlu1 %3076 }
0x1863   : > { %8786 = vmatprep.subr.msk.bf16.mxu0 %vm10836_vm6, %v8784_v43 }
0x1864   : > { %v9780_v55 = vpop.eup %9779  ;;  %8789 = vmatpush3.bf16.msk.msra.mxu0 %vm10836_vm6, %v8784_v43 }
0x1865   : > { %v9782_v23 = vpop.eup %9781  ;;  %8792 = vmatprep.subr.msk.bf16.mxu0 %vm10817_vm4, %v8790_v54  ;;  %v2986_v45 = vmul.f32 %v9780_v55, %v9776_v22  ;;  %v3079_v47 = vpop.permute.xlu1 %3078 }
0x1866   : > { %v2985_v44 = vmul.f32 %v9782_v23, %v9778_v24 }
0x1868   : > { %8152 = vmatprep.mubr.msk.f32.mxu0 %vm1283_vm7, %v2985_v44 }
0x1869   : > { %8153 = vmatmul.mubr.msk.f32.vlgmr.msra.gmra.mrb[32].mxu0 %vm1283_vm7, %v2986_v45 }
0x186a   : > { %8159 = vmatprep.mubr.msk.f32.mxu0 %vm1193_vm3, %v3077_v46 }
0x186d   : > { %8795 = vmatpush3.bf16.xpose.msk.msra.mxu0 %vm10817_vm4, %v8790_v54 }
0x1874   : > { %8160 = vmatmul.mubr.msk.f32.vlgmr.msra.gmra.mrb[34].mxu0 %vm1193_vm3, %v3079_v47 }
0x193c   : > { %v11072_v48 = vpop.f32.mrb[32].mxu0 }
0x193d   : > { %v11074_v49 = vpop.f32.mrb[33].mxu0 }
0x193e   : > { %v9620_v50 = vpack.i.bf16 %v11072_v48, %v11074_v49 }
0x1947   : > { %v8161_v51 = vpop.f32.mrb[34].mxu0 }
0x1948   : > { %v3168_v52 = vmul.f32 0.17677669, %v8161_v51  ;;  %v3158_v53 = vpop.f32.mrb[35].mxu0 }
0x1949   : > { %v3167_v56 = vmul.f32 0.17677669, %v3158_v53 }
0x194a   : > { %v3172_v9 = vsel %vm1287_vm8, %v3168_v52, -inf }
0x194b   : > { %3173 = vmax.xlane.f32.xlu1 %v3172_v9  ;;  %v3169_v57 = vsel %vm1283_vm7, %v3167_v56, -inf }
0x194c   : > { %3170 = vmax.xlane.f32.xlu0 %v3169_v57 }
0x195c   : > { %9611 = vrot.lane.b32.xlu1 %v11010_v31, %s10312_s29 }
0x1960   : > { %3279 = vrot.lane.b32.xlu1 %v11004_v17, %s10312_s29 }
0x1964   : > { %3281 = vrot.lane.b32.xlu1 %v11020_v33, %s10312_s29 }
0x19d8   : > { %v3174_v36 = vpop.xlane.xlu1 %3173 }
0x19d9   : > { %v3176_v37 = vsub.f32 %v3168_v52, %v3174_v36  ;;  %v3171_v8 = vpop.xlane.xlu0 %3170 }
0x19da   : > { %v3175_v4 = vsub.f32 %v3167_v56, %v3171_v8 }
0x19db   : > { %v3179_v39 = vmul.f32 1.442695, %v3176_v37 }
0x19dc   : > { %v3177_v41 = vmul.f32 1.442695, %v3175_v4  ;;  %v9612_v6 = vpop.permute.xlu1 %9611 }
0x19dd   : > { %9783 = vpow2.f32 %v3179_v39  ;;  %v9614_v58 = vunpack.i.h.bf16 %v9612_v6  ;;  %v9613_v12 = vunpack.i.l.bf16 %v9612_v6  ;;  %v3514_v39 = vld [vmem:[#allocation10 + $0x88] sm:$0xff]  ;;  %v3519_v6 = vld [vmem:[#allocation10 + $0xb0] sm:$0xff] }
0x19de   : > { %9785 = vpow2.f32 %v3177_v41  ;;  %v3515_v41 = vld [vmem:[#allocation10 + $0x90] sm:$0xff] }
0x19df   : > { %v8802_v18 = vpack.c.bf16 %v9614_v58, %v9613_v12  ;;  %v3521_v12 = vld [vmem:[#allocation10 + $0xc0] sm:$0xff] }
0x19e0   : > { %v3280_v25 = vpop.permute.xlu1 %3279 }
0x19e4   : > { %v3282_v26 = vpop.permute.xlu1 %3281 }
0x19e7   : > { %v9784_v14 = vpop.eup %9783 }
0x19e8   : > { %v3184_v0 = vsel %vm1287_vm8, %v9784_v14, 0.0  ;;  %v9786_v5 = vpop.eup %9785 }
0x19e9   : > { %3185 = vadd.xlane.f32.xlu0 %v3184_v0  ;;  %v3181_v31 = vsel %vm1283_vm7, %v9786_v5, 0.0  ;;  %v3516_v0 = vld [vmem:[#allocation10 + $0x98] sm:$0xff] }
0x19ed   : > { %3182 = vadd.xlane.f32.xlu0 %v3181_v31  ;;  %v3517_v31 = vld [vmem:[#allocation10 + $0xa0] sm:$0xff] }
0x1a03   : > { %9606 = vrot.lane.b32.xlu0 %v11012_v32, %s10311_s23 }
0x1a76   : > { %v3186_v17 = vpop.xlane.xlu0 %3185 }
0x1a77   : > { %9787 = vrcp.f32 %v3186_v17  ;;  %v3518_v17 = vld [vmem:[#allocation10 + $0xa8] sm:$0xff] }
0x1a7a   : > { %v3183_v33 = vpop.xlane.xlu0 %3182 }
0x1a7b   : > { %9789 = vrcp.f32 %v3183_v33  ;;  %v8822_v33 = vpack.c.bf16 %v3518_v17, %v3517_v31  ;;  %v3665_v31 = vld [vmem:[#allocation13 + $0x130] sm:$0xff]  ;;  %v3668_v17 = vld [vmem:[#allocation13 + $0x148] sm:$0xff] }
0x1a7e   : > { %v9607_v7 = vpop.permute.xlu0 %9606 }
0x1a7f   : > { %v9609_v16 = vunpack.i.h.bf16 %v9607_v7  ;;  %v9608_v13 = vunpack.i.l.bf16 %v9607_v7  ;;  %v3520_v7 = vld [vmem:[#allocation10 + $0xb8] sm:$0xff] }
0x1a80   : > { %v8826_v58 = vpack.c.bf16 %v3520_v7, %v3519_v6  ;;  %v3667_v6 = vld [vmem:[#allocation13 + $0x140] sm:$0xff]  ;;  %v3669_v7 = vld [vmem:[#allocation13 + $0x150] sm:$0xff] }
0x1a81   : > { %v8796_v38 = vpack.c.bf16 %v9609_v16, %v9608_v13  ;;  %v9788_v19 = vpop.eup %9787  ;;  %v3522_v16 = vld [vmem:[#allocation10 + $0xc8] sm:$0xff] }
0x1a82   : > { %v3190_v24 = vmul.f32 %v9788_v19, %v9784_v14  ;;  %v8830_v13 = vpack.c.bf16 %v3522_v16, %v3521_v12 }
0x1a83   : > { %8798 = vmatprep.subr.msk.bf16.mxu0 %vm10836_vm6, %v8796_v38 }
0x1a84   : > { %8801 = vmatpush3.bf16.msk.msra.mxu0 %vm10836_vm6, %v8796_v38  ;;  %v3523_v38 = vld [vmem:[#allocation10 + $0xd0] sm:$0xff] }
0x1a85   : > { %v9790_v20 = vpop.eup %9789  ;;  %8804 = vmatprep.subr.msk.bf16.mxu0 %vm10817_vm4, %v8802_v18 }
0x1a86   : > { %v3189_v22 = vmul.f32 %v9790_v20, %v9786_v5  ;;  %v8818_v5 = vpack.c.bf16 %v3516_v0, %v3515_v41  ;;  %v3525_v20 = vld [vmem:[#allocation10 + $0xe0] sm:$0xff] }
0x1a87   : > { %v3666_v41 = vld [vmem:[#allocation13 + $0x138] sm:$0xff] }
0x1a88   : > { %8166 = vmatprep.mubr.msk.f32.mxu0 %vm1283_vm7, %v3189_v22  ;;  %v3526_v22 = vld [vmem:[#allocation10 + $0xe8] sm:$0xff] }
0x1a89   : > { %8167 = vmatmul.mubr.msk.f32.vlgmr.msra.gmra.mrb[36].mxu0 %vm1283_vm7, %v3190_v24  ;;  %v8838_v24 = vpack.c.bf16 %v3526_v22, %v3525_v20 }
0x1a8a   : > { %8173 = vmatprep.mubr.msk.f32.mxu0 %vm1193_vm3, %v3280_v25  ;;  %v3527_v25 = vld [vmem:[#allocation10 + $0xf0] sm:$0xff] }
0x1a8d   : > { %8807 = vmatpush3.bf16.xpose.msk.msra.mxu0 %vm10817_vm4, %v8802_v18  ;;  %v3524_v18 = vld [vmem:[#allocation10 + $0xd8] sm:$0xff] }
0x1a8e   : > { %v8834_v19 = vpack.c.bf16 %v3524_v18, %v3523_v38 }
0x1a94   : > { %8174 = vmatmul.mubr.msk.f32.vlgmr.msra.gmra.mrb[38].mxu0 %vm1193_vm3, %v3282_v26  ;;  %v3528_v26 = vld [vmem:[#allocation10 + $0xf8] sm:$0xff] }
0x1b5c   : > { %v8168_v27 = vpop.f32.mrb[36].mxu0 }
0x1b5d   : > { %v3270_v28 = vpop.f32.mrb[37].mxu0 }
0x1b5e   : > { %v9625_v29 = vpack.i.bf16 %v8168_v27, %v3270_v28  ;;  %v8842_v27 = vpack.c.bf16 %v3528_v26, %v3527_v25  ;;  %v3672_v25 = vld [vmem:[#allocation13 + $0x168] sm:$0xff]  ;;  %v3674_v26 = vld [vmem:[#allocation13 + $0x178] sm:$0xff] }
0x1b67   : > { %v8175_v30 = vpop.f32.mrb[38].mxu0 }
0x1b68   : > { %v3371_v34 = vmul.f32 0.17677669, %v8175_v30  ;;  %v3361_v35 = vpop.f32.mrb[39].mxu0 }
0x1b69   : > { %v3370_v40 = vmul.f32 0.17677669, %v3361_v35 }
0x1b6a   : > { %v3375_v42 = vsel %vm1287_vm8, %v3371_v34, -inf }
0x1b6b   : > { %3376 = vmax.xlane.f32.xlu1 %v3375_v42  ;;  %v3372_v43 = vsel %vm1283_vm7, %v3370_v40, -inf }
0x1b6c   : > { %3373 = vmax.xlane.f32.xlu0 %v3372_v43 }
0x1b7c   : > { %9621 = vrot.lane.b32.xlu1 %v9620_v50, %s10312_s29 }
0x1b80   : > { %9626 = vrot.lane.b32.xlu1 %v9625_v29, %s10311_s23 }
0x1bf8   : > { %v3377_v54 = vpop.xlane.xlu1 %3376 }
0x1bf9   : > { %v3379_v55 = vsub.f32 %v3371_v34, %v3377_v54  ;;  %v3374_v23 = vpop.xlane.xlu0 %3373 }
0x1bfa   : > { %v3378_v44 = vsub.f32 %v3370_v40, %v3374_v23 }
0x1bfb   : > { %v3382_v45 = vmul.f32 1.442695, %v3379_v55 }
0x1bfc   : > { %v3380_v46 = vmul.f32 1.442695, %v3378_v44  ;;  %v9622_v34 = vpop.permute.xlu1 %9621 }
0x1bfd   : > { %9791 = vpow2.f32 %v3382_v45  ;;  %v9624_v40 = vunpack.i.h.bf16 %v9622_v34  ;;  %v9623_v42 = vunpack.i.l.bf16 %v9622_v34  ;;  %v3676_v34 = vld [vmem:[#allocation13 + $0x188] sm:$0xff] }
0x1bfe   : > { %9793 = vpow2.f32 %v3380_v46 }
0x1bff   : > { %v3507_v23 = vsel %vm1193_vm3, %v11044_v59, %v9624_v40  ;;  %v3506_v46 = vsel %vm1193_vm3, %v11046_v63, %v9623_v42  ;;  %v3675_v42 = vld [vmem:[#allocation13 + $0x180] sm:$0xff] }
0x1c00   : > { %v9627_v35 = vpop.permute.xlu1 %9626 }
0x1c01   : > { %v9629_v43 = vunpack.i.h.bf16 %v9627_v35  ;;  %v9628_v54 = vunpack.i.l.bf16 %v9627_v35  ;;  %v3678_v35 = vld [vmem:[#allocation13 + $0x198] sm:$0xff] }
0x1c02   : > { %v8862_v40 = vpack.c.bf16 %v3678_v35, %v3676_v34  ;;  %v3813_v34 = vld [vmem:[#allocation15 + $0x1d8] sm:$0xff] }
0x1c07   : > { %v9792_v47 = vpop.eup %9791 }
0x1c08   : > { %v3387_v51 = vsel %vm1287_vm8, %v9792_v47, 0.0  ;;  %v9794_v52 = vpop.eup %9793 }
0x1c09   : > { %3388 = vadd.xlane.f32.xlu0 %v3387_v51  ;;  %v3384_v53 = vsel %vm1283_vm7, %v9794_v52, 0.0  ;;  %v3509_v51 = vsel %vm2027_vm9, %v3507_v23, %v9629_v43  ;;  %v3677_v43 = vld [vmem:[#allocation13 + $0x190] sm:$0xff]  ;;  %v3682_v23 = vld [vmem:[#allocation13 + $0x1b8] sm:$0xff] }
0x1c0d   : > { %3385 = vadd.xlane.f32.xlu0 %v3384_v53 }
0x1c23   : > { %9616 = vrot.lane.b32.xlu0 %v11012_v32, %s10312_s29  ;;  %v3513_v32 = vld [vmem:[#allocation10 + $0x80] sm:$0xff] }
0x1c24   : > { %v8814_v14 = vpack.c.bf16 %v3514_v39, %v3513_v32  ;;  %v3661_v32 = vld [vmem:[#allocation13 + $0x110] sm:$0xff]  ;;  %v3664_v39 = vld [vmem:[#allocation13 + $0x128] sm:$0xff] }
0x1c25   : > { %v8850_v0 = vpack.c.bf16 %v3666_v41, %v3664_v39  ;;  %v3787_v39 = vld [vmem:[#allocation15 + $0x108] sm:$0xff]  ;;  %v3804_v41 = vld [vmem:[#allocation15 + $0x190] sm:$0xff] }
0x1c26   : > { %8815 = vmatprep.subr.bf16.mxu1 %v8814_v14 }
0x1c27   : > { %8817 = vmatpush3.bf16.msra.mxu1 %v8814_v14 }
0x1c28   : > { %8819 = vmatprep.subr.bf16.mxu1 %v8818_v5 }
0x1c2b   : > { %8821 = vmatpush3.bf16.msra.mxu1 %v8818_v5  ;;  %v3663_v5 = vld [vmem:[#allocation13 + $0x120] sm:$0xff] }
0x1c2c   : > { %8823 = vmatprep.subr.bf16.mxu1 %v8822_v33 }
0x1c2f   : > { %8825 = vmatpush3.bf16.msra.mxu1 %v8822_v33 }
0x1c30   : > { %8827 = vmatprep.subr.bf16.mxu1 %v8826_v58 }
0x1c33   : > { %8829 = vmatpush3.bf16.msra.mxu1 %v8826_v58  ;;  %v8856_v58 = vpack.c.bf16 %v3669_v7, %v3667_v6  ;;  %v3790_v7 = vld [vmem:[#allocation15 + $0x120] sm:$0xff] }
0x1c34   : > { %8831 = vmatprep.subr.bf16.mxu1 %v8830_v13 }
0x1c37   : > { %8833 = vmatpush3.bf16.msra.mxu1 %v8830_v13 }
0x1c38   : > { %8835 = vmatprep.subr.bf16.mxu1 %v8834_v19 }
0x1c3b   : > { %8837 = vmatpush3.bf16.msra.mxu1 %v8834_v19 }
0x1c3c   : > { %8839 = vmatprep.subr.bf16.mxu1 %v8838_v24 }
0x1c3f   : > { %8841 = vmatpush3.bf16.msra.mxu1 %v8838_v24 }
0x1c40   : > { %8843 = vmatprep.subr.bf16.mxu1 %v8842_v27 }
0x1c43   : > { %8845 = vmatpush3.bf16.msra.mxu1 %v8842_v27  ;;  %v8858_v27 = vpack.c.bf16 %v3674_v26, %v3672_v25  ;;  %v3811_v25 = vld [vmem:[#allocation15 + $0x1c8] sm:$0xff] }
0x1c96   : > { %v3389_v48 = vpop.xlane.xlu0 %3388 }
0x1c97   : > { %9795 = vrcp.f32 %v3389_v48  ;;  %v7452_v48 = vld [vmem:[%s11524_s10 + $0x1] ss:$0 sm:$0xff] }
0x1c9a   : > { %v3386_v49 = vpop.xlane.xlu0 %3385 }
0x1c9b   : > { %9797 = vrcp.f32 %v3386_v49 }
0x1c9e   : > { %v9617_v50 = vpop.permute.xlu0 %9616 }
0x1c9f   : > { %v9619_v56 = vunpack.i.h.bf16 %v9617_v50  ;;  %v9618_v9 = vunpack.i.l.bf16 %v9617_v50 }
0x1ca1   : > { %v8808_v57 = vpack.c.bf16 %v9619_v56, %v9618_v9  ;;  %v9796_v36 = vpop.eup %9795 }
0x1ca2   : > { %v3393_v4 = vmul.f32 %v9796_v36, %v9792_v47  ;;  %v3508_v47 = vsel %vm2027_vm9, %v3506_v46, %v9628_v54  ;;  %v3660_v36 = vld [vmem:[#allocation13 + $0x108] sm:$0xff]  ;;  %v8864_v54 = vpack.c.bf16 %v3677_v43, %v3675_v42  ;;  %v3681_v46 = vld [vmem:[#allocation13 + $0x1b0] sm:$0xff]  ;;  %v3797_v43 = vld [vmem:[#allocation15 + $0x158] sm:$0xff] }
0x1ca3   : > { %8810 = vmatprep.subr.msk.bf16.mxu0 %vm10836_vm6, %v8808_v57  ;;  %v3796_v42 = vld [vmem:[#allocation15 + $0x150] sm:$0xff] }
0x1ca4   : > { %8813 = vmatpush3.bf16.msk.msra.mxu0 %vm10836_vm6, %v8808_v57 }
0x1ca5   : > { %v9798_v37 = vpop.eup %9797 }
0x1ca6   : > { %v3392_v8 = vmul.f32 %v9798_v37, %v9794_v52  ;;  %v3662_v37 = vld [vmem:[#allocation13 + $0x118] sm:$0xff] }
0x1ca8   : > { %8180 = vmatprep.mubr.msk.f32.mxu0 %vm1283_vm7, %v3392_v8  ;;  %v3659_v8 = vld [vmem:[#allocation13 + $0x100] sm:$0xff] }
0x1ca9   : > { %8181 = vmatmul.mubr.msk.f32.vlgmr.msra.gmra.mrb[40].mxu0 %vm1283_vm7, %v3393_v4  ;;  %v8846_v4 = vpack.c.bf16 %v3662_v37, %v3660_v36  ;;  %v8848_v14 = vpack.c.bf16 %v3661_v32, %v3659_v8  ;;  %v3802_v37 = vld [vmem:[#allocation15 + $0x180] sm:$0xff]  ;;  %v3803_v8 = vld [vmem:[#allocation15 + $0x188] sm:$0xff] }
0x1caa   : > { %3768 = vmatprep.mubr.f32.mxu0 %v10308_v1  ;;  %v8878_v32 = vpack.c.bf16 %v3803_v8, %v3802_v37  ;;  %v3798_v8 = vld [vmem:[#allocation15 + $0x160] sm:$0xff] }
0x1cab   : > { %8847 = vmatprep.subr.bf16.mxu0 %v8846_v4  ;;  %v3786_v4 = vld [vmem:[#allocation15 + $0x100] sm:$0xff] }
0x1cac   : > { %8849 = vmatpush1.bf16.msra.mxu0 %v8848_v14  ;;  %v3805_v14 = vld [vmem:[#allocation15 + $0x198] sm:$0xff]  ;;  %8879 = vmatprep.subr.bf16.mxu1 %v8878_v32 }
0x1cad   : > { %8851 = vmatprep.subr.bf16.mxu0 %v8850_v0  ;;  %v8880_v0 = vpack.c.bf16 %v3787_v39, %v3786_v4  ;;  %v3799_v4 = vld [vmem:[#allocation15 + $0x168] sm:$0xff]  ;;  %v3816_v39 = vld [vmem:[#allocation15 + $0x1f0] sm:$0xff] }
0x1cae   : > { %v8904_v32 = vpack.c.bf16 %v3799_v4, %v3798_v8  ;;  %v3963_v8 = vld [vmem:[#allocation9 + $0x378] sm:$0xff] }
0x1caf   : > { %v3959_v4 = vld [vmem:[#allocation9 + $0x358] sm:$0xff] }
0x1d7c   : > { %v8182_v28 = vpop.f32.mrb[40].mxu0 }
0x1d7d   : > { %v3473_v29 = vpop.f32.mrb[41].mxu0 }
0x1d7e   : > { %v9630_v30 = vpack.i.bf16 %v8182_v28, %v3473_v29  ;;  %v3671_v28 = vld [vmem:[#allocation13 + $0x160] sm:$0xff]  ;;  %v3673_v29 = vld [vmem:[#allocation13 + $0x170] sm:$0xff] }
0x1d80   : > { %9631 = vrot.lane.b32.xlu1 %v9630_v30, %s10310_s30  ;;  %v8860_v30 = vpack.c.bf16 %v3673_v29, %v3671_v28  ;;  %v3794_v28 = vld [vmem:[#allocation15 + $0x140] sm:$0xff]  ;;  %v3795_v29 = vld [vmem:[#allocation15 + $0x148] sm:$0xff] }
0x1d81   : > { %v8896_v35 = vpack.c.bf16 %v3795_v29, %v3794_v28 }
0x1df2   : > { %v9632_v55 = vpop.permute.xlu1 %9631 }
0x1df3   : > { %v9634_v44 = vunpack.i.h.bf16 %v9632_v55  ;;  %v9633_v45 = vunpack.i.l.bf16 %v9632_v55  ;;  %v3680_v55 = vld [vmem:[#allocation13 + $0x1a8] sm:$0xff] }
0x1df5   : > { %v3510_v52 = vsel %vm2030_vm10, %v3508_v47, %v9633_v45  ;;  %v3511_v53 = vsel %vm2030_vm10, %v3509_v51, %v9634_v44  ;;  %v8866_v44 = vpack.c.bf16 %v3682_v23, %v3680_v55  ;;  %v3679_v45 = vld [vmem:[#allocation13 + $0x1a0] sm:$0xff]  ;;  %v3684_v51 = vld [vmem:[#allocation13 + $0x1c8] sm:$0xff]  ;;  %v8900_v23 = vpack.c.bf16 %v3797_v43, %v3796_v42 }
0x1df6   : > { %8215 = vmatprep.mubr.f32.mxu1 %v3510_v52  ;;  %v8868_v47 = vpack.c.bf16 %v3681_v46, %v3679_v45  ;;  %v3686_v52 = vld [vmem:[#allocation13 + $0x1d8] sm:$0xff]  ;;  %v3815_v55 = vld [vmem:[#allocation15 + $0x1e8] sm:$0xff] }
0x1df7   : > { %8216 = vmatmul.mubr.f32.vlgmr.msra.gmra.mrb[14].mxu1 %v3511_v53  ;;  %v3683_v53 = vld [vmem:[#allocation13 + $0x1c0] sm:$0xff] }
0x1df8   : > { %8881 = vmatpush3.bf16.msra.mxu1 %v8880_v0  ;;  %v3801_v0 = vld [vmem:[#allocation15 + $0x178] sm:$0xff] }
0x1eca   : > { %v8217_v59 = vpop.f32.mrb[14].mxu1 }
0x1ecb   : > { %v3609_v49 = vadd.f32 %v8217_v59, %v7452_v48  ;;  %v3603_v50 = vpop.f32.mrb[15].mxu1  ;;  %v3685_v59 = vld [vmem:[#allocation13 + $0x1d0] sm:$0xff] }
0x1ecc   : > { %v3604_v56 = vadd.f32 %v7452_v48, %v3603_v50  ;;  %v8870_v48 = vpack.c.bf16 %v3686_v52, %v3684_v51  ;;  %v3690_v50 = vld [vmem:[#allocation13 + $0x1f8] sm:$0xff] }
0x1ecd   : > { %v3613_v63 = vadd.f32 %v3609_v49, %v10996_v10  ;;  %v3670_v10 = vld [vmem:[#allocation13 + $0x158] sm:$0xff]  ;;  %v3688_v49 = vld [vmem:[#allocation13 + $0x1e8] sm:$0xff] }
0x1ece   : > { %v3612_v9 = vadd.f32 %v3604_v56, %v10990_v3  ;;  %v8852_v3 = vpack.c.bf16 %v3665_v31, %v3663_v5  ;;  %v8854_v33 = vpack.c.bf16 %v3670_v10, %v3668_v17  ;;  %v8872_v56 = vpack.c.bf16 %v3685_v59, %v3683_v53  ;;  %v3788_v31 = vld [vmem:[#allocation15 + $0x110] sm:$0xff]  ;;  %v3789_v17 = vld [vmem:[#allocation15 + $0x118] sm:$0xff]  ;;  %v3806_v10 = vld [vmem:[#allocation15 + $0x1a0] sm:$0xff] }
0x1ecf   : > { %v3620_v57 = vsel %vm974_vm2, %v3613_v63, 0.0  ;;  %v8882_v5 = vpack.c.bf16 %v3805_v14, %v3804_v41  ;;  %v7454_v59 = vld [vmem:[%s11525_s11 + $0x1] ss:$0 sm:$0xff]  ;;  %v3800_v14 = vld [vmem:[#allocation15 + $0x170] sm:$0xff] }
0x1ed0   : > { %3621 = vadd.xlane.f32.xlu1 %v3620_v57  ;;  %3618 = vadd.xlane.f32.xlu0 %v3612_v9  ;;  %v3689_v57 = vld [vmem:[#allocation13 + $0x1f0] sm:$0xff] }
0x1ed1   : > { %8853 = vmatpush1.bf16.msra.mxu0 %v8852_v3  ;;  %v3807_v3 = vld [vmem:[#allocation15 + $0x1a8] sm:$0xff]  ;;  %8883 = vmatprep.subr.bf16.mxu1 %v8882_v5  ;;  %v8908_v5 = vpack.c.bf16 %v3801_v0, %v3800_v14 }
0x1ed2   : > { %8855 = vmatprep.subr.bf16.mxu0 %v8854_v33  ;;  %v8884_v33 = vpack.c.bf16 %v3789_v17, %v3788_v31  ;;  %v8886_v6 = vpack.c.bf16 %v3807_v3, %v3806_v10 }
0x1ed4   : > { %8885 = vmatpush3.bf16.msra.mxu1 %v8884_v33 }
0x1ed5   : > { %8857 = vmatpush1.bf16.msra.mxu0 %v8856_v58  ;;  %v3791_v58 = vld [vmem:[#allocation15 + $0x128] sm:$0xff]  ;;  %8887 = vmatprep.subr.bf16.mxu1 %v8886_v6 }
0x1ed6   : > { %8859 = vmatprep.subr.bf16.mxu0 %v8858_v27 }
0x1ed9   : > { %8861 = vmatpush1.bf16.msra.mxu0 %v8860_v30  ;;  %v3812_v30 = vld [vmem:[#allocation15 + $0x1d0] sm:$0xff] }
0x1eda   : > { %8863 = vmatprep.subr.bf16.mxu0 %v8862_v40  ;;  %v8898_v40 = vpack.c.bf16 %v3813_v34, %v3812_v30 }
0x1edd   : > { %8865 = vmatpush1.bf16.msra.mxu0 %v8864_v54  ;;  %v3814_v54 = vld [vmem:[#allocation15 + $0x1e0] sm:$0xff] }
0x1ede   : > { %8867 = vmatprep.subr.bf16.mxu0 %v8866_v44  ;;  %v8902_v44 = vpack.c.bf16 %v3815_v55, %v3814_v54  ;;  %v3949_v54 = vld [vmem:[#allocation9 + $0x308] sm:$0xff]  ;;  %v3952_v55 = vld [vmem:[#allocation9 + $0x320] sm:$0xff] }
0x1ee1   : > { %8869 = vmatpush1.bf16.msra.mxu0 %v8868_v47 }
0x1ee2   : > { %8871 = vmatprep.subr.bf16.mxu0 %v8870_v48 }
0x1ee5   : > { %8873 = vmatpush1.bf16.msra.mxu0 %v8872_v56 }
0x1f5d   : > { %v3622_v12 = vpop.xlane.xlu1 %3621  ;;  %v3619_v16 = vpop.xlane.xlu0 %3618 }
0x1f5e   : > { %v3624_v13 = vmul.f32 0.0078125, %v3622_v12  ;;  %v3623_v38 = vmul.f32 0.0078125, %v3619_v16  ;;  %v3808_v12 = vld [vmem:[#allocation15 + $0x1b0] sm:$0xff]  ;;  %v3809_v16 = vld [vmem:[#allocation15 + $0x1b8] sm:$0xff] }
0x1f60   : > { %v11135_v18 = vsub.f32 %v3613_v63, %v3624_v13  ;;  %v11137_v19 = vsub.f32 %v3612_v9, %v3623_v38  ;;  %v8874_v63 = vpack.c.bf16 %v3690_v50, %v3688_v49  ;;  %v3687_v9 = vld [vmem:[#allocation13 + $0x1e0] sm:$0xff]  ;;  %v8888_v13 = vpack.c.bf16 %v3791_v58, %v3790_v7  ;;  %v7455_v50 = vld [vmem:[#allocation12 + $0x1] ss:$0 sm:$0xff] }
0x1f61   : > { %v8876_v36 = vpack.c.bf16 %v3689_v57, %v3687_v9  ;;  %v8890_v38 = vpack.c.bf16 %v3809_v16, %v3808_v12 }
0x1f62   : > { %v3627_v20 = vmul.f32 %v11137_v19, %v11137_v19  ;;  %v3628_v22 = vmul.f32 %v11135_v18, %v11135_v18  ;;  %8875 = vmatprep.subr.bf16.mxu0 %v8874_v63  ;;  %8889 = vmatpush3.bf16.msra.mxu1 %v8888_v13 }
0x1f63   : > { %8877 = vmatpush1.bf16.msra.mxu0 %v8876_v36  ;;  %8891 = vmatprep.subr.bf16.mxu1 %v8890_v38 }
0x1f64   : > { %3629 = vadd.xlane.f32.xlu0 %v3627_v20  ;;  %v3631_v24 = vsel %vm974_vm2, %v3628_v22, 0.0  ;;  %v3792_v20 = vld [vmem:[#allocation15 + $0x130] sm:$0xff]  ;;  %v3793_v22 = vld [vmem:[#allocation15 + $0x138] sm:$0xff] }
0x1f65   : > { %v8892_v26 = vpack.c.bf16 %v3793_v22, %v3792_v20 }
0x1f67   : > { %8893 = vmatpush3.bf16.msra.mxu1 %v8892_v26 }
0x1f68   : > { %3632 = vadd.xlane.f32.xlu0 %v3631_v24  ;;  %v3810_v24 = vld [vmem:[#allocation15 + $0x1c0] sm:$0xff] }
0x1f69   : > { %v8894_v27 = vpack.c.bf16 %v3811_v25, %v3810_v24  ;;  %v7458_v25 = vld [vmem:[%s11608_s19 + $0x1] ss:$0 sm:$0xff] }
0x1f6b   : > { %8895 = vmatprep.subr.bf16.mxu1 %v8894_v27 }
0x1f6c   : > { %8897 = vmatpush3.bf16.msra.mxu1 %v8896_v35 }
0x1f6d   : > { %8899 = vmatprep.subr.bf16.mxu1 %v8898_v40 }
0x1f70   : > { %8901 = vmatpush3.bf16.msra.mxu1 %v8900_v23  ;;  %v3948_v23 = vld [vmem:[#allocation9 + $0x300] sm:$0xff] }
0x1f71   : > { %8903 = vmatprep.subr.bf16.mxu1 %v8902_v44  ;;  %v8910_v44 = vpack.c.bf16 %v3952_v55, %v3949_v54  ;;  %v3974_v55 = vld [vmem:[#allocation9 + $0x3d0] sm:$0xff] }
0x1f73   : > { %8911 = vmatprep.subr.bf16.mxu0 %v8910_v44 }
0x1f74   : > { %8905 = vmatpush3.bf16.msra.mxu1 %v8904_v32 }
0x1ff1   : > { %v3630_v45 = vpop.xlane.xlu0 %3629 }
0x1ff2   : > { %v3634_v46 = vmul.f32 0.0078125, %v3630_v45  ;;  %v3951_v45 = vld [vmem:[#allocation9 + $0x318] sm:$0xff] }
0x1ff4   : > { %v3636_v47 = vadd.f32 1e-05, %v3634_v46  ;;  %v3955_v46 = vld [vmem:[#allocation9 + $0x338] sm:$0xff] }
0x1ff5   : > { %v3633_v51 = vpop.xlane.xlu0 %3632 }
0x1ff6   : > { %9799 = vrsqrt.f32 %v3636_v47  ;;  %v3635_v52 = vmul.f32 0.0078125, %v3633_v51  ;;  %v3958_v47 = vld [vmem:[#allocation9 + $0x350] sm:$0xff]  ;;  %v8912_v51 = vpack.c.bf16 %v3951_v45, %v3948_v23  ;;  %v3977_v23 = vld [vmem:[#allocation9 + $0x3e8] sm:$0xff] }
0x1ff7   : > { %v8958_v44 = vpack.c.bf16 %v3977_v23, %v3974_v55  ;;  %v3985_v45 = vld [vmem:[#allocation9 + $0x428] sm:$0xff] }
0x1ff8   : > { %v3637_v53 = vadd.f32 1e-05, %v3635_v52  ;;  %v8914_v52 = vpack.c.bf16 %v3958_v47, %v3955_v46  ;;  %v3988_v46 = vld [vmem:[#allocation9 + $0x440] sm:$0xff] }
0x1ff9   : > { %v8934_v47 = vpack.c.bf16 %v3988_v46, %v3985_v45 }
0x1ffa   : > { %9801 = vrsqrt.f32 %v3637_v53  ;;  %v3954_v53 = vld [vmem:[#allocation9 + $0x330] sm:$0xff] }
0x2000   : > { %v9800_v48 = vpop.eup %9799 }
0x2001   : > { %v3640_v49 = vmul.f32 %v9800_v48, %v11137_v19  ;;  %v3817_v19 = vld [vmem:[#allocation15 + $0x1f8] sm:$0xff]  ;;  %v3957_v48 = vld [vmem:[#allocation9 + $0x348] sm:$0xff] }
0x2002   : > { %v8906_v41 = vpack.c.bf16 %v3817_v19, %v3816_v39 }
0x2003   : > { %v3648_v56 = vmul.f32 %v7454_v59, %v3640_v49  ;;  %v3953_v49 = vld [vmem:[#allocation9 + $0x328] sm:$0xff] }
0x2004   : > { %v9802_v63 = vpop.eup %9801  ;;  %8907 = vmatprep.subr.bf16.mxu1 %v8906_v41 }
0x2005   : > { %v3656_v9 = vadd.f32 %v7455_v50, %v3648_v56  ;;  %v3641_v57 = vmul.f32 %v9802_v63, %v11135_v18  ;;  %8909 = vmatpush3.bf16.msra.mxu1 %v8908_v5  ;;  %v7456_v18 = vld [vmem:[%s11607_s3 + $0x2] sm:$0x3]  ;;  %v3964_v56 = vld [vmem:[#allocation9 + $0x380] sm:$0xff]  ;;  %v8916_v63 = vpack.c.bf16 %v3957_v48, %v3954_v53 }
0x2006   : > { %v3697_v31 = vrot.slane %v7456_v18, %v10801_v62  ;;  %v3701_v17 = vrot.slane %v7456_v18, %v10808_v2  ;;  %v3980_v48 = vld [vmem:[#allocation9 + $0x400] sm:$0xff] }
0x2007   : > { %3769 = vmatmul.mubr.f32.vlgmr.msra.gmra.mrb[42].mxu0 %v3656_v9  ;;  %v3649_v36 = vmul.f32 %v7454_v59, %v3641_v57  ;;  %v3950_v59 = vld [vmem:[#allocation9 + $0x310] sm:$0xff]  ;;  %v3956_v57 = vld [vmem:[#allocation9 + $0x340] sm:$0xff] }
0x2008   : > { %3774 = vmatprep.mubr.f32.mxu0 %v10308_v1  ;;  %8913 = vmatpush1.bf16.msra.mxu0 %v8912_v51  ;;  %v8946_v32 = vpack.c.bf16 %v3959_v4, %v3956_v57  ;;  %v3984_v51 = vld [vmem:[#allocation9 + $0x420] sm:$0xff]  ;;  %v3993_v57 = vld [vmem:[#allocation9 + $0x468] sm:$0xff] }
0x2009   : > { %v3657_v37 = vadd.f32 %v7455_v50, %v3649_v36  ;;  %v3961_v50 = vld [vmem:[#allocation9 + $0x368] sm:$0xff]  ;;  %8915 = vmatprep.subr.bf16.mxu0 %v8914_v52  ;;  %v3987_v52 = vld [vmem:[#allocation9 + $0x438] sm:$0xff] }
0x200a   : > { %v8918_v36 = vpack.c.bf16 %v3964_v56, %v3961_v50  ;;  %v8936_v53 = vpack.c.bf16 %v3987_v52, %v3984_v51  ;;  %v3991_v50 = vld [vmem:[#allocation9 + $0x458] sm:$0xff]  ;;  %v3994_v56 = vld [vmem:[#allocation9 + $0x470] sm:$0xff] }
0x200b   : > { %3775 = vmatmul.mubr.f32.gmra.mrb[44].mxu0 %v3657_v37 }
0x200c   : > { %4078 = vmatprep.mubr.f32.mxu0 %v10308_v1  ;;  %8917 = vmatpush1.bf16.msra.mxu0 %v8916_v63  ;;  %v8938_v63 = vpack.c.bf16 %v3994_v56, %v3991_v50 }
0x200d   : > { %8919 = vmatprep.subr.bf16.mxu0 %v8918_v36  ;;  %v3986_v36 = vld [vmem:[#allocation9 + $0x430] sm:$0xff] }
0x20da   : > { %v3770_v10 = vpop.f32.mrb[42].mxu0 }
0x20db   : > { %v3771_v3 = vadd.f32 %v3770_v10, %v3697_v31  ;;  %v3772_v33 = vpop.f32.mrb[43].mxu0 }
0x20dc   : > { %v3773_v6 = vadd.f32 %v3772_v33, %v3701_v17  ;;  %v3970_v33 = vld [vmem:[#allocation9 + $0x3b0] sm:$0xff] }
0x20dd   : > { %v3781_v12 = vmax.f32 %v3771_v3, 0.0  ;;  %v3967_v3 = vld [vmem:[#allocation9 + $0x398] sm:$0xff] }
0x20de   : > { %v3782_v7 = vmax.f32 %v3773_v6, 0.0  ;;  %v3776_v58 = vpop.f32.mrb[44].mxu0  ;;  %v8922_v6 = vpack.c.bf16 %v3970_v33, %v3967_v3  ;;  %v7459_v33 = vld [vmem:[#allocation16 + $0x1] ss:$0 sm:$0xff] }
0x20df   : > { %v3777_v16 = vadd.f32 %v3776_v58, %v3697_v31  ;;  %v3778_v13 = vpop.f32.mrb[45].mxu0  ;;  %v3969_v58 = vld [vmem:[#allocation9 + $0x3a8] sm:$0xff] }
0x20e0   : > { %v3779_v38 = vadd.f32 %v3778_v13, %v3701_v17  ;;  %3890 = vmatprep.mubr.f32.mxu1 %v3782_v7  ;;  %v3966_v7 = vld [vmem:[#allocation9 + $0x390] sm:$0xff]  ;;  %v3965_v13 = vld [vmem:[#allocation9 + $0x388] sm:$0xff] }
0x20e1   : > { %3891 = vmatmul.mubr.f32.vlgmr.msra.gmra.mrb[16].mxu1 %v3781_v12  ;;  %v3783_v22 = vmax.f32 %v3777_v16, 0.0  ;;  %v8924_v12 = vpack.c.bf16 %v3969_v58, %v3966_v7  ;;  %v3962_v16 = vld [vmem:[#allocation9 + $0x370] sm:$0xff]  ;;  %v7460_v7 = vld [vmem:[#allocation18 + $0x1] ss:$0 sm:$0xff] }
0x20e2   : > { %v3784_v20 = vmax.f32 %v3779_v38, 0.0  ;;  %v8950_v38 = vpack.c.bf16 %v3965_v13, %v3962_v16 }
0x20e4   : > { %3895 = vmatprep.mubr.f32.mxu1 %v3784_v20  ;;  %v3973_v20 = vld [vmem:[#allocation9 + $0x3c8] sm:$0xff] }
0x20e5   : > { %3896 = vmatmul.mubr.f32.gmra.mrb[18].mxu1 %v3783_v22  ;;  %v3976_v22 = vld [vmem:[#allocation9 + $0x3e0] sm:$0xff] }
0x21b4   : > { %v7748_v24 = vpop.f32.mrb[16].mxu1 }
0x21b5   : > { %v7749_v26 = vpop.f32.mrb[17].mxu1 }
0x21b6   : > { %v7750_v27 = vadd.f32 %v7749_v26, %v7748_v24  ;;  %v8926_v24 = vpack.c.bf16 %v3976_v22, %v3973_v20  ;;  %v3975_v26 = vld [vmem:[#allocation9 + $0x3d8] sm:$0xff] }
0x21b8   : > { %v3893_v28 = vadd.f32 %v7750_v27, %v7458_v25  ;;  %v7751_v29 = vpop.f32.mrb[18].mxu1 }
0x21b9   : > { %v7752_v30 = vpop.f32.mrb[19].mxu1 }
0x21ba   : > { %v7753_v34 = vadd.f32 %v7752_v30, %v7751_v29  ;;  %v3901_v35 = vadd.f32 %v3893_v28, %v3656_v9  ;;  %v8942_v9 = vpack.c.bf16 %v3953_v49, %v3950_v59  ;;  %v3968_v28 = vld [vmem:[#allocation9 + $0x3a0] sm:$0xff]  ;;  %v3971_v29 = vld [vmem:[#allocation9 + $0x3b8] sm:$0xff] }
0x21bb   : > { %v8954_v30 = vpack.c.bf16 %v3971_v29, %v3968_v28  ;;  %v3983_v59 = vld [vmem:[#allocation9 + $0x418] sm:$0xff] }
0x21bc   : > { %v3898_v40 = vadd.f32 %v7753_v34, %v7458_v25  ;;  %3907 = vadd.xlane.f32.xlu0 %v3901_v35  ;;  %8943 = vmatprep.subr.bf16.mxu1 %v8942_v9  ;;  %v3972_v25 = vld [vmem:[#allocation9 + $0x3c0] sm:$0xff]  ;;  %v3979_v34 = vld [vmem:[#allocation9 + $0x3f8] sm:$0xff]  ;;  %v8962_v49 = vpack.c.bf16 %v3983_v59, %v3980_v48 }
0x21bd   : > { %8945 = vmatpush3.bf16.msra.mxu1 %v8942_v9  ;;  %v8928_v27 = vpack.c.bf16 %v3975_v26, %v3972_v25  ;;  %v3990_v9 = vld [vmem:[#allocation9 + $0x450] sm:$0xff] }
0x21be   : > { %v3902_v42 = vadd.f32 %v3898_v40, %v3657_v37  ;;  %v3960_v37 = vld [vmem:[#allocation9 + $0x360] sm:$0xff]  ;;  %8947 = vmatprep.subr.bf16.mxu1 %v8946_v32 }
0x21bf   : > { %v8920_v39 = vpack.c.bf16 %v3963_v8, %v3960_v37  ;;  %v8940_v37 = vpack.c.bf16 %v3993_v57, %v3990_v9  ;;  %v3989_v8 = vld [vmem:[#allocation9 + $0x448] sm:$0xff] }
0x21c0   : > { %v3909_v43 = vsel %vm974_vm2, %v3902_v42, 0.0  ;;  %v8966_v4 = vpack.c.bf16 %v3989_v8, %v3986_v36 }
0x21c1   : > { %3910 = vadd.xlane.f32.xlu1 %v3909_v43  ;;  %8949 = vmatpush3.bf16.msra.mxu1 %v8946_v32  ;;  %v3981_v43 = vld [vmem:[#allocation9 + $0x408] sm:$0xff]  ;;  %v3992_v32 = vld [vmem:[#allocation9 + $0x460] sm:$0xff] }
0x21c2   : > { %8921 = vmatpush1.bf16.msra.mxu0 %v8920_v39  ;;  %8951 = vmatprep.subr.bf16.mxu1 %v8950_v38  ;;  %v3995_v39 = vld [vmem:[#allocation9 + $0x478] sm:$0xff] }
0x21c3   : > { %8923 = vmatprep.subr.bf16.mxu0 %v8922_v6 }
0x21c5   : > { %8953 = vmatpush3.bf16.msra.mxu1 %v8950_v38 }
0x21c6   : > { %8925 = vmatpush1.bf16.msra.mxu0 %v8924_v12  ;;  %8955 = vmatprep.subr.bf16.mxu1 %v8954_v30 }
0x21c7   : > { %8927 = vmatprep.subr.bf16.mxu0 %v8926_v24 }
0x21c9   : > { %8957 = vmatpush3.bf16.msra.mxu1 %v8954_v30 }
0x21ca   : > { %8929 = vmatpush1.bf16.msra.mxu0 %v8928_v27  ;;  %8959 = vmatprep.subr.bf16.mxu1 %v8958_v44 }
0x21cd   : > { %8961 = vmatpush3.bf16.msra.mxu1 %v8958_v44 }
0x21ce   : > { %8963 = vmatprep.subr.bf16.mxu1 %v8962_v49 }
0x21d1   : > { %8965 = vmatpush3.bf16.msra.mxu1 %v8962_v49 }
0x21d2   : > { %8967 = vmatprep.subr.bf16.mxu1 %v8966_v4 }
0x21d5   : > { %8969 = vmatpush3.bf16.msra.mxu1 %v8966_v4 }
0x2249   : > { %v3908_v19 = vpop.xlane.xlu0 %3907 }
0x224a   : > { %v3912_v41 = vmul.f32 0.0078125, %v3908_v19  ;;  %v8970_v19 = vpack.c.bf16 %v3995_v39, %v3992_v32 }
0x224c   : > { %v11160_v14 = vsub.f32 %v3901_v35, %v3912_v41  ;;  %v3982_v35 = vld [vmem:[#allocation9 + $0x410] sm:$0xff]  ;;  %8971 = vmatprep.subr.bf16.mxu1 %v8970_v19 }
0x224d   : > { %v8930_v40 = vpack.c.bf16 %v3982_v35, %v3979_v34  ;;  %8973 = vmatpush3.bf16.msra.mxu1 %v8970_v19 }
0x224e   : > { %v3911_v0 = vpop.xlane.xlu1 %3910  ;;  %v3916_v5 = vmul.f32 %v11160_v14, %v11160_v14 }
0x224f   : > { %v3913_v18 = vmul.f32 0.0078125, %v3911_v0  ;;  %8931 = vmatprep.subr.bf16.mxu0 %v8930_v40 }
0x2250   : > { %3918 = vadd.xlane.f32.xlu0 %v3916_v5 }
0x2251   : > { %v11164_v31 = vsub.f32 %v3902_v42, %v3913_v18  ;;  %v3978_v42 = vld [vmem:[#allocation9 + $0x3f0] sm:$0xff] }
0x2252   : > { %v8932_v54 = vpack.c.bf16 %v3981_v43, %v3978_v42 }
0x2253   : > { %v3917_v17 = vmul.f32 %v11164_v31, %v11164_v31 }
0x2254   : > { %8933 = vmatpush1.bf16.msra.mxu0 %v8932_v54 }
0x2255   : > { %v3920_v10 = vsel %vm974_vm2, %v3917_v17, 0.0  ;;  %8935 = vmatprep.subr.bf16.mxu0 %v8934_v47 }
0x2256   : > { %3921 = vadd.xlane.f32.xlu1 %v3920_v10 }
0x2258   : > { %8937 = vmatpush1.bf16.msra.mxu0 %v8936_v53 }
0x2259   : > { %8939 = vmatprep.subr.bf16.mxu0 %v8938_v63 }
0x225c   : > { %8941 = vmatpush1.bf16.msra.mxu0 %v8940_v37 }
0x22dd   : > { %v3919_v41 = vpop.xlane.xlu0 %3918 }
0x22de   : > { %v3923_v0 = vmul.f32 0.0078125, %v3919_v41 }
0x22e0   : > { %v3925_v5 = vadd.f32 1e-05, %v3923_v0 }
0x22e2   : > { %9803 = vrsqrt.f32 %v3925_v5 }
0x22e3   : > { %v3922_v18 = vpop.xlane.xlu1 %3921 }
0x22e4   : > { %v3924_v17 = vmul.f32 0.0078125, %v3922_v18 }
0x22e6   : > { %v3926_v10 = vadd.f32 1e-05, %v3924_v17 }
0x22e8   : > { %9805 = vrsqrt.f32 %v3926_v10 }
0x22ec   : > { %v9804_v3 = vpop.eup %9803 }
0x22ed   : > { %v3929_v6 = vmul.f32 %v9804_v3, %v11160_v14  ;;  %v7461_v14 = vld [vmem:[%s11522_s8 + $0x6] sm:$0x7] }
0x22ee   : > { %v4002_v22 = vrot.slane %v7461_v14, %v10801_v62  ;;  %v4006_v27 = vrot.slane %v7461_v14, %v10808_v2 }
0x22ef   : > { %v3937_v58 = vmul.f32 %v7459_v33, %v3929_v6 }
0x22f1   : > { %v11170_v12 = vadd.f32 %v7460_v7, %v3937_v58 }
0x22f2   : > { %v9806_v16 = vpop.eup %9805 }
0x22f3   : > { %4079 = vmatmul.mubr.f32.vlgmr.msra.gmra.mrb[46].mxu0 %v11170_v12  ;;  %8250 = vmatprep.mubr.f32.mxu1 %v11170_v12  ;;  %v3930_v13 = vmul.f32 %v9806_v16, %v11164_v31  ;;  %v4010_v31 = vrot.slane %v7461_v14, %v10832_v15 }
0x22f4   : > { %4084 = vmatprep.mubr.f32.mxu0 %v10308_v1 }
0x22f5   : > { %v3938_v38 = vmul.f32 %v7459_v33, %v3930_v13 }
0x22f7   : > { %v11176_v20 = vadd.f32 %v7460_v7, %v3938_v38 }
0x22f9   : > { %4085 = vmatmul.mubr.f32.gmra.mrb[48].mxu0 %v11176_v20  ;;  %8251 = vmatmul.mubr.f32.vlgmr.msra.gmra.mrb[20].mxu1 %v11176_v20 }
0x23c6   : > { %v4080_v24 = vpop.f32.mrb[46].mxu0 }
0x23c7   : > { %v11184_v25 = vadd.f32 %v4080_v24, %v4002_v22  ;;  %v4082_v26 = vpop.f32.mrb[47].mxu0 }
0x23c8   : > { %v4083_v40 = vadd.f32 %v4082_v26, %v4006_v27 }
0x23c9   : > { %8257 = vmatprep.mubr.msk.f32.mxu0 %vm1193_vm3, %v11184_v25 }
0x23cc   : > { %v4086_v28 = vpop.f32.mrb[48].mxu0  ;;  %v8252_v29 = vpop.f32.mrb[20].mxu1 }
0x23cd   : > { %v4163_v30 = vadd.f32 %v8252_v29, %v4010_v31  ;;  %v4088_v34 = vpop.f32.mrb[49].mxu0  ;;  %v4157_v35 = vpop.f32.mrb[21].mxu1  ;;  %v4087_v45 = vadd.f32 %v4086_v28, %v4002_v22 }
0x23ce   : > { %v4089_v42 = vadd.f32 %v4088_v34, %v4006_v27  ;;  %v4158_v43 = vadd.f32 %v4157_v35, %v4010_v31 }
0x23d0   : > { %v8974_v54 = vpack.c.bf16 %v4089_v42, %v4083_v40  ;;  %v8980_v55 = vpack.c.bf16 %v4163_v30, %v4158_v43  ;;  %v11190_v23 = vpack.i.bf16 %v4089_v42, %v4083_v40  ;;  %v11192_v44 = vpack.i.bf16 %v4163_v30, %v4158_v43 }
0x23d2   : > { %8976 = vmatprep.subr.msk.bf16.mxu0 %vm10817_vm4, %v8974_v54 }
0x23d3   : > { %8979 = vmatpush3.bf16.xpose.msk.msra.mxu0 %vm10817_vm4, %v8974_v54 }
0x23d4   : > { %8982 = vmatprep.subr.msk.bf16.mxu0 %vm10836_vm6, %v8980_v55 }
0x23da   : > { %8258 = vmatmul.mubr.msk.f32.vlgmr.msra.gmra.mrb[50].mxu0 %vm1193_vm3, %v4087_v45 }
0x23db   : > { %8985 = vmatpush3.bf16.msk.msra.mxu0 %vm10836_vm6, %v8980_v55 }
0x24ad   : > { %v8259_v46 = vpop.f32.mrb[50].mxu0 }
0x24ae   : > { %v4254_v47 = vmul.f32 0.17677669, %v8259_v46  ;;  %v4244_v51 = vpop.f32.mrb[51].mxu0 }
0x24af   : > { %v4253_v52 = vmul.f32 0.17677669, %v4244_v51 }
0x24b0   : > { %v4258_v53 = vsel %vm1287_vm8, %v4254_v47, -inf }
0x24b1   : > { %4259 = vmax.xlane.f32.xlu1 %v4258_v53  ;;  %v4255_v48 = vsel %vm1283_vm7, %v4253_v52, -inf }
0x24b2   : > { %4256 = vmax.xlane.f32.xlu0 %v4255_v48 }
0x253e   : > { %v4260_v59 = vpop.xlane.xlu1 %4259 }
0x253f   : > { %v4262_v49 = vsub.f32 %v4254_v47, %v4260_v59  ;;  %v4257_v50 = vpop.xlane.xlu0 %4256 }
0x2540   : > { %v4261_v56 = vsub.f32 %v4253_v52, %v4257_v50 }
0x2541   : > { %v4265_v63 = vmul.f32 1.442695, %v4262_v49 }
0x2542   : > { %v4263_v9 = vmul.f32 1.442695, %v4261_v56 }
0x2543   : > { %9807 = vpow2.f32 %v4265_v63 }
0x2544   : > { %9809 = vpow2.f32 %v4263_v9 }
0x254d   : > { %v9808_v57 = vpop.eup %9807 }
0x254e   : > { %v9810_v36 = vpop.eup %9809  ;;  %v4270_v37 = vsel %vm1287_vm8, %v9808_v57, 0.0 }
0x254f   : > { %4271 = vadd.xlane.f32.xlu1 %v4270_v37  ;;  %v4267_v8 = vsel %vm1283_vm7, %v9810_v36, 0.0 }
0x2550   : > { %4268 = vadd.xlane.f32.xlu0 %v4267_v8 }
0x2560   : > { %4361 = vrot.lane.b32.xlu1 %v11184_v25, %s10310_s30 }
0x2564   : > { %4363 = vrot.lane.b32.xlu1 %v4087_v45, %s10310_s30 }
0x2566   : > { %9636 = vrot.lane.b32.xlu0 %v11190_v23, %s10310_s30 }
0x25dc   : > { %v4272_v4 = vpop.xlane.xlu1 %4271 }
0x25dd   : > { %9811 = vrcp.f32 %v4272_v4  ;;  %v4269_v32 = vpop.xlane.xlu0 %4268 }
0x25de   : > { %9813 = vrcp.f32 %v4269_v32 }
0x25e0   : > { %v4362_v3 = vpop.permute.xlu1 %4361 }
0x25e1   : > { %v9637_v39 = vpop.permute.xlu0 %9636 }
0x25e2   : > { %v9639_v19 = vunpack.i.h.bf16 %v9637_v39  ;;  %v9638_v41 = vunpack.i.l.bf16 %v9637_v39 }
0x25e4   : > { %v8986_v0 = vpack.c.bf16 %v9639_v19, %v9638_v41  ;;  %v4364_v33 = vpop.permute.xlu1 %4363 }
0x25e6   : > { %8988 = vmatprep.subr.msk.bf16.mxu0 %vm10817_vm4, %v8986_v0 }
0x25e7   : > { %v9812_v5 = vpop.eup %9811 }
0x25e8   : > { %v9814_v18 = vpop.eup %9813  ;;  %v4276_v10 = vmul.f32 %v9812_v5, %v9808_v57 }
0x25e9   : > { %v4275_v17 = vmul.f32 %v9814_v18, %v9810_v36 }
0x25eb   : > { %8264 = vmatprep.mubr.msk.f32.mxu0 %vm1283_vm7, %v4275_v17 }
0x25ec   : > { %8265 = vmatmul.mubr.msk.f32.vlgmr.msra.gmra.mrb[52].mxu0 %vm1283_vm7, %v4276_v10 }
0x25ed   : > { %8991 = vmatpush3.bf16.xpose.msk.msra.mxu0 %vm10817_vm4, %v8986_v0  ;;  %8271 = vmatprep.mubr.msk.f32.mxu0 %vm1193_vm3, %v4362_v3 }
0x25f4   : > { %8272 = vmatmul.mubr.msk.f32.vlgmr.msra.gmra.mrb[54].mxu0 %vm1193_vm3, %v4364_v33 }
0x26bf   : > { %v11220_v6 = vpop.f32.mrb[52].mxu0 }
0x26c0   : > { %v11222_v7 = vpop.f32.mrb[53].mxu0 }
0x26c7   : > { %v8273_v58 = vpop.f32.mrb[54].mxu0 }
0x26c8   : > { %v4453_v16 = vmul.f32 0.17677669, %v8273_v58  ;;  %v4443_v13 = vpop.f32.mrb[55].mxu0 }
0x26c9   : > { %v4452_v38 = vmul.f32 0.17677669, %v4443_v13 }
0x26ca   : > { %v4457_v14 = vsel %vm1287_vm8, %v4453_v16, -inf }
0x26cb   : > { %4458 = vmax.xlane.f32.xlu0 %v4457_v14  ;;  %v4454_v22 = vsel %vm1283_vm7, %v4452_v38, -inf }
0x26cc   : > { %4455 = vmax.xlane.f32.xlu1 %v4454_v22 }
0x26dd   : > { %9641 = vrot.lane.b32.xlu1 %v11192_v44, %s10310_s30 }
0x26e1   : > { %9651 = vrot.lane.b32.xlu1 %v11190_v23, %s10312_s29 }
0x26e5   : > { %4565 = vrot.lane.b32.xlu1 %v11184_v25, %s10311_s23 }
0x26e9   : > { %4567 = vrot.lane.b32.xlu1 %v4087_v45, %s10311_s23 }
0x26ed   : > { %4770 = vrot.lane.b32.xlu1 %v4087_v45, %s10312_s29 }
0x2758   : > { %v4459_v24 = vpop.xlane.xlu0 %4458 }
0x2759   : > { %v4461_v26 = vsub.f32 %v4453_v16, %v4459_v24  ;;  %v4456_v31 = vpop.xlane.xlu1 %4455 }
0x275a   : > { %v4460_v27 = vsub.f32 %v4452_v38, %v4456_v31 }
0x275b   : > { %v4464_v28 = vmul.f32 1.442695, %v4461_v26 }
0x275c   : > { %v4462_v29 = vmul.f32 1.442695, %v4460_v27 }
0x275d   : > { %9815 = vpow2.f32 %v4464_v28  ;;  %v9642_v30 = vpop.permute.xlu1 %9641 }
0x275e   : > { %v9644_v34 = vunpack.i.h.bf16 %v9642_v30  ;;  %v9643_v35 = vunpack.i.l.bf16 %v9642_v30  ;;  %9817 = vpow2.f32 %v4462_v29 }
0x2760   : > { %v8992_v40 = vpack.c.bf16 %v9644_v34, %v9643_v35 }
0x2761   : > { %v9652_v48 = vpop.permute.xlu1 %9651 }
0x2762   : > { %8994 = vmatprep.subr.msk.bf16.mxu0 %vm10836_vm6, %v8992_v40  ;;  %v9654_v50 = vunpack.i.h.bf16 %v9652_v48  ;;  %v9653_v56 = vunpack.i.l.bf16 %v9652_v48 }
0x2763   : > { %8997 = vmatpush3.bf16.msk.msra.mxu0 %vm10836_vm6, %v8992_v40 }
0x2765   : > { %v4566_v9 = vpop.permute.xlu1 %4565 }
0x2767   : > { %v9816_v42 = vpop.eup %9815 }
0x2768   : > { %v4469_v43 = vsel %vm1287_vm8, %v9816_v42, 0.0  ;;  %v9818_v54 = vpop.eup %9817 }
0x2769   : > { %4470 = vadd.xlane.f32.xlu0 %v4469_v43  ;;  %v4466_v55 = vsel %vm1283_vm7, %v9818_v54, 0.0  ;;  %v4568_v57 = vpop.permute.xlu1 %4567 }
0x276d   : > { %4467 = vadd.xlane.f32.xlu0 %v4466_v55  ;;  %v4771_v37 = vpop.permute.xlu1 %4770 }
0x2783   : > { %9646 = vrot.lane.b32.xlu0 %v11190_v23, %s10311_s23 }
0x2787   : > { %4768 = vrot.lane.b32.xlu0 %v11184_v25, %s10312_s29  ;;  %v9010_v25 = vpack.c.bf16 %v9654_v50, %v9653_v56 }
0x27f6   : > { %v4471_v45 = vpop.xlane.xlu0 %4470 }
0x27f7   : > { %9819 = vrcp.f32 %v4471_v45 }
0x27fa   : > { %v4468_v46 = vpop.xlane.xlu0 %4467 }
0x27fb   : > { %9821 = vrcp.f32 %v4468_v46 }
0x27fe   : > { %v9647_v47 = vpop.permute.xlu0 %9646 }
0x27ff   : > { %v9649_v51 = vunpack.i.h.bf16 %v9647_v47  ;;  %v9648_v52 = vunpack.i.l.bf16 %v9647_v47 }
0x2801   : > { %v8998_v53 = vpack.c.bf16 %v9649_v51, %v9648_v52  ;;  %v9820_v59 = vpop.eup %9819 }
0x2802   : > { %v4475_v63 = vmul.f32 %v9820_v59, %v9816_v42  ;;  %v4769_v36 = vpop.permute.xlu0 %4768 }
0x2803   : > { %9000 = vmatprep.subr.msk.bf16.mxu0 %vm10817_vm4, %v8998_v53 }
0x2805   : > { %v9822_v49 = vpop.eup %9821 }
0x2806   : > { %v4474_v23 = vmul.f32 %v9822_v49, %v9818_v54 }
0x2808   : > { %8278 = vmatprep.mubr.msk.f32.mxu0 %vm1283_vm7, %v4474_v23 }
0x2809   : > { %8279 = vmatmul.mubr.msk.f32.vlgmr.msra.gmra.mrb[56].mxu0 %vm1283_vm7, %v4475_v63 }
0x280a   : > { %9003 = vmatpush3.bf16.xpose.msk.msra.mxu0 %vm10817_vm4, %v8998_v53  ;;  %8285 = vmatprep.mubr.msk.f32.mxu0 %vm1193_vm3, %v4566_v9 }
0x280b   : > { %9012 = vmatprep.subr.msk.bf16.mxu0 %vm10817_vm4, %v9010_v25 }
0x2811   : > { %8286 = vmatmul.mubr.msk.f32.vlgmr.msra.gmra.mrb[58].mxu0 %vm1193_vm3, %v4568_v57 }
0x2812   : > { %9015 = vmatpush3.bf16.xpose.msk.msra.mxu0 %vm10817_vm4, %v9010_v25  ;;  %8299 = vmatprep.mubr.msk.f32.mxu0 %vm1193_vm3, %v4769_v36 }
0x2819   : > { %8300 = vmatmul.mubr.msk.f32.vlgmr.msra.gmra.mrb[60].mxu0 %vm1193_vm3, %v4771_v37 }
0x281a   : > { %5257 = vmatprep.mubr.f32.mxu0 %v10308_v1 }
0x28dc   : > { %v8280_v8 = vpop.f32.mrb[56].mxu0 }
0x28dd   : > { %v4556_v4 = vpop.f32.mrb[57].mxu0 }
0x28de   : > { %v9665_v32 = vpack.i.bf16 %v8280_v8, %v4556_v4 }
0x28e4   : > { %v8287_v39 = vpop.f32.mrb[58].mxu0 }
0x28e5   : > { %v4657_v19 = vmul.f32 0.17677669, %v8287_v39  ;;  %v4647_v41 = vpop.f32.mrb[59].mxu0  ;;  %v5002_v39 = vld [vmem:[#allocation10 + $0x100] sm:$0xff] }
0x28e6   : > { %v4656_v0 = vmul.f32 0.17677669, %v4647_v41  ;;  %v5004_v41 = vld [vmem:[#allocation10 + $0x110] sm:$0xff] }
0x28e7   : > { %v4661_v5 = vsel %vm1287_vm8, %v4657_v19, -inf }
0x28e8   : > { %4662 = vmax.xlane.f32.xlu1 %v4661_v5  ;;  %v4658_v18 = vsel %vm1283_vm7, %v4656_v0, -inf  ;;  %v5005_v5 = vld [vmem:[#allocation10 + $0x118] sm:$0xff] }
0x28e9   : > { %4659 = vmax.xlane.f32.xlu0 %v4658_v18  ;;  %v9026_v18 = vpack.c.bf16 %v5005_v5, %v5004_v41  ;;  %v5153_v5 = vld [vmem:[#allocation13 + $0x228] sm:$0xff] }
0x28ec   : > { %v8301_v17 = vpop.f32.mrb[60].mxu0 }
0x28ed   : > { %v4850_v10 = vpop.f32.mrb[61].mxu0  ;;  %v4860_v33 = vmul.f32 0.17677669, %v8301_v17  ;;  %v5006_v17 = vld [vmem:[#allocation10 + $0x120] sm:$0xff] }
0x28ee   : > { %v4859_v3 = vmul.f32 0.17677669, %v4850_v10  ;;  %v5007_v10 = vld [vmem:[#allocation10 + $0x128] sm:$0xff] }
0x28ef   : > { %v4864_v16 = vsel %vm1287_vm8, %v4860_v33, -inf }
0x28f0   : > { %v4861_v58 = vsel %vm1283_vm7, %v4859_v3, -inf }
0x28f1   : > { %4862 = vmax.xlane.f32.xlu0 %v4861_v58  ;;  %v5009_v58 = vld [vmem:[#allocation10 + $0x138] sm:$0xff] }
0x28f5   : > { %4865 = vmax.xlane.f32.xlu0 %v4864_v16 }
0x2975   : > { %v4663_v13 = vpop.xlane.xlu1 %4662 }
0x2976   : > { %v4665_v38 = vsub.f32 %v4657_v19, %v4663_v13  ;;  %v4660_v14 = vpop.xlane.xlu0 %4659  ;;  %v5003_v19 = vld [vmem:[#allocation10 + $0x108] sm:$0xff]  ;;  %v5010_v13 = vld [vmem:[#allocation10 + $0x140] sm:$0xff] }
0x2977   : > { %v4664_v22 = vsub.f32 %v4656_v0, %v4660_v14  ;;  %v9022_v0 = vpack.c.bf16 %v5003_v19, %v5002_v39  ;;  %v5151_v39 = vld [vmem:[#allocation13 + $0x218] sm:$0xff]  ;;  %v5148_v19 = vld [vmem:[#allocation13 + $0x200] sm:$0xff] }
0x2978   : > { %v4668_v24 = vmul.f32 1.442695, %v4665_v38  ;;  %v5011_v38 = vld [vmem:[#allocation10 + $0x148] sm:$0xff] }
0x2979   : > { %v4666_v26 = vmul.f32 1.442695, %v4664_v22  ;;  %v9038_v14 = vpack.c.bf16 %v5011_v38, %v5010_v13  ;;  %v5012_v22 = vld [vmem:[#allocation10 + $0x150] sm:$0xff]  ;;  %v5156_v13 = vld [vmem:[#allocation13 + $0x240] sm:$0xff] }
0x297a   : > { %9823 = vpow2.f32 %v4668_v24  ;;  %v5013_v24 = vld [vmem:[#allocation10 + $0x158] sm:$0xff] }
0x297b   : > { %9825 = vpow2.f32 %v4666_v26  ;;  %v9042_v26 = vpack.c.bf16 %v5013_v24, %v5012_v22  ;;  %v5158_v38 = vld [vmem:[#allocation13 + $0x250] sm:$0xff] }
0x297e   : > { %v4863_v31 = vpop.xlane.xlu0 %4862 }
0x297f   : > { %v4867_v27 = vsub.f32 %v4859_v3, %v4863_v31  ;;  %v9030_v3 = vpack.c.bf16 %v5007_v10, %v5006_v17  ;;  %v5014_v31 = vld [vmem:[#allocation10 + $0x160] sm:$0xff] }
0x2981   : > { %v4869_v28 = vmul.f32 1.442695, %v4867_v27  ;;  %v5015_v27 = vld [vmem:[#allocation10 + $0x168] sm:$0xff] }
0x2982   : > { %v4866_v29 = vpop.xlane.xlu0 %4865 }
0x2983   : > { %9827 = vpow2.f32 %v4869_v28  ;;  %v4868_v30 = vsub.f32 %v4860_v33, %v4866_v29  ;;  %v5008_v33 = vld [vmem:[#allocation10 + $0x130] sm:$0xff]  ;;  %v9046_v28 = vpack.c.bf16 %v5015_v27, %v5014_v31 }
0x2984   : > { %v9824_v34 = vpop.eup %9823  ;;  %v9034_v16 = vpack.c.bf16 %v5009_v58, %v5008_v33  ;;  %v5016_v29 = vld [vmem:[#allocation10 + $0x170] sm:$0xff] }
0x2985   : > { %v9826_v35 = vpop.eup %9825  ;;  %v4871_v40 = vmul.f32 1.442695, %v4868_v30  ;;  %v4673_v42 = vsel %vm1287_vm8, %v9824_v34, 0.0  ;;  %v5017_v30 = vld [vmem:[#allocation10 + $0x178] sm:$0xff]  ;;  %v5157_v58 = vld [vmem:[#allocation13 + $0x248] sm:$0xff] }
0x2986   : > { %4674 = vadd.xlane.f32.xlu1 %v4673_v42  ;;  %v4670_v43 = vsel %vm1283_vm7, %v9826_v35, 0.0  ;;  %v5154_v33 = vld [vmem:[#allocation13 + $0x230] sm:$0xff] }
0x2987   : > { %9829 = vpow2.f32 %v4871_v40  ;;  %4671 = vadd.xlane.f32.xlu0 %v4670_v43 }
0x298d   : > { %v9828_v54 = vpop.eup %9827 }
0x298e   : > { %v4873_v55 = vsel %vm1283_vm7, %v9828_v54, 0.0 }
0x298f   : > { %4874 = vadd.xlane.f32.xlu0 %v4873_v55 }
0x2991   : > { %v9830_v45 = vpop.eup %9829 }
0x2992   : > { %v4876_v46 = vsel %vm1287_vm8, %v9830_v45, 0.0 }
0x2993   : > { %4877 = vadd.xlane.f32.xlu1 %v4876_v46 }
0x29a4   : > { %9661 = vrot.lane.b32.xlu1 %v11192_v44, %s10312_s29 }
0x29a5   : > { %9656 = vrot.lane.b32.xlu0 %v11192_v44, %s10311_s23 }
0x29a8   : > { %9666 = vrot.lane.b32.xlu1 %v9665_v32, %s10312_s29 }
0x2a13   : > { %v4675_v51 = vpop.xlane.xlu1 %4674 }
0x2a14   : > { %v4672_v47 = vpop.xlane.xlu0 %4671 }
0x2a15   : > { %9831 = vrcp.f32 %v4672_v47 }
0x2a16   : > { %9833 = vrcp.f32 %v4675_v51 }
0x2a1c   : > { %v4875_v52 = vpop.xlane.xlu0 %4874 }
0x2a1d   : > { %9835 = vrcp.f32 %v4875_v52 }
0x2a1f   : > { %v9832_v53 = vpop.eup %9831 }
0x2a20   : > { %v4878_v48 = vpop.xlane.xlu1 %4877  ;;  %v9657_v59 = vpop.permute.xlu0 %9656  ;;  %v4678_v49 = vmul.f32 %v9832_v53, %v9826_v35 }
0x2a21   : > { %9837 = vrcp.f32 %v4878_v48  ;;  %v9659_v50 = vunpack.i.h.bf16 %v9657_v59  ;;  %v9658_v56 = vunpack.i.l.bf16 %v9657_v59  ;;  %v9834_v63 = vpop.eup %9833 }
0x2a22   : > { %8292 = vmatprep.mubr.msk.f32.mxu1 %vm1283_vm7, %v4678_v49  ;;  %v4679_v36 = vmul.f32 %v9834_v63, %v9824_v34  ;;  %v9050_v34 = vpack.c.bf16 %v5017_v30, %v5016_v29 }
0x2a23   : > { %v9004_v23 = vpack.c.bf16 %v9659_v50, %v9658_v56 }
0x2a24   : > { %v9662_v44 = vpop.permute.xlu1 %9661 }
0x2a25   : > { %v9664_v25 = vunpack.i.h.bf16 %v9662_v44  ;;  %v9663_v9 = vunpack.i.l.bf16 %v9662_v44  ;;  %9006 = vmatprep.subr.msk.bf16.mxu1 %vm10836_vm6, %v9004_v23 }
0x2a26   : > { %9009 = vmatpush3.bf16.msk.msra.mxu1 %vm10836_vm6, %v9004_v23 }
0x2a27   : > { %v9836_v57 = vpop.eup %9835  ;;  %v9016_v37 = vpack.c.bf16 %v9664_v25, %v9663_v9  ;;  %v7491_v9 = vld [vmem:[%s11524_s10 + $0x2] ss:$0 sm:$0xff] }
0x2a28   : > { %v4881_v8 = vmul.f32 %v9836_v57, %v9828_v54 }
0x2a29   : > { %8293 = vmatmul.mubr.msk.f32.vlgmr.msra.gmra.mrb[22].mxu1 %vm1283_vm7, %v4679_v36  ;;  %9018 = vmatprep.subr.msk.bf16.mxu1 %vm10836_vm6, %v9016_v37 }
0x2a2a   : > { %9021 = vmatpush3.bf16.msk.msra.mxu1 %vm10836_vm6, %v9016_v37  ;;  %8306 = vmatprep.mubr.msk.f32.mxu1 %vm1283_vm7, %v4881_v8 }
0x2a2b   : > { %v9838_v4 = vpop.eup %9837  ;;  %9023 = vmatprep.subr.bf16.mxu1 %v9022_v0 }
0x2a2c   : > { %v4882_v32 = vmul.f32 %v9838_v4, %v9830_v45  ;;  %v9667_v45 = vpop.permute.xlu1 %9666 }
0x2a2d   : > { %v9669_v47 = vunpack.i.h.bf16 %v9667_v45  ;;  %v9668_v51 = vunpack.i.l.bf16 %v9667_v45  ;;  %v5165_v45 = vld [vmem:[#allocation13 + $0x288] sm:$0xff] }
0x2a2e   : > { %8307 = vmatmul.mubr.msk.f32.vlgmr.msra.gmra.mrb[24].mxu1 %vm1283_vm7, %v4882_v32  ;;  %v5149_v32 = vld [vmem:[#allocation13 + $0x208] sm:$0xff] }
0x2a2f   : > { %9025 = vmatpush3.bf16.msra.mxu1 %v9022_v0  ;;  %v4996_v59 = vsel %vm1193_vm3, %v11220_v6, %v9669_v47  ;;  %v4995_v56 = vsel %vm1193_vm3, %v11222_v7, %v9668_v51  ;;  %v9054_v41 = vpack.c.bf16 %v5151_v39, %v5149_v32  ;;  %v5150_v0 = vld [vmem:[#allocation13 + $0x210] sm:$0xff]  ;;  %v5164_v51 = vld [vmem:[#allocation13 + $0x280] sm:$0xff] }
0x2a30   : > { %9027 = vmatprep.subr.bf16.mxu1 %v9026_v18  ;;  %v9056_v17 = vpack.c.bf16 %v5150_v0, %v5148_v19  ;;  %v5291_v39 = vld [vmem:[#allocation15 + $0x280] sm:$0xff]  ;;  %v5292_v19 = vld [vmem:[#allocation15 + $0x288] sm:$0xff] }
0x2a31   : > { %9055 = vmatprep.subr.bf16.mxu0 %v9054_v41  ;;  %v5275_v41 = vld [vmem:[#allocation15 + $0x200] sm:$0xff]  ;;  %v9086_v0 = vpack.c.bf16 %v5292_v19, %v5291_v39 }
0x2a32   : > { %9057 = vmatpush1.bf16.msra.mxu0 %v9056_v17  ;;  %v5294_v17 = vld [vmem:[#allocation15 + $0x298] sm:$0xff]  ;;  %v5287_v19 = vld [vmem:[#allocation15 + $0x260] sm:$0xff] }
0x2a33   : > { %9029 = vmatpush3.bf16.msra.mxu1 %v9026_v18  ;;  %v5155_v18 = vld [vmem:[#allocation13 + $0x238] sm:$0xff] }
0x2a34   : > { %9031 = vmatprep.subr.bf16.mxu1 %v9030_v3  ;;  %v9058_v10 = vpack.c.bf16 %v5155_v18, %v5153_v5  ;;  %v5276_v5 = vld [vmem:[#allocation15 + $0x208] sm:$0xff]  ;;  %v5293_v18 = vld [vmem:[#allocation15 + $0x290] sm:$0xff] }
0x2a36   : > { %9059 = vmatprep.subr.bf16.mxu0 %v9058_v10  ;;  %v9088_v10 = vpack.c.bf16 %v5276_v5, %v5275_v41  ;;  %v5288_v41 = vld [vmem:[#allocation15 + $0x268] sm:$0xff]  ;;  %v5305_v5 = vld [vmem:[#allocation15 + $0x2f0] sm:$0xff] }
0x2a37   : > { %9033 = vmatpush3.bf16.msra.mxu1 %v9030_v3  ;;  %v5152_v3 = vld [vmem:[#allocation13 + $0x220] sm:$0xff] }
0x2a38   : > { %9035 = vmatprep.subr.bf16.mxu1 %v9034_v16 }
0x2a3b   : > { %9037 = vmatpush3.bf16.msra.mxu1 %v9034_v16 }
0x2a3c   : > { %9039 = vmatprep.subr.bf16.mxu1 %v9038_v14 }
0x2a3f   : > { %9041 = vmatpush3.bf16.msra.mxu1 %v9038_v14  ;;  %v9064_v14 = vpack.c.bf16 %v5158_v38, %v5156_v13  ;;  %v5279_v38 = vld [vmem:[#allocation15 + $0x220] sm:$0xff] }
0x2a40   : > { %9043 = vmatprep.subr.bf16.mxu1 %v9042_v26 }
0x2a43   : > { %9045 = vmatpush3.bf16.msra.mxu1 %v9042_v26 }
0x2a44   : > { %9047 = vmatprep.subr.bf16.mxu1 %v9046_v28 }
0x2a47   : > { %9049 = vmatpush3.bf16.msra.mxu1 %v9046_v28 }
0x2a48   : > { %9051 = vmatprep.subr.bf16.mxu1 %v9050_v34 }
0x2a4b   : > { %9053 = vmatpush3.bf16.msra.mxu1 %v9050_v34 }
0x2a4c   : > { %9087 = vmatprep.subr.bf16.mxu1 %v9086_v0  ;;  %v9112_v0 = vpack.c.bf16 %v5288_v41, %v5287_v19  ;;  %v5452_v19 = vld [vmem:[#allocation9 + $0x4f8] sm:$0xff] }
0x2a4d   : > { %v5448_v41 = vld [vmem:[#allocation9 + $0x4d8] sm:$0xff] }
0x2afc   : > { %v8294_v35 = vpop.f32.mrb[22].mxu1 }
0x2afd   : > { %v4759_v40 = vpop.f32.mrb[23].mxu1 }
0x2afe   : > { %v9670_v42 = vpack.i.bf16 %v8294_v35, %v4759_v40  ;;  %v5161_v35 = vld [vmem:[#allocation13 + $0x268] sm:$0xff]  ;;  %v5163_v40 = vld [vmem:[#allocation13 + $0x278] sm:$0xff] }
0x2b00   : > { %9671 = vrot.lane.b32.xlu1 %v9670_v42, %s10311_s23  ;;  %v9066_v42 = vpack.c.bf16 %v5163_v40, %v5161_v35  ;;  %v5300_v35 = vld [vmem:[#allocation15 + $0x2c8] sm:$0xff] }
0x2b01   : > { %v8308_v43 = vpop.f32.mrb[24].mxu1 }
0x2b02   : > { %v4962_v54 = vpop.f32.mrb[25].mxu1 }
0x2b03   : > { %v9675_v55 = vpack.i.bf16 %v8308_v43, %v4962_v54  ;;  %v5160_v43 = vld [vmem:[#allocation13 + $0x260] sm:$0xff]  ;;  %v5162_v54 = vld [vmem:[#allocation13 + $0x270] sm:$0xff] }
0x2b05   : > { %9676 = vrot.lane.b32.xlu0 %v9675_v55, %s10310_s30  ;;  %v9068_v55 = vpack.c.bf16 %v5162_v54, %v5160_v43  ;;  %v5283_v43 = vld [vmem:[#allocation15 + $0x240] sm:$0xff]  ;;  %v5284_v54 = vld [vmem:[#allocation15 + $0x248] sm:$0xff] }
0x2b72   : > { %v9672_v46 = vpop.permute.xlu1 %9671 }
0x2b73   : > { %v9674_v52 = vunpack.i.h.bf16 %v9672_v46  ;;  %v9673_v53 = vunpack.i.l.bf16 %v9672_v46  ;;  %v5167_v46 = vld [vmem:[#allocation13 + $0x298] sm:$0xff] }
0x2b74   : > { %v9070_v47 = vpack.c.bf16 %v5167_v46, %v5165_v45  ;;  %v5302_v45 = vld [vmem:[#allocation15 + $0x2d8] sm:$0xff]  ;;  %v9104_v46 = vpack.c.bf16 %v5284_v54, %v5283_v43 }
0x2b75   : > { %v4997_v23 = vsel %vm2027_vm9, %v4995_v56, %v9673_v53  ;;  %v4998_v63 = vsel %vm2027_vm9, %v4996_v59, %v9674_v52  ;;  %v5166_v52 = vld [vmem:[#allocation13 + $0x290] sm:$0xff]  ;;  %v5171_v59 = vld [vmem:[#allocation13 + $0x2b8] sm:$0xff] }
0x2b76   : > { %v9072_v53 = vpack.c.bf16 %v5166_v52, %v5164_v51  ;;  %v5170_v56 = vld [vmem:[#allocation13 + $0x2b0] sm:$0xff]  ;;  %v5286_v52 = vld [vmem:[#allocation15 + $0x258] sm:$0xff] }
0x2b77   : > { %v9677_v48 = vpop.permute.xlu0 %9676  ;;  %v5285_v51 = vld [vmem:[#allocation15 + $0x250] sm:$0xff] }
0x2b78   : > { %v9679_v49 = vunpack.i.h.bf16 %v9677_v48  ;;  %v9678_v50 = vunpack.i.l.bf16 %v9677_v48  ;;  %v5169_v48 = vld [vmem:[#allocation13 + $0x2a8] sm:$0xff] }
0x2b7a   : > { %v4999_v44 = vsel %vm2030_vm10, %v4997_v23, %v9678_v50  ;;  %v5000_v25 = vsel %vm2030_vm10, %v4998_v63, %v9679_v49  ;;  %v9074_v49 = vpack.c.bf16 %v5171_v59, %v5169_v48  ;;  %v5168_v50 = vld [vmem:[#allocation13 + $0x2a0] sm:$0xff]  ;;  %v5173_v63 = vld [vmem:[#allocation13 + $0x2c8] sm:$0xff]  ;;  %v9108_v59 = vpack.c.bf16 %v5286_v52, %v5285_v51 }
0x2b7b   : > { %8341 = vmatprep.mubr.f32.mxu1 %v4999_v44  ;;  %v9076_v23 = vpack.c.bf16 %v5170_v56, %v5168_v50  ;;  %v5175_v44 = vld [vmem:[#allocation13 + $0x2d8] sm:$0xff]  ;;  %v5304_v48 = vld [vmem:[#allocation15 + $0x2e8] sm:$0xff] }
0x2b7c   : > { %8342 = vmatmul.mubr.f32.vlgmr.msra.gmra.mrb[26].mxu1 %v5000_v25  ;;  %v5172_v25 = vld [vmem:[#allocation13 + $0x2c0] sm:$0xff] }
0x2b7d   : > { %9089 = vmatpush3.bf16.msra.mxu1 %v9088_v10  ;;  %v5290_v10 = vld [vmem:[#allocation15 + $0x278] sm:$0xff] }
0x2c4f   : > { %v8343_v6 = vpop.f32.mrb[26].mxu1 }
0x2c50   : > { %v5098_v57 = vadd.f32 %v8343_v6, %v7491_v9  ;;  %v5092_v36 = vpop.f32.mrb[27].mxu1  ;;  %v5174_v6 = vld [vmem:[#allocation13 + $0x2d0] sm:$0xff] }
0x2c51   : > { %v5093_v37 = vadd.f32 %v7491_v9, %v5092_v36  ;;  %v9078_v9 = vpack.c.bf16 %v5175_v44, %v5173_v63  ;;  %v5179_v36 = vld [vmem:[#allocation13 + $0x2f8] sm:$0xff] }
0x2c52   : > { %v5102_v7 = vadd.f32 %v5098_v57, %v11176_v20  ;;  %v5159_v20 = vld [vmem:[#allocation13 + $0x258] sm:$0xff]  ;;  %v5177_v57 = vld [vmem:[#allocation13 + $0x2e8] sm:$0xff] }
0x2c53   : > { %v5101_v8 = vadd.f32 %v5093_v37, %v11170_v12  ;;  %v9060_v12 = vpack.c.bf16 %v5154_v33, %v5152_v3  ;;  %v9062_v16 = vpack.c.bf16 %v5159_v20, %v5157_v58  ;;  %v9080_v37 = vpack.c.bf16 %v5174_v6, %v5172_v25  ;;  %v5277_v33 = vld [vmem:[#allocation15 + $0x210] sm:$0xff]  ;;  %v5278_v58 = vld [vmem:[#allocation15 + $0x218] sm:$0xff]  ;;  %v5295_v20 = vld [vmem:[#allocation15 + $0x2a0] sm:$0xff] }
0x2c54   : > { %v5109_v4 = vsel %vm974_vm2, %v5102_v7, 0.0  ;;  %v9090_v3 = vpack.c.bf16 %v5294_v17, %v5293_v18  ;;  %v7493_v6 = vld [vmem:[%s11525_s11 + $0x2] ss:$0 sm:$0xff] }
0x2c55   : > { %5110 = vadd.xlane.f32.xlu0 %v5109_v4  ;;  %5107 = vadd.xlane.f32.xlu1 %v5101_v8  ;;  %v5178_v4 = vld [vmem:[#allocation13 + $0x2f0] sm:$0xff] }
0x2c56   : > { %9061 = vmatpush1.bf16.msra.mxu0 %v9060_v12  ;;  %v5296_v12 = vld [vmem:[#allocation15 + $0x2a8] sm:$0xff]  ;;  %9091 = vmatprep.subr.bf16.mxu1 %v9090_v3  ;;  %v5289_v17 = vld [vmem:[#allocation15 + $0x270] sm:$0xff] }
0x2c57   : > { %9063 = vmatprep.subr.bf16.mxu0 %v9062_v16  ;;  %v9092_v16 = vpack.c.bf16 %v5278_v58, %v5277_v33  ;;  %v9094_v13 = vpack.c.bf16 %v5296_v12, %v5295_v20  ;;  %v9116_v3 = vpack.c.bf16 %v5290_v10, %v5289_v17 }
0x2c59   : > { %9093 = vmatpush3.bf16.msra.mxu1 %v9092_v16 }
0x2c5a   : > { %9065 = vmatpush1.bf16.msra.mxu0 %v9064_v14  ;;  %v5280_v14 = vld [vmem:[#allocation15 + $0x228] sm:$0xff]  ;;  %9095 = vmatprep.subr.bf16.mxu1 %v9094_v13 }
0x2c5b   : > { %9067 = vmatprep.subr.bf16.mxu0 %v9066_v42 }
0x2c5e   : > { %9069 = vmatpush1.bf16.msra.mxu0 %v9068_v55  ;;  %v5301_v55 = vld [vmem:[#allocation15 + $0x2d0] sm:$0xff] }
0x2c5f   : > { %9071 = vmatprep.subr.bf16.mxu0 %v9070_v47  ;;  %v9106_v47 = vpack.c.bf16 %v5302_v45, %v5301_v55 }
0x2c62   : > { %9073 = vmatpush1.bf16.msra.mxu0 %v9072_v53  ;;  %v5303_v53 = vld [vmem:[#allocation15 + $0x2e0] sm:$0xff] }
0x2c63   : > { %9075 = vmatprep.subr.bf16.mxu0 %v9074_v49  ;;  %v9110_v49 = vpack.c.bf16 %v5304_v48, %v5303_v53  ;;  %v5438_v53 = vld [vmem:[#allocation9 + $0x488] sm:$0xff]  ;;  %v5441_v48 = vld [vmem:[#allocation9 + $0x4a0] sm:$0xff] }
0x2c66   : > { %9077 = vmatpush1.bf16.msra.mxu0 %v9076_v23 }
0x2c67   : > { %9079 = vmatprep.subr.bf16.mxu0 %v9078_v9 }
0x2c6a   : > { %9081 = vmatpush1.bf16.msra.mxu0 %v9080_v37 }
0x2ce2   : > { %v5111_v22 = vpop.xlane.xlu0 %5110  ;;  %v5108_v24 = vpop.xlane.xlu1 %5107 }
0x2ce3   : > { %v5113_v26 = vmul.f32 0.0078125, %v5111_v22  ;;  %v5112_v31 = vmul.f32 0.0078125, %v5108_v24  ;;  %v5297_v22 = vld [vmem:[#allocation15 + $0x2b0] sm:$0xff]  ;;  %v5298_v24 = vld [vmem:[#allocation15 + $0x2b8] sm:$0xff] }
0x2ce5   : > { %v11300_v27 = vsub.f32 %v5102_v7, %v5113_v26  ;;  %v11302_v28 = vsub.f32 %v5101_v8, %v5112_v31  ;;  %v9082_v7 = vpack.c.bf16 %v5179_v36, %v5177_v57  ;;  %v5176_v8 = vld [vmem:[#allocation13 + $0x2e0] sm:$0xff]  ;;  %v9096_v26 = vpack.c.bf16 %v5280_v14, %v5279_v38  ;;  %v7494_v36 = vld [vmem:[#allocation12 + $0x2] ss:$0 sm:$0xff] }
0x2ce6   : > { %v9084_v32 = vpack.c.bf16 %v5178_v4, %v5176_v8  ;;  %v9098_v31 = vpack.c.bf16 %v5298_v24, %v5297_v22 }
0x2ce7   : > { %v5116_v29 = vmul.f32 %v11302_v28, %v11302_v28  ;;  %v5117_v30 = vmul.f32 %v11300_v27, %v11300_v27  ;;  %9083 = vmatprep.subr.bf16.mxu0 %v9082_v7  ;;  %9097 = vmatpush3.bf16.msra.mxu1 %v9096_v26 }
0x2ce8   : > { %9085 = vmatpush1.bf16.msra.mxu0 %v9084_v32  ;;  %9099 = vmatprep.subr.bf16.mxu1 %v9098_v31 }
0x2ce9   : > { %5118 = vadd.xlane.f32.xlu0 %v5116_v29  ;;  %v5120_v34 = vsel %vm974_vm2, %v5117_v30, 0.0  ;;  %v5281_v29 = vld [vmem:[#allocation15 + $0x230] sm:$0xff]  ;;  %v5282_v30 = vld [vmem:[#allocation15 + $0x238] sm:$0xff] }
0x2cea   : > { %v9100_v40 = vpack.c.bf16 %v5282_v30, %v5281_v29 }
0x2cec   : > { %9101 = vmatpush3.bf16.msra.mxu1 %v9100_v40 }
0x2ced   : > { %5121 = vadd.xlane.f32.xlu0 %v5120_v34  ;;  %v5299_v34 = vld [vmem:[#allocation15 + $0x2c0] sm:$0xff] }
0x2cee   : > { %v9102_v42 = vpack.c.bf16 %v5300_v35, %v5299_v34  ;;  %v7497_v35 = vld [vmem:[%s11608_s19 + $0x2] ss:$0 sm:$0xff] }
0x2cf0   : > { %9103 = vmatprep.subr.bf16.mxu1 %v9102_v42 }
0x2cf1   : > { %9105 = vmatpush3.bf16.msra.mxu1 %v9104_v46 }
0x2cf2   : > { %9107 = vmatprep.subr.bf16.mxu1 %v9106_v47 }
0x2cf5   : > { %9109 = vmatpush3.bf16.msra.mxu1 %v9108_v59  ;;  %v5437_v59 = vld [vmem:[#allocation9 + $0x480] sm:$0xff] }
0x2cf6   : > { %9111 = vmatprep.subr.bf16.mxu1 %v9110_v49  ;;  %v9118_v49 = vpack.c.bf16 %v5441_v48, %v5438_v53  ;;  %v5463_v48 = vld [vmem:[#allocation9 + $0x550] sm:$0xff] }
0x2cf8   : > { %9119 = vmatprep.subr.bf16.mxu0 %v9118_v49 }
0x2cf9   : > { %9113 = vmatpush3.bf16.msra.mxu1 %v9112_v0 }
0x2d76   : > { %v5119_v50 = vpop.xlane.xlu0 %5118 }
0x2d77   : > { %v5123_v56 = vmul.f32 0.0078125, %v5119_v50  ;;  %v5440_v50 = vld [vmem:[#allocation9 + $0x498] sm:$0xff] }
0x2d79   : > { %v5125_v23 = vadd.f32 1e-05, %v5123_v56  ;;  %v5444_v56 = vld [vmem:[#allocation9 + $0x4b8] sm:$0xff] }
0x2d7a   : > { %v5122_v63 = vpop.xlane.xlu0 %5121 }
0x2d7b   : > { %9839 = vrsqrt.f32 %v5125_v23  ;;  %v5124_v44 = vmul.f32 0.0078125, %v5122_v63  ;;  %v5447_v23 = vld [vmem:[#allocation9 + $0x4d0] sm:$0xff]  ;;  %v9120_v63 = vpack.c.bf16 %v5440_v50, %v5437_v59  ;;  %v5466_v59 = vld [vmem:[#allocation9 + $0x568] sm:$0xff] }
0x2d7c   : > { %v9166_v49 = vpack.c.bf16 %v5466_v59, %v5463_v48  ;;  %v5474_v50 = vld [vmem:[#allocation9 + $0x5a8] sm:$0xff] }
0x2d7d   : > { %v5126_v25 = vadd.f32 1e-05, %v5124_v44  ;;  %v9122_v44 = vpack.c.bf16 %v5447_v23, %v5444_v56  ;;  %v5477_v56 = vld [vmem:[#allocation9 + $0x5c0] sm:$0xff] }
0x2d7e   : > { %v9142_v23 = vpack.c.bf16 %v5477_v56, %v5474_v50 }
0x2d7f   : > { %9841 = vrsqrt.f32 %v5126_v25  ;;  %v5443_v25 = vld [vmem:[#allocation9 + $0x4b0] sm:$0xff] }
0x2d85   : > { %v9840_v9 = vpop.eup %9839 }
0x2d86   : > { %v5129_v57 = vmul.f32 %v9840_v9, %v11302_v28  ;;  %v5306_v28 = vld [vmem:[#allocation15 + $0x2f8] sm:$0xff]  ;;  %v5446_v9 = vld [vmem:[#allocation9 + $0x4c8] sm:$0xff] }
0x2d87   : > { %v9114_v18 = vpack.c.bf16 %v5306_v28, %v5305_v5 }
0x2d88   : > { %v5137_v37 = vmul.f32 %v7493_v6, %v5129_v57  ;;  %v5442_v57 = vld [vmem:[#allocation9 + $0x4a8] sm:$0xff] }
0x2d89   : > { %v9842_v7 = vpop.eup %9841  ;;  %9115 = vmatprep.subr.bf16.mxu1 %v9114_v18 }
0x2d8a   : > { %v5145_v8 = vadd.f32 %v7494_v36, %v5137_v37  ;;  %v5130_v4 = vmul.f32 %v9842_v7, %v11300_v27  ;;  %9117 = vmatpush3.bf16.msra.mxu1 %v9116_v3  ;;  %v7495_v27 = vld [vmem:[%s11607_s3 + $0x4] sm:$0x3]  ;;  %v5453_v37 = vld [vmem:[#allocation9 + $0x500] sm:$0xff]  ;;  %v9124_v7 = vpack.c.bf16 %v5446_v9, %v5443_v25 }
0x2d8b   : > { %v5186_v33 = vrot.slane %v7495_v27, %v10801_v62  ;;  %v5190_v58 = vrot.slane %v7495_v27, %v10808_v2  ;;  %v5469_v9 = vld [vmem:[#allocation9 + $0x580] sm:$0xff] }
0x2d8c   : > { %5258 = vmatmul.mubr.f32.vlgmr.msra.gmra.mrb[62].mxu0 %v5145_v8  ;;  %v5138_v32 = vmul.f32 %v7493_v6, %v5130_v4  ;;  %v5439_v6 = vld [vmem:[#allocation9 + $0x490] sm:$0xff]  ;;  %v5445_v4 = vld [vmem:[#allocation9 + $0x4c0] sm:$0xff] }
0x2d8d   : > { %5263 = vmatprep.mubr.f32.mxu0 %v10308_v1  ;;  %9121 = vmatpush1.bf16.msra.mxu0 %v9120_v63  ;;  %v9154_v0 = vpack.c.bf16 %v5448_v41, %v5445_v4  ;;  %v5473_v63 = vld [vmem:[#allocation9 + $0x5a0] sm:$0xff]  ;;  %v5482_v4 = vld [vmem:[#allocation9 + $0x5e8] sm:$0xff] }
0x2d8e   : > { %v5146_v39 = vadd.f32 %v7494_v36, %v5138_v32  ;;  %v5450_v36 = vld [vmem:[#allocation9 + $0x4e8] sm:$0xff]  ;;  %9123 = vmatprep.subr.bf16.mxu0 %v9122_v44  ;;  %v5476_v44 = vld [vmem:[#allocation9 + $0x5b8] sm:$0xff] }
0x2d8f   : > { %v9126_v32 = vpack.c.bf16 %v5453_v37, %v5450_v36  ;;  %v9144_v25 = vpack.c.bf16 %v5476_v44, %v5473_v63  ;;  %v5480_v36 = vld [vmem:[#allocation9 + $0x5d8] sm:$0xff]  ;;  %v5483_v37 = vld [vmem:[#allocation9 + $0x5f0] sm:$0xff] }
0x2d90   : > { %5264 = vmatmul.mubr.f32.gmra.mrb[64].mxu0 %v5146_v39 }
0x2d91   : > { %5567 = vmatprep.mubr.f32.mxu0 %v10308_v1  ;;  %9125 = vmatpush1.bf16.msra.mxu0 %v9124_v7  ;;  %v9146_v7 = vpack.c.bf16 %v5483_v37, %v5480_v36 }
0x2d92   : > { %9127 = vmatprep.subr.bf16.mxu0 %v9126_v32  ;;  %v5475_v32 = vld [vmem:[#allocation9 + $0x5b0] sm:$0xff] }
0x2e5f   : > { %v5259_v20 = vpop.f32.mrb[62].mxu0 }
0x2e60   : > { %v5260_v12 = vadd.f32 %v5259_v20, %v5186_v33  ;;  %v5261_v16 = vpop.f32.mrb[63].mxu0 }
0x2e61   : > { %v5262_v13 = vadd.f32 %v5261_v16, %v5190_v58  ;;  %v5459_v16 = vld [vmem:[#allocation9 + $0x530] sm:$0xff] }
0x2e62   : > { %v5270_v22 = vmax.f32 %v5260_v12, 0.0  ;;  %v5456_v12 = vld [vmem:[#allocation9 + $0x518] sm:$0xff] }
0x2e63   : > { %v5271_v38 = vmax.f32 %v5262_v13, 0.0  ;;  %v5265_v14 = vpop.f32.mrb[64].mxu0  ;;  %v9130_v13 = vpack.c.bf16 %v5459_v16, %v5456_v12  ;;  %v7498_v16 = vld [vmem:[#allocation16 + $0x2] ss:$0 sm:$0xff] }
0x2e64   : > { %v5266_v24 = vadd.f32 %v5265_v14, %v5186_v33  ;;  %v5267_v26 = vpop.f32.mrb[65].mxu0  ;;  %v5458_v14 = vld [vmem:[#allocation9 + $0x528] sm:$0xff] }
0x2e65   : > { %v5268_v31 = vadd.f32 %v5267_v26, %v5190_v58  ;;  %5379 = vmatprep.mubr.f32.mxu1 %v5271_v38  ;;  %v5455_v38 = vld [vmem:[#allocation9 + $0x510] sm:$0xff]  ;;  %v5454_v26 = vld [vmem:[#allocation9 + $0x508] sm:$0xff] }
0x2e66   : > { %5380 = vmatmul.mubr.f32.vlgmr.msra.gmra.mrb[28].mxu1 %v5270_v22  ;;  %v5272_v30 = vmax.f32 %v5266_v24, 0.0  ;;  %v9132_v22 = vpack.c.bf16 %v5458_v14, %v5455_v38  ;;  %v5451_v24 = vld [vmem:[#allocation9 + $0x4f0] sm:$0xff]  ;;  %v7499_v38 = vld [vmem:[#allocation18 + $0x2] ss:$0 sm:$0xff] }
0x2e67   : > { %v5273_v29 = vmax.f32 %v5268_v31, 0.0  ;;  %v9158_v31 = vpack.c.bf16 %v5454_v26, %v5451_v24 }
0x2e69   : > { %5384 = vmatprep.mubr.f32.mxu1 %v5273_v29  ;;  %v5462_v29 = vld [vmem:[#allocation9 + $0x548] sm:$0xff] }
0x2e6a   : > { %5385 = vmatmul.mubr.f32.gmra.mrb[30].mxu1 %v5272_v30  ;;  %v5465_v30 = vld [vmem:[#allocation9 + $0x560] sm:$0xff] }
0x2f39   : > { %v7854_v34 = vpop.f32.mrb[28].mxu1 }
0x2f3a   : > { %v7855_v40 = vpop.f32.mrb[29].mxu1 }
0x2f3b   : > { %v7856_v42 = vadd.f32 %v7855_v40, %v7854_v34  ;;  %v9134_v34 = vpack.c.bf16 %v5465_v30, %v5462_v29  ;;  %v5464_v40 = vld [vmem:[#allocation9 + $0x558] sm:$0xff] }
0x2f3d   : > { %v5382_v43 = vadd.f32 %v7856_v42, %v7497_v35  ;;  %v7857_v54 = vpop.f32.mrb[30].mxu1 }
0x2f3e   : > { %v7858_v55 = vpop.f32.mrb[31].mxu1 }
0x2f3f   : > { %v7859_v45 = vadd.f32 %v7858_v55, %v7857_v54  ;;  %v5390_v46 = vadd.f32 %v5382_v43, %v5145_v8  ;;  %v9150_v8 = vpack.c.bf16 %v5442_v57, %v5439_v6  ;;  %v5457_v43 = vld [vmem:[#allocation9 + $0x520] sm:$0xff]  ;;  %v5460_v54 = vld [vmem:[#allocation9 + $0x538] sm:$0xff] }
0x2f40   : > { %v9162_v55 = vpack.c.bf16 %v5460_v54, %v5457_v43  ;;  %v5472_v6 = vld [vmem:[#allocation9 + $0x598] sm:$0xff] }
0x2f41   : > { %v5387_v47 = vadd.f32 %v7859_v45, %v7497_v35  ;;  %5396 = vadd.xlane.f32.xlu1 %v5390_v46  ;;  %9151 = vmatprep.subr.bf16.mxu1 %v9150_v8  ;;  %v5461_v35 = vld [vmem:[#allocation9 + $0x540] sm:$0xff]  ;;  %v5468_v45 = vld [vmem:[#allocation9 + $0x578] sm:$0xff]  ;;  %v9170_v57 = vpack.c.bf16 %v5472_v6, %v5469_v9 }
0x2f42   : > { %9153 = vmatpush3.bf16.msra.mxu1 %v9150_v8  ;;  %v9136_v42 = vpack.c.bf16 %v5464_v40, %v5461_v35  ;;  %v5479_v8 = vld [vmem:[#allocation9 + $0x5d0] sm:$0xff] }
0x2f43   : > { %v5391_v51 = vadd.f32 %v5387_v47, %v5146_v39  ;;  %v5449_v39 = vld [vmem:[#allocation9 + $0x4e0] sm:$0xff]  ;;  %9155 = vmatprep.subr.bf16.mxu1 %v9154_v0 }
0x2f44   : > { %v9128_v5 = vpack.c.bf16 %v5452_v19, %v5449_v39  ;;  %v9148_v39 = vpack.c.bf16 %v5482_v4, %v5479_v8  ;;  %v5478_v19 = vld [vmem:[#allocation9 + $0x5c8] sm:$0xff] }
0x2f45   : > { %v5398_v52 = vsel %vm974_vm2, %v5391_v51, 0.0  ;;  %v9174_v41 = vpack.c.bf16 %v5478_v19, %v5475_v32 }
0x2f46   : > { %5399 = vadd.xlane.f32.xlu0 %v5398_v52  ;;  %9157 = vmatpush3.bf16.msra.mxu1 %v9154_v0  ;;  %v5470_v52 = vld [vmem:[#allocation9 + $0x588] sm:$0xff]  ;;  %v5481_v0 = vld [vmem:[#allocation9 + $0x5e0] sm:$0xff] }
0x2f47   : > { %9129 = vmatpush1.bf16.msra.mxu0 %v9128_v5  ;;  %9159 = vmatprep.subr.bf16.mxu1 %v9158_v31  ;;  %v5484_v5 = vld [vmem:[#allocation9 + $0x5f8] sm:$0xff] }
0x2f48   : > { %9131 = vmatprep.subr.bf16.mxu0 %v9130_v13 }
0x2f4a   : > { %9161 = vmatpush3.bf16.msra.mxu1 %v9158_v31 }
0x2f4b   : > { %9133 = vmatpush1.bf16.msra.mxu0 %v9132_v22  ;;  %9163 = vmatprep.subr.bf16.mxu1 %v9162_v55 }
0x2f4c   : > { %9135 = vmatprep.subr.bf16.mxu0 %v9134_v34 }
0x2f4e   : > { %9165 = vmatpush3.bf16.msra.mxu1 %v9162_v55 }
0x2f4f   : > { %9137 = vmatpush1.bf16.msra.mxu0 %v9136_v42  ;;  %9167 = vmatprep.subr.bf16.mxu1 %v9166_v49 }
0x2f52   : > { %9169 = vmatpush3.bf16.msra.mxu1 %v9166_v49 }
0x2f53   : > { %9171 = vmatprep.subr.bf16.mxu1 %v9170_v57 }
0x2f56   : > { %9173 = vmatpush3.bf16.msra.mxu1 %v9170_v57 }
0x2f57   : > { %9175 = vmatprep.subr.bf16.mxu1 %v9174_v41 }
0x2f5a   : > { %9177 = vmatpush3.bf16.msra.mxu1 %v9174_v41 }
0x2fce   : > { %v5397_v28 = vpop.xlane.xlu1 %5396 }
0x2fcf   : > { %v5401_v18 = vmul.f32 0.0078125, %v5397_v28  ;;  %v9178_v28 = vpack.c.bf16 %v5484_v5, %v5481_v0 }
0x2fd1   : > { %v11325_v17 = vsub.f32 %v5390_v46, %v5401_v18  ;;  %v5471_v46 = vld [vmem:[#allocation9 + $0x590] sm:$0xff]  ;;  %9179 = vmatprep.subr.bf16.mxu1 %v9178_v28 }
0x2fd2   : > { %v9138_v47 = vpack.c.bf16 %v5471_v46, %v5468_v45  ;;  %9181 = vmatpush3.bf16.msra.mxu1 %v9178_v28 }
0x2fd3   : > { %v5400_v10 = vpop.xlane.xlu0 %5399  ;;  %v5405_v3 = vmul.f32 %v11325_v17, %v11325_v17 }
0x2fd4   : > { %v5402_v27 = vmul.f32 0.0078125, %v5400_v10  ;;  %9139 = vmatprep.subr.bf16.mxu0 %v9138_v47 }
0x2fd5   : > { %5407 = vadd.xlane.f32.xlu1 %v5405_v3 }
0x2fd6   : > { %v11329_v33 = vsub.f32 %v5391_v51, %v5402_v27  ;;  %v5467_v51 = vld [vmem:[#allocation9 + $0x570] sm:$0xff] }
0x2fd7   : > { %v9140_v53 = vpack.c.bf16 %v5470_v52, %v5467_v51 }
0x2fd8   : > { %v5406_v58 = vmul.f32 %v11329_v33, %v11329_v33 }
0x2fd9   : > { %9141 = vmatpush1.bf16.msra.mxu0 %v9140_v53 }
0x2fda   : > { %v5409_v20 = vsel %vm974_vm2, %v5406_v58, 0.0  ;;  %9143 = vmatprep.subr.bf16.mxu0 %v9142_v23 }
0x2fdb   : > { %5410 = vadd.xlane.f32.xlu0 %v5409_v20 }
0x2fdd   : > { %9145 = vmatpush1.bf16.msra.mxu0 %v9144_v25 }
0x2fde   : > { %9147 = vmatprep.subr.bf16.mxu0 %v9146_v7 }
0x2fe1   : > { %9149 = vmatpush1.bf16.msra.mxu0 %v9148_v39 }
0x3062   : > { %v5408_v18 = vpop.xlane.xlu1 %5407 }
0x3063   : > { %v5412_v10 = vmul.f32 0.0078125, %v5408_v18 }
0x3065   : > { %v5414_v3 = vadd.f32 1e-05, %v5412_v10 }
0x3067   : > { %9843 = vrsqrt.f32 %v5414_v3 }
0x3068   : > { %v5411_v27 = vpop.xlane.xlu0 %5410 }
0x3069   : > { %v5413_v58 = vmul.f32 0.0078125, %v5411_v27 }
0x306b   : > { %v5415_v20 = vadd.f32 1e-05, %v5413_v58 }
0x306d   : > { %9845 = vrsqrt.f32 %v5415_v20 }
0x3071   : > { %v9844_v12 = vpop.eup %9843 }
0x3072   : > { %v5418_v13 = vmul.f32 %v9844_v12, %v11325_v17  ;;  %v7500_v17 = vld [vmem:[%s11522_s8 + $0x9] sm:$0x7] }
0x3073   : > { %v5491_v30 = vrot.slane %v7500_v17, %v10801_v62  ;;  %v5495_v42 = vrot.slane %v7500_v17, %v10808_v2 }
0x3074   : > { %v5426_v14 = vmul.f32 %v7498_v16, %v5418_v13 }
0x3076   : > { %v11335_v22 = vadd.f32 %v7499_v38, %v5426_v14 }
0x3077   : > { %v9846_v24 = vpop.eup %9845 }
0x3078   : > { %5568 = vmatmul.mubr.f32.vlgmr.msra.gmra.mrb[66].mxu0 %v11335_v22  ;;  %8376 = vmatprep.mubr.f32.mxu1 %v11335_v22  ;;  %v5419_v26 = vmul.f32 %v9846_v24, %v11329_v33  ;;  %v5499_v33 = vrot.slane %v7500_v17, %v10832_v15 }
0x3079   : > { %5573 = vmatprep.mubr.f32.mxu0 %v10308_v1 }
0x307a   : > { %v5427_v31 = vmul.f32 %v7498_v16, %v5419_v26 }
0x307c   : > { %v11341_v29 = vadd.f32 %v7499_v38, %v5427_v31 }
0x307e   : > { %5574 = vmatmul.mubr.f32.gmra.mrb[68].mxu0 %v11341_v29  ;;  %8377 = vmatmul.mubr.f32.vlgmr.msra.gmra.mrb[32].mxu1 %v11341_v29 }
0x314b   : > { %v5569_v34 = vpop.f32.mrb[66].mxu0 }
0x314c   : > { %v11349_v35 = vadd.f32 %v5569_v34, %v5491_v30  ;;  %v5571_v40 = vpop.f32.mrb[67].mxu0 }
0x314d   : > { %v5572_v47 = vadd.f32 %v5571_v40, %v5495_v42 }
0x314e   : > { %8383 = vmatprep.mubr.msk.f32.mxu0 %vm1193_vm3, %v11349_v35 }
0x3151   : > { %v5575_v43 = vpop.f32.mrb[68].mxu0  ;;  %v8378_v54 = vpop.f32.mrb[32].mxu1 }
0x3152   : > { %v5652_v55 = vadd.f32 %v8378_v54, %v5499_v33  ;;  %v5577_v45 = vpop.f32.mrb[69].mxu0  ;;  %v5646_v46 = vpop.f32.mrb[33].mxu1  ;;  %v11365_v50 = vadd.f32 %v5575_v43, %v5491_v30 }
0x3153   : > { %v5578_v51 = vadd.f32 %v5577_v45, %v5495_v42  ;;  %v5647_v52 = vadd.f32 %v5646_v46, %v5499_v33 }
0x3155   : > { %v9182_v53 = vpack.c.bf16 %v5578_v51, %v5572_v47  ;;  %v9188_v48 = vpack.c.bf16 %v5652_v55, %v5647_v52  ;;  %v11355_v59 = vpack.i.bf16 %v5578_v51, %v5572_v47  ;;  %v11357_v49 = vpack.i.bf16 %v5652_v55, %v5647_v52 }
0x3157   : > { %9184 = vmatprep.subr.msk.bf16.mxu0 %vm10817_vm4, %v9182_v53 }
0x3158   : > { %9187 = vmatpush3.bf16.xpose.msk.msra.mxu0 %vm10817_vm4, %v9182_v53 }
0x3159   : > { %9190 = vmatprep.subr.msk.bf16.mxu0 %vm10836_vm6, %v9188_v48 }
0x315f   : > { %8384 = vmatmul.mubr.msk.f32.vlgmr.msra.gmra.mrb[70].mxu0 %vm1193_vm3, %v11365_v50 }
0x3160   : > { %9193 = vmatpush3.bf16.msk.msra.mxu0 %vm10836_vm6, %v9188_v48 }
0x3232   : > { %v8385_v56 = vpop.f32.mrb[70].mxu0 }
0x3233   : > { %v5743_v23 = vmul.f32 0.17677669, %v8385_v56  ;;  %v5733_v63 = vpop.f32.mrb[71].mxu0 }
0x3234   : > { %v5742_v44 = vmul.f32 0.17677669, %v5733_v63 }
0x3235   : > { %v5747_v25 = vsel %vm1287_vm8, %v5743_v23, -inf }
0x3236   : > { %5748 = vmax.xlane.f32.xlu0 %v5747_v25  ;;  %v5744_v9 = vsel %vm1283_vm7, %v5742_v44, -inf }
0x3237   : > { %5745 = vmax.xlane.f32.xlu1 %v5744_v9 }
0x3248   : > { %9681 = vrot.lane.b32.xlu1 %v11355_v59, %s10310_s30 }
0x32c3   : > { %v5749_v6 = vpop.xlane.xlu0 %5748 }
0x32c4   : > { %v5751_v57 = vsub.f32 %v5743_v23, %v5749_v6  ;;  %v5746_v36 = vpop.xlane.xlu1 %5745 }
0x32c5   : > { %v5750_v37 = vsub.f32 %v5742_v44, %v5746_v36 }
0x32c6   : > { %v5754_v7 = vmul.f32 1.442695, %v5751_v57 }
0x32c7   : > { %v5752_v8 = vmul.f32 1.442695, %v5750_v37 }
0x32c8   : > { %9847 = vpow2.f32 %v5754_v7  ;;  %v9682_v4 = vpop.permute.xlu1 %9681 }
0x32c9   : > { %9849 = vpow2.f32 %v5752_v8  ;;  %v9684_v32 = vunpack.i.h.bf16 %v9682_v4  ;;  %v9683_v39 = vunpack.i.l.bf16 %v9682_v4 }
0x32cb   : > { %v9194_v19 = vpack.c.bf16 %v9684_v32, %v9683_v39 }
0x32cd   : > { %9196 = vmatprep.subr.msk.bf16.mxu0 %vm10817_vm4, %v9194_v19 }
0x32d2   : > { %v9848_v41 = vpop.eup %9847 }
0x32d3   : > { %v9850_v0 = vpop.eup %9849  ;;  %v5759_v5 = vsel %vm1287_vm8, %v9848_v41, 0.0 }
0x32d4   : > { %5760 = vadd.xlane.f32.xlu0 %v5759_v5  ;;  %v5756_v28 = vsel %vm1283_vm7, %v9850_v0, 0.0 }
0x32d5   : > { %5757 = vadd.xlane.f32.xlu1 %v5756_v28 }
0x32e6   : > { %5852 = vrot.lane.b32.xlu1 %v11365_v50, %s10310_s30 }
0x32ea   : > { %5850 = vrot.lane.b32.xlu0 %v11349_v35, %s10310_s30 }
0x3361   : > { %v5761_v18 = vpop.xlane.xlu0 %5760 }
0x3362   : > { %9851 = vrcp.f32 %v5761_v18  ;;  %v5758_v10 = vpop.xlane.xlu1 %5757 }
0x3363   : > { %9853 = vrcp.f32 %v5758_v10 }
0x3365   : > { %v5851_v12 = vpop.permute.xlu0 %5850 }
0x3366   : > { %v5853_v16 = vpop.permute.xlu1 %5852 }
0x336c   : > { %v9852_v3 = vpop.eup %9851 }
0x336d   : > { %v9854_v27 = vpop.eup %9853  ;;  %v5765_v20 = vmul.f32 %v9852_v3, %v9848_v41 }
0x336e   : > { %v5764_v58 = vmul.f32 %v9854_v27, %v9850_v0 }
0x3370   : > { %8390 = vmatprep.mubr.msk.f32.mxu0 %vm1283_vm7, %v5764_v58 }
0x3371   : > { %8391 = vmatmul.mubr.msk.f32.vlgmr.msra.gmra.mrb[72].mxu0 %vm1283_vm7, %v5765_v20 }
0x3372   : > { %9199 = vmatpush3.bf16.xpose.msk.msra.mxu0 %vm10817_vm4, %v9194_v19  ;;  %8397 = vmatprep.mubr.msk.f32.mxu0 %vm1193_vm3, %v5851_v12 }
0x3379   : > { %8398 = vmatmul.mubr.msk.f32.vlgmr.msra.gmra.mrb[74].mxu0 %vm1193_vm3, %v5853_v16 }
0x3444   : > { %v11389_v13 = vpop.f32.mrb[72].mxu0 }
0x3445   : > { %v11391_v38 = vpop.f32.mrb[73].mxu0 }
0x344c   : > { %v8399_v14 = vpop.f32.mrb[74].mxu0 }
0x344d   : > { %v5942_v24 = vmul.f32 0.17677669, %v8399_v14  ;;  %v5932_v26 = vpop.f32.mrb[75].mxu0 }
0x344e   : > { %v5941_v31 = vmul.f32 0.17677669, %v5932_v26 }
0x344f   : > { %v5946_v17 = vsel %vm1287_vm8, %v5942_v24, -inf }
0x3450   : > { %5947 = vmax.xlane.f32.xlu0 %v5946_v17  ;;  %v5943_v30 = vsel %vm1283_vm7, %v5941_v31, -inf }
0x3451   : > { %5944 = vmax.xlane.f32.xlu1 %v5943_v30 }
0x34dd   : > { %v5948_v34 = vpop.xlane.xlu0 %5947 }
0x34de   : > { %v5950_v40 = vsub.f32 %v5942_v24, %v5948_v34  ;;  %v5945_v33 = vpop.xlane.xlu1 %5944 }
0x34df   : > { %v5949_v42 = vsub.f32 %v5941_v31, %v5945_v33 }
0x34e0   : > { %v5953_v43 = vmul.f32 1.442695, %v5950_v40 }
0x34e1   : > { %v5951_v54 = vmul.f32 1.442695, %v5949_v42 }
0x34e2   : > { %9855 = vpow2.f32 %v5953_v43 }
0x34e3   : > { %9857 = vpow2.f32 %v5951_v54 }
0x34ec   : > { %v9856_v55 = vpop.eup %9855 }
0x34ed   : > { %v9858_v45 = vpop.eup %9857  ;;  %v5958_v46 = vsel %vm1287_vm8, %v9856_v55, 0.0 }
0x34ee   : > { %5959 = vadd.xlane.f32.xlu1 %v5958_v46  ;;  %v5955_v47 = vsel %vm1283_vm7, %v9858_v45, 0.0 }
0x34ef   : > { %5956 = vadd.xlane.f32.xlu0 %v5955_v47 }
0x34ff   : > { %9691 = vrot.lane.b32.xlu1 %v11355_v59, %s10311_s23 }
0x3503   : > { %9696 = vrot.lane.b32.xlu1 %v11355_v59, %s10312_s29 }
0x3505   : > { %9686 = vrot.lane.b32.xlu0 %v11357_v49, %s10310_s30 }
0x3507   : > { %6054 = vrot.lane.b32.xlu1 %v11349_v35, %s10311_s23 }
0x3509   : > { %6056 = vrot.lane.b32.xlu0 %v11365_v50, %s10311_s23 }
0x350b   : > { %6257 = vrot.lane.b32.xlu1 %v11349_v35, %s10312_s29 }
0x350d   : > { %6259 = vrot.lane.b32.xlu0 %v11365_v50, %s10312_s29 }
0x357b   : > { %v5960_v51 = vpop.xlane.xlu1 %5959 }
0x357c   : > { %9859 = vrcp.f32 %v5960_v51  ;;  %v5957_v52 = vpop.xlane.xlu0 %5956 }
0x357d   : > { %9861 = vrcp.f32 %v5957_v52 }
0x357f   : > { %v9692_v53 = vpop.permute.xlu1 %9691 }
0x3580   : > { %v9687_v48 = vpop.permute.xlu0 %9686  ;;  %v9694_v59 = vunpack.i.h.bf16 %v9692_v53  ;;  %v9693_v56 = vunpack.i.l.bf16 %v9692_v53 }
0x3581   : > { %v9689_v23 = vunpack.i.h.bf16 %v9687_v48  ;;  %v9688_v63 = vunpack.i.l.bf16 %v9687_v48 }
0x3582   : > { %v9206_v25 = vpack.c.bf16 %v9694_v59, %v9693_v56 }
0x3583   : > { %v9200_v44 = vpack.c.bf16 %v9689_v23, %v9688_v63  ;;  %v9697_v9 = vpop.permute.xlu1 %9696 }
0x3584   : > { %v9699_v36 = vunpack.i.h.bf16 %v9697_v9  ;;  %v9698_v37 = vunpack.i.l.bf16 %v9697_v9  ;;  %v6057_v4 = vpop.permute.xlu0 %6056 }
0x3585   : > { %9202 = vmatprep.subr.msk.bf16.mxu0 %vm10836_vm6, %v9200_v44 }
0x3586   : > { %v9860_v35 = vpop.eup %9859  ;;  %9205 = vmatpush3.bf16.msk.msra.mxu0 %vm10836_vm6, %v9200_v44  ;;  %v9218_v8 = vpack.c.bf16 %v9699_v36, %v9698_v37 }
0x3587   : > { %v9862_v50 = vpop.eup %9861  ;;  %9208 = vmatprep.subr.msk.bf16.mxu0 %vm10817_vm4, %v9206_v25  ;;  %v5964_v57 = vmul.f32 %v9860_v35, %v9856_v55  ;;  %v6055_v7 = vpop.permute.xlu1 %6054 }
0x3588   : > { %v5963_v6 = vmul.f32 %v9862_v50, %v9858_v45  ;;  %v6260_v39 = vpop.permute.xlu0 %6259 }
0x358a   : > { %8404 = vmatprep.mubr.msk.f32.mxu0 %vm1283_vm7, %v5963_v6 }
0x358b   : > { %8405 = vmatmul.mubr.msk.f32.vlgmr.msra.gmra.mrb[76].mxu0 %vm1283_vm7, %v5964_v57  ;;  %v6258_v32 = vpop.permute.xlu1 %6257 }
0x358c   : > { %8411 = vmatprep.mubr.msk.f32.mxu0 %vm1193_vm3, %v6055_v7 }
0x358f   : > { %9211 = vmatpush3.bf16.xpose.msk.msra.mxu0 %vm10817_vm4, %v9206_v25 }
0x3590   : > { %9220 = vmatprep.subr.msk.bf16.mxu0 %vm10817_vm4, %v9218_v8 }
0x3596   : > { %8412 = vmatmul.mubr.msk.f32.vlgmr.msra.gmra.mrb[78].mxu0 %vm1193_vm3, %v6057_v4 }
0x3597   : > { %9223 = vmatpush3.bf16.xpose.msk.msra.mxu0 %vm10817_vm4, %v9218_v8  ;;  %8425 = vmatprep.mubr.msk.f32.mxu0 %vm1193_vm3, %v6258_v32 }
0x359e   : > { %8426 = vmatmul.mubr.msk.f32.vlgmr.msra.gmra.mrb[80].mxu0 %vm1193_vm3, %v6260_v39 }
0x359f   : > { %6746 = vmatprep.mubr.f32.mxu0 %v10308_v1 }
0x365e   : > { %v8406_v19 = vpop.f32.mrb[76].mxu0 }
0x365f   : > { %v6045_v41 = vpop.f32.mrb[77].mxu0 }
0x3660   : > { %v9710_v0 = vpack.i.bf16 %v8406_v19, %v6045_v41 }
0x3669   : > { %v8413_v5 = vpop.f32.mrb[78].mxu0 }
0x366a   : > { %v6146_v28 = vmul.f32 0.17677669, %v8413_v5  ;;  %v6136_v18 = vpop.f32.mrb[79].mxu0  ;;  %v6492_v5 = vld [vmem:[#allocation10 + $0x188] sm:$0xff] }
0x366b   : > { %v6145_v10 = vmul.f32 0.17677669, %v6136_v18 }
0x366c   : > { %v6150_v3 = vsel %vm1287_vm8, %v6146_v28, -inf }
0x366d   : > { %6151 = vmax.xlane.f32.xlu0 %v6150_v3  ;;  %v6147_v11 = vsel %vm1283_vm7, %v6145_v10, -inf }
0x366e   : > { %6148 = vmax.xlane.f32.xlu1 %v6147_v11  ;;  %v6495_v11 = vld [vmem:[#allocation10 + $0x1a0] sm:$0xff] }
0x3671   : > { %v8427_v27 = vpop.f32.mrb[80].mxu0 }
0x3672   : > { %v6339_v58 = vpop.f32.mrb[81].mxu0  ;;  %v6349_v12 = vmul.f32 0.17677669, %v8427_v27  ;;  %v6496_v27 = vld [vmem:[#allocation10 + $0x1a8] sm:$0xff] }
0x3673   : > { %v6348_v20 = vmul.f32 0.17677669, %v6339_v58  ;;  %v9238_v58 = vpack.c.bf16 %v6496_v27, %v6495_v11  ;;  %v6641_v11 = vld [vmem:[#allocation13 + $0x320] sm:$0xff]  ;;  %v6643_v27 = vld [vmem:[#allocation13 + $0x330] sm:$0xff] }
0x3674   : > { %v6353_v14 = vsel %vm1287_vm8, %v6349_v12, -inf }
0x3675   : > { %v6350_v16 = vsel %vm1283_vm7, %v6348_v20, -inf }
0x3676   : > { %6351 = vmax.xlane.f32.xlu0 %v6350_v16  ;;  %v6499_v16 = vld [vmem:[#allocation10 + $0x1c0] sm:$0xff] }
0x367a   : > { %6354 = vmax.xlane.f32.xlu0 %v6353_v14  ;;  %v6500_v14 = vld [vmem:[#allocation10 + $0x1c8] sm:$0xff] }
0x36fa   : > { %v6152_v24 = vpop.xlane.xlu0 %6151 }
0x36fb   : > { %v6154_v26 = vsub.f32 %v6146_v28, %v6152_v24  ;;  %v6149_v31 = vpop.xlane.xlu1 %6148  ;;  %v6493_v28 = vld [vmem:[#allocation10 + $0x190] sm:$0xff]  ;;  %v9246_v24 = vpack.c.bf16 %v6500_v14, %v6499_v16 }
0x36fc   : > { %v6153_v17 = vsub.f32 %v6145_v10, %v6149_v31  ;;  %v6494_v10 = vld [vmem:[#allocation10 + $0x198] sm:$0xff] }
0x36fd   : > { %v6157_v30 = vmul.f32 1.442695, %v6154_v26  ;;  %v9234_v3 = vpack.c.bf16 %v6494_v10, %v6493_v28  ;;  %v6501_v26 = vld [vmem:[#allocation10 + $0x1d0] sm:$0xff]  ;;  %v6502_v31 = vld [vmem:[#allocation10 + $0x1d8] sm:$0xff] }
0x36fe   : > { %v6155_v34 = vmul.f32 1.442695, %v6153_v17  ;;  %v9250_v17 = vpack.c.bf16 %v6502_v31, %v6501_v26  ;;  %v6642_v28 = vld [vmem:[#allocation13 + $0x328] sm:$0xff] }
0x36ff   : > { %9863 = vpow2.f32 %v6157_v30  ;;  %v6503_v30 = vld [vmem:[#allocation10 + $0x1e0] sm:$0xff] }
0x3700   : > { %9865 = vpow2.f32 %v6155_v34  ;;  %v6504_v34 = vld [vmem:[#allocation10 + $0x1e8] sm:$0xff] }
0x3703   : > { %v6352_v40 = vpop.xlane.xlu0 %6351 }
0x3704   : > { %v6356_v33 = vsub.f32 %v6348_v20, %v6352_v40  ;;  %v6498_v20 = vld [vmem:[#allocation10 + $0x1b8] sm:$0xff]  ;;  %v9254_v40 = vpack.c.bf16 %v6504_v34, %v6503_v30 }
0x3706   : > { %v6358_v42 = vmul.f32 1.442695, %v6356_v33  ;;  %v6505_v33 = vld [vmem:[#allocation10 + $0x1f0] sm:$0xff] }
0x3707   : > { %v6355_v43 = vpop.xlane.xlu0 %6354 }
0x3708   : > { %9867 = vpow2.f32 %v6358_v42  ;;  %v6357_v54 = vsub.f32 %v6349_v12, %v6355_v43  ;;  %v9242_v12 = vpack.c.bf16 %v6498_v20, %v6497_v21  ;;  %v6506_v42 = vld [vmem:[#allocation10 + $0x1f8] sm:$0xff]  ;;  %v6645_v20 = vld [vmem:[#allocation13 + $0x340] sm:$0xff] }
0x3709   : > { %v9864_v55 = vpop.eup %9863  ;;  %v9258_v43 = vpack.c.bf16 %v6506_v42, %v6505_v33  ;;  %v6650_v42 = vld [vmem:[#allocation13 + $0x368] sm:$0xff] }
0x370a   : > { %v9866_v45 = vpop.eup %9865  ;;  %v6360_v46 = vmul.f32 1.442695, %v6357_v54  ;;  %v6162_v47 = vsel %vm1287_vm8, %v9864_v55, 0.0 }
0x370b   : > { %6163 = vadd.xlane.f32.xlu0 %v6162_v47  ;;  %v6159_v51 = vsel %vm1283_vm7, %v9866_v45, 0.0 }
0x370c   : > { %9869 = vpow2.f32 %v6360_v46  ;;  %6160 = vadd.xlane.f32.xlu1 %v6159_v51 }
0x3712   : > { %v9868_v52 = vpop.eup %9867 }
0x3713   : > { %v6362_v53 = vsel %vm1283_vm7, %v9868_v52, 0.0 }
0x3714   : > { %6363 = vadd.xlane.f32.xlu1 %v6362_v53 }
0x3716   : > { %v9870_v48 = vpop.eup %9869 }
0x3717   : > { %v6365_v59 = vsel %vm1287_vm8, %v9870_v48, 0.0 }
0x3718   : > { %6366 = vadd.xlane.f32.xlu0 %v6365_v59 }
0x3725   : > { %9701 = vrot.lane.b32.xlu1 %v11357_v49, %s10311_s23 }
0x3729   : > { %9711 = vrot.lane.b32.xlu1 %v9710_v0, %s10312_s29  ;;  %v6491_v0 = vld [vmem:[#allocation10 + $0x180] sm:$0xff] }
0x372a   : > { %v9230_v18 = vpack.c.bf16 %v6492_v5, %v6491_v0  ;;  %v6639_v5 = vld [vmem:[#allocation13 + $0x310] sm:$0xff] }
0x372e   : > { %9706 = vrot.lane.b32.xlu0 %v11357_v49, %s10312_s29 }
0x3798   : > { %v6164_v23 = vpop.xlane.xlu0 %6163 }
0x3799   : > { %v6161_v56 = vpop.xlane.xlu1 %6160 }
0x379a   : > { %9871 = vrcp.f32 %v6161_v56 }
0x379b   : > { %9873 = vrcp.f32 %v6164_v23 }
0x37a1   : > { %v6364_v63 = vpop.xlane.xlu1 %6363 }
0x37a2   : > { %9875 = vrcp.f32 %v6364_v63 }
0x37a4   : > { %v9872_v44 = vpop.eup %9871 }
0x37a5   : > { %v6367_v25 = vpop.xlane.xlu0 %6366  ;;  %v9702_v9 = vpop.permute.xlu1 %9701  ;;  %v6167_v35 = vmul.f32 %v9872_v44, %v9866_v45 }
0x37a6   : > { %9877 = vrcp.f32 %v6367_v25  ;;  %v9704_v50 = vunpack.i.h.bf16 %v9702_v9  ;;  %v9703_v6 = vunpack.i.l.bf16 %v9702_v9  ;;  %v9874_v36 = vpop.eup %9873 }
0x37a7   : > { %8418 = vmatprep.mubr.msk.f32.mxu1 %vm1283_vm7, %v6167_v35  ;;  %v6168_v4 = vmul.f32 %v9874_v36, %v9864_v55 }
0x37a8   : > { %v9212_v57 = vpack.c.bf16 %v9704_v50, %v9703_v6 }
0x37a9   : > { %v9707_v37 = vpop.permute.xlu0 %9706 }
0x37aa   : > { %v9709_v7 = vunpack.i.h.bf16 %v9707_v37  ;;  %v9708_v49 = vunpack.i.l.bf16 %v9707_v37  ;;  %9214 = vmatprep.subr.msk.bf16.mxu1 %vm10836_vm6, %v9212_v57  ;;  %v7530_v37 = vld [vmem:[%s11524_s10 + $0x3] ss:$0 sm:$0xff] }
0x37ab   : > { %9217 = vmatpush3.bf16.msk.msra.mxu1 %vm10836_vm6, %v9212_v57 }
0x37ac   : > { %v9876_v8 = vpop.eup %9875  ;;  %v9224_v32 = vpack.c.bf16 %v9709_v7, %v9708_v49 }
0x37ad   : > { %v6370_v39 = vmul.f32 %v9876_v8, %v9868_v52  ;;  %v9712_v52 = vpop.permute.xlu1 %9711 }
0x37ae   : > { %8419 = vmatmul.mubr.msk.f32.vlgmr.msra.gmra.mrb[34].mxu1 %vm1283_vm7, %v6168_v4  ;;  %9226 = vmatprep.subr.msk.bf16.mxu1 %vm10836_vm6, %v9224_v32  ;;  %v9713_v59 = vunpack.i.l.bf16 %v9712_v52 }
0x37af   : > { %9229 = vmatpush3.bf16.msk.msra.mxu1 %vm10836_vm6, %v9224_v32  ;;  %8432 = vmatprep.mubr.msk.f32.mxu1 %vm1283_vm7, %v6370_v39  ;;  %v6638_v39 = vld [vmem:[#allocation13 + $0x308] sm:$0xff] }
0x37b0   : > { %v9878_v19 = vpop.eup %9877  ;;  %9231 = vmatprep.subr.bf16.mxu1 %v9230_v18  ;;  %v6484_v35 = vsel %vm1193_vm3, %v11391_v38, %v9713_v59 }
0x37b1   : > { %v6371_v41 = vmul.f32 %v9878_v19, %v9870_v48  ;;  %v9714_v48 = vunpack.i.h.bf16 %v9712_v52  ;;  %v6640_v19 = vld [vmem:[#allocation13 + $0x318] sm:$0xff] }
0x37b2   : > { %v9262_v0 = vpack.c.bf16 %v6640_v19, %v6638_v39  ;;  %v6781_v39 = vld [vmem:[#allocation15 + $0x388] sm:$0xff]  ;;  %v6764_v19 = vld [vmem:[#allocation15 + $0x300] sm:$0xff] }
0x37b3   : > { %8433 = vmatmul.mubr.msk.f32.vlgmr.msra.gmra.mrb[36].mxu1 %vm1283_vm7, %v6371_v41  ;;  %v6485_v44 = vsel %vm1193_vm3, %v11389_v13, %v9714_v48  ;;  %v6637_v41 = vld [vmem:[#allocation13 + $0x300] sm:$0xff]  ;;  %v6655_v48 = vld [vmem:[#allocation13 + $0x390] sm:$0xff] }
0x37b4   : > { %9233 = vmatpush3.bf16.msra.mxu1 %v9230_v18  ;;  %v6644_v18 = vld [vmem:[#allocation13 + $0x338] sm:$0xff]  ;;  %v9264_v10 = vpack.c.bf16 %v6639_v5, %v6637_v41  ;;  %9263 = vmatprep.subr.bf16.mxu0 %v9262_v0  ;;  %v6765_v0 = vld [vmem:[#allocation15 + $0x308] sm:$0xff]  ;;  %v6782_v5 = vld [vmem:[#allocation15 + $0x390] sm:$0xff] }
0x37b5   : > { %9235 = vmatprep.subr.bf16.mxu1 %v9234_v3 }
0x37b6   : > { %9265 = vmatpush1.bf16.msra.mxu0 %v9264_v10 }
0x37b8   : > { %9237 = vmatpush3.bf16.msra.mxu1 %v9234_v3  ;;  %v9266_v3 = vpack.c.bf16 %v6644_v18, %v6642_v28  ;;  %v6783_v28 = vld [vmem:[#allocation15 + $0x398] sm:$0xff]  ;;  %v9296_v18 = vpack.c.bf16 %v6765_v0, %v6764_v19  ;;  %v6794_v19 = vld [vmem:[#allocation15 + $0x3f0] sm:$0xff] }
0x37b9   : > { %9239 = vmatprep.subr.bf16.mxu1 %v9238_v58  ;;  %v9298_v10 = vpack.c.bf16 %v6783_v28, %v6782_v5  ;;  %v6778_v0 = vld [vmem:[#allocation15 + $0x370] sm:$0xff]  ;;  %v6779_v5 = vld [vmem:[#allocation15 + $0x378] sm:$0xff] }
0x37ba   : > { %9267 = vmatprep.subr.bf16.mxu0 %v9266_v3  ;;  %v6766_v3 = vld [vmem:[#allocation15 + $0x310] sm:$0xff]  ;;  %v9324_v28 = vpack.c.bf16 %v6779_v5, %v6778_v0  ;;  %v6930_v0 = vld [vmem:[#allocation19 + $0xb0] sm:$0xff] }
0x37bc   : > { %9241 = vmatpush3.bf16.msra.mxu1 %v9238_v58  ;;  %v6646_v58 = vld [vmem:[#allocation13 + $0x348] sm:$0xff] }
0x37bd   : > { %9243 = vmatprep.subr.bf16.mxu1 %v9242_v12 }
0x37c0   : > { %9245 = vmatpush3.bf16.msra.mxu1 %v9242_v12  ;;  %v6647_v12 = vld [vmem:[#allocation13 + $0x350] sm:$0xff] }
0x37c1   : > { %9247 = vmatprep.subr.bf16.mxu1 %v9246_v24  ;;  %v9272_v16 = vpack.c.bf16 %v6647_v12, %v6645_v20  ;;  %v6769_v20 = vld [vmem:[#allocation15 + $0x328] sm:$0xff]  ;;  %v6786_v12 = vld [vmem:[#allocation15 + $0x3b0] sm:$0xff] }
0x37c4   : > { %9249 = vmatpush3.bf16.msra.mxu1 %v9246_v24 }
0x37c5   : > { %9251 = vmatprep.subr.bf16.mxu1 %v9250_v17 }
0x37c8   : > { %9253 = vmatpush3.bf16.msra.mxu1 %v9250_v17 }
0x37c9   : > { %9255 = vmatprep.subr.bf16.mxu1 %v9254_v40 }
0x37cc   : > { %9257 = vmatpush3.bf16.msra.mxu1 %v9254_v40 }
0x37cd   : > { %9259 = vmatprep.subr.bf16.mxu1 %v9258_v43 }
0x37d0   : > { %9261 = vmatpush3.bf16.msra.mxu1 %v9258_v43  ;;  %v6652_v43 = vld [vmem:[#allocation13 + $0x378] sm:$0xff] }
0x3881   : > { %v8420_v54 = vpop.f32.mrb[34].mxu1 }
0x3882   : > { %v6248_v55 = vpop.f32.mrb[35].mxu1 }
0x3883   : > { %v9715_v45 = vpack.i.bf16 %v8420_v54, %v6248_v55  ;;  %v9274_v54 = vpack.c.bf16 %v6652_v43, %v6650_v42  ;;  %v6649_v55 = vld [vmem:[#allocation13 + $0x360] sm:$0xff] }
0x3884   : > { %v6772_v43 = vld [vmem:[#allocation15 + $0x340] sm:$0xff] }
0x3885   : > { %9716 = vrot.lane.b32.xlu1 %v9715_v45, %s10311_s23  ;;  %v6651_v45 = vld [vmem:[#allocation13 + $0x370] sm:$0xff] }
0x3886   : > { %v8434_v46 = vpop.f32.mrb[36].mxu1 }
0x3887   : > { %v6451_v47 = vpop.f32.mrb[37].mxu1 }
0x3888   : > { %v9720_v51 = vpack.i.bf16 %v8434_v46, %v6451_v47  ;;  %v9276_v46 = vpack.c.bf16 %v6651_v45, %v6649_v55  ;;  %v6654_v47 = vld [vmem:[#allocation13 + $0x388] sm:$0xff]  ;;  %v6790_v55 = vld [vmem:[#allocation15 + $0x3d0] sm:$0xff]  ;;  %v6791_v45 = vld [vmem:[#allocation15 + $0x3d8] sm:$0xff] }
0x388a   : > { %9721 = vrot.lane.b32.xlu1 %v9720_v51, %s10310_s30  ;;  %v6656_v51 = vld [vmem:[#allocation13 + $0x398] sm:$0xff] }
0x388b   : > { %v9278_v52 = vpack.c.bf16 %v6656_v51, %v6654_v47  ;;  %v9314_v47 = vpack.c.bf16 %v6791_v45, %v6790_v55  ;;  %v6774_v51 = vld [vmem:[#allocation15 + $0x350] sm:$0xff] }
0x388c   : > { %v6909_v55 = vld [vmem:[#allocation19 + $0x8] sm:$0xff] }
0x388d   : > { %v6913_v45 = vld [vmem:[#allocation19 + $0x28] sm:$0xff] }
0x38f7   : > { %v9717_v53 = vpop.permute.xlu1 %9716 }
0x38f8   : > { %v9719_v56 = vunpack.i.h.bf16 %v9717_v53  ;;  %v9718_v23 = vunpack.i.l.bf16 %v9717_v53  ;;  %v6653_v53 = vld [vmem:[#allocation13 + $0x380] sm:$0xff] }
0x38f9   : > { %v9280_v59 = vpack.c.bf16 %v6655_v48, %v6653_v53  ;;  %v6792_v53 = vld [vmem:[#allocation15 + $0x3e0] sm:$0xff]  ;;  %v6793_v48 = vld [vmem:[#allocation15 + $0x3e8] sm:$0xff] }
0x38fa   : > { %v6486_v50 = vsel %vm2027_vm9, %v6484_v35, %v9718_v23  ;;  %v6487_v6 = vsel %vm2027_vm9, %v6485_v44, %v9719_v56  ;;  %v6658_v56 = vld [vmem:[#allocation13 + $0x3a8] sm:$0xff]  ;;  %v6660_v23 = vld [vmem:[#allocation13 + $0x3b8] sm:$0xff]  ;;  %v6657_v44 = vld [vmem:[#allocation13 + $0x3a0] sm:$0xff] }
0x38fb   : > { %v6662_v35 = vld [vmem:[#allocation13 + $0x3c8] sm:$0xff] }
0x38fc   : > { %v9722_v63 = vpop.permute.xlu1 %9721 }
0x38fd   : > { %v9724_v25 = vunpack.i.h.bf16 %v9722_v63  ;;  %v9723_v9 = vunpack.i.l.bf16 %v9722_v63  ;;  %v9282_v63 = vpack.c.bf16 %v6660_v23, %v6658_v56  ;;  %v9318_v56 = vpack.c.bf16 %v6793_v48, %v6792_v53  ;;  %v6912_v53 = vld [vmem:[#allocation19 + $0x20] sm:$0xff] }
0x38ff   : > { %v6488_v57 = vsel %vm2030_vm10, %v6486_v50, %v9723_v9  ;;  %v6489_v36 = vsel %vm2030_vm10, %v6487_v6, %v9724_v25  ;;  %v6659_v25 = vld [vmem:[#allocation13 + $0x3b0] sm:$0xff]  ;;  %v6664_v50 = vld [vmem:[#allocation13 + $0x3d8] sm:$0xff]  ;;  %v6661_v6 = vld [vmem:[#allocation13 + $0x3c0] sm:$0xff] }
0x3900   : > { %8467 = vmatprep.mubr.f32.mxu1 %v6488_v57  ;;  %v9284_v9 = vpack.c.bf16 %v6659_v25, %v6657_v44  ;;  %v9286_v57 = vpack.c.bf16 %v6664_v50, %v6662_v35 }
0x3901   : > { %8468 = vmatmul.mubr.f32.vlgmr.msra.gmra.mrb[38].mxu1 %v6489_v36  ;;  %v6663_v36 = vld [vmem:[#allocation13 + $0x3d0] sm:$0xff] }
0x39d4   : > { %v8469_v13 = vpop.f32.mrb[38].mxu1 }
0x39d5   : > { %v6587_v7 = vadd.f32 %v8469_v13, %v7530_v37  ;;  %v6581_v49 = vpop.f32.mrb[39].mxu1  ;;  %v6668_v13 = vld [vmem:[#allocation13 + $0x3f8] sm:$0xff] }
0x39d6   : > { %v6582_v8 = vadd.f32 %v7530_v37, %v6581_v49  ;;  %v6666_v37 = vld [vmem:[#allocation13 + $0x3e8] sm:$0xff] }
0x39d7   : > { %v6591_v4 = vadd.f32 %v6587_v7, %v11341_v29  ;;  %v9268_v29 = vpack.c.bf16 %v6643_v27, %v6641_v11  ;;  %v9288_v7 = vpack.c.bf16 %v6663_v36, %v6661_v6  ;;  %v9290_v49 = vpack.c.bf16 %v6668_v13, %v6666_v37  ;;  %v6767_v11 = vld [vmem:[#allocation15 + $0x318] sm:$0xff]  ;;  %v6784_v27 = vld [vmem:[#allocation15 + $0x3a0] sm:$0xff]  ;;  %v7532_v6 = vld [vmem:[%s11525_s11 + $0x3] ss:$0 sm:$0xff] }
0x39d8   : > { %v6590_v38 = vadd.f32 %v6582_v8, %v11335_v22  ;;  %v6648_v22 = vld [vmem:[#allocation13 + $0x358] sm:$0xff]  ;;  %v6665_v8 = vld [vmem:[#allocation13 + $0x3e0] sm:$0xff] }
0x39d9   : > { %v6598_v32 = vsel %vm974_vm2, %v6591_v4, 0.0  ;;  %v9270_v21 = vpack.c.bf16 %v6648_v22, %v6646_v58  ;;  %9269 = vmatpush1.bf16.msra.mxu0 %v9268_v29  ;;  %v6785_v58 = vld [vmem:[#allocation15 + $0x3a8] sm:$0xff]  ;;  %v9300_v22 = vpack.c.bf16 %v6767_v11, %v6766_v3  ;;  %v7533_v36 = vld [vmem:[#allocation12 + $0x3] ss:$0 sm:$0xff] }
0x39da   : > { %6596 = vadd.xlane.f32.xlu0 %v6590_v38  ;;  %v9302_v29 = vpack.c.bf16 %v6785_v58, %v6784_v27 }
0x39db   : > { %9271 = vmatprep.subr.bf16.mxu0 %v9270_v21  ;;  %v6768_v21 = vld [vmem:[#allocation15 + $0x320] sm:$0xff] }
0x39dd   : > { %9273 = vmatpush1.bf16.msra.mxu0 %v9272_v16  ;;  %v6787_v16 = vld [vmem:[#allocation15 + $0x3b8] sm:$0xff] }
0x39de   : > { %6599 = vadd.xlane.f32.xlu0 %v6598_v32  ;;  %9275 = vmatprep.subr.bf16.mxu0 %v9274_v54  ;;  %v6780_v32 = vld [vmem:[#allocation15 + $0x380] sm:$0xff]  ;;  %v6773_v54 = vld [vmem:[#allocation15 + $0x348] sm:$0xff] }
0x39df   : > { %v9294_v41 = vpack.c.bf16 %v6781_v39, %v6780_v32  ;;  %v6777_v32 = vld [vmem:[#allocation15 + $0x368] sm:$0xff] }
0x39e1   : > { %9277 = vmatpush1.bf16.msra.mxu0 %v9276_v46  ;;  %9295 = vmatprep.subr.bf16.mxu1 %v9294_v41  ;;  %v9312_v46 = vpack.c.bf16 %v6773_v54, %v6772_v43 }
0x39e2   : > { %9279 = vmatprep.subr.bf16.mxu0 %v9278_v52  ;;  %9297 = vmatpush3.bf16.msra.mxu1 %v9296_v18  ;;  %v6775_v52 = vld [vmem:[#allocation15 + $0x358] sm:$0xff] }
0x39e3   : > { %9299 = vmatprep.subr.bf16.mxu1 %v9298_v10 }
0x39e5   : > { %9281 = vmatpush1.bf16.msra.mxu0 %v9280_v59  ;;  %v9316_v59 = vpack.c.bf16 %v6775_v52, %v6774_v51  ;;  %v6915_v51 = vld [vmem:[#allocation19 + $0x38] sm:$0xff]  ;;  %v6908_v52 = vld [vmem:[#allocation19] sm:$0xff] }
0x39e6   : > { %9283 = vmatprep.subr.bf16.mxu0 %v9282_v63  ;;  %9301 = vmatpush3.bf16.msra.mxu1 %v9300_v22  ;;  %v9328_v48 = vpack.c.bf16 %v6912_v53, %v6908_v52  ;;  %v6949_v52 = vld [vmem:[#allocation19 + $0x148] sm:$0xff] }
0x39e7   : > { %9303 = vmatprep.subr.bf16.mxu1 %v9302_v29  ;;  %v6953_v53 = vld [vmem:[#allocation19 + $0x168] sm:$0xff] }
0x39e9   : > { %9285 = vmatpush1.bf16.msra.mxu0 %v9284_v9 }
0x39ea   : > { %9287 = vmatprep.subr.bf16.mxu0 %v9286_v57 }
0x39ed   : > { %9289 = vmatpush1.bf16.msra.mxu0 %v9288_v7 }
0x39ee   : > { %9291 = vmatprep.subr.bf16.mxu0 %v9290_v49 }
0x3a67   : > { %v6597_v14 = vpop.xlane.xlu0 %6596 }
0x3a68   : > { %v6601_v24 = vmul.f32 0.0078125, %v6597_v14  ;;  %v9304_v14 = vpack.c.bf16 %v6769_v20, %v6768_v21 }
0x3a6a   : > { %v11471_v26 = vsub.f32 %v6590_v38, %v6601_v24  ;;  %v6667_v38 = vld [vmem:[#allocation13 + $0x3f0] sm:$0xff]  ;;  %v9306_v24 = vpack.c.bf16 %v6787_v16, %v6786_v12  ;;  %9305 = vmatpush3.bf16.msra.mxu1 %v9304_v14 }
0x3a6b   : > { %v6600_v31 = vpop.xlane.xlu0 %6599 }
0x3a6c   : > { %v6602_v17 = vmul.f32 0.0078125, %v6600_v31  ;;  %v6605_v30 = vmul.f32 %v11471_v26, %v11471_v26  ;;  %v6770_v31 = vld [vmem:[#allocation15 + $0x330] sm:$0xff]  ;;  %9307 = vmatprep.subr.bf16.mxu1 %v9306_v24 }
0x3a6e   : > { %v11475_v34 = vsub.f32 %v6591_v4, %v6602_v17  ;;  %6607 = vadd.xlane.f32.xlu1 %v6605_v30  ;;  %v9292_v4 = vpack.c.bf16 %v6667_v38, %v6665_v8  ;;  %v6771_v17 = vld [vmem:[#allocation15 + $0x338] sm:$0xff]  ;;  %v6788_v30 = vld [vmem:[#allocation15 + $0x3c0] sm:$0xff] }
0x3a70   : > { %v6606_v40 = vmul.f32 %v11475_v34, %v11475_v34  ;;  %9293 = vmatpush1.bf16.msra.mxu0 %v9292_v4  ;;  %v6776_v4 = vld [vmem:[#allocation15 + $0x360] sm:$0xff] }
0x3a71   : > { %v9320_v39 = vpack.c.bf16 %v6777_v32, %v6776_v4  ;;  %v6927_v4 = vld [vmem:[#allocation19 + $0x98] sm:$0xff] }
0x3a72   : > { %v6609_v33 = vsel %vm974_vm2, %v6606_v40, 0.0  ;;  %v6789_v40 = vld [vmem:[#allocation15 + $0x3c8] sm:$0xff]  ;;  %v6931_v32 = vld [vmem:[#allocation19 + $0xb8] sm:$0xff] }
0x3a73   : > { %6610 = vadd.xlane.f32.xlu0 %v6609_v33  ;;  %v9308_v33 = vpack.c.bf16 %v6771_v17, %v6770_v31  ;;  %v9310_v42 = vpack.c.bf16 %v6789_v40, %v6788_v30  ;;  %v7536_v17 = vld [vmem:[%s11608_s19 + $0x3] ss:$0 sm:$0xff] }
0x3a75   : > { %9309 = vmatpush3.bf16.msra.mxu1 %v9308_v33 }
0x3a76   : > { %9311 = vmatprep.subr.bf16.mxu1 %v9310_v42 }
0x3a79   : > { %9313 = vmatpush3.bf16.msra.mxu1 %v9312_v46  ;;  %v6911_v46 = vld [vmem:[#allocation19 + $0x18] sm:$0xff] }
0x3a7a   : > { %9315 = vmatprep.subr.bf16.mxu1 %v9314_v47  ;;  %v9326_v47 = vpack.c.bf16 %v6913_v45, %v6909_v55 }
0x3a7c   : > { %9327 = vmatprep.subr.bf16.mxu0 %v9326_v47  ;;  %v6946_v47 = vld [vmem:[#allocation19 + $0x130] sm:$0xff] }
0x3a7d   : > { %9317 = vmatpush3.bf16.msra.mxu1 %v9316_v59  ;;  %v6910_v59 = vld [vmem:[#allocation19 + $0x10] sm:$0xff] }
0x3a7e   : > { %9319 = vmatprep.subr.bf16.mxu1 %v9318_v56  ;;  %v6914_v56 = vld [vmem:[#allocation19 + $0x30] sm:$0xff] }
0x3a81   : > { %9321 = vmatpush3.bf16.msra.mxu1 %v9320_v39  ;;  %v6924_v39 = vld [vmem:[#allocation19 + $0x80] sm:$0xff] }
0x3afb   : > { %v6608_v23 = vpop.xlane.xlu1 %6607 }
0x3afc   : > { %v6612_v63 = vmul.f32 0.0078125, %v6608_v23  ;;  %v6917_v23 = vld [vmem:[#allocation19 + $0x48] sm:$0xff] }
0x3afe   : > { %v6614_v44 = vadd.f32 1e-05, %v6612_v63  ;;  %v9360_v63 = vpack.c.bf16 %v6914_v56, %v6910_v59  ;;  %v6955_v59 = vld [vmem:[#allocation19 + $0x178] sm:$0xff]  ;;  %v6948_v56 = vld [vmem:[#allocation19 + $0x140] sm:$0xff] }
0x3b00   : > { %9879 = vrsqrt.f32 %v6614_v44  ;;  %v6611_v25 = vpop.xlane.xlu0 %6610  ;;  %v6921_v44 = vld [vmem:[#allocation19 + $0x68] sm:$0xff] }
0x3b01   : > { %v6613_v9 = vmul.f32 0.0078125, %v6611_v25  ;;  %v6919_v25 = vld [vmem:[#allocation19 + $0x58] sm:$0xff] }
0x3b03   : > { %v6615_v35 = vadd.f32 1e-05, %v6613_v9  ;;  %v6923_v9 = vld [vmem:[#allocation19 + $0x78] sm:$0xff] }
0x3b05   : > { %9881 = vrsqrt.f32 %v6615_v35  ;;  %v9330_v35 = vpack.c.bf16 %v6921_v44, %v6917_v23  ;;  %v6952_v23 = vld [vmem:[#allocation19 + $0x160] sm:$0xff] }
0x3b06   : > { %v9348_v44 = vpack.c.bf16 %v6952_v23, %v6948_v56 }
0x3b0a   : > { %v9880_v50 = vpop.eup %9879 }
0x3b0b   : > { %v6618_v57 = vmul.f32 %v9880_v50, %v11471_v26  ;;  %v6795_v26 = vld [vmem:[#allocation15 + $0x3f8] sm:$0xff]  ;;  %v9362_v50 = vpack.c.bf16 %v6923_v9, %v6919_v25 }
0x3b0c   : > { %v9322_v41 = vpack.c.bf16 %v6795_v26, %v6794_v19  ;;  %v9366_v19 = vpack.c.bf16 %v6931_v32, %v6927_v4  ;;  %v6928_v26 = vld [vmem:[#allocation19 + $0xa0] sm:$0xff]  ;;  %v6950_v25 = vld [vmem:[#allocation19 + $0x150] sm:$0xff] }
0x3b0d   : > { %v6626_v37 = vmul.f32 %v7532_v6, %v6618_v57  ;;  %v6920_v57 = vld [vmem:[#allocation19 + $0x60] sm:$0xff]  ;;  %v9336_v5 = vpack.c.bf16 %v6928_v26, %v6924_v39  ;;  %v6954_v9 = vld [vmem:[#allocation19 + $0x170] sm:$0xff]  ;;  %v6965_v39 = vld [vmem:[#allocation19 + $0x1c8] sm:$0xff] }
0x3b0e   : > { %9323 = vmatprep.subr.bf16.mxu1 %v9322_v41  ;;  %v6926_v41 = vld [vmem:[#allocation19 + $0x90] sm:$0xff]  ;;  %v6967_v26 = vld [vmem:[#allocation19 + $0x1d8] sm:$0xff] }
0x3b0f   : > { %v9882_v13 = vpop.eup %9881  ;;  %v6634_v7 = vadd.f32 %v7533_v36, %v6626_v37  ;;  %9325 = vmatpush3.bf16.msra.mxu1 %v9324_v28  ;;  %v9368_v28 = vpack.c.bf16 %v6930_v0, %v6926_v41  ;;  %v6962_v4 = vld [vmem:[#allocation19 + $0x1b0] sm:$0xff]  ;;  %v6971_v0 = vld [vmem:[#allocation19 + $0x1f8] sm:$0xff] }
0x3b10   : > { %v6619_v49 = vmul.f32 %v9882_v13, %v11475_v34  ;;  %v7534_v34 = vld [vmem:[%s11607_s3 + $0x6] sm:$0x3]  ;;  %v6922_v13 = vld [vmem:[#allocation19 + $0x70] sm:$0xff] }
0x3b11   : > { %6747 = vmatmul.mubr.f32.vlgmr.msra.gmra.mrb[82].mxu0 %v6634_v7  ;;  %v6675_v18 = vrot.slane %v7534_v34, %v10801_v62  ;;  %v6679_v10 = vrot.slane %v7534_v34, %v10808_v2 }
0x3b12   : > { %6752 = vmatprep.mubr.f32.mxu0 %v10308_v1  ;;  %v6627_v8 = vmul.f32 %v7532_v6, %v6619_v49  ;;  %9329 = vmatpush1.bf16.msra.mxu0 %v9328_v48  ;;  %v6916_v6 = vld [vmem:[#allocation19 + $0x40] sm:$0xff]  ;;  %v6929_v49 = vld [vmem:[#allocation19 + $0xa8] sm:$0xff]  ;;  %v9346_v48 = vpack.c.bf16 %v6953_v53, %v6949_v52 }
0x3b13   : > { %v9332_v37 = vpack.c.bf16 %v6920_v57, %v6916_v6  ;;  %9331 = vmatprep.subr.bf16.mxu0 %v9330_v35  ;;  %v9380_v35 = vpack.c.bf16 %v6954_v9, %v6950_v25  ;;  %v6961_v6 = vld [vmem:[#allocation19 + $0x1a8] sm:$0xff]  ;;  %v6959_v57 = vld [vmem:[#allocation19 + $0x198] sm:$0xff] }
0x3b14   : > { %v6635_v38 = vadd.f32 %v7533_v36, %v6627_v8  ;;  %v6918_v36 = vld [vmem:[#allocation19 + $0x50] sm:$0xff] }
0x3b15   : > { %v9364_v8 = vpack.c.bf16 %v6922_v13, %v6918_v36  ;;  %v6956_v13 = vld [vmem:[#allocation19 + $0x180] sm:$0xff] }
0x3b16   : > { %6753 = vmatmul.mubr.f32.gmra.mrb[84].mxu0 %v6635_v38 }
0x3b17   : > { %7058 = vmatprep.mubr.f32.mxu0 %v10308_v1  ;;  %9333 = vmatpush1.bf16.msra.mxu0 %v9332_v37  ;;  %v6963_v37 = vld [vmem:[#allocation19 + $0x1b8] sm:$0xff] }
0x3be4   : > { %v6748_v3 = vpop.f32.mrb[82].mxu0 }
0x3be5   : > { %v6749_v11 = vadd.f32 %v6748_v3, %v6675_v18  ;;  %v6750_v27 = vpop.f32.mrb[83].mxu0 }
0x3be6   : > { %v6751_v58 = vadd.f32 %v6750_v27, %v6679_v10  ;;  %v6937_v27 = vld [vmem:[#allocation19 + $0xe8] sm:$0xff] }
0x3be7   : > { %v6759_v29 = vmax.f32 %v6749_v11, 0.0  ;;  %v6933_v11 = vld [vmem:[#allocation19 + $0xc8] sm:$0xff] }
0x3be8   : > { %v6760_v22 = vmax.f32 %v6751_v58, 0.0  ;;  %v6935_v58 = vld [vmem:[#allocation19 + $0xd8] sm:$0xff] }
0x3be9   : > { %v6754_v21 = vpop.f32.mrb[84].mxu0 }
0x3bea   : > { %v6755_v20 = vadd.f32 %v6754_v21, %v6675_v18  ;;  %v6756_v12 = vpop.f32.mrb[85].mxu0  ;;  %6868 = vmatprep.mubr.f32.mxu1 %v6760_v22  ;;  %v9338_v22 = vpack.c.bf16 %v6937_v27, %v6933_v11  ;;  %v6932_v21 = vld [vmem:[#allocation19 + $0xc0] sm:$0xff]  ;;  %v6970_v11 = vld [vmem:[#allocation19 + $0x1f0] sm:$0xff] }
0x3beb   : > { %v6757_v16 = vadd.f32 %v6756_v12, %v6679_v10  ;;  %6869 = vmatmul.mubr.f32.vlgmr.msra.gmra.mrb[40].mxu1 %v6759_v29  ;;  %v6939_v29 = vld [vmem:[#allocation19 + $0xf8] sm:$0xff] }
0x3bec   : > { %v6761_v24 = vmax.f32 %v6755_v20, 0.0  ;;  %v6936_v20 = vld [vmem:[#allocation19 + $0xe0] sm:$0xff]  ;;  %v9370_v12 = vpack.c.bf16 %v6939_v29, %v6935_v58 }
0x3bed   : > { %v6762_v14 = vmax.f32 %v6757_v16, 0.0  ;;  %v9340_v16 = vpack.c.bf16 %v6936_v20, %v6932_v21  ;;  %v7537_v20 = vld [vmem:[#allocation16 + $0x3] ss:$0 sm:$0xff] }
0x3bef   : > { %6873 = vmatprep.mubr.f32.mxu1 %v6762_v14  ;;  %v6934_v14 = vld [vmem:[#allocation19 + $0xd0] sm:$0xff] }
0x3bf0   : > { %6874 = vmatmul.mubr.f32.gmra.mrb[42].mxu1 %v6761_v24  ;;  %v6938_v24 = vld [vmem:[#allocation19 + $0xf0] sm:$0xff] }
0x3bf1   : > { %7129 = vmatprep.mubr.f32.mxu1 %v10308_v1  ;;  %v9358_v1 = vpack.c.bf16 %v6915_v51, %v6911_v46  ;;  %v6942_v46 = vld [vmem:[#allocation19 + $0x110] sm:$0xff] }
0x3bf2   : > { %v9376_v51 = vpack.c.bf16 %v6946_v47, %v6942_v46 }
0x3bf3   : > { %9359 = vmatprep.subr.bf16.mxu1 %v9358_v1  ;;  %v6951_v1 = vld [vmem:[#allocation19 + $0x158] sm:$0xff] }
0x3bf4   : > { %9361 = vmatpush1.bf16.msra.mxu1 %v9360_v63  ;;  %v9378_v63 = vpack.c.bf16 %v6955_v59, %v6951_v1 }
0x3bf5   : > { %9363 = vmatprep.subr.bf16.mxu1 %v9362_v50  ;;  %v6957_v50 = vld [vmem:[#allocation19 + $0x188] sm:$0xff] }
0x3bf6   : > { %v9350_v36 = vpack.c.bf16 %v6961_v6, %v6957_v50 }
0x3bf8   : > { %9365 = vmatpush1.bf16.msra.mxu1 %v9364_v8 }
0x3bf9   : > { %9367 = vmatprep.subr.bf16.mxu1 %v9366_v19  ;;  %v6969_v19 = vld [vmem:[#allocation19 + $0x1e8] sm:$0xff] }
0x3bfa   : > { %v9354_v41 = vpack.c.bf16 %v6969_v19, %v6965_v39 }
0x3bfc   : > { %9369 = vmatpush1.bf16.msra.mxu1 %v9368_v28  ;;  %v6968_v28 = vld [vmem:[#allocation19 + $0x1e0] sm:$0xff] }
0x3bfd   : > { %9371 = vmatprep.subr.bf16.mxu1 %v9370_v12 }
0x3cbe   : > { %v7960_v31 = vpop.f32.mrb[40].mxu1 }
0x3cbf   : > { %v7961_v30 = vpop.f32.mrb[41].mxu1 }
0x3cc0   : > { %v7962_v40 = vadd.f32 %v7961_v30, %v7960_v31  ;;  %v9372_v31 = vpack.c.bf16 %v6938_v24, %v6934_v14  ;;  %v6945_v30 = vld [vmem:[#allocation19 + $0x128] sm:$0xff] }
0x3cc2   : > { %v6871_v33 = vadd.f32 %v7962_v40, %v7536_v17  ;;  %v6941_v17 = vld [vmem:[#allocation19 + $0x108] sm:$0xff]  ;;  %v6943_v40 = vld [vmem:[#allocation19 + $0x118] sm:$0xff]  ;;  %9373 = vmatpush1.bf16.msra.mxu1 %v9372_v31  ;;  %v6972_v31 = vld [vmem:[#allocation21] sm:$0xf] }
0x3cc3   : > { %v7963_v42 = vpop.f32.mrb[42].mxu1 }
0x3cc4   : > { %v7964_v43 = vpop.f32.mrb[43].mxu1  ;;  %v6878_v54 = vadd.f32 %v6871_v33, %v6634_v7  ;;  %v6925_v7 = vld [vmem:[#allocation19 + $0x88] sm:$0xff]  ;;  %v9342_v33 = vpack.c.bf16 %v6945_v30, %v6941_v17  ;;  %v6947_v42 = vld [vmem:[#allocation19 + $0x138] sm:$0xff]  ;;  %v10313_v17 = vmov 1966171168  }
0x3cc5   : > { %v9334_v38 = vpack.c.bf16 %v6929_v49, %v6925_v7  ;;  %v6940_v43 = vld [vmem:[#allocation19 + $0x100] sm:$0xff]  ;;  %v9374_v55 = vpack.c.bf16 %v6947_v42, %v6943_v40  ;;  %v9382_v49 = vpack.c.bf16 %v6963_v37, %v6959_v57  ;;  %v7143_v30 = vunpack.c.l.s4 %v10313_v17 }
0x3cc6   : > { %6883 = vadd.xlane.f32.xlu0 %v6878_v54  ;;  %v6960_v7 = vld [vmem:[#allocation19 + $0x1a0] sm:$0xff]  ;;  %v6988_v40 = vsub.s32 3, %v10798_v61  ;;  %v6985_v42 = vrot.slane %v6972_v31, %v10832_v15 }
0x3cc7   : > { %9335 = vmatprep.subr.bf16.mxu0 %v9334_v38  ;;  %9375 = vmatprep.subr.bf16.mxu1 %v9374_v55  ;;  %v9352_v8 = vpack.c.bf16 %v6960_v7, %v6956_v13  ;;  %v6958_v38 = vld [vmem:[#allocation19 + $0x190] sm:$0xff] }
0x3cc8   : > { %9337 = vmatpush1.bf16.msra.mxu0 %v9336_v5  ;;  %9377 = vmatpush1.bf16.msra.mxu1 %v9376_v51  ;;  %v9384_v32 = vpack.c.bf16 %v6962_v4, %v6958_v38  ;;  %v6964_v5 = vld [vmem:[#allocation19 + $0x1c0] sm:$0xff]  ;;  %v6989_v55 = vrot.slane %v6972_v31, %v6988_v40 }
0x3cc9   : > { %9339 = vmatprep.subr.bf16.mxu0 %v9338_v22  ;;  %9379 = vmatprep.subr.bf16.mxu1 %v9378_v63 }
0x3ccc   : > { %9341 = vmatpush1.bf16.msra.mxu0 %v9340_v16  ;;  %9381 = vmatpush1.bf16.msra.mxu1 %v9380_v35  ;;  %v7538_v16 = vld [vmem:[#allocation18 + $0x3] ss:$0 sm:$0xff] }
0x3ccd   : > { %9343 = vmatprep.subr.bf16.mxu0 %v9342_v33  ;;  %9383 = vmatprep.subr.bf16.mxu1 %v9382_v49  ;;  %v6977_v33 = vrot.slane %v6972_v31, %v10801_v62 }
0x3cd0   : > { %9385 = vmatpush1.bf16.msra.mxu1 %v9384_v32 }
0x3d53   : > { %v6884_v34 = vpop.xlane.xlu0 %6883 }
0x3d54   : > { %v6885_v18 = vmul.f32 0.0078125, %v6884_v34  ;;  %v9386_v34 = vpack.c.bf16 %v6971_v0, %v6967_v26 }
0x3d56   : > { %v11496_v10 = vsub.f32 %v6878_v54, %v6885_v18  ;;  %v6944_v54 = vld [vmem:[#allocation19 + $0x120] sm:$0xff]  ;;  %v9356_v18 = vpack.c.bf16 %v6968_v28, %v6964_v5  ;;  %9387 = vmatprep.subr.bf16.mxu1 %v9386_v34 }
0x3d57   : > { %v9344_v45 = vpack.c.bf16 %v6944_v54, %v6940_v43  ;;  %v6981_v43 = vrot.slane %v6972_v31, %v10808_v2  ;;  %v7144_v54 = vunpack.c.0.s8 %v7143_v30 }
0x3d58   : > { %v6887_v3 = vmul.f32 %v11496_v10, %v11496_v10 }
0x3d59   : > { %9345 = vmatpush1.bf16.msra.mxu0 %v9344_v45  ;;  %v7147_v1 = vsub.s32 %v7144_v54, %v10798_v61 }
0x3d5a   : > { %6888 = vadd.xlane.f32.xlu1 %v6887_v3  ;;  %9347 = vmatprep.subr.bf16.mxu0 %v9346_v48  ;;  %v6966_v3 = vld [vmem:[#allocation19 + $0x1d0] sm:$0xff] }
0x3d5b   : > { %v9388_v27 = vpack.c.bf16 %v6970_v11, %v6966_v3 }
0x3d5d   : > { %9349 = vmatpush1.bf16.msra.mxu0 %v9348_v44  ;;  %9389 = vmatpush1.bf16.msra.mxu1 %v9388_v27 }
0x3d5e   : > { %9351 = vmatprep.subr.bf16.mxu0 %v9350_v36 }
0x3d61   : > { %9353 = vmatpush1.bf16.msra.mxu0 %v9352_v8 }
0x3d62   : > { %9355 = vmatprep.subr.bf16.mxu0 %v9354_v41 }
0x3d65   : > { %9357 = vmatpush1.bf16.msra.mxu0 %v9356_v18 }
0x3de7   : > { %v6889_v58 = vpop.xlane.xlu1 %6888 }
0x3de8   : > { %v6890_v22 = vmul.f32 0.0078125, %v6889_v58 }
0x3dea   : > { %v6891_v29 = vadd.f32 1e-05, %v6890_v22 }
0x3dec   : > { %9883 = vrsqrt.f32 %v6891_v29 }
0x3df6   : > { %v9884_v21 = vpop.eup %9883 }
0x3df7   : > { %v6893_v12 = vmul.f32 %v9884_v21, %v11496_v10 }
0x3df9   : > { %v6900_v14 = vmul.f32 %v7537_v20, %v6893_v12 }
0x3dfb   : > { %v6907_v24 = vadd.f32 %v7538_v16, %v6900_v14 }
0x3dfd   : > { %7059 = vmatmul.mubr.f32.vlgmr.msra.gmra.mrb[86].mxu0 %v6907_v24  ;;  %7130 = vmatmul.mubr.f32.vlgmr.msra.gmra.mrb[44].mxu1 %v6907_v24 }
0x3ed0   : > { %v7060_v10 = vpop.f32.mrb[86].mxu0  ;;  %v7131_v45 = vpop.f32.mrb[44].mxu1 }
0x3ed1   : > { %v7061_v46 = vadd.f32 %v7060_v10, %v6977_v33  ;;  %v7132_v47 = vadd.f32 %v7131_v45, %v6985_v42  ;;  %v7062_v51 = vpop.f32.mrb[87].mxu0  ;;  %v7133_v52 = vpop.f32.mrb[45].mxu1 }
0x3ed2   : > { %v7063_v53 = vadd.f32 %v7062_v51, %v6981_v43  ;;  %v7134_v48 = vadd.f32 %v7133_v52, %v6989_v55 }
0x3ed4   : > { %v7140_v59 = vcombine.low %v7061_v46, %v7063_v53  ;;  %v7141_v56 = vcombine.low %v7132_v47, %v7134_v48 }
0x3ed6   : > { %v7148_v62 = vrot.slane %v7140_v59, %v7147_v1  ;;  %v7155_v23 = vrot.slane %v7141_v56, %v7147_v1 }
0x3ed8   : > { %v7156_v15 = vcombine.low %v7148_v62, %v7155_v23 }
0x3eda   : > { %v7163_v2 = vrot.slane %v7156_v15, %v7147_v1 }
0x3edc   : > { %7169 = vst.msk [vmem:[%s835_s28] sm:$0xf] %vm7167_vm11, %v7163_v2 }
0x3edd PF: > { %s11610_s24 = sld [smem:[#allocation29_spill]] }
0x3ee3   : > { %s38_s2 = sadd.s32 1, %s11610_s24  }
0x3ee4   : > { %p35_p7 = scmp.ge.s32.totalorder %s38_s2, 4  }
0x3ee6   :  { %37 = sbr.rel (!%p35_p7) target bundleno = 21 (0x15), region = 223 }
0x3eed   :  { %7189 = vsyncpa [#allocation3], 1 }
0x3eee   :  { %7191 = vsyncpa [#allocation3 + $0x1], 1 }
0x3eef   :  { %7192 = vsyncpa [#allocation5], 1 }
0x3ef0   :  { %7193 = vsyncpa [#allocation8], 1 }
0x3ef1   :  { %7194 = vsyncpa [#allocation11], 1 }
0x3ef2   :  { %7195 = vsyncpa [#allocation14], 1 }
0x3ef3   :  { %7196 = vsyncpa [#allocation17], 1 }
0x3ef4   :  { %7197 = vsyncpa [#allocation20], 1 }

</bundles_post_ra>
